<compile_context>
chip_gen: v7x
topology: tpu7x:2x2x1
jax: 0.10.0
libtpu: 0.0.40
codegen_flags: <defaults>
</compile_context>

<pallas_src>
import math
from functools import partial

import numpy as np
import jax
import jax.numpy as jnp
from jax import lax
from jax.experimental import pallas as pl
from jax.experimental.pallas import tpu as pltpu

EPS = 1e-6        # FusedLayerNorm eps
NEG_INF = -1e30   # additive mask value (exp underflows to exactly 0)


# ----------------------------- in-kernel helpers -----------------------------

def _layernorm_f32(x, w, b):
    # x: (M, C) f32; w, b: (1, C) f32
    mu = jnp.mean(x, axis=-1, keepdims=True)
    xc = x - mu
    var = jnp.mean(xc * xc, axis=-1, keepdims=True)
    return xc * lax.rsqrt(var + EPS) * w + b


def _masked_mha(x, lnw, lnb, wqkv, wproj, bproj, bias, *, num_heads, n_videos, tn):
    """x: (M, C) f32 with M = n_videos * tn.  wqkv: (C, 3C) bf16 (attention
    scale pre-folded into the Q columns).  wproj: (C, C) bf16.  bias: (tn, tn)
    f32 additive mask (0 where allowed, -1e30 elsewhere), identical for every
    video.  Returns x + proj(attention(LayerNorm(x))) in f32.

    Per-head outputs are accumulated directly into the projection instead of
    being lane-concatenated (removes the lane-padded (tn, dh) temporaries)."""
    M, C = x.shape
    dh = C // num_heads

    xn = _layernorm_f32(x, lnw, lnb).astype(jnp.bfloat16)
    # one QKV matmul over all videos' rows; cast to bf16 ONCE (not per head)
    qkv = jnp.dot(xn, wqkv, preferred_element_type=jnp.float32).astype(jnp.bfloat16)
    q_all = qkv[:, 0:C]
    k_all = qkv[:, C:2 * C]
    v_all = qkv[:, 2 * C:3 * C]

    proj = jnp.zeros((M, C), jnp.float32)
    for h in range(num_heads):                    # short static loop (dh = 8)
        c0 = h * dh
        w_h = wproj[c0:c0 + dh, :]                # (dh, C) bf16
        pieces = []
        for v in range(n_videos):                 # score work is O(V), not O(V^2)
            r0 = v * tn
            q = q_all[r0:r0 + tn, c0:c0 + dh]     # (tn, dh) bf16
            k = k_all[r0:r0 + tn, c0:c0 + dh]
            vv = v_all[r0:r0 + tn, c0:c0 + dh]

            # s = q @ k^T (contract last dims; no explicit transpose op)
            s = lax.dot_general(q, k, (((1,), (1,)), ((), ())),
                                preferred_element_type=jnp.float32)   # (tn, tn)
            s = s + bias
            s = s - jnp.max(s, axis=-1, keepdims=True)
            p = jnp.exp(s)
            p = p * pl.reciprocal(jnp.sum(p, axis=-1, keepdims=True), approx=True)

            pieces.append(jnp.dot(p.astype(jnp.bfloat16), vv,
                                  preferred_element_type=jnp.float32))  # (tn, dh)
        pv = pieces[0] if n_videos == 1 else jnp.concatenate(pieces, axis=0)
        proj = proj + jnp.dot(pv.astype(jnp.bfloat16), w_h,
                              preferred_element_type=jnp.float32)       # (M, C)

    return x + proj + bproj


# ------------------------------ fused block kernel ----------------------------

def _block_kernel(x_ref, vecs_ref, b1_ref, wpack_ref, fc2_ref, o_ref,
                  *, num_heads, seq_len, tn, n_videos):
    C = x_ref.shape[-1]
    t = tn // seq_len

    x = x_ref[...]                                # (n_videos*tn, C) f32

    # packed (1, C) f32 vectors
    ln0w, ln0b, bp0 = vecs_ref[0:1, :], vecs_ref[1:2, :], vecs_ref[2:3, :]
    ln1w, ln1b, bp1 = vecs_ref[3:4, :], vecs_ref[4:5, :], vecs_ref[5:6, :]
    ln2w, ln2b, b2 = vecs_ref[6:7, :], vecs_ref[7:8, :], vecs_ref[8:9, :]

    # packed bf16 weights: [sp_qkv | sp_proj | tp_qkv | tp_proj | fc1]
    wqkv0 = wpack_ref[:, 0:3 * C]
    wp0 = wpack_ref[:, 3 * C:4 * C]
    wqkv1 = wpack_ref[:, 4 * C:7 * C]
    wp1 = wpack_ref[:, 7 * C:8 * C]
    w1 = wpack_ref[:, 8 * C:]

    # ---- masks generated in-kernel (zero HBM traffic, no O(tn^2) inputs) ----
    # frame id / position id built with iota + compare/mul only.
    row = lax.broadcasted_iota(jnp.int32, (tn, 1), 0)
    col = lax.broadcasted_iota(jnp.int32, (1, tn), 1)

    def frame_id(idx):                            # == idx // seq_len
        acc = jnp.zeros_like(idx)
        for f in range(1, t):
            acc = acc + (idx >= f * seq_len).astype(jnp.int32)
        return acc

    fr, fc = frame_id(row), frame_id(col)
    pr, pc = row - fr * seq_len, col - fc * seq_len
    sp_bias = jnp.where(fr == fc, 0.0, NEG_INF).astype(jnp.float32)  # same frame
    tp_bias = jnp.where(pr == pc, 0.0, NEG_INF).astype(jnp.float32)  # same position

    mha = partial(_masked_mha, num_heads=num_heads, n_videos=n_videos, tn=tn)
    # spatial attention: tokens attend within their frame
    x = mha(x, ln0w, ln0b, wqkv0, wp0, bp0, sp_bias)
    # temporal attention: tokens attend across frames at the same position
    x = mha(x, ln1w, ln1b, wqkv1, wp1, bp1, tp_bias)

    # token-wise MLP (exact erf-GELU for PyTorch parity), residual
    xn = _layernorm_f32(x, ln2w, ln2b).astype(jnp.bfloat16)
    h = jnp.dot(xn, w1, preferred_element_type=jnp.float32) + b1_ref[...]
    h = 0.5 * h * (1.0 + lax.erf(h * (1.0 / math.sqrt(2.0))))
    y = jnp.dot(h.astype(jnp.bfloat16), fc2_ref[...],
                preferred_element_type=jnp.float32) + b2
    o_ref[...] = (x + y).astype(o_ref.dtype)


# ------------------------------ wrapper / launch -------------------------------

def _videos_per_step(bs, tn, target_rows=256):
    """Largest divisor V of bs with V*tn <= target_rows (fills the 256-wide
    MXU rows), while keeping >= 2 grid steps whenever bs >= 2 so both v7x
    TensorCores get work via dimension_semantics=('parallel',)."""
    v = 1
    for cand in range(1, bs + 1):
        if bs % cand:
            continue
        if cand * tn > target_rows:
            continue
        if bs // cand < 2 and bs >= 2:
            continue
        v = cand
    return v


def spatio_temporal_block(x, p, *, num_heads):
    """x: (bs, t, seq_len, c) f32; p: prepared params (see prepare_params)."""
    bs, t, seq_len, c = x.shape
    tn = t * seq_len
    n_videos = _videos_per_step(bs, tn)
    steps = bs // n_videos
    rows = n_videos * tn

    xf = x.reshape(bs * tn, c)                    # t-major rows; free reshape

    kernel = partial(_block_kernel, num_heads=num_heads, seq_len=seq_len,
                     tn=tn, n_videos=n_videos)

    def bcast(arr):
        nd = arr.ndim
        return pl.BlockSpec(arr.shape, lambda i, _nd=nd: (0,) * _nd)

    out = pl.pallas_call(
        kernel,
        out_shape=jax.ShapeDtypeStruct((bs * tn, c), x.dtype),
        grid=(steps,),
        in_specs=[
            pl.BlockSpec((rows, c), lambda i: (i, 0)),   # x rows for V videos
            bcast(p["vecs"]),                            # packed f32 vectors
            bcast(p["fc1_b"]),                           # (1, hidden) f32
            bcast(p["wpack"]),                           # packed bf16 (C, .) weights
            bcast(p["fc2_w"]),                           # (hidden, C) bf16
        ],
        out_specs=pl.BlockSpec((rows, c), lambda i: (i, 0)),
        compiler_params=pltpu.CompilerParams(
            dimension_semantics=("parallel",)),
    )(xf, p["vecs"], p["fc1_b"], p["wpack"], p["fc2_w"])

    return out.reshape(bs, t, seq_len, c)         # already t-major: free


def prepare_params(raw, *, num_heads):
    """One-time host-side prep: transpose Linear weights to (in, out) layout,
    fold the attention scale into the Q columns of the QKV weights, cast MXU
    weight operands to bf16, and pack the small constants into few buffers."""
    dim = raw["sp_proj_w"].shape[0]
    scale = (dim // num_heads) ** (-0.5)
    colscale = jnp.concatenate([jnp.full((dim,), scale, jnp.float32),
                                jnp.ones((2 * dim,), jnp.float32)])

    def qkv_t(w):   # (3C, C) torch layout -> (C, 3C), scale folded, bf16
        return (w.T * colscale[None, :]).astype(jnp.bfloat16)

    def lin_t(w):   # (out, in) -> (in, out), bf16
        return w.T.astype(jnp.bfloat16)

    wpack = jnp.concatenate(
        [qkv_t(raw["sp_qkv_w"]), lin_t(raw["sp_proj_w"]),
         qkv_t(raw["tp_qkv_w"]), lin_t(raw["tp_proj_w"]),
         lin_t(raw["mlp_fc1_w"])], axis=1)                       # (C, 8C+hid) bf16

    vecs = jnp.concatenate(
        [raw["norm0_w"], raw["norm0_b"], raw["sp_proj_b"],
         raw["norm1_w"], raw["norm1_b"], raw["tp_proj_b"],
         raw["norm2_w"], raw["norm2_b"], raw["mlp_fc2_b"]],
        axis=0).astype(jnp.float32)                               # (9, C) f32

    return {
        "vecs": vecs,
        "fc1_b": raw["mlp_fc1_b"].astype(jnp.float32),            # (1, hid) f32
        "wpack": wpack,
        "fc2_w": lin_t(raw["mlp_fc2_w"]),                         # (hid, C) bf16
    }


# --------------------------- pure-JAX reference (check) -----------------------

def _ref_ln(x, w, b):
    mu = jnp.mean(x, axis=-1, keepdims=True)
    var = jnp.mean((x - mu) ** 2, axis=-1, keepdims=True)
    return (x - mu) / jnp.sqrt(var + EPS) * w + b


def _ref_attn(x, lnw, lnb, wqkv, wproj, bproj, num_heads, scale):
    B, N, C = x.shape
    dh = C // num_heads
    hp = jax.lax.Precision.HIGHEST
    xn = _ref_ln(x, lnw, lnb)
    qkv = jnp.einsum("bnc,oc->bno", xn, wqkv, precision=hp)
    qkv = qkv.reshape(B, N, 3, num_heads, dh).transpose(2, 0, 3, 1, 4)
    q, k, v = qkv[0] * scale, qkv[1], qkv[2]
    a = jnp.einsum("bhnd,bhmd->bhnm", q, k, precision=hp)
    a = jax.nn.softmax(a, axis=-1)
    o = jnp.einsum("bhnm,bhmd->bhnd", a, v, precision=hp)
    o = o.transpose(0, 2, 1, 3).reshape(B, N, C)
    o = jnp.einsum("bnc,oc->bno", o, wproj, precision=hp) + bproj
    return x + o


def _ref_block(x, p, num_heads):
    bs, t, seq_len, c = x.shape
    scale = (c // num_heads) ** (-0.5)
    hp = jax.lax.Precision.HIGHEST
    xs = x.reshape(bs * t, seq_len, c)
    xs = _ref_attn(xs, p["norm0_w"][0], p["norm0_b"][0], p["sp_qkv_w"],
                   p["sp_proj_w"], p["sp_proj_b"][0], num_heads, scale)
    xt = xs.reshape(bs, t, seq_len, c).transpose(0, 2, 1, 3).reshape(bs * seq_len, t, c)
    xt = _ref_attn(xt, p["norm1_w"][0], p["norm1_b"][0], p["tp_qkv_w"],
                   p["tp_proj_w"], p["tp_proj_b"][0], num_heads, scale)
    xn = _ref_ln(xt, p["norm2_w"][0], p["norm2_b"][0])
    h = jnp.einsum("bnc,hc->bnh", xn, p["mlp_fc1_w"], precision=hp) + p["mlp_fc1_b"][0]
    h = 0.5 * h * (1.0 + jax.lax.erf(h / math.sqrt(2.0)))
    y = jnp.einsum("bnh,ch->bnc", h, p["mlp_fc2_w"], precision=hp) + p["mlp_fc2_b"][0]
    xt = xt + y
    return xt.reshape(bs, seq_len, t, c).transpose(0, 2, 1, 3)


# ------------------------------- parameter init --------------------------------

def init_params(key, dim, mlp_ratio=4.0):
    hidden = int(dim * mlp_ratio)
    ks = jax.random.split(key, 16)

    def w(k, o, i):  # nn.Linear weight layout: (out_features, in_features)
        return (0.02 * jax.random.normal(k, (o, i))).astype(jnp.float32)

    def vec(k, n, base=0.0):
        return (base + 0.1 * jax.random.normal(k, (1, n))).astype(jnp.float32)

    return {
        "norm0_w": vec(ks[0], dim, 1.0), "norm0_b": vec(ks[1], dim),
        "sp_qkv_w": w(ks[2], 3 * dim, dim),
        "sp_proj_w": w(ks[3], dim, dim), "sp_proj_b": vec(ks[4], dim),
        "norm1_w": vec(ks[5], dim, 1.0), "norm1_b": vec(ks[6], dim),
        "tp_qkv_w": w(ks[7], 3 * dim, dim),
        "tp_proj_w": w(ks[8], dim, dim), "tp_proj_b": vec(ks[9], dim),
        "norm2_w": vec(ks[10], dim, 1.0), "norm2_b": vec(ks[11], dim),
        "mlp_fc1_w": w(ks[12], hidden, dim), "mlp_fc1_b": vec(ks[13], hidden),
        "mlp_fc2_w": w(ks[14], dim, hidden), "mlp_fc2_b": vec(ks[15], dim),
    }


# ------------------------------------ main -------------------------------------

if __name__ == "__main__":
    # bs=4 exercises the multi-video-per-step path (V=2 -> 128-row matmuls)
    # while still keeping 2 parallel grid steps.
    bs, t, seq_len, dim, num_heads = 4, 4, 16, 32, 4

    key = jax.random.PRNGKey(0)
    kx, kp = jax.random.split(key)
    x = jax.random.normal(kx, (bs, t, seq_len, dim), dtype=jnp.float32)
    raw_params = init_params(kp, dim)

    # one-time host-side weight prep (transpose + scale-fold + bf16 cast + pack)
    prepped = prepare_params(raw_params, num_heads=num_heads)

    fwd = jax.jit(partial(spatio_temporal_block, num_heads=num_heads))
    out = jax.block_until_ready(fwd(x, prepped))

    ref = jax.block_until_ready(_ref_block(x, raw_params, num_heads))
    assert out.shape == (bs, t, seq_len, dim)
    if not np.allclose(np.asarray(out), np.asarray(ref), atol=2e-2, rtol=2e-2):
        err = float(np.max(np.abs(np.asarray(out) - np.asarray(ref))))
        raise AssertionError(f"Pallas output diverges from JAX reference (max|err|={err})")

    print("KERNEL_OK")
</pallas_src>

<mosaic_0001>
module attributes {stable_mosaic.version = 11 : i64} {
  func.func @_block_kernel(%arg0: i32, %arg1: memref<128x32xf32, #tpu.memory_space<vmem>>, %arg2: memref<9x32xf32, #tpu.memory_space<vmem>>, %arg3: memref<1x128xf32, #tpu.memory_space<vmem>>, %arg4: memref<32x384xbf16, #tpu.memory_space<vmem>>, %arg5: memref<128x32xbf16, #tpu.memory_space<vmem>>, %arg6: memref<128x32xf32, #tpu.memory_space<vmem>>) attributes {dimension_semantics = [#tpu.dimension_semantics<parallel>], iteration_bounds = array<i64: 2>, scalar_prefetch = 0 : i64, scratch_operands = 0 : i64, tpu.core_type = #tpu.core_type<tc>, window_params = [{transform_indices = @transform_0, window_bounds = array<i64: 128, 32>}, {pipeline_mode = #tpu.pipeline_mode<synchronous>, transform_indices = @transform_1, window_bounds = array<i64: 9, 32>}, {pipeline_mode = #tpu.pipeline_mode<synchronous>, transform_indices = @transform_2, window_bounds = array<i64: 1, 128>}, {pipeline_mode = #tpu.pipeline_mode<synchronous>, transform_indices = @transform_3, window_bounds = array<i64: 32, 384>}, {pipeline_mode = #tpu.pipeline_mode<synchronous>, transform_indices = @transform_4, window_bounds = array<i64: 128, 32>}, {transform_indices = @transform_5, window_bounds = array<i64: 128, 32>}]} {
    %c0 = arith.constant 0 : index
    %c0_0 = arith.constant 0 : index
    %0 = vector.load %arg1[%c0, %c0_0] : memref<128x32xf32, #tpu.memory_space<vmem>>, vector<128x32xf32>
    %c0_1 = arith.constant 0 : index
    %c0_2 = arith.constant 0 : index
    %1 = vector.load %arg2[%c0_1, %c0_2] : memref<9x32xf32, #tpu.memory_space<vmem>>, vector<1x32xf32>
    %c1 = arith.constant 1 : index
    %c0_3 = arith.constant 0 : index
    %2 = vector.load %arg2[%c1, %c0_3] : memref<9x32xf32, #tpu.memory_space<vmem>>, vector<1x32xf32>
    %c2 = arith.constant 2 : index
    %c0_4 = arith.constant 0 : index
    %3 = vector.load %arg2[%c2, %c0_4] : memref<9x32xf32, #tpu.memory_space<vmem>>, vector<1x32xf32>
    %c3 = arith.constant 3 : index
    %c0_5 = arith.constant 0 : index
    %4 = vector.load %arg2[%c3, %c0_5] : memref<9x32xf32, #tpu.memory_space<vmem>>, vector<1x32xf32>
    %c4 = arith.constant 4 : index
    %c0_6 = arith.constant 0 : index
    %5 = vector.load %arg2[%c4, %c0_6] : memref<9x32xf32, #tpu.memory_space<vmem>>, vector<1x32xf32>
    %c5 = arith.constant 5 : index
    %c0_7 = arith.constant 0 : index
    %6 = vector.load %arg2[%c5, %c0_7] : memref<9x32xf32, #tpu.memory_space<vmem>>, vector<1x32xf32>
    %c6 = arith.constant 6 : index
    %c0_8 = arith.constant 0 : index
    %7 = vector.load %arg2[%c6, %c0_8] : memref<9x32xf32, #tpu.memory_space<vmem>>, vector<1x32xf32>
    %c7 = arith.constant 7 : index
    %c0_9 = arith.constant 0 : index
    %8 = vector.load %arg2[%c7, %c0_9] : memref<9x32xf32, #tpu.memory_space<vmem>>, vector<1x32xf32>
    %c8 = arith.constant 8 : index
    %c0_10 = arith.constant 0 : index
    %9 = vector.load %arg2[%c8, %c0_10] : memref<9x32xf32, #tpu.memory_space<vmem>>, vector<1x32xf32>
    %c0_11 = arith.constant 0 : index
    %c0_12 = arith.constant 0 : index
    %10 = vector.load %arg4[%c0_11, %c0_12] : memref<32x384xbf16, #tpu.memory_space<vmem>>, vector<32x96xbf16>
    %c0_13 = arith.constant 0 : index
    %c96 = arith.constant 96 : index
    %11 = vector.load %arg4[%c0_13, %c96] : memref<32x384xbf16, #tpu.memory_space<vmem>>, vector<32x32xbf16>
    %c0_14 = arith.constant 0 : index
    %c128 = arith.constant 128 : index
    %12 = vector.load %arg4[%c0_14, %c128] : memref<32x384xbf16, #tpu.memory_space<vmem>>, vector<32x96xbf16>
    %c0_15 = arith.constant 0 : index
    %c224 = arith.constant 224 : index
    %13 = vector.load %arg4[%c0_15, %c224] : memref<32x384xbf16, #tpu.memory_space<vmem>>, vector<32x32xbf16>
    %c0_16 = arith.constant 0 : index
    %c256 = arith.constant 256 : index
    %14 = vector.load %arg4[%c0_16, %c256] : memref<32x384xbf16, #tpu.memory_space<vmem>>, vector<32x128xbf16>
    %15 = tpu.iota {dimensions = array<i32: 0>} : vector<64x1xi32>
    %16 = tpu.iota {dimensions = array<i32: 1>} : vector<1x64xi32>
    %c0_i32 = arith.constant 0 : i32
    %17 = vector.broadcast %c0_i32 : i32 to vector<64x1xi32>
    %c16_i32 = arith.constant 16 : i32
    %18 = vector.broadcast %c16_i32 : i32 to vector<64x1xi32>
    %19 = arith.cmpi sge, %15, %18 : vector<64x1xi32>
    %20 = arith.extui %19 : vector<64x1xi1> to vector<64x1xi32>
    %21 = arith.addi %17, %20 : vector<64x1xi32>
    %c32_i32 = arith.constant 32 : i32
    %22 = vector.broadcast %c32_i32 : i32 to vector<64x1xi32>
    %23 = arith.cmpi sge, %15, %22 : vector<64x1xi32>
    %24 = arith.extui %23 : vector<64x1xi1> to vector<64x1xi32>
    %25 = arith.addi %21, %24 : vector<64x1xi32>
    %c48_i32 = arith.constant 48 : i32
    %26 = vector.broadcast %c48_i32 : i32 to vector<64x1xi32>
    %27 = arith.cmpi sge, %15, %26 : vector<64x1xi32>
    %28 = arith.extui %27 : vector<64x1xi1> to vector<64x1xi32>
    %29 = arith.addi %25, %28 : vector<64x1xi32>
    %c0_i32_17 = arith.constant 0 : i32
    %30 = vector.broadcast %c0_i32_17 : i32 to vector<1x64xi32>
    %c16_i32_18 = arith.constant 16 : i32
    %31 = vector.broadcast %c16_i32_18 : i32 to vector<1x64xi32>
    %32 = arith.cmpi sge, %16, %31 : vector<1x64xi32>
    %33 = arith.extui %32 : vector<1x64xi1> to vector<1x64xi32>
    %34 = arith.addi %30, %33 : vector<1x64xi32>
    %c32_i32_19 = arith.constant 32 : i32
    %35 = vector.broadcast %c32_i32_19 : i32 to vector<1x64xi32>
    %36 = arith.cmpi sge, %16, %35 : vector<1x64xi32>
    %37 = arith.extui %36 : vector<1x64xi1> to vector<1x64xi32>
    %38 = arith.addi %34, %37 : vector<1x64xi32>
    %c48_i32_20 = arith.constant 48 : i32
    %39 = vector.broadcast %c48_i32_20 : i32 to vector<1x64xi32>
    %40 = arith.cmpi sge, %16, %39 : vector<1x64xi32>
    %41 = arith.extui %40 : vector<1x64xi1> to vector<1x64xi32>
    %42 = arith.addi %38, %41 : vector<1x64xi32>
    %c16_i32_21 = arith.constant 16 : i32
    %43 = vector.broadcast %c16_i32_21 : i32 to vector<64x1xi32>
    %44 = arith.muli %29, %43 : vector<64x1xi32>
    %45 = arith.subi %15, %44 : vector<64x1xi32>
    %c16_i32_22 = arith.constant 16 : i32
    %46 = vector.broadcast %c16_i32_22 : i32 to vector<1x64xi32>
    %47 = arith.muli %42, %46 : vector<1x64xi32>
    %48 = arith.subi %16, %47 : vector<1x64xi32>
    %49 = vector.broadcast %29 : vector<64x1xi32> to vector<64x64xi32>
    %50 = vector.broadcast %42 : vector<1x64xi32> to vector<64x64xi32>
    %51 = arith.cmpi eq, %49, %50 : vector<64x64xi32>
    %cst = arith.constant 0.000000e+00 : f32
    %cst_23 = arith.constant -1.000000e+30 : f32
    %52 = vector.broadcast %cst : f32 to vector<64x64xf32>
    %53 = vector.broadcast %cst_23 : f32 to vector<64x64xf32>
    %54 = arith.select %51, %52, %53 : vector<64x64xi1>, vector<64x64xf32>
    %55 = vector.broadcast %45 : vector<64x1xi32> to vector<64x64xi32>
    %56 = vector.broadcast %48 : vector<1x64xi32> to vector<64x64xi32>
    %57 = arith.cmpi eq, %55, %56 : vector<64x64xi32>
    %cst_24 = arith.constant 0.000000e+00 : f32
    %cst_25 = arith.constant -1.000000e+30 : f32
    %58 = vector.broadcast %cst_24 : f32 to vector<64x64xf32>
    %59 = vector.broadcast %cst_25 : f32 to vector<64x64xf32>
    %60 = arith.select %57, %58, %59 : vector<64x64xi1>, vector<64x64xf32>
    %cst_26 = arith.constant dense<0.000000e+00> : vector<128xf32>
    %61 = vector.multi_reduction <add>, %0, %cst_26 [1] : vector<128x32xf32> to vector<128xf32>
    %62 = vector.shape_cast %61 : vector<128xf32> to vector<128x1xf32>
    %cst_27 = arith.constant 3.200000e+01 : f32
    %63 = vector.broadcast %cst_27 : f32 to vector<128x1xf32>
    %64 = arith.divf %62, %63 : vector<128x1xf32>
    %65 = vector.broadcast %64 : vector<128x1xf32> to vector<128x32xf32>
    %66 = arith.subf %0, %65 : vector<128x32xf32>
    %67 = arith.mulf %66, %66 : vector<128x32xf32>
    %cst_28 = arith.constant dense<0.000000e+00> : vector<128xf32>
    %68 = vector.multi_reduction <add>, %67, %cst_28 [1] : vector<128x32xf32> to vector<128xf32>
    %69 = vector.shape_cast %68 : vector<128xf32> to vector<128x1xf32>
    %cst_29 = arith.constant 3.200000e+01 : f32
    %70 = vector.broadcast %cst_29 : f32 to vector<128x1xf32>
    %71 = arith.divf %69, %70 : vector<128x1xf32>
    %cst_30 = arith.constant 9.99999997E-7 : f32
    %72 = vector.broadcast %cst_30 : f32 to vector<128x1xf32>
    %73 = arith.addf %71, %72 : vector<128x1xf32>
    %74 = math.rsqrt %73 : vector<128x1xf32>
    %75 = vector.broadcast %74 : vector<128x1xf32> to vector<128x32xf32>
    %76 = arith.mulf %66, %75 : vector<128x32xf32>
    %77 = vector.broadcast %1 : vector<1x32xf32> to vector<128x32xf32>
    %78 = arith.mulf %76, %77 : vector<128x32xf32>
    %79 = vector.broadcast %2 : vector<1x32xf32> to vector<128x32xf32>
    %80 = arith.addf %78, %79 : vector<128x32xf32>
    %81 = arith.truncf %80 : vector<128x32xf32> to vector<128x32xbf16>
    %cst_31 = arith.constant dense<0.000000e+00> : vector<128x96xf32>
    %82 = tpu.matmul %81, %10, %cst_31 {dimension_numbers = #tpu.dot_dimension_numbers<[1], [0], [0], [1], [0, 0, 1, 1], [], []>} : vector<128x32xbf16>, vector<32x96xbf16>, vector<128x96xf32> -> vector<128x96xf32>
    %83 = arith.truncf %82 : vector<128x96xf32> to vector<128x96xbf16>
    %84 = vector.extract_strided_slice %83 {offsets = [0, 0], sizes = [128, 32], strides = [1, 1]} : vector<128x96xbf16> to vector<128x32xbf16>
    %85 = vector.extract_strided_slice %83 {offsets = [0, 32], sizes = [128, 32], strides = [1, 1]} : vector<128x96xbf16> to vector<128x32xbf16>
    %86 = vector.extract_strided_slice %83 {offsets = [0, 64], sizes = [128, 32], strides = [1, 1]} : vector<128x96xbf16> to vector<128x32xbf16>
    %cst_32 = arith.constant 0.000000e+00 : f32
    %87 = vector.broadcast %cst_32 : f32 to vector<128x32xf32>
    %88 = vector.extract_strided_slice %11 {offsets = [0, 0], sizes = [8, 32], strides = [1, 1]} : vector<32x32xbf16> to vector<8x32xbf16>
    %89 = vector.extract_strided_slice %84 {offsets = [0, 0], sizes = [64, 8], strides = [1, 1]} : vector<128x32xbf16> to vector<64x8xbf16>
    %90 = vector.extract_strided_slice %85 {offsets = [0, 0], sizes = [64, 8], strides = [1, 1]} : vector<128x32xbf16> to vector<64x8xbf16>
    %91 = vector.extract_strided_slice %86 {offsets = [0, 0], sizes = [64, 8], strides = [1, 1]} : vector<128x32xbf16> to vector<64x8xbf16>
    %cst_33 = arith.constant dense<0.000000e+00> : vector<64x64xf32>
    %92 = tpu.matmul %89, %90, %cst_33 {dimension_numbers = #tpu.dot_dimension_numbers<[1], [1], [0], [0], [0, 0, 1, 0], [], []>} : vector<64x8xbf16>, vector<64x8xbf16>, vector<64x64xf32> -> vector<64x64xf32>
    %93 = arith.addf %92, %54 : vector<64x64xf32>
    %cst_34 = arith.constant dense<0xFF800000> : vector<64xf32>
    %94 = vector.multi_reduction <maximumf>, %93, %cst_34 [1] : vector<64x64xf32> to vector<64xf32>
    %95 = vector.shape_cast %94 : vector<64xf32> to vector<64x1xf32>
    %96 = vector.broadcast %95 : vector<64x1xf32> to vector<64x64xf32>
    %97 = arith.subf %93, %96 : vector<64x64xf32>
    %98 = math.exp %97 : vector<64x64xf32>
    %cst_35 = arith.constant dense<0.000000e+00> : vector<64xf32>
    %99 = vector.multi_reduction <add>, %98, %cst_35 [1] : vector<64x64xf32> to vector<64xf32>
    %100 = vector.shape_cast %99 : vector<64xf32> to vector<64x1xf32>
    %101 = tpu.reciprocal %100 {approx = true} : vector<64x1xf32> -> vector<64x1xf32>
    %102 = vector.broadcast %101 : vector<64x1xf32> to vector<64x64xf32>
    %103 = arith.mulf %98, %102 : vector<64x64xf32>
    %104 = arith.truncf %103 : vector<64x64xf32> to vector<64x64xbf16>
    %cst_36 = arith.constant dense<0.000000e+00> : vector<64x8xf32>
    %105 = tpu.matmul %104, %91, %cst_36 {dimension_numbers = #tpu.dot_dimension_numbers<[1], [0], [0], [1], [0, 0, 1, 1], [], []>} : vector<64x64xbf16>, vector<64x8xbf16>, vector<64x8xf32> -> vector<64x8xf32>
    %106 = vector.extract_strided_slice %84 {offsets = [64, 0], sizes = [64, 8], strides = [1, 1]} : vector<128x32xbf16> to vector<64x8xbf16>
    %107 = vector.extract_strided_slice %85 {offsets = [64, 0], sizes = [64, 8], strides = [1, 1]} : vector<128x32xbf16> to vector<64x8xbf16>
    %108 = vector.extract_strided_slice %86 {offsets = [64, 0], sizes = [64, 8], strides = [1, 1]} : vector<128x32xbf16> to vector<64x8xbf16>
    %cst_37 = arith.constant dense<0.000000e+00> : vector<64x64xf32>
    %109 = tpu.matmul %106, %107, %cst_37 {dimension_numbers = #tpu.dot_dimension_numbers<[1], [1], [0], [0], [0, 0, 1, 0], [], []>} : vector<64x8xbf16>, vector<64x8xbf16>, vector<64x64xf32> -> vector<64x64xf32>
    %110 = arith.addf %109, %54 : vector<64x64xf32>
    %cst_38 = arith.constant dense<0xFF800000> : vector<64xf32>
    %111 = vector.multi_reduction <maximumf>, %110, %cst_38 [1] : vector<64x64xf32> to vector<64xf32>
    %112 = vector.shape_cast %111 : vector<64xf32> to vector<64x1xf32>
    %113 = vector.broadcast %112 : vector<64x1xf32> to vector<64x64xf32>
    %114 = arith.subf %110, %113 : vector<64x64xf32>
    %115 = math.exp %114 : vector<64x64xf32>
    %cst_39 = arith.constant dense<0.000000e+00> : vector<64xf32>
    %116 = vector.multi_reduction <add>, %115, %cst_39 [1] : vector<64x64xf32> to vector<64xf32>
    %117 = vector.shape_cast %116 : vector<64xf32> to vector<64x1xf32>
    %118 = tpu.reciprocal %117 {approx = true} : vector<64x1xf32> -> vector<64x1xf32>
    %119 = vector.broadcast %118 : vector<64x1xf32> to vector<64x64xf32>
    %120 = arith.mulf %115, %119 : vector<64x64xf32>
    %121 = arith.truncf %120 : vector<64x64xf32> to vector<64x64xbf16>
    %cst_40 = arith.constant dense<0.000000e+00> : vector<64x8xf32>
    %122 = tpu.matmul %121, %108, %cst_40 {dimension_numbers = #tpu.dot_dimension_numbers<[1], [0], [0], [1], [0, 0, 1, 1], [], []>} : vector<64x64xbf16>, vector<64x8xbf16>, vector<64x8xf32> -> vector<64x8xf32>
    %123 = tpu.concatenate %105, %122 in 0 : vector<64x8xf32>, vector<64x8xf32> -> vector<128x8xf32>
    %124 = arith.truncf %123 : vector<128x8xf32> to vector<128x8xbf16>
    %cst_41 = arith.constant dense<0.000000e+00> : vector<128x32xf32>
    %125 = tpu.matmul %124, %88, %cst_41 {dimension_numbers = #tpu.dot_dimension_numbers<[1], [0], [0], [1], [0, 0, 1, 1], [], []>} : vector<128x8xbf16>, vector<8x32xbf16>, vector<128x32xf32> -> vector<128x32xf32>
    %126 = arith.addf %87, %125 : vector<128x32xf32>
    %127 = vector.extract_strided_slice %11 {offsets = [8, 0], sizes = [8, 32], strides = [1, 1]} : vector<32x32xbf16> to vector<8x32xbf16>
    %128 = vector.extract_strided_slice %84 {offsets = [0, 8], sizes = [64, 8], strides = [1, 1]} : vector<128x32xbf16> to vector<64x8xbf16>
    %129 = vector.extract_strided_slice %85 {offsets = [0, 8], sizes = [64, 8], strides = [1, 1]} : vector<128x32xbf16> to vector<64x8xbf16>
    %130 = vector.extract_strided_slice %86 {offsets = [0, 8], sizes = [64, 8], strides = [1, 1]} : vector<128x32xbf16> to vector<64x8xbf16>
    %cst_42 = arith.constant dense<0.000000e+00> : vector<64x64xf32>
    %131 = tpu.matmul %128, %129, %cst_42 {dimension_numbers = #tpu.dot_dimension_numbers<[1], [1], [0], [0], [0, 0, 1, 0], [], []>} : vector<64x8xbf16>, vector<64x8xbf16>, vector<64x64xf32> -> vector<64x64xf32>
    %132 = arith.addf %131, %54 : vector<64x64xf32>
    %cst_43 = arith.constant dense<0xFF800000> : vector<64xf32>
    %133 = vector.multi_reduction <maximumf>, %132, %cst_43 [1] : vector<64x64xf32> to vector<64xf32>
    %134 = vector.shape_cast %133 : vector<64xf32> to vector<64x1xf32>
    %135 = vector.broadcast %134 : vector<64x1xf32> to vector<64x64xf32>
    %136 = arith.subf %132, %135 : vector<64x64xf32>
    %137 = math.exp %136 : vector<64x64xf32>
    %cst_44 = arith.constant dense<0.000000e+00> : vector<64xf32>
    %138 = vector.multi_reduction <add>, %137, %cst_44 [1] : vector<64x64xf32> to vector<64xf32>
    %139 = vector.shape_cast %138 : vector<64xf32> to vector<64x1xf32>
    %140 = tpu.reciprocal %139 {approx = true} : vector<64x1xf32> -> vector<64x1xf32>
    %141 = vector.broadcast %140 : vector<64x1xf32> to vector<64x64xf32>
    %142 = arith.mulf %137, %141 : vector<64x64xf32>
    %143 = arith.truncf %142 : vector<64x64xf32> to vector<64x64xbf16>
    %cst_45 = arith.constant dense<0.000000e+00> : vector<64x8xf32>
    %144 = tpu.matmul %143, %130, %cst_45 {dimension_numbers = #tpu.dot_dimension_numbers<[1], [0], [0], [1], [0, 0, 1, 1], [], []>} : vector<64x64xbf16>, vector<64x8xbf16>, vector<64x8xf32> -> vector<64x8xf32>
    %145 = vector.extract_strided_slice %84 {offsets = [64, 8], sizes = [64, 8], strides = [1, 1]} : vector<128x32xbf16> to vector<64x8xbf16>
    %146 = vector.extract_strided_slice %85 {offsets = [64, 8], sizes = [64, 8], strides = [1, 1]} : vector<128x32xbf16> to vector<64x8xbf16>
    %147 = vector.extract_strided_slice %86 {offsets = [64, 8], sizes = [64, 8], strides = [1, 1]} : vector<128x32xbf16> to vector<64x8xbf16>
    %cst_46 = arith.constant dense<0.000000e+00> : vector<64x64xf32>
    %148 = tpu.matmul %145, %146, %cst_46 {dimension_numbers = #tpu.dot_dimension_numbers<[1], [1], [0], [0], [0, 0, 1, 0], [], []>} : vector<64x8xbf16>, vector<64x8xbf16>, vector<64x64xf32> -> vector<64x64xf32>
    %149 = arith.addf %148, %54 : vector<64x64xf32>
    %cst_47 = arith.constant dense<0xFF800000> : vector<64xf32>
    %150 = vector.multi_reduction <maximumf>, %149, %cst_47 [1] : vector<64x64xf32> to vector<64xf32>
    %151 = vector.shape_cast %150 : vector<64xf32> to vector<64x1xf32>
    %152 = vector.broadcast %151 : vector<64x1xf32> to vector<64x64xf32>
    %153 = arith.subf %149, %152 : vector<64x64xf32>
    %154 = math.exp %153 : vector<64x64xf32>
    %cst_48 = arith.constant dense<0.000000e+00> : vector<64xf32>
    %155 = vector.multi_reduction <add>, %154, %cst_48 [1] : vector<64x64xf32> to vector<64xf32>
    %156 = vector.shape_cast %155 : vector<64xf32> to vector<64x1xf32>
    %157 = tpu.reciprocal %156 {approx = true} : vector<64x1xf32> -> vector<64x1xf32>
    %158 = vector.broadcast %157 : vector<64x1xf32> to vector<64x64xf32>
    %159 = arith.mulf %154, %158 : vector<64x64xf32>
    %160 = arith.truncf %159 : vector<64x64xf32> to vector<64x64xbf16>
    %cst_49 = arith.constant dense<0.000000e+00> : vector<64x8xf32>
    %161 = tpu.matmul %160, %147, %cst_49 {dimension_numbers = #tpu.dot_dimension_numbers<[1], [0], [0], [1], [0, 0, 1, 1], [], []>} : vector<64x64xbf16>, vector<64x8xbf16>, vector<64x8xf32> -> vector<64x8xf32>
    %162 = tpu.concatenate %144, %161 in 0 : vector<64x8xf32>, vector<64x8xf32> -> vector<128x8xf32>
    %163 = arith.truncf %162 : vector<128x8xf32> to vector<128x8xbf16>
    %cst_50 = arith.constant dense<0.000000e+00> : vector<128x32xf32>
    %164 = tpu.matmul %163, %127, %cst_50 {dimension_numbers = #tpu.dot_dimension_numbers<[1], [0], [0], [1], [0, 0, 1, 1], [], []>} : vector<128x8xbf16>, vector<8x32xbf16>, vector<128x32xf32> -> vector<128x32xf32>
    %165 = arith.addf %126, %164 : vector<128x32xf32>
    %166 = vector.extract_strided_slice %11 {offsets = [16, 0], sizes = [8, 32], strides = [1, 1]} : vector<32x32xbf16> to vector<8x32xbf16>
    %167 = vector.extract_strided_slice %84 {offsets = [0, 16], sizes = [64, 8], strides = [1, 1]} : vector<128x32xbf16> to vector<64x8xbf16>
    %168 = vector.extract_strided_slice %85 {offsets = [0, 16], sizes = [64, 8], strides = [1, 1]} : vector<128x32xbf16> to vector<64x8xbf16>
    %169 = vector.extract_strided_slice %86 {offsets = [0, 16], sizes = [64, 8], strides = [1, 1]} : vector<128x32xbf16> to vector<64x8xbf16>
    %cst_51 = arith.constant dense<0.000000e+00> : vector<64x64xf32>
    %170 = tpu.matmul %167, %168, %cst_51 {dimension_numbers = #tpu.dot_dimension_numbers<[1], [1], [0], [0], [0, 0, 1, 0], [], []>} : vector<64x8xbf16>, vector<64x8xbf16>, vector<64x64xf32> -> vector<64x64xf32>
    %171 = arith.addf %170, %54 : vector<64x64xf32>
    %cst_52 = arith.constant dense<0xFF800000> : vector<64xf32>
    %172 = vector.multi_reduction <maximumf>, %171, %cst_52 [1] : vector<64x64xf32> to vector<64xf32>
    %173 = vector.shape_cast %172 : vector<64xf32> to vector<64x1xf32>
    %174 = vector.broadcast %173 : vector<64x1xf32> to vector<64x64xf32>
    %175 = arith.subf %171, %174 : vector<64x64xf32>
    %176 = math.exp %175 : vector<64x64xf32>
    %cst_53 = arith.constant dense<0.000000e+00> : vector<64xf32>
    %177 = vector.multi_reduction <add>, %176, %cst_53 [1] : vector<64x64xf32> to vector<64xf32>
    %178 = vector.shape_cast %177 : vector<64xf32> to vector<64x1xf32>
    %179 = tpu.reciprocal %178 {approx = true} : vector<64x1xf32> -> vector<64x1xf32>
    %180 = vector.broadcast %179 : vector<64x1xf32> to vector<64x64xf32>
    %181 = arith.mulf %176, %180 : vector<64x64xf32>
    %182 = arith.truncf %181 : vector<64x64xf32> to vector<64x64xbf16>
    %cst_54 = arith.constant dense<0.000000e+00> : vector<64x8xf32>
    %183 = tpu.matmul %182, %169, %cst_54 {dimension_numbers = #tpu.dot_dimension_numbers<[1], [0], [0], [1], [0, 0, 1, 1], [], []>} : vector<64x64xbf16>, vector<64x8xbf16>, vector<64x8xf32> -> vector<64x8xf32>
    %184 = vector.extract_strided_slice %84 {offsets = [64, 16], sizes = [64, 8], strides = [1, 1]} : vector<128x32xbf16> to vector<64x8xbf16>
    %185 = vector.extract_strided_slice %85 {offsets = [64, 16], sizes = [64, 8], strides = [1, 1]} : vector<128x32xbf16> to vector<64x8xbf16>
    %186 = vector.extract_strided_slice %86 {offsets = [64, 16], sizes = [64, 8], strides = [1, 1]} : vector<128x32xbf16> to vector<64x8xbf16>
    %cst_55 = arith.constant dense<0.000000e+00> : vector<64x64xf32>
    %187 = tpu.matmul %184, %185, %cst_55 {dimension_numbers = #tpu.dot_dimension_numbers<[1], [1], [0], [0], [0, 0, 1, 0], [], []>} : vector<64x8xbf16>, vector<64x8xbf16>, vector<64x64xf32> -> vector<64x64xf32>
    %188 = arith.addf %187, %54 : vector<64x64xf32>
    %cst_56 = arith.constant dense<0xFF800000> : vector<64xf32>
    %189 = vector.multi_reduction <maximumf>, %188, %cst_56 [1] : vector<64x64xf32> to vector<64xf32>
    %190 = vector.shape_cast %189 : vector<64xf32> to vector<64x1xf32>
    %191 = vector.broadcast %190 : vector<64x1xf32> to vector<64x64xf32>
    %192 = arith.subf %188, %191 : vector<64x64xf32>
    %193 = math.exp %192 : vector<64x64xf32>
    %cst_57 = arith.constant dense<0.000000e+00> : vector<64xf32>
    %194 = vector.multi_reduction <add>, %193, %cst_57 [1] : vector<64x64xf32> to vector<64xf32>
    %195 = vector.shape_cast %194 : vector<64xf32> to vector<64x1xf32>
    %196 = tpu.reciprocal %195 {approx = true} : vector<64x1xf32> -> vector<64x1xf32>
    %197 = vector.broadcast %196 : vector<64x1xf32> to vector<64x64xf32>
    %198 = arith.mulf %193, %197 : vector<64x64xf32>
    %199 = arith.truncf %198 : vector<64x64xf32> to vector<64x64xbf16>
    %cst_58 = arith.constant dense<0.000000e+00> : vector<64x8xf32>
    %200 = tpu.matmul %199, %186, %cst_58 {dimension_numbers = #tpu.dot_dimension_numbers<[1], [0], [0], [1], [0, 0, 1, 1], [], []>} : vector<64x64xbf16>, vector<64x8xbf16>, vector<64x8xf32> -> vector<64x8xf32>
    %201 = tpu.concatenate %183, %200 in 0 : vector<64x8xf32>, vector<64x8xf32> -> vector<128x8xf32>
    %202 = arith.truncf %201 : vector<128x8xf32> to vector<128x8xbf16>
    %cst_59 = arith.constant dense<0.000000e+00> : vector<128x32xf32>
    %203 = tpu.matmul %202, %166, %cst_59 {dimension_numbers = #tpu.dot_dimension_numbers<[1], [0], [0], [1], [0, 0, 1, 1], [], []>} : vector<128x8xbf16>, vector<8x32xbf16>, vector<128x32xf32> -> vector<128x32xf32>
    %204 = arith.addf %165, %203 : vector<128x32xf32>
    %205 = vector.extract_strided_slice %11 {offsets = [24, 0], sizes = [8, 32], strides = [1, 1]} : vector<32x32xbf16> to vector<8x32xbf16>
    %206 = vector.extract_strided_slice %84 {offsets = [0, 24], sizes = [64, 8], strides = [1, 1]} : vector<128x32xbf16> to vector<64x8xbf16>
    %207 = vector.extract_strided_slice %85 {offsets = [0, 24], sizes = [64, 8], strides = [1, 1]} : vector<128x32xbf16> to vector<64x8xbf16>
    %208 = vector.extract_strided_slice %86 {offsets = [0, 24], sizes = [64, 8], strides = [1, 1]} : vector<128x32xbf16> to vector<64x8xbf16>
    %cst_60 = arith.constant dense<0.000000e+00> : vector<64x64xf32>
    %209 = tpu.matmul %206, %207, %cst_60 {dimension_numbers = #tpu.dot_dimension_numbers<[1], [1], [0], [0], [0, 0, 1, 0], [], []>} : vector<64x8xbf16>, vector<64x8xbf16>, vector<64x64xf32> -> vector<64x64xf32>
    %210 = arith.addf %209, %54 : vector<64x64xf32>
    %cst_61 = arith.constant dense<0xFF800000> : vector<64xf32>
    %211 = vector.multi_reduction <maximumf>, %210, %cst_61 [1] : vector<64x64xf32> to vector<64xf32>
    %212 = vector.shape_cast %211 : vector<64xf32> to vector<64x1xf32>
    %213 = vector.broadcast %212 : vector<64x1xf32> to vector<64x64xf32>
    %214 = arith.subf %210, %213 : vector<64x64xf32>
    %215 = math.exp %214 : vector<64x64xf32>
    %cst_62 = arith.constant dense<0.000000e+00> : vector<64xf32>
    %216 = vector.multi_reduction <add>, %215, %cst_62 [1] : vector<64x64xf32> to vector<64xf32>
    %217 = vector.shape_cast %216 : vector<64xf32> to vector<64x1xf32>
    %218 = tpu.reciprocal %217 {approx = true} : vector<64x1xf32> -> vector<64x1xf32>
    %219 = vector.broadcast %218 : vector<64x1xf32> to vector<64x64xf32>
    %220 = arith.mulf %215, %219 : vector<64x64xf32>
    %221 = arith.truncf %220 : vector<64x64xf32> to vector<64x64xbf16>
    %cst_63 = arith.constant dense<0.000000e+00> : vector<64x8xf32>
    %222 = tpu.matmul %221, %208, %cst_63 {dimension_numbers = #tpu.dot_dimension_numbers<[1], [0], [0], [1], [0, 0, 1, 1], [], []>} : vector<64x64xbf16>, vector<64x8xbf16>, vector<64x8xf32> -> vector<64x8xf32>
    %223 = vector.extract_strided_slice %84 {offsets = [64, 24], sizes = [64, 8], strides = [1, 1]} : vector<128x32xbf16> to vector<64x8xbf16>
    %224 = vector.extract_strided_slice %85 {offsets = [64, 24], sizes = [64, 8], strides = [1, 1]} : vector<128x32xbf16> to vector<64x8xbf16>
    %225 = vector.extract_strided_slice %86 {offsets = [64, 24], sizes = [64, 8], strides = [1, 1]} : vector<128x32xbf16> to vector<64x8xbf16>
    %cst_64 = arith.constant dense<0.000000e+00> : vector<64x64xf32>
    %226 = tpu.matmul %223, %224, %cst_64 {dimension_numbers = #tpu.dot_dimension_numbers<[1], [1], [0], [0], [0, 0, 1, 0], [], []>} : vector<64x8xbf16>, vector<64x8xbf16>, vector<64x64xf32> -> vector<64x64xf32>
    %227 = arith.addf %226, %54 : vector<64x64xf32>
    %cst_65 = arith.constant dense<0xFF800000> : vector<64xf32>
    %228 = vector.multi_reduction <maximumf>, %227, %cst_65 [1] : vector<64x64xf32> to vector<64xf32>
    %229 = vector.shape_cast %228 : vector<64xf32> to vector<64x1xf32>
    %230 = vector.broadcast %229 : vector<64x1xf32> to vector<64x64xf32>
    %231 = arith.subf %227, %230 : vector<64x64xf32>
    %232 = math.exp %231 : vector<64x64xf32>
    %cst_66 = arith.constant dense<0.000000e+00> : vector<64xf32>
    %233 = vector.multi_reduction <add>, %232, %cst_66 [1] : vector<64x64xf32> to vector<64xf32>
    %234 = vector.shape_cast %233 : vector<64xf32> to vector<64x1xf32>
    %235 = tpu.reciprocal %234 {approx = true} : vector<64x1xf32> -> vector<64x1xf32>
    %236 = vector.broadcast %235 : vector<64x1xf32> to vector<64x64xf32>
    %237 = arith.mulf %232, %236 : vector<64x64xf32>
    %238 = arith.truncf %237 : vector<64x64xf32> to vector<64x64xbf16>
    %cst_67 = arith.constant dense<0.000000e+00> : vector<64x8xf32>
    %239 = tpu.matmul %238, %225, %cst_67 {dimension_numbers = #tpu.dot_dimension_numbers<[1], [0], [0], [1], [0, 0, 1, 1], [], []>} : vector<64x64xbf16>, vector<64x8xbf16>, vector<64x8xf32> -> vector<64x8xf32>
    %240 = tpu.concatenate %222, %239 in 0 : vector<64x8xf32>, vector<64x8xf32> -> vector<128x8xf32>
    %241 = arith.truncf %240 : vector<128x8xf32> to vector<128x8xbf16>
    %cst_68 = arith.constant dense<0.000000e+00> : vector<128x32xf32>
    %242 = tpu.matmul %241, %205, %cst_68 {dimension_numbers = #tpu.dot_dimension_numbers<[1], [0], [0], [1], [0, 0, 1, 1], [], []>} : vector<128x8xbf16>, vector<8x32xbf16>, vector<128x32xf32> -> vector<128x32xf32>
    %243 = arith.addf %204, %242 : vector<128x32xf32>
    %244 = arith.addf %0, %243 : vector<128x32xf32>
    %245 = vector.broadcast %3 : vector<1x32xf32> to vector<128x32xf32>
    %246 = arith.addf %244, %245 : vector<128x32xf32>
    %cst_69 = arith.constant dense<0.000000e+00> : vector<128xf32>
    %247 = vector.multi_reduction <add>, %246, %cst_69 [1] : vector<128x32xf32> to vector<128xf32>
    %248 = vector.shape_cast %247 : vector<128xf32> to vector<128x1xf32>
    %cst_70 = arith.constant 3.200000e+01 : f32
    %249 = vector.broadcast %cst_70 : f32 to vector<128x1xf32>
    %250 = arith.divf %248, %249 : vector<128x1xf32>
    %251 = vector.broadcast %250 : vector<128x1xf32> to vector<128x32xf32>
    %252 = arith.subf %246, %251 : vector<128x32xf32>
    %253 = arith.mulf %252, %252 : vector<128x32xf32>
    %cst_71 = arith.constant dense<0.000000e+00> : vector<128xf32>
    %254 = vector.multi_reduction <add>, %253, %cst_71 [1] : vector<128x32xf32> to vector<128xf32>
    %255 = vector.shape_cast %254 : vector<128xf32> to vector<128x1xf32>
    %cst_72 = arith.constant 3.200000e+01 : f32
    %256 = vector.broadcast %cst_72 : f32 to vector<128x1xf32>
    %257 = arith.divf %255, %256 : vector<128x1xf32>
    %cst_73 = arith.constant 9.99999997E-7 : f32
    %258 = vector.broadcast %cst_73 : f32 to vector<128x1xf32>
    %259 = arith.addf %257, %258 : vector<128x1xf32>
    %260 = math.rsqrt %259 : vector<128x1xf32>
    %261 = vector.broadcast %260 : vector<128x1xf32> to vector<128x32xf32>
    %262 = arith.mulf %252, %261 : vector<128x32xf32>
    %263 = vector.broadcast %4 : vector<1x32xf32> to vector<128x32xf32>
    %264 = arith.mulf %262, %263 : vector<128x32xf32>
    %265 = vector.broadcast %5 : vector<1x32xf32> to vector<128x32xf32>
    %266 = arith.addf %264, %265 : vector<128x32xf32>
    %267 = arith.truncf %266 : vector<128x32xf32> to vector<128x32xbf16>
    %cst_74 = arith.constant dense<0.000000e+00> : vector<128x96xf32>
    %268 = tpu.matmul %267, %12, %cst_74 {dimension_numbers = #tpu.dot_dimension_numbers<[1], [0], [0], [1], [0, 0, 1, 1], [], []>} : vector<128x32xbf16>, vector<32x96xbf16>, vector<128x96xf32> -> vector<128x96xf32>
    %269 = arith.truncf %268 : vector<128x96xf32> to vector<128x96xbf16>
    %270 = vector.extract_strided_slice %269 {offsets = [0, 0], sizes = [128, 32], strides = [1, 1]} : vector<128x96xbf16> to vector<128x32xbf16>
    %271 = vector.extract_strided_slice %269 {offsets = [0, 32], sizes = [128, 32], strides = [1, 1]} : vector<128x96xbf16> to vector<128x32xbf16>
    %272 = vector.extract_strided_slice %269 {offsets = [0, 64], sizes = [128, 32], strides = [1, 1]} : vector<128x96xbf16> to vector<128x32xbf16>
    %cst_75 = arith.constant 0.000000e+00 : f32
    %273 = vector.broadcast %cst_75 : f32 to vector<128x32xf32>
    %274 = vector.extract_strided_slice %13 {offsets = [0, 0], sizes = [8, 32], strides = [1, 1]} : vector<32x32xbf16> to vector<8x32xbf16>
    %275 = vector.extract_strided_slice %270 {offsets = [0, 0], sizes = [64, 8], strides = [1, 1]} : vector<128x32xbf16> to vector<64x8xbf16>
    %276 = vector.extract_strided_slice %271 {offsets = [0, 0], sizes = [64, 8], strides = [1, 1]} : vector<128x32xbf16> to vector<64x8xbf16>
    %277 = vector.extract_strided_slice %272 {offsets = [0, 0], sizes = [64, 8], strides = [1, 1]} : vector<128x32xbf16> to vector<64x8xbf16>
    %cst_76 = arith.constant dense<0.000000e+00> : vector<64x64xf32>
    %278 = tpu.matmul %275, %276, %cst_76 {dimension_numbers = #tpu.dot_dimension_numbers<[1], [1], [0], [0], [0, 0, 1, 0], [], []>} : vector<64x8xbf16>, vector<64x8xbf16>, vector<64x64xf32> -> vector<64x64xf32>
    %279 = arith.addf %278, %60 : vector<64x64xf32>
    %cst_77 = arith.constant dense<0xFF800000> : vector<64xf32>
    %280 = vector.multi_reduction <maximumf>, %279, %cst_77 [1] : vector<64x64xf32> to vector<64xf32>
    %281 = vector.shape_cast %280 : vector<64xf32> to vector<64x1xf32>
    %282 = vector.broadcast %281 : vector<64x1xf32> to vector<64x64xf32>
    %283 = arith.subf %279, %282 : vector<64x64xf32>
    %284 = math.exp %283 : vector<64x64xf32>
    %cst_78 = arith.constant dense<0.000000e+00> : vector<64xf32>
    %285 = vector.multi_reduction <add>, %284, %cst_78 [1] : vector<64x64xf32> to vector<64xf32>
    %286 = vector.shape_cast %285 : vector<64xf32> to vector<64x1xf32>
    %287 = tpu.reciprocal %286 {approx = true} : vector<64x1xf32> -> vector<64x1xf32>
    %288 = vector.broadcast %287 : vector<64x1xf32> to vector<64x64xf32>
    %289 = arith.mulf %284, %288 : vector<64x64xf32>
    %290 = arith.truncf %289 : vector<64x64xf32> to vector<64x64xbf16>
    %cst_79 = arith.constant dense<0.000000e+00> : vector<64x8xf32>
    %291 = tpu.matmul %290, %277, %cst_79 {dimension_numbers = #tpu.dot_dimension_numbers<[1], [0], [0], [1], [0, 0, 1, 1], [], []>} : vector<64x64xbf16>, vector<64x8xbf16>, vector<64x8xf32> -> vector<64x8xf32>
    %292 = vector.extract_strided_slice %270 {offsets = [64, 0], sizes = [64, 8], strides = [1, 1]} : vector<128x32xbf16> to vector<64x8xbf16>
    %293 = vector.extract_strided_slice %271 {offsets = [64, 0], sizes = [64, 8], strides = [1, 1]} : vector<128x32xbf16> to vector<64x8xbf16>
    %294 = vector.extract_strided_slice %272 {offsets = [64, 0], sizes = [64, 8], strides = [1, 1]} : vector<128x32xbf16> to vector<64x8xbf16>
    %cst_80 = arith.constant dense<0.000000e+00> : vector<64x64xf32>
    %295 = tpu.matmul %292, %293, %cst_80 {dimension_numbers = #tpu.dot_dimension_numbers<[1], [1], [0], [0], [0, 0, 1, 0], [], []>} : vector<64x8xbf16>, vector<64x8xbf16>, vector<64x64xf32> -> vector<64x64xf32>
    %296 = arith.addf %295, %60 : vector<64x64xf32>
    %cst_81 = arith.constant dense<0xFF800000> : vector<64xf32>
    %297 = vector.multi_reduction <maximumf>, %296, %cst_81 [1] : vector<64x64xf32> to vector<64xf32>
    %298 = vector.shape_cast %297 : vector<64xf32> to vector<64x1xf32>
    %299 = vector.broadcast %298 : vector<64x1xf32> to vector<64x64xf32>
    %300 = arith.subf %296, %299 : vector<64x64xf32>
    %301 = math.exp %300 : vector<64x64xf32>
    %cst_82 = arith.constant dense<0.000000e+00> : vector<64xf32>
    %302 = vector.multi_reduction <add>, %301, %cst_82 [1] : vector<64x64xf32> to vector<64xf32>
    %303 = vector.shape_cast %302 : vector<64xf32> to vector<64x1xf32>
    %304 = tpu.reciprocal %303 {approx = true} : vector<64x1xf32> -> vector<64x1xf32>
    %305 = vector.broadcast %304 : vector<64x1xf32> to vector<64x64xf32>
    %306 = arith.mulf %301, %305 : vector<64x64xf32>
    %307 = arith.truncf %306 : vector<64x64xf32> to vector<64x64xbf16>
    %cst_83 = arith.constant dense<0.000000e+00> : vector<64x8xf32>
    %308 = tpu.matmul %307, %294, %cst_83 {dimension_numbers = #tpu.dot_dimension_numbers<[1], [0], [0], [1], [0, 0, 1, 1], [], []>} : vector<64x64xbf16>, vector<64x8xbf16>, vector<64x8xf32> -> vector<64x8xf32>
    %309 = tpu.concatenate %291, %308 in 0 : vector<64x8xf32>, vector<64x8xf32> -> vector<128x8xf32>
    %310 = arith.truncf %309 : vector<128x8xf32> to vector<128x8xbf16>
    %cst_84 = arith.constant dense<0.000000e+00> : vector<128x32xf32>
    %311 = tpu.matmul %310, %274, %cst_84 {dimension_numbers = #tpu.dot_dimension_numbers<[1], [0], [0], [1], [0, 0, 1, 1], [], []>} : vector<128x8xbf16>, vector<8x32xbf16>, vector<128x32xf32> -> vector<128x32xf32>
    %312 = arith.addf %273, %311 : vector<128x32xf32>
    %313 = vector.extract_strided_slice %13 {offsets = [8, 0], sizes = [8, 32], strides = [1, 1]} : vector<32x32xbf16> to vector<8x32xbf16>
    %314 = vector.extract_strided_slice %270 {offsets = [0, 8], sizes = [64, 8], strides = [1, 1]} : vector<128x32xbf16> to vector<64x8xbf16>
    %315 = vector.extract_strided_slice %271 {offsets = [0, 8], sizes = [64, 8], strides = [1, 1]} : vector<128x32xbf16> to vector<64x8xbf16>
    %316 = vector.extract_strided_slice %272 {offsets = [0, 8], sizes = [64, 8], strides = [1, 1]} : vector<128x32xbf16> to vector<64x8xbf16>
    %cst_85 = arith.constant dense<0.000000e+00> : vector<64x64xf32>
    %317 = tpu.matmul %314, %315, %cst_85 {dimension_numbers = #tpu.dot_dimension_numbers<[1], [1], [0], [0], [0, 0, 1, 0], [], []>} : vector<64x8xbf16>, vector<64x8xbf16>, vector<64x64xf32> -> vector<64x64xf32>
    %318 = arith.addf %317, %60 : vector<64x64xf32>
    %cst_86 = arith.constant dense<0xFF800000> : vector<64xf32>
    %319 = vector.multi_reduction <maximumf>, %318, %cst_86 [1] : vector<64x64xf32> to vector<64xf32>
    %320 = vector.shape_cast %319 : vector<64xf32> to vector<64x1xf32>
    %321 = vector.broadcast %320 : vector<64x1xf32> to vector<64x64xf32>
    %322 = arith.subf %318, %321 : vector<64x64xf32>
    %323 = math.exp %322 : vector<64x64xf32>
    %cst_87 = arith.constant dense<0.000000e+00> : vector<64xf32>
    %324 = vector.multi_reduction <add>, %323, %cst_87 [1] : vector<64x64xf32> to vector<64xf32>
    %325 = vector.shape_cast %324 : vector<64xf32> to vector<64x1xf32>
    %326 = tpu.reciprocal %325 {approx = true} : vector<64x1xf32> -> vector<64x1xf32>
    %327 = vector.broadcast %326 : vector<64x1xf32> to vector<64x64xf32>
    %328 = arith.mulf %323, %327 : vector<64x64xf32>
    %329 = arith.truncf %328 : vector<64x64xf32> to vector<64x64xbf16>
    %cst_88 = arith.constant dense<0.000000e+00> : vector<64x8xf32>
    %330 = tpu.matmul %329, %316, %cst_88 {dimension_numbers = #tpu.dot_dimension_numbers<[1], [0], [0], [1], [0, 0, 1, 1], [], []>} : vector<64x64xbf16>, vector<64x8xbf16>, vector<64x8xf32> -> vector<64x8xf32>
    %331 = vector.extract_strided_slice %270 {offsets = [64, 8], sizes = [64, 8], strides = [1, 1]} : vector<128x32xbf16> to vector<64x8xbf16>
    %332 = vector.extract_strided_slice %271 {offsets = [64, 8], sizes = [64, 8], strides = [1, 1]} : vector<128x32xbf16> to vector<64x8xbf16>
    %333 = vector.extract_strided_slice %272 {offsets = [64, 8], sizes = [64, 8], strides = [1, 1]} : vector<128x32xbf16> to vector<64x8xbf16>
    %cst_89 = arith.constant dense<0.000000e+00> : vector<64x64xf32>
    %334 = tpu.matmul %331, %332, %cst_89 {dimension_numbers = #tpu.dot_dimension_numbers<[1], [1], [0], [0], [0, 0, 1, 0], [], []>} : vector<64x8xbf16>, vector<64x8xbf16>, vector<64x64xf32> -> vector<64x64xf32>
    %335 = arith.addf %334, %60 : vector<64x64xf32>
    %cst_90 = arith.constant dense<0xFF800000> : vector<64xf32>
    %336 = vector.multi_reduction <maximumf>, %335, %cst_90 [1] : vector<64x64xf32> to vector<64xf32>
    %337 = vector.shape_cast %336 : vector<64xf32> to vector<64x1xf32>
    %338 = vector.broadcast %337 : vector<64x1xf32> to vector<64x64xf32>
    %339 = arith.subf %335, %338 : vector<64x64xf32>
    %340 = math.exp %339 : vector<64x64xf32>
    %cst_91 = arith.constant dense<0.000000e+00> : vector<64xf32>
    %341 = vector.multi_reduction <add>, %340, %cst_91 [1] : vector<64x64xf32> to vector<64xf32>
    %342 = vector.shape_cast %341 : vector<64xf32> to vector<64x1xf32>
    %343 = tpu.reciprocal %342 {approx = true} : vector<64x1xf32> -> vector<64x1xf32>
    %344 = vector.broadcast %343 : vector<64x1xf32> to vector<64x64xf32>
    %345 = arith.mulf %340, %344 : vector<64x64xf32>
    %346 = arith.truncf %345 : vector<64x64xf32> to vector<64x64xbf16>
    %cst_92 = arith.constant dense<0.000000e+00> : vector<64x8xf32>
    %347 = tpu.matmul %346, %333, %cst_92 {dimension_numbers = #tpu.dot_dimension_numbers<[1], [0], [0], [1], [0, 0, 1, 1], [], []>} : vector<64x64xbf16>, vector<64x8xbf16>, vector<64x8xf32> -> vector<64x8xf32>
    %348 = tpu.concatenate %330, %347 in 0 : vector<64x8xf32>, vector<64x8xf32> -> vector<128x8xf32>
    %349 = arith.truncf %348 : vector<128x8xf32> to vector<128x8xbf16>
    %cst_93 = arith.constant dense<0.000000e+00> : vector<128x32xf32>
    %350 = tpu.matmul %349, %313, %cst_93 {dimension_numbers = #tpu.dot_dimension_numbers<[1], [0], [0], [1], [0, 0, 1, 1], [], []>} : vector<128x8xbf16>, vector<8x32xbf16>, vector<128x32xf32> -> vector<128x32xf32>
    %351 = arith.addf %312, %350 : vector<128x32xf32>
    %352 = vector.extract_strided_slice %13 {offsets = [16, 0], sizes = [8, 32], strides = [1, 1]} : vector<32x32xbf16> to vector<8x32xbf16>
    %353 = vector.extract_strided_slice %270 {offsets = [0, 16], sizes = [64, 8], strides = [1, 1]} : vector<128x32xbf16> to vector<64x8xbf16>
    %354 = vector.extract_strided_slice %271 {offsets = [0, 16], sizes = [64, 8], strides = [1, 1]} : vector<128x32xbf16> to vector<64x8xbf16>
    %355 = vector.extract_strided_slice %272 {offsets = [0, 16], sizes = [64, 8], strides = [1, 1]} : vector<128x32xbf16> to vector<64x8xbf16>
    %cst_94 = arith.constant dense<0.000000e+00> : vector<64x64xf32>
    %356 = tpu.matmul %353, %354, %cst_94 {dimension_numbers = #tpu.dot_dimension_numbers<[1], [1], [0], [0], [0, 0, 1, 0], [], []>} : vector<64x8xbf16>, vector<64x8xbf16>, vector<64x64xf32> -> vector<64x64xf32>
    %357 = arith.addf %356, %60 : vector<64x64xf32>
    %cst_95 = arith.constant dense<0xFF800000> : vector<64xf32>
    %358 = vector.multi_reduction <maximumf>, %357, %cst_95 [1] : vector<64x64xf32> to vector<64xf32>
    %359 = vector.shape_cast %358 : vector<64xf32> to vector<64x1xf32>
    %360 = vector.broadcast %359 : vector<64x1xf32> to vector<64x64xf32>
    %361 = arith.subf %357, %360 : vector<64x64xf32>
    %362 = math.exp %361 : vector<64x64xf32>
    %cst_96 = arith.constant dense<0.000000e+00> : vector<64xf32>
    %363 = vector.multi_reduction <add>, %362, %cst_96 [1] : vector<64x64xf32> to vector<64xf32>
    %364 = vector.shape_cast %363 : vector<64xf32> to vector<64x1xf32>
    %365 = tpu.reciprocal %364 {approx = true} : vector<64x1xf32> -> vector<64x1xf32>
    %366 = vector.broadcast %365 : vector<64x1xf32> to vector<64x64xf32>
    %367 = arith.mulf %362, %366 : vector<64x64xf32>
    %368 = arith.truncf %367 : vector<64x64xf32> to vector<64x64xbf16>
    %cst_97 = arith.constant dense<0.000000e+00> : vector<64x8xf32>
    %369 = tpu.matmul %368, %355, %cst_97 {dimension_numbers = #tpu.dot_dimension_numbers<[1], [0], [0], [1], [0, 0, 1, 1], [], []>} : vector<64x64xbf16>, vector<64x8xbf16>, vector<64x8xf32> -> vector<64x8xf32>
    %370 = vector.extract_strided_slice %270 {offsets = [64, 16], sizes = [64, 8], strides = [1, 1]} : vector<128x32xbf16> to vector<64x8xbf16>
    %371 = vector.extract_strided_slice %271 {offsets = [64, 16], sizes = [64, 8], strides = [1, 1]} : vector<128x32xbf16> to vector<64x8xbf16>
    %372 = vector.extract_strided_slice %272 {offsets = [64, 16], sizes = [64, 8], strides = [1, 1]} : vector<128x32xbf16> to vector<64x8xbf16>
    %cst_98 = arith.constant dense<0.000000e+00> : vector<64x64xf32>
    %373 = tpu.matmul %370, %371, %cst_98 {dimension_numbers = #tpu.dot_dimension_numbers<[1], [1], [0], [0], [0, 0, 1, 0], [], []>} : vector<64x8xbf16>, vector<64x8xbf16>, vector<64x64xf32> -> vector<64x64xf32>
    %374 = arith.addf %373, %60 : vector<64x64xf32>
    %cst_99 = arith.constant dense<0xFF800000> : vector<64xf32>
    %375 = vector.multi_reduction <maximumf>, %374, %cst_99 [1] : vector<64x64xf32> to vector<64xf32>
    %376 = vector.shape_cast %375 : vector<64xf32> to vector<64x1xf32>
    %377 = vector.broadcast %376 : vector<64x1xf32> to vector<64x64xf32>
    %378 = arith.subf %374, %377 : vector<64x64xf32>
    %379 = math.exp %378 : vector<64x64xf32>
    %cst_100 = arith.constant dense<0.000000e+00> : vector<64xf32>
    %380 = vector.multi_reduction <add>, %379, %cst_100 [1] : vector<64x64xf32> to vector<64xf32>
    %381 = vector.shape_cast %380 : vector<64xf32> to vector<64x1xf32>
    %382 = tpu.reciprocal %381 {approx = true} : vector<64x1xf32> -> vector<64x1xf32>
    %383 = vector.broadcast %382 : vector<64x1xf32> to vector<64x64xf32>
    %384 = arith.mulf %379, %383 : vector<64x64xf32>
    %385 = arith.truncf %384 : vector<64x64xf32> to vector<64x64xbf16>
    %cst_101 = arith.constant dense<0.000000e+00> : vector<64x8xf32>
    %386 = tpu.matmul %385, %372, %cst_101 {dimension_numbers = #tpu.dot_dimension_numbers<[1], [0], [0], [1], [0, 0, 1, 1], [], []>} : vector<64x64xbf16>, vector<64x8xbf16>, vector<64x8xf32> -> vector<64x8xf32>
    %387 = tpu.concatenate %369, %386 in 0 : vector<64x8xf32>, vector<64x8xf32> -> vector<128x8xf32>
    %388 = arith.truncf %387 : vector<128x8xf32> to vector<128x8xbf16>
    %cst_102 = arith.constant dense<0.000000e+00> : vector<128x32xf32>
    %389 = tpu.matmul %388, %352, %cst_102 {dimension_numbers = #tpu.dot_dimension_numbers<[1], [0], [0], [1], [0, 0, 1, 1], [], []>} : vector<128x8xbf16>, vector<8x32xbf16>, vector<128x32xf32> -> vector<128x32xf32>
    %390 = arith.addf %351, %389 : vector<128x32xf32>
    %391 = vector.extract_strided_slice %13 {offsets = [24, 0], sizes = [8, 32], strides = [1, 1]} : vector<32x32xbf16> to vector<8x32xbf16>
    %392 = vector.extract_strided_slice %270 {offsets = [0, 24], sizes = [64, 8], strides = [1, 1]} : vector<128x32xbf16> to vector<64x8xbf16>
    %393 = vector.extract_strided_slice %271 {offsets = [0, 24], sizes = [64, 8], strides = [1, 1]} : vector<128x32xbf16> to vector<64x8xbf16>
    %394 = vector.extract_strided_slice %272 {offsets = [0, 24], sizes = [64, 8], strides = [1, 1]} : vector<128x32xbf16> to vector<64x8xbf16>
    %cst_103 = arith.constant dense<0.000000e+00> : vector<64x64xf32>
    %395 = tpu.matmul %392, %393, %cst_103 {dimension_numbers = #tpu.dot_dimension_numbers<[1], [1], [0], [0], [0, 0, 1, 0], [], []>} : vector<64x8xbf16>, vector<64x8xbf16>, vector<64x64xf32> -> vector<64x64xf32>
    %396 = arith.addf %395, %60 : vector<64x64xf32>
    %cst_104 = arith.constant dense<0xFF800000> : vector<64xf32>
    %397 = vector.multi_reduction <maximumf>, %396, %cst_104 [1] : vector<64x64xf32> to vector<64xf32>
    %398 = vector.shape_cast %397 : vector<64xf32> to vector<64x1xf32>
    %399 = vector.broadcast %398 : vector<64x1xf32> to vector<64x64xf32>
    %400 = arith.subf %396, %399 : vector<64x64xf32>
    %401 = math.exp %400 : vector<64x64xf32>
    %cst_105 = arith.constant dense<0.000000e+00> : vector<64xf32>
    %402 = vector.multi_reduction <add>, %401, %cst_105 [1] : vector<64x64xf32> to vector<64xf32>
    %403 = vector.shape_cast %402 : vector<64xf32> to vector<64x1xf32>
    %404 = tpu.reciprocal %403 {approx = true} : vector<64x1xf32> -> vector<64x1xf32>
    %405 = vector.broadcast %404 : vector<64x1xf32> to vector<64x64xf32>
    %406 = arith.mulf %401, %405 : vector<64x64xf32>
    %407 = arith.truncf %406 : vector<64x64xf32> to vector<64x64xbf16>
    %cst_106 = arith.constant dense<0.000000e+00> : vector<64x8xf32>
    %408 = tpu.matmul %407, %394, %cst_106 {dimension_numbers = #tpu.dot_dimension_numbers<[1], [0], [0], [1], [0, 0, 1, 1], [], []>} : vector<64x64xbf16>, vector<64x8xbf16>, vector<64x8xf32> -> vector<64x8xf32>
    %409 = vector.extract_strided_slice %270 {offsets = [64, 24], sizes = [64, 8], strides = [1, 1]} : vector<128x32xbf16> to vector<64x8xbf16>
    %410 = vector.extract_strided_slice %271 {offsets = [64, 24], sizes = [64, 8], strides = [1, 1]} : vector<128x32xbf16> to vector<64x8xbf16>
    %411 = vector.extract_strided_slice %272 {offsets = [64, 24], sizes = [64, 8], strides = [1, 1]} : vector<128x32xbf16> to vector<64x8xbf16>
    %cst_107 = arith.constant dense<0.000000e+00> : vector<64x64xf32>
    %412 = tpu.matmul %409, %410, %cst_107 {dimension_numbers = #tpu.dot_dimension_numbers<[1], [1], [0], [0], [0, 0, 1, 0], [], []>} : vector<64x8xbf16>, vector<64x8xbf16>, vector<64x64xf32> -> vector<64x64xf32>
    %413 = arith.addf %412, %60 : vector<64x64xf32>
    %cst_108 = arith.constant dense<0xFF800000> : vector<64xf32>
    %414 = vector.multi_reduction <maximumf>, %413, %cst_108 [1] : vector<64x64xf32> to vector<64xf32>
    %415 = vector.shape_cast %414 : vector<64xf32> to vector<64x1xf32>
    %416 = vector.broadcast %415 : vector<64x1xf32> to vector<64x64xf32>
    %417 = arith.subf %413, %416 : vector<64x64xf32>
    %418 = math.exp %417 : vector<64x64xf32>
    %cst_109 = arith.constant dense<0.000000e+00> : vector<64xf32>
    %419 = vector.multi_reduction <add>, %418, %cst_109 [1] : vector<64x64xf32> to vector<64xf32>
    %420 = vector.shape_cast %419 : vector<64xf32> to vector<64x1xf32>
    %421 = tpu.reciprocal %420 {approx = true} : vector<64x1xf32> -> vector<64x1xf32>
    %422 = vector.broadcast %421 : vector<64x1xf32> to vector<64x64xf32>
    %423 = arith.mulf %418, %422 : vector<64x64xf32>
    %424 = arith.truncf %423 : vector<64x64xf32> to vector<64x64xbf16>
    %cst_110 = arith.constant dense<0.000000e+00> : vector<64x8xf32>
    %425 = tpu.matmul %424, %411, %cst_110 {dimension_numbers = #tpu.dot_dimension_numbers<[1], [0], [0], [1], [0, 0, 1, 1], [], []>} : vector<64x64xbf16>, vector<64x8xbf16>, vector<64x8xf32> -> vector<64x8xf32>
    %426 = tpu.concatenate %408, %425 in 0 : vector<64x8xf32>, vector<64x8xf32> -> vector<128x8xf32>
    %427 = arith.truncf %426 : vector<128x8xf32> to vector<128x8xbf16>
    %cst_111 = arith.constant dense<0.000000e+00> : vector<128x32xf32>
    %428 = tpu.matmul %427, %391, %cst_111 {dimension_numbers = #tpu.dot_dimension_numbers<[1], [0], [0], [1], [0, 0, 1, 1], [], []>} : vector<128x8xbf16>, vector<8x32xbf16>, vector<128x32xf32> -> vector<128x32xf32>
    %429 = arith.addf %390, %428 : vector<128x32xf32>
    %430 = arith.addf %246, %429 : vector<128x32xf32>
    %431 = vector.broadcast %6 : vector<1x32xf32> to vector<128x32xf32>
    %432 = arith.addf %430, %431 : vector<128x32xf32>
    %cst_112 = arith.constant dense<0.000000e+00> : vector<128xf32>
    %433 = vector.multi_reduction <add>, %432, %cst_112 [1] : vector<128x32xf32> to vector<128xf32>
    %434 = vector.shape_cast %433 : vector<128xf32> to vector<128x1xf32>
    %cst_113 = arith.constant 3.200000e+01 : f32
    %435 = vector.broadcast %cst_113 : f32 to vector<128x1xf32>
    %436 = arith.divf %434, %435 : vector<128x1xf32>
    %437 = vector.broadcast %436 : vector<128x1xf32> to vector<128x32xf32>
    %438 = arith.subf %432, %437 : vector<128x32xf32>
    %439 = arith.mulf %438, %438 : vector<128x32xf32>
    %cst_114 = arith.constant dense<0.000000e+00> : vector<128xf32>
    %440 = vector.multi_reduction <add>, %439, %cst_114 [1] : vector<128x32xf32> to vector<128xf32>
    %441 = vector.shape_cast %440 : vector<128xf32> to vector<128x1xf32>
    %cst_115 = arith.constant 3.200000e+01 : f32
    %442 = vector.broadcast %cst_115 : f32 to vector<128x1xf32>
    %443 = arith.divf %441, %442 : vector<128x1xf32>
    %cst_116 = arith.constant 9.99999997E-7 : f32
    %444 = vector.broadcast %cst_116 : f32 to vector<128x1xf32>
    %445 = arith.addf %443, %444 : vector<128x1xf32>
    %446 = math.rsqrt %445 : vector<128x1xf32>
    %447 = vector.broadcast %446 : vector<128x1xf32> to vector<128x32xf32>
    %448 = arith.mulf %438, %447 : vector<128x32xf32>
    %449 = vector.broadcast %7 : vector<1x32xf32> to vector<128x32xf32>
    %450 = arith.mulf %448, %449 : vector<128x32xf32>
    %451 = vector.broadcast %8 : vector<1x32xf32> to vector<128x32xf32>
    %452 = arith.addf %450, %451 : vector<128x32xf32>
    %453 = arith.truncf %452 : vector<128x32xf32> to vector<128x32xbf16>
    %cst_117 = arith.constant dense<0.000000e+00> : vector<128x128xf32>
    %454 = tpu.matmul %453, %14, %cst_117 {dimension_numbers = #tpu.dot_dimension_numbers<[1], [0], [0], [1], [0, 0, 1, 1], [], []>} : vector<128x32xbf16>, vector<32x128xbf16>, vector<128x128xf32> -> vector<128x128xf32>
    %c0_118 = arith.constant 0 : index
    %c0_119 = arith.constant 0 : index
    %455 = vector.load %arg3[%c0_118, %c0_119] : memref<1x128xf32, #tpu.memory_space<vmem>>, vector<1x128xf32>
    %456 = vector.broadcast %455 : vector<1x128xf32> to vector<128x128xf32>
    %457 = arith.addf %454, %456 : vector<128x128xf32>
    %cst_120 = arith.constant 5.000000e-01 : f32
    %458 = vector.broadcast %cst_120 : f32 to vector<128x128xf32>
    %459 = arith.mulf %458, %457 : vector<128x128xf32>
    %cst_121 = arith.constant 0.707106769 : f32
    %460 = vector.broadcast %cst_121 : f32 to vector<128x128xf32>
    %461 = arith.mulf %457, %460 : vector<128x128xf32>
    %462 = math.erf %461 : vector<128x128xf32>
    %cst_122 = arith.constant 1.000000e+00 : f32
    %463 = vector.broadcast %cst_122 : f32 to vector<128x128xf32>
    %464 = arith.addf %463, %462 : vector<128x128xf32>
    %465 = arith.mulf %459, %464 : vector<128x128xf32>
    %466 = arith.truncf %465 : vector<128x128xf32> to vector<128x128xbf16>
    %c0_123 = arith.constant 0 : index
    %c0_124 = arith.constant 0 : index
    %467 = vector.load %arg5[%c0_123, %c0_124] : memref<128x32xbf16, #tpu.memory_space<vmem>>, vector<128x32xbf16>
    %cst_125 = arith.constant dense<0.000000e+00> : vector<128x32xf32>
    %468 = tpu.matmul %466, %467, %cst_125 {dimension_numbers = #tpu.dot_dimension_numbers<[1], [0], [0], [1], [0, 0, 1, 1], [], []>} : vector<128x128xbf16>, vector<128x32xbf16>, vector<128x32xf32> -> vector<128x32xf32>
    %469 = vector.broadcast %9 : vector<1x32xf32> to vector<128x32xf32>
    %470 = arith.addf %468, %469 : vector<128x32xf32>
    %471 = arith.addf %432, %470 : vector<128x32xf32>
    %c0_126 = arith.constant 0 : index
    %c0_127 = arith.constant 0 : index
    %472 = vector.load %arg6[%c0_126, %c0_127] : memref<128x32xf32, #tpu.memory_space<vmem>>, vector<128x32xf32>
    tpu.vector_store %arg6[%c0_126, %c0_127], %471 {strides = array<i32>} : memref<128x32xf32, #tpu.memory_space<vmem>>, vector<128x32xf32>,
    return
  }
  func.func @transform_0(%arg0: i32) -> (i32, i32) {
    %c0_i32 = arith.constant 0 : i32
    %c0_i32_0 = arith.constant 0 : i32
    return %arg0, %c0_i32 : i32, i32
  }
  func.func @transform_1(%arg0: i32) -> (i32, i32) {
    %c0_i32 = arith.constant 0 : i32
    %c0_i32_0 = arith.constant 0 : i32
    %c0_i32_1 = arith.constant 0 : i32
    return %c0_i32, %c0_i32_0 : i32, i32
  }
  func.func @transform_2(%arg0: i32) -> (i32, i32) {
    %c0_i32 = arith.constant 0 : i32
    %c0_i32_0 = arith.constant 0 : i32
    %c0_i32_1 = arith.constant 0 : i32
    return %c0_i32, %c0_i32_0 : i32, i32
  }
  func.func @transform_3(%arg0: i32) -> (i32, i32) {
    %c0_i32 = arith.constant 0 : i32
    %c0_i32_0 = arith.constant 0 : i32
    %c0_i32_1 = arith.constant 0 : i32
    return %c0_i32, %c0_i32_0 : i32, i32
  }
  func.func @transform_4(%arg0: i32) -> (i32, i32) {
    %c0_i32 = arith.constant 0 : i32
    %c0_i32_0 = arith.constant 0 : i32
    %c0_i32_1 = arith.constant 0 : i32
    return %c0_i32, %c0_i32_0 : i32, i32
  }
  func.func @transform_5(%arg0: i32) -> (i32, i32) {
    %c0_i32 = arith.constant 0 : i32
    %c0_i32_0 = arith.constant 0 : i32
    return %arg0, %c0_i32 : i32, i32
  }
}

</mosaic_0001>

<bundles_post_ra>
// kernel: spatio_temporal_block.1
= control target key start
LH: loop header
LB: loop body
LE: loop exit
PB: predicated region body
PF: predicated region fallthrough
CT: control target
= control target key end

     0   :  { %10 = vsyncpa [#allocation3], 0  ;;  %s13371_s0 = inlined_call_operand.hbm [shape: f32[256,32], index: 0, kind: input, shape index: {}]   ;;  %s13372_s1 = inlined_call_operand.vmem [shape: f32[9,32], index: 1, kind: input, shape index: {}]   ;;  %s13373_s2 = inlined_call_operand.vmem [shape: f32[1,128], index: 2, kind: input, shape index: {}]   ;;  %s13374_s3 = inlined_call_operand.vmem [shape: bf16[32,384], index: 3, kind: input, shape index: {}]   ;;  %s13375_s4 = inlined_call_operand.vmem [shape: bf16[128,32], index: 4, kind: input, shape index: {}]   ;;  %s13376_s5 = inlined_call_operand.hbm [shape: f32[256,32], index: 5, kind: output, shape index: {}]  }
   0x1   :  { %12 = vsyncpa [#allocation3 + $0x1], 0 }
   0x2   :  { %13 = vsyncpa [#allocation4], 0 }
   0x3   :  { %15 = vsyncpa [#allocation4 + $0x1], 0  ;;  %s10225_s18 = smov 0   ;;  %s10227_s19 = smov 0  }
   0x4   :  { %s10229_s20 = smov 0   ;;  %s10231_s21 = smov 0  }
   0x5 LB: > { %s10246_s22 = sadd.s32 4294967295, %s10173_s21   ;;  %s7759_s23 = sadd.s32 4294967294, %s10173_s21   ;;  %s10173_s21 = sphi %s10231_s21, %s13486_s21   ;;  %s10169_s20 = sphi %s10229_s20, %s13485_s20   ;;  %s10165_s19 = sphi %s10227_s19, %s13484_s19   ;;  %s10161_s18 = sphi %s10225_s18, %s13483_s18  }
   0x6   : > { %s10250_s24 = sadd.s32 1, %s10173_s21   ;;  %s28_s25 = sadd.s32 1, %s10169_s20 }
   0x7   : > { %s25_s26 = ssub.s32 %s10173_s21, %s10250_s24  ;;  %p35_p0 = scmp.ne.s32.totalorder %s10169_s20, %s10165_s19 }
   0x8   : > { %p26_p1 = scmp.eq.s32.totalorder %s25_s26, 0  ;;  %p36_p2 = scmp.eq.s32.totalorder %s10173_s21, 0 }
   0x9   : > { %p41_p3 = scmp.ne.s32.totalorder %s10165_s19, %s10161_s18  ;;  %p42_p4 = scmp.eq.s32.totalorder %s10246_s22, 0 }
   0xa   : > { %s10262_s27 = scalar_select %p26_p1, %s10169_s20, %s28_s25  }
   0xb   : > { %p10264_p5 = por %p36_p2, %p35_p0  ;;  %p10268_p6 = por %p42_p4, %p41_p3 }
   0xc   : > { %p149_p7 = scmp.eq.s32.totalorder %s10246_s22, 1  ;;  %p155_p8 = scmp.eq.s32.totalorder %s7759_s23, 1 }
   0xd   : > { %p9339_p10 = scmp.lt.s32.totalorder %s10173_s21, 2  ;;  %s187_s7 = sand.u32 1, %s10169_s20  }
   0xe   : > { %p10275_p11 = por %p149_p7, %p35_p0  ;;  %p10279_p12 = por %p155_p8, %p41_p3 }
   0xf   : > { %s8035_s8 = sshll.u32 %s10173_s21, 11  ;;  %s7762_s9 = sshll.u32 %s187_s7, 7 }
  0x10   : > { %s13412_s30 = scalar_select %p10275_p11, 1, 0 }
  0x11   : > { %s13413_s6 = scalar_select %p10279_p12, 1, 0 }
  0x12   : > { %s10288_s12 = scalar_lea.hbm %s13371_s0, %s8035_s8  ;;  %s191_s13 = scalar_lea.vmem [#allocation2], %s7762_s9 }
  0x13   : > { %s198_s14 = sshll.u32 %s191_s13, 4  ;;  %p10292_p13 = pnand %p9339_p10, %p10264_p5  ;;  %s10296_s14 = int_to_ptr.vmem [resolvable:$true] %s198_s14 }
  0x14   : > { %s10298_s16 = scalar_lea.sflag [#allocation3], %s187_s7  ;;  %s10077_s17 = scalar_lea.hbm %s10288_s12, 2048 }
  0x15   : > { %p10078_p0 = scmp.ne.s32.totalorder %s10288_s12, %s10077_s17  ;;  %p10079_p1 = pneg %p10292_p13 }
  0x16   : > { %s10082_s26 = scalar_lea.hbm %s13371_s0, 4096  ;;  %p10083_p4 = scmp.lt.u32.totalorder %s10288_s12, %s13371_s0 }
  0x17   : > { %p10080_p2 = pnand %p10079_p1, %p10078_p0  ;;  %p10084_p5 = scmp.lt.u32.totalorder %s10082_s26, %s10077_s17 }
  0x18   : > { %p10086_p8 = scmp.lt.u32.totalorder %s10077_s17, %s10288_s12 }
  0x19   : > { %p10081_p3 = pneg %p10080_p2  ;;  %p10085_p7 = por %p10084_p5, %p10083_p4 }
  0x1b   : > { %p10087_p10 = por %p10086_p8, %p10085_p7 }
  0x1d   : > { %p10088_p9 = pnand %p10087_p10, %p10081_p3 }
  0x1f   : > { %10091 = shalt.err (!%p10088_p9)
}
  0x20   : > { %s10092_s7 = scalar_lea.vmem %s10296_s14, 2048  ;;  %s10175_s9 = smov [#allocation2]  }
  0x21   : > { %p10093_p0 = scmp.ne.s32.totalorder %s10296_s14, %s10092_s7  ;;  %s10097_s10 = sshll.u32 %s10175_s9, 4  ;;  %s10098_s10 = int_to_ptr.vmem [resolvable:$false] %s10097_s10 }
  0x22   : > { %s10099_s11 = scalar_lea.vmem %s10098_s10, 4096  ;;  %p10100_p11 = scmp.lt.s32.totalorder %s10296_s14, %s10098_s10 }
  0x23   : > { %p10095_p2 = pnand %p10093_p0, %p10079_p1  ;;  %p10101_p4 = scmp.lt.s32.totalorder %s10099_s11, %s10092_s7 }
  0x25   : > { %p10096_p12 = pneg %p10095_p2  ;;  %p10102_p5 = por %p10101_p4, %p10100_p11 }
  0x27   : > { %p10103_p7 = pnand %p10102_p5, %p10096_p12 }
  0x29   : > { %10106 = shalt.err (!%p10103_p7)
}
  0x2a   : > { %s10176_s13 = smov 128   ;;  %s10177_s17 = smov 8  }
  0x2b   : > { %9334 = dma.hbm_to_vmem [thread:$0]  (!%p10292_p13), %s10288_s12, 2048, %s10296_s14, %s10298_s16, %s10176_s13, %s10176_s13, %s10177_s17  }
  0x2c   : > { %p7765_p9 = scmp.ge.s32.totalorder %s10173_s21, 1  ;;  %p206_p1 = scmp.lt.s32.totalorder %s10173_s21, 3 }
  0x2e   : > { %p207_p3 = pnand %p7765_p9, %p206_p1 }
  0x30   : > { %210 = sbr.rel (%p207_p3) target bundleno = 10190 (0x27ce), region = 40 }
  0x37   : > { %s10329_s23 = sand.u32 1, %s10165_s19  }
  0x38   : > { %s13381_s25 = sshll.u32 %s10329_s23, 7  ;;  %s213_s26 = scalar_lea.sflag [#allocation3], %s10329_s23 }
  0x39   : > { %s10335_s28 = scalar_lea.vmem [#allocation2], %s13381_s25 }
  0x3a   : > { %10152 = dma.done.wait (%p10268_p6), %s213_s26, 2048  }
  0x3b   : > { %10154 = vsyncadd (%p10268_p6), %s213_s26, 4294965248  ;;  %vm416_vm0 = vcmask 261120   ;;  %v246_v0 = vld [vmem:[%s10335_s28] sm:$0xff]  ;;  %v248_v1 = vld [vmem:[%s10335_s28 + $0x10] sm:$0xff]  ;;  %vm827_vm1 = vcmask 64512   ;;  %s10178_s26 = smov 96  }
  0x3c   : > { %v247_v2 = vld [vmem:[%s10335_s28 + $0x8] sm:$0xff]  ;;  %v417_v3 = vsel %vm416_vm0, %v246_v0, 0.0  ;;  %v423_v4 = vsel %vm416_vm0, %v248_v1, 0.0  ;;  %v249_v5 = vld [vmem:[%s10335_s28 + $0x18] sm:$0xff]  ;;  %v10348_v6 = vld [vmem:[%s10335_s28 + $0x20] sm:$0xff]  ;;  %s10179_s29 = smov 64  }
  0x3d   : > { %418 = vadd.xlane.f32.xlu0 %v417_v3  ;;  %424 = vadd.xlane.f32.xlu1 %v423_v4  ;;  %v10351_v7 = vld [vmem:[%s10335_s28 + $0x28] sm:$0xff]  ;;  %v420_v8 = vsel %vm416_vm0, %v247_v2, 0.0  ;;  %v426_v9 = vsel %vm416_vm0, %v249_v5, 0.0  ;;  %v10356_v10 = vld [vmem:[%s10335_s28 + $0x30] sm:$0xff]  ;;  %v10359_v11 = vld [vmem:[%s10335_s28 + $0x38] sm:$0xff]  ;;  %v429_v12 = vsel %vm416_vm0, %v10348_v6, 0.0 }
  0x3e   : > { %v432_v13 = vsel %vm416_vm0, %v10351_v7, 0.0  ;;  %v435_v14 = vsel %vm416_vm0, %v10356_v10, 0.0  ;;  %v438_v15 = vsel %vm416_vm0, %v10359_v11, 0.0  ;;  %v10370_v16 = vld [vmem:[%s10335_s28 + $0x40] sm:$0xff]  ;;  %v10373_v17 = vld [vmem:[%s10335_s28 + $0x48] sm:$0xff]  ;;  %v10380_v20 = vld [vmem:[%s10335_s28 + $0x50] sm:$0xff] }
  0x3f   : > { %v441_v18 = vsel %vm416_vm0, %v10370_v16, 0.0  ;;  %v444_v19 = vsel %vm416_vm0, %v10373_v17, 0.0  ;;  %v10383_v21 = vld [vmem:[%s10335_s28 + $0x58] sm:$0xff]  ;;  %v447_v22 = vsel %vm416_vm0, %v10380_v20, 0.0  ;;  %v10390_v24 = vld [vmem:[%s10335_s28 + $0x60] sm:$0xff]  ;;  %v10393_v25 = vld [vmem:[%s10335_s28 + $0x68] sm:$0xff] }
  0x40   : > { %v450_v23 = vsel %vm416_vm0, %v10383_v21, 0.0  ;;  %v453_v26 = vsel %vm416_vm0, %v10390_v24, 0.0  ;;  %v456_v27 = vsel %vm416_vm0, %v10393_v25, 0.0  ;;  %v10400_v28 = vld [vmem:[%s10335_s28 + $0x70] sm:$0xff]  ;;  %v10403_v29 = vld [vmem:[%s10335_s28 + $0x78] sm:$0xff]  ;;  %vm917_vm7 = vcmask 523264  }
  0x41   : > { %421 = vadd.xlane.f32.xlu0 %v420_v8  ;;  %427 = vadd.xlane.f32.xlu1 %v426_v9  ;;  %v459_v30 = vsel %vm416_vm0, %v10400_v28, 0.0  ;;  %v462_v31 = vsel %vm416_vm0, %v10403_v29, 0.0  ;;  %s10182_s12 = smov 88   ;;  %s10183_s14 = smov 120   ;;  %vm1996_vm10 = vcmask 1043456  }
  0x42   : > { %s10184_s15 = smov 56   ;;  %s10185_s10 = smov 32  }
  0x43   : > { %s10186_s11 = smov 80   ;;  %s13390_s13 = smov 112  }
  0x44   : > { %s13388_s17 = smov 48   ;;  %s13386_s7 = smov 72  }
  0x45   : > { %430 = vadd.xlane.f32.xlu0 %v429_v12  ;;  %433 = vadd.xlane.f32.xlu1 %v432_v13  ;;  %s13384_s9 = smov 104   ;;  %s13382_s16 = smov 40  }
  0x46   : > { %s13460_s25 = smov 72   ;;  %s13461_s8 = smov 104  }
  0x47   : > { %p13480_p11 = scmp.ne.s32.totalorder %s13412_s30, 0 }
  0x49   : > { %436 = vadd.xlane.f32.xlu0 %v435_v14  ;;  %439 = vadd.xlane.f32.xlu1 %v438_v15 }
  0x4d   : > { %442 = vadd.xlane.f32.xlu0 %v441_v18  ;;  %445 = vadd.xlane.f32.xlu1 %v444_v19 }
  0x51   : > { %448 = vadd.xlane.f32.xlu0 %v447_v22  ;;  %451 = vadd.xlane.f32.xlu1 %v450_v23 }
  0x55   : > { %454 = vadd.xlane.f32.xlu0 %v453_v26  ;;  %457 = vadd.xlane.f32.xlu1 %v456_v27 }
  0x59   : > { %460 = vadd.xlane.f32.xlu0 %v459_v30  ;;  %463 = vadd.xlane.f32.xlu1 %v462_v31 }
  0xca   : > { %v419_v32 = vpop.xlane.xlu0 %418  ;;  %v425_v33 = vpop.xlane.xlu1 %424 }
  0xcb   : > { %v466_v34 = vmul.f32 0.03125, %v419_v32  ;;  %v468_v35 = vmul.f32 0.03125, %v425_v33 }
  0xcd   : > { %v10409_v36 = vsub.f32 %v246_v0, %v466_v34  ;;  %v10411_v37 = vsub.f32 %v248_v1, %v468_v35 }
  0xce   : > { %v422_v38 = vpop.xlane.xlu0 %421  ;;  %v428_v39 = vpop.xlane.xlu1 %427 }
  0xcf   : > { %v467_v40 = vmul.f32 0.03125, %v422_v38  ;;  %v469_v41 = vmul.f32 0.03125, %v428_v39  ;;  %v498_v42 = vmul.f32 %v10409_v36, %v10409_v36  ;;  %v500_v43 = vmul.f32 %v10411_v37, %v10411_v37 }
  0xd1   : > { %v10417_v44 = vsub.f32 %v247_v2, %v467_v40  ;;  %v10419_v45 = vsub.f32 %v249_v5, %v469_v41  ;;  %v514_v46 = vsel %vm416_vm0, %v498_v42, 0.0  ;;  %v520_v49 = vsel %vm416_vm0, %v500_v43, 0.0 }
  0xd2   : > { %515 = vadd.xlane.f32.xlu0 %v514_v46  ;;  %v431_v47 = vpop.xlane.xlu0 %430  ;;  %v434_v48 = vpop.xlane.xlu1 %433 }
  0xd3   : > { %v470_v50 = vmul.f32 0.03125, %v431_v47  ;;  %v471_v51 = vmul.f32 0.03125, %v434_v48  ;;  %v499_v52 = vmul.f32 %v10417_v44, %v10417_v44  ;;  %v501_v53 = vmul.f32 %v10419_v45, %v10419_v45 }
  0xd5   : > { %v10428_v54 = vsub.f32 %v10348_v6, %v470_v50  ;;  %v10431_v55 = vsub.f32 %v10351_v7, %v471_v51  ;;  %v517_v56 = vsel %vm416_vm0, %v499_v52, 0.0  ;;  %v523_v59 = vsel %vm416_vm0, %v501_v53, 0.0  ;;  %v272_v53 = vld [vmem:[%s13374_s3 + $0xc] sm:$0xf] }
  0xd6   : > { %521 = vadd.xlane.f32.xlu0 %v520_v49  ;;  %518 = vadd.xlane.f32.xlu1 %v517_v56  ;;  %v437_v57 = vpop.xlane.xlu0 %436  ;;  %v440_v58 = vpop.xlane.xlu1 %439 }
  0xd7   : > { %v472_v60 = vmul.f32 0.03125, %v437_v57  ;;  %v473_v61 = vmul.f32 0.03125, %v440_v58  ;;  %v502_v62 = vmul.f32 %v10428_v54, %v10428_v54  ;;  %v503_v63 = vmul.f32 %v10431_v55, %v10431_v55  ;;  %v273_v57 = vld [vmem:[%s13374_s3 + $0x18] sm:$0xf]  ;;  %v274_v58 = vld [vmem:[%s13374_s3 + $0x24] sm:$0xf] }
  0xd9   : > { %v10440_v0 = vsub.f32 %v10356_v10, %v472_v60  ;;  %v10443_v1 = vsub.f32 %v10359_v11, %v473_v61  ;;  %v526_v2 = vsel %vm416_vm0, %v502_v62, 0.0  ;;  %v529_v5 = vsel %vm416_vm0, %v503_v63, 0.0 }
  0xda   : > { %524 = vadd.xlane.f32.xlu1 %v523_v59  ;;  %527 = vadd.xlane.f32.xlu0 %v526_v2  ;;  %v443_v3 = vpop.xlane.xlu0 %442  ;;  %v446_v4 = vpop.xlane.xlu1 %445  ;;  %v7785_v59 = vcombine.low %v273_v57, %v274_v58 }
  0xdb   : > { %v474_v6 = vmul.f32 0.03125, %v443_v3  ;;  %v475_v7 = vmul.f32 0.03125, %v446_v4  ;;  %v504_v8 = vmul.f32 %v10440_v0, %v10440_v0  ;;  %v505_v9 = vmul.f32 %v10443_v1, %v10443_v1 }
  0xdd   : > { %v10452_v10 = vsub.f32 %v10370_v16, %v474_v6  ;;  %v10455_v11 = vsub.f32 %v10373_v17, %v475_v7  ;;  %v532_v12 = vsel %vm416_vm0, %v504_v8, 0.0  ;;  %v535_v15 = vsel %vm416_vm0, %v505_v9, 0.0 }
  0xde   : > { %530 = vadd.xlane.f32.xlu1 %v529_v5  ;;  %533 = vadd.xlane.f32.xlu0 %v532_v12  ;;  %v449_v13 = vpop.xlane.xlu0 %448  ;;  %v452_v14 = vpop.xlane.xlu1 %451 }
  0xdf   : > { %v476_v18 = vmul.f32 0.03125, %v449_v13  ;;  %v477_v19 = vmul.f32 0.03125, %v452_v14  ;;  %v506_v22 = vmul.f32 %v10452_v10, %v10452_v10  ;;  %v507_v16 = vmul.f32 %v10455_v11, %v10455_v11 }
  0xe1   : > { %v10464_v23 = vsub.f32 %v10380_v20, %v476_v18  ;;  %v10467_v17 = vsub.f32 %v10383_v21, %v477_v19  ;;  %v538_v26 = vsel %vm416_vm0, %v506_v22, 0.0  ;;  %v541_v31 = vsel %vm416_vm0, %v507_v16, 0.0 }
  0xe2   : > { %536 = vadd.xlane.f32.xlu1 %v535_v15  ;;  %539 = vadd.xlane.f32.xlu0 %v538_v26  ;;  %v455_v27 = vpop.xlane.xlu0 %454  ;;  %v458_v30 = vpop.xlane.xlu1 %457 }
  0xe3   : > { %v478_v32 = vmul.f32 0.03125, %v455_v27  ;;  %v479_v33 = vmul.f32 0.03125, %v458_v30  ;;  %v508_v34 = vmul.f32 %v10464_v23, %v10464_v23  ;;  %v509_v20 = vmul.f32 %v10467_v17, %v10467_v17 }
  0xe5   : > { %v10476_v35 = vsub.f32 %v10390_v24, %v478_v32  ;;  %v10479_v21 = vsub.f32 %v10393_v25, %v479_v33  ;;  %v544_v38 = vsel %vm416_vm0, %v508_v34, 0.0  ;;  %v547_v41 = vsel %vm416_vm0, %v509_v20, 0.0  ;;  %v10517_v20 = vld [vmem:[%s13372_s1] ss:$0 sm:$0xff] }
  0xe6   : > { %542 = vadd.xlane.f32.xlu1 %v541_v31  ;;  %545 = vadd.xlane.f32.xlu0 %v544_v38  ;;  %v461_v39 = vpop.xlane.xlu0 %460  ;;  %v464_v40 = vpop.xlane.xlu1 %463 }
  0xe7   : > { %v480_v42 = vmul.f32 0.03125, %v461_v39  ;;  %v481_v43 = vmul.f32 0.03125, %v464_v40  ;;  %v510_v46 = vmul.f32 %v10476_v35, %v10476_v35  ;;  %v511_v24 = vmul.f32 %v10479_v21, %v10479_v21 }
  0xe9   : > { %v10488_v47 = vsub.f32 %v10400_v28, %v480_v42  ;;  %v10491_v25 = vsub.f32 %v10403_v29, %v481_v43  ;;  %v550_v48 = vsel %vm416_vm0, %v510_v46, 0.0  ;;  %v553_v49 = vsel %vm416_vm0, %v511_v24, 0.0  ;;  %v271_v29 = vld [vmem:[%s13374_s3] sm:$0xf] }
  0xea   : > { %548 = vadd.xlane.f32.xlu1 %v547_v41  ;;  %551 = vadd.xlane.f32.xlu0 %v550_v48  ;;  %v7784_v56 = vcombine.low %v271_v29, %v272_v53 }
  0xeb   : > { %v512_v50 = vmul.f32 %v10488_v47, %v10488_v47  ;;  %v513_v51 = vmul.f32 %v10491_v25, %v10491_v25 }
  0xec   : > { %8411 = vmatprep.subr.bf16.mxu1 %v7784_v56 }
  0xed   : > { %v556_v52 = vsel %vm416_vm0, %v512_v50, 0.0  ;;  %v559_v28 = vsel %vm416_vm0, %v513_v51, 0.0  ;;  %8412 = vmatpush3.bf16.msra.mxu1 %v7784_v56 }
  0xee   : > { %554 = vadd.xlane.f32.xlu1 %v553_v49  ;;  %557 = vadd.xlane.f32.xlu0 %v556_v52  ;;  %v10524_v49 = vld [vmem:[%s13372_s1 + $0x1] ss:$0 sm:$0xff] }
  0xef   : > { %8413 = vmatprep.subr.bf16.mxu1 %v7785_v59 }
  0xf1   : > { %8414 = vmatpush3.bf16.msra.mxu1 %v7785_v59 }
  0xf2   : > { %560 = vadd.xlane.f32.xlu1 %v559_v28 }
 0x15f   : > { %v516_v60 = vpop.xlane.xlu0 %515 }
 0x160   : > { %v562_v61 = vmul.f32 0.03125, %v516_v60 }
 0x162   : > { %v578_v62 = vadd.f32 1e-06, %v562_v61 }
 0x163   : > { %v519_v63 = vpop.xlane.xlu1 %518  ;;  %v522_v2 = vpop.xlane.xlu0 %521 }
 0x164   : > { %9413 = vrsqrt.f32 %v578_v62  ;;  %v563_v3 = vmul.f32 0.03125, %v519_v63  ;;  %v564_v4 = vmul.f32 0.03125, %v522_v2 }
 0x166   : > { %v579_v5 = vadd.f32 1e-06, %v563_v3  ;;  %v580_v6 = vadd.f32 1e-06, %v564_v4 }
 0x167   : > { %v525_v7 = vpop.xlane.xlu1 %524  ;;  %v528_v8 = vpop.xlane.xlu0 %527 }
 0x168   : > { %9415 = vrsqrt.f32 %v579_v5  ;;  %v565_v9 = vmul.f32 0.03125, %v525_v7  ;;  %v566_v12 = vmul.f32 0.03125, %v528_v8 }
 0x169   : > { %9417 = vrsqrt.f32 %v580_v6 }
 0x16a   : > { %v581_v13 = vadd.f32 1e-06, %v565_v9  ;;  %v582_v14 = vadd.f32 1e-06, %v566_v12 }
 0x16b   : > { %v531_v15 = vpop.xlane.xlu1 %530  ;;  %v534_v18 = vpop.xlane.xlu0 %533 }
 0x16c   : > { %9419 = vrsqrt.f32 %v581_v13  ;;  %v567_v19 = vmul.f32 0.03125, %v531_v15  ;;  %v568_v22 = vmul.f32 0.03125, %v534_v18 }
 0x16d   : > { %9421 = vrsqrt.f32 %v582_v14 }
 0x16e   : > { %v9414_v16 = vpop.eup %9413  ;;  %v583_v26 = vadd.f32 1e-06, %v567_v19  ;;  %v584_v27 = vadd.f32 1e-06, %v568_v22 }
 0x16f   : > { %v537_v30 = vpop.xlane.xlu1 %536  ;;  %v540_v31 = vpop.xlane.xlu0 %539  ;;  %v610_v32 = vmul.f32 %v9414_v16, %v10409_v36 }
 0x170   : > { %9423 = vrsqrt.f32 %v583_v26  ;;  %v569_v33 = vmul.f32 0.03125, %v537_v30  ;;  %v570_v34 = vmul.f32 0.03125, %v540_v31 }
 0x171   : > { %9425 = vrsqrt.f32 %v584_v27  ;;  %v630_v24 = vmul.f32 %v10517_v20, %v610_v32 }
 0x172   : > { %v9416_v38 = vpop.eup %9415  ;;  %v585_v39 = vadd.f32 1e-06, %v569_v33  ;;  %v586_v40 = vadd.f32 1e-06, %v570_v34 }
 0x173   : > { %v9418_v41 = vpop.eup %9417  ;;  %v543_v42 = vpop.xlane.xlu1 %542  ;;  %v611_v46 = vmul.f32 %v9416_v38, %v10417_v44  ;;  %v650_v57 = vadd.f32 %v10524_v49, %v630_v24 }
 0x174   : > { %v546_v43 = vpop.xlane.xlu0 %545  ;;  %9427 = vrsqrt.f32 %v585_v39  ;;  %v571_v36 = vmul.f32 0.03125, %v543_v42  ;;  %v612_v50 = vmul.f32 %v9418_v41, %v10411_v37 }
 0x175   : > { %v572_v48 = vmul.f32 0.03125, %v546_v43  ;;  %9429 = vrsqrt.f32 %v586_v40  ;;  %v631_v51 = vmul.f32 %v10517_v20, %v611_v46 }
 0x176   : > { %v9420_v52 = vpop.eup %9419  ;;  %v587_v28 = vadd.f32 1e-06, %v571_v36  ;;  %v632_v60 = vmul.f32 %v10517_v20, %v612_v50 }
 0x177   : > { %v588_v29 = vadd.f32 1e-06, %v572_v48  ;;  %v9422_v53 = vpop.eup %9421  ;;  %v549_v44 = vpop.xlane.xlu1 %548  ;;  %v651_v58 = vadd.f32 %v10524_v49, %v631_v51  ;;  %v613_v59 = vmul.f32 %v9420_v52, %v10419_v45 }
 0x178   : > { %v552_v56 = vpop.xlane.xlu0 %551  ;;  %9431 = vrsqrt.f32 %v587_v28  ;;  %v573_v61 = vmul.f32 0.03125, %v549_v44  ;;  %v614_v2 = vmul.f32 %v9422_v53, %v10428_v54  ;;  %v652_v45 = vadd.f32 %v10524_v49, %v632_v60 }
 0x179   : > { %v574_v37 = vmul.f32 0.03125, %v552_v56  ;;  %9433 = vrsqrt.f32 %v588_v29  ;;  %v666_v62 = vpack.c.bf16 %v651_v58, %v650_v57  ;;  %v633_v63 = vmul.f32 %v10517_v20, %v613_v59 }
 0x17a   : > { %v9424_v3 = vpop.eup %9423  ;;  %v589_v4 = vadd.f32 1e-06, %v573_v61  ;;  %v634_v13 = vmul.f32 %v10517_v20, %v614_v2 }
 0x17b   : > { %v590_v5 = vadd.f32 1e-06, %v574_v37  ;;  %v9426_v6 = vpop.eup %9425  ;;  %v555_v7 = vpop.xlane.xlu1 %554  ;;  %8415 = vmatprep.mubr.msk.bf16.mxu1 %vm416_vm0, %v666_v62  ;;  %v653_v9 = vadd.f32 %v10524_v49, %v633_v63  ;;  %v615_v12 = vmul.f32 %v9424_v3, %v10431_v55 }
 0x17c   : > { %v558_v8 = vpop.xlane.xlu0 %557  ;;  %9435 = vrsqrt.f32 %v589_v4  ;;  %v575_v14 = vmul.f32 0.03125, %v555_v7  ;;  %v616_v54 = vmul.f32 %v9426_v6, %v10440_v0  ;;  %v654_v55 = vadd.f32 %v10524_v49, %v634_v13 }
 0x17d   : > { %v576_v15 = vmul.f32 0.03125, %v558_v8  ;;  %9437 = vrsqrt.f32 %v590_v5  ;;  %v667_v18 = vpack.c.bf16 %v653_v9, %v652_v45  ;;  %v635_v19 = vmul.f32 %v10517_v20, %v615_v12 }
 0x17e   : > { %v9428_v22 = vpop.eup %9427  ;;  %v591_v16 = vadd.f32 1e-06, %v575_v14  ;;  %v636_v33 = vmul.f32 %v10517_v20, %v616_v54 }
 0x17f   : > { %v592_v26 = vadd.f32 1e-06, %v576_v15  ;;  %v9430_v27 = vpop.eup %9429  ;;  %v561_v30 = vpop.xlane.xlu1 %560  ;;  %8416 = vmatmul.mubr.msk.bf16.vlgmr.msra.gmra.mrb[0].mxu1 %vm416_vm0, %v667_v18  ;;  %v655_v31 = vadd.f32 %v10524_v49, %v635_v19  ;;  %v617_v32 = vmul.f32 %v9428_v22, %v10443_v1 }
 0x180   : > { %9439 = vrsqrt.f32 %v591_v16  ;;  %v577_v0 = vmul.f32 0.03125, %v561_v30  ;;  %v618_v34 = vmul.f32 %v9430_v27, %v10452_v10  ;;  %v656_v43 = vadd.f32 %v10524_v49, %v636_v33 }
 0x181   : > { %9441 = vrsqrt.f32 %v592_v26  ;;  %v668_v38 = vpack.c.bf16 %v655_v31, %v654_v55  ;;  %v637_v39 = vmul.f32 %v10517_v20, %v617_v32 }
 0x182   : > { %v9432_v40 = vpop.eup %9431  ;;  %v593_v41 = vadd.f32 1e-06, %v577_v0  ;;  %v638_v24 = vmul.f32 %v10517_v20, %v618_v34 }
 0x183   : > { %v9434_v42 = vpop.eup %9433  ;;  %8419 = vmatprep.mubr.msk.bf16.mxu1 %vm416_vm0, %v668_v38  ;;  %v657_v46 = vadd.f32 %v10524_v49, %v637_v39  ;;  %v619_v1 = vmul.f32 %v9432_v40, %v10455_v11 }
 0x184   : > { %9443 = vrsqrt.f32 %v593_v41  ;;  %v620_v10 = vmul.f32 %v9434_v42, %v10464_v23  ;;  %v658_v52 = vadd.f32 %v10524_v49, %v638_v24 }
 0x185   : > { %v669_v36 = vpack.c.bf16 %v657_v46, %v656_v43  ;;  %v639_v48 = vmul.f32 %v10517_v20, %v619_v1 }
 0x186   : > { %v9436_v50 = vpop.eup %9435  ;;  %v640_v11 = vmul.f32 %v10517_v20, %v620_v10 }
 0x187   : > { %v9438_v51 = vpop.eup %9437  ;;  %8420 = vmatmul.mubr.msk.bf16.gmra.mrb[4].mxu1 %vm416_vm0, %v669_v36  ;;  %v659_v28 = vadd.f32 %v10524_v49, %v639_v48  ;;  %v621_v29 = vmul.f32 %v9436_v50, %v10467_v17 }
 0x188   : > { %v622_v53 = vmul.f32 %v9438_v51, %v10476_v35  ;;  %v660_v58 = vadd.f32 %v10524_v49, %v640_v11 }
 0x189   : > { %v670_v44 = vpack.c.bf16 %v659_v28, %v658_v52  ;;  %v641_v23 = vmul.f32 %v10517_v20, %v621_v29 }
 0x18a   : > { %v9440_v56 = vpop.eup %9439  ;;  %v642_v61 = vmul.f32 %v10517_v20, %v622_v53 }
 0x18b   : > { %v9442_v57 = vpop.eup %9441  ;;  %8423 = vmatprep.mubr.msk.bf16.mxu1 %vm416_vm0, %v670_v44  ;;  %v661_v59 = vadd.f32 %v10524_v49, %v641_v23  ;;  %v623_v60 = vmul.f32 %v9440_v56, %v10479_v21  ;;  %v13380_v23 = vlaneseq }
 0x18c   : > { %v624_v17 = vmul.f32 %v9442_v57, %v10488_v47  ;;  %v662_v63 = vadd.f32 %v10524_v49, %v642_v61  ;;  %v10180_v57 = vmov 0  }
 0x18d   : > { %v671_v37 = vpack.c.bf16 %v661_v59, %v660_v58  ;;  %v643_v35 = vmul.f32 %v10517_v20, %v623_v60  ;;  %v10652_v56 = vand.u32 127, %v13380_v23 }
 0x18e   : > { %v9444_v62 = vpop.eup %9443  ;;  %v644_v4 = vmul.f32 %v10517_v20, %v624_v17 }
 0x18f   : > { %8424 = vmatmul.mubr.msk.bf16.gmra.mrb[8].mxu1 %vm416_vm0, %v671_v37  ;;  %v663_v2 = vadd.f32 %v10524_v49, %v643_v35  ;;  %v625_v3 = vmul.f32 %v9444_v62, %v10491_v25  ;;  %vm358_vm2 = vcmp.ge.s32.totalorder %v10652_v56, 16  ;;  %vm360_vm3 = vcmp.ge.s32.totalorder %v10652_v56, 32 }
 0x190   : > { %v664_v47 = vadd.f32 %v10524_v49, %v644_v4  ;;  %v359_v58 = vsel %vm358_vm2, 1, %v10180_v57  ;;  %v361_v59 = vsel %vm360_vm3, 1, %v10180_v57  ;;  %vm363_vm4 = vcmp.ge.s32.totalorder %v10652_v56, 48 }
 0x191   : > { %v672_v5 = vpack.c.bf16 %v663_v2, %v662_v63  ;;  %v645_v21 = vmul.f32 %v10517_v20, %v625_v3  ;;  %v362_v60 = vadd.s32 %v361_v59, %v359_v58  ;;  %v364_v61 = vsel %vm363_vm4, 1, %v10180_v57 }
 0x192   : > { %v13378_v37 = vmov -1e+30  }
 0x193   : > { %8427 = vmatprep.mubr.msk.bf16.mxu1 %vm416_vm0, %v672_v5  ;;  %v665_v6 = vadd.f32 %v10524_v49, %v645_v21  ;;  %v10657_v17 = vadd.s32 %v364_v61, %v362_v60 }
 0x195   : > { %v673_v7 = vpack.c.bf16 %v665_v6, %v664_v47  ;;  %vm7776_vm5 = vcmp.eq.s32.totalorder %v10657_v17, 1  ;;  %vm7774_vm6 = vcmp.eq.s32.totalorder %v10657_v17, 0  ;;  %vm7780_vm8 = vcmp.eq.s32.totalorder %v10657_v17, 3 }
 0x196   : > { %v10662_v35 = vsel %vm7776_vm5, 0.0, %v13378_v37  ;;  %v10665_v63 = vsel %vm7774_vm6, 0.0, %v13378_v37  ;;  %vm7778_vm9 = vcmp.eq.s32.totalorder %v10657_v17, 2 }
 0x197   : > { %8428 = vmatmul.mubr.msk.bf16.gmra.mrb[12].mxu1 %vm416_vm0, %v673_v7 }
 0x252   : > { %v8417_v8 = vpop.f32.mrb[0].mxu1 }
 0x253   : > { %v744_v45 = vpop.f32.mrb[1].mxu1 }
 0x254   : > { %v8418_v9 = vpop.f32.mrb[2].mxu1 }
 0x255   : > { %v10579_v12 = vpack.c.bf16 %v8418_v9, %v8417_v8  ;;  %v747_v25 = vpop.f32.mrb[3].mxu1  ;;  %v10687_v9 = vsel %vm7780_vm8, 0.0, %v13378_v37 }
 0x256   : > { %v10581_v13 = vpack.c.bf16 %v747_v25, %v744_v45 }
 0x257   : > { %821 = vrot.lane.b32.xlu1 %v10579_v12, %s10178_s26 }
 0x258   : > { %819 = vrot.lane.b32.xlu0 %v10581_v13, %s10178_s26  ;;  %8439 = vmatprep.mubr.msk.bf16.mxu0 %vm827_vm1, %v10581_v13 }
 0x25a   : > { %v8421_v20 = vpop.f32.mrb[4].mxu1 }
 0x25b   : > { %v760_v49 = vpop.f32.mrb[5].mxu1 }
 0x25c   : > { %v8422_v14 = vpop.f32.mrb[6].mxu1 }
 0x25d   : > { %v10589_v15 = vpack.c.bf16 %v8422_v14, %v8421_v20  ;;  %v763_v54 = vpop.f32.mrb[7].mxu1 }
 0x25e   : > { %v10591_v18 = vpack.c.bf16 %v763_v54, %v760_v49 }
 0x25f   : > { %825 = vrot.lane.b32.xlu0 %v10589_v15, %s10178_s26 }
 0x260   : > { %823 = vrot.lane.b32.xlu1 %v10591_v18, %s10178_s26 }
 0x262   : > { %v8425_v19 = vpop.f32.mrb[8].mxu1 }
 0x263   : > { %v776_v22 = vpop.f32.mrb[9].mxu1 }
 0x264   : > { %v8426_v16 = vpop.f32.mrb[10].mxu1 }
 0x265   : > { %v10597_v26 = vpack.c.bf16 %v8426_v16, %v8425_v19  ;;  %v779_v27 = vpop.f32.mrb[11].mxu1  ;;  %v10699_v16 = vsel %vm7778_vm9, 0.0, %v13378_v37 }
 0x266   : > { %v10599_v30 = vpack.c.bf16 %v779_v27, %v776_v22 }
 0x268   : > { %1103 = vrot.lane.b32.xlu1 %v10599_v30, %s10178_s26  ;;  %8471 = vmatprep.mubr.msk.bf16.mxu1 %vm827_vm1, %v10599_v30 }
 0x26a   : > { %v8429_v55 = vpop.f32.mrb[12].mxu1 }
 0x26b   : > { %v792_v31 = vpop.f32.mrb[13].mxu1 }
 0x26c   : > { %1105 = vrot.lane.b32.xlu1 %v10597_v26, %s10178_s26  ;;  %v8430_v32 = vpop.f32.mrb[14].mxu1 }
 0x26d   : > { %v10607_v33 = vpack.c.bf16 %v8430_v32, %v8429_v55  ;;  %v795_v0 = vpop.f32.mrb[15].mxu1 }
 0x26e   : > { %v10609_v34 = vpack.c.bf16 %v795_v0, %v792_v31 }
 0x270   : > { %1109 = vrot.lane.b32.xlu1 %v10607_v33, %s10178_s26  ;;  %1107 = vrot.lane.b32.xlu0 %v10609_v34, %s10178_s26 }
 0x274   : > { %1012 = vrot.lane.b32.xlu1 %v10579_v12, %s10179_s29  ;;  %1010 = vrot.lane.b32.xlu0 %v10581_v13, %s10179_s29 }
 0x278   : > { %1016 = vrot.lane.b32.xlu1 %v10589_v15, %s10179_s29  ;;  %1014 = vrot.lane.b32.xlu0 %v10591_v18, %s10179_s29 }
 0x2c9   : > { %v822_v40 = vpop.permute.xlu1 %821 }
 0x2ca   : > { %v820_v38 = vpop.permute.xlu0 %819  ;;  %v844_v41 = vsel %vm827_vm1, %v822_v40, 0 }
 0x2cb   : > { %9255 = vmatprep.subr.msk.bf16.mxu0 %vm827_vm1, %v820_v38  ;;  %v841_v39 = vsel %vm827_vm1, %v820_v38, 0 }
 0x2cc   : > { %8432 = vmatpush3.bf16.xpose.msra.mxu0 %v841_v39 }
 0x2cd   : > { %9256 = vmatprep.subr.msk.bf16.mxu0 %vm827_vm1, %v822_v40 }
 0x2d1   : > { %v826_v24 = vpop.permute.xlu0 %825 }
 0x2d2   : > { %v824_v42 = vpop.permute.xlu1 %823  ;;  %v850_v48 = vsel %vm827_vm1, %v826_v24, 0 }
 0x2d3   : > { %v847_v46 = vsel %vm827_vm1, %v824_v42, 0 }
 0x2d4   : > { %8434 = vmatpush3.bf16.xpose.msra.mxu0 %v844_v41 }
 0x2d5   : > { %9257 = vmatprep.subr.msk.bf16.mxu0 %vm827_vm1, %v824_v42 }
 0x2da   : > { %v1104_v43 = vpop.permute.xlu1 %1103 }
 0x2db   : > { %9259 = vmatprep.subr.msk.bf16.mxu1 %vm827_vm1, %v1104_v43  ;;  %v1124_v1 = vsel %vm827_vm1, %v1104_v43, 0 }
 0x2dc   : > { %8436 = vmatpush3.bf16.xpose.msra.mxu0 %v847_v46  ;;  %8464 = vmatpush3.bf16.xpose.msra.mxu1 %v1124_v1 }
 0x2dd   : > { %9258 = vmatprep.subr.msk.bf16.mxu0 %vm827_vm1, %v826_v24 }
 0x2de   : > { %v1106_v10 = vpop.permute.xlu1 %1105 }
 0x2df   : > { %9260 = vmatprep.subr.msk.bf16.mxu1 %vm827_vm1, %v1106_v10  ;;  %v1127_v50 = vsel %vm827_vm1, %v1106_v10, 0 }
 0x2e2   : > { %v1108_v36 = vpop.permute.xlu0 %1107  ;;  %v1110_v51 = vpop.permute.xlu1 %1109 }
 0x2e3   : > { %v1130_v29 = vsel %vm827_vm1, %v1108_v36, 0  ;;  %v1133_v44 = vsel %vm827_vm1, %v1110_v51, 0 }
 0x2e4   : > { %8438 = vmatpush3.bf16.xpose.msra.mxu0 %v850_v48  ;;  %8466 = vmatpush3.bf16.xpose.msra.mxu1 %v1127_v50 }
 0x2e5   : > { %9261 = vmatprep.subr.msk.bf16.mxu1 %vm827_vm1, %v1108_v36 }
 0x2e6   : > { %v1011_v52 = vpop.permute.xlu0 %1010  ;;  %v1013_v28 = vpop.permute.xlu1 %1012 }
 0x2e7   : > { %8447 = vmatprep.subr.bf16.mxu0 %v1011_v52 }
 0x2ea   : > { %v1015_v11 = vpop.permute.xlu0 %1014  ;;  %v1017_v53 = vpop.permute.xlu1 %1016 }
 0x2eb   : > { %8440 = vmatmul.mubr.msk.bf16.vlgmr.msra.gmra.mrb[0].mxu0 %vm827_vm1, %v10579_v12 }
 0x2ec   : > { %8443 = vmatprep.mubr.msk.bf16.mxu0 %vm827_vm1, %v10591_v18  ;;  %8448 = vmatpush3.bf16.msra.mxu0 %v1011_v52 }
 0x2ed   : > { %8468 = vmatpush3.bf16.xpose.msra.mxu1 %v1130_v29  ;;  %8449 = vmatprep.subr.bf16.mxu0 %v1013_v28 }
 0x2ee   : > { %9262 = vmatprep.subr.msk.bf16.mxu1 %vm827_vm1, %v1110_v51 }
 0x2f0   : > { %8450 = vmatpush3.bf16.msra.mxu0 %v1013_v28 }
 0x2f1   : > { %8451 = vmatprep.subr.bf16.mxu0 %v1015_v11 }
 0x2f3   : > { %8444 = vmatmul.mubr.msk.bf16.gmra.mrb[4].mxu0 %vm827_vm1, %v10589_v15 }
 0x2f4   : > { %8452 = vmatpush3.bf16.msra.mxu0 %v1015_v11 }
 0x2f5   : > { %8470 = vmatpush3.bf16.xpose.msra.mxu1 %v1133_v44  ;;  %8453 = vmatprep.subr.bf16.mxu0 %v1017_v53 }
 0x2f8   : > { %8454 = vmatpush3.bf16.msra.mxu0 %v1017_v53 }
 0x2fc   : > { %8472 = vmatmul.mubr.msk.bf16.vlgmr.msra.gmra.mrb[16].mxu1 %vm827_vm1, %v10597_v26 }
 0x2fd   : > { %8475 = vmatprep.mubr.msk.bf16.mxu1 %vm827_vm1, %v10609_v34 }
 0x304   : > { %8476 = vmatmul.mubr.msk.bf16.gmra.mrb[20].mxu1 %vm827_vm1, %v10607_v33 }
 0x3be   : > { %v8441_v62 = vpop.f32.mrb[0].mxu0 }
 0x3bf   : > { %v10668_v2 = vadd.f32 %v8441_v62, %v10662_v35  ;;  %v886_v3 = vpop.f32.mrb[1].mxu0 }
 0x3c0   : > { %v8442_v4 = vpop.f32.mrb[2].mxu0  ;;  %v10671_v5 = vadd.f32 %v886_v3, %v10665_v63 }
 0x3c1   : > { %v889_v21 = vpop.f32.mrb[3].mxu0  ;;  %v924_v47 = vsel %vm917_vm7, %v10668_v2, -inf  ;;  %v10682_v8 = vadd.f32 %v8442_v4, %v10662_v35 }
 0x3c2   : > { %v10676_v6 = vadd.f32 %v889_v21, %v10665_v63  ;;  %925 = vmax.xlane.f32.xlu0 %v924_v47  ;;  %v918_v45 = vsel %vm917_vm7, %v10671_v5, -inf }
 0x3c3   : > { %v927_v22 = vsel %vm917_vm7, %v10682_v8, -inf }
 0x3c4   : > { %v921_v7 = vsel %vm917_vm7, %v10676_v6, -inf }
 0x3c5   : > { %922 = vmax.xlane.f32.xlu1 %v921_v7 }
 0x3c6   : > { %v8445_v25 = vpop.f32.mrb[4].mxu0  ;;  %919 = vmax.xlane.f32.xlu0 %v918_v45 }
 0x3c7   : > { %v902_v20 = vpop.f32.mrb[5].mxu0  ;;  %v10691_v14 = vadd.f32 %v8445_v25, %v10687_v9 }
 0x3c8   : > { %v8446_v49 = vpop.f32.mrb[6].mxu0  ;;  %v10707_v31 = vadd.f32 %v902_v20, %v10699_v16 }
 0x3c9   : > { %v10694_v54 = vadd.f32 %v8446_v49, %v10687_v9  ;;  %v905_v19 = vpop.f32.mrb[7].mxu0  ;;  %v936_v32 = vsel %vm917_vm7, %v10691_v14, -inf }
 0x3ca   : > { %928 = vmax.xlane.f32.xlu0 %v927_v22  ;;  %v10702_v27 = vadd.f32 %v905_v19, %v10699_v16  ;;  %v930_v42 = vsel %vm917_vm7, %v10707_v31, -inf }
 0x3cb   : > { %v939_v55 = vsel %vm917_vm7, %v10694_v54, -inf }
 0x3cc   : > { %940 = vmax.xlane.f32.xlu1 %v939_v55  ;;  %v933_v38 = vsel %vm917_vm7, %v10702_v27, -inf }
 0x3ce   : > { %937 = vmax.xlane.f32.xlu0 %v936_v32 }
 0x3cf   : > { %v8473_v0 = vpop.f32.mrb[16].mxu1 }
 0x3d0   : > { %v1169_v39 = vpop.f32.mrb[17].mxu1  ;;  %934 = vmax.xlane.f32.xlu1 %v933_v38  ;;  %v10714_v40 = vadd.f32 %v8473_v0, %v10662_v35 }
 0x3d1   : > { %v8474_v41 = vpop.f32.mrb[18].mxu1  ;;  %v10727_v10 = vadd.f32 %v1169_v39, %v10665_v63 }
 0x3d2   : > { %v10719_v43 = vadd.f32 %v8474_v41, %v10662_v35  ;;  %v1172_v46 = vpop.f32.mrb[19].mxu1  ;;  %931 = vmax.xlane.f32.xlu0 %v930_v42  ;;  %v1206_v36 = vsel %vm917_vm7, %v10714_v40, -inf }
 0x3d3   : > { %v10722_v1 = vadd.f32 %v1172_v46, %v10665_v63  ;;  %v1200_v29 = vsel %vm917_vm7, %v10727_v10, -inf }
 0x3d4   : > { %v1209_v24 = vsel %vm917_vm7, %v10719_v43, -inf }
 0x3d5   : > { %1210 = vmax.xlane.f32.xlu1 %v1209_v24  ;;  %v1203_v51 = vsel %vm917_vm7, %v10722_v1, -inf }
 0x3d6   : > { %1207 = vmax.xlane.f32.xlu0 %v1206_v36 }
 0x3d7   : > { %v8477_v48 = vpop.f32.mrb[20].mxu1 }
 0x3d8   : > { %v1185_v50 = vpop.f32.mrb[21].mxu1  ;;  %v10734_v52 = vadd.f32 %v8477_v48, %v10687_v9 }
 0x3d9   : > { %v8478_v28 = vpop.f32.mrb[22].mxu1  ;;  %1204 = vmax.xlane.f32.xlu1 %v1203_v51  ;;  %v10739_v53 = vadd.f32 %v1185_v50, %v10699_v16 }
 0x3da   : > { %v1188_v11 = vpop.f32.mrb[23].mxu1  ;;  %1201 = vmax.xlane.f32.xlu0 %v1200_v29  ;;  %v1218_v44 = vsel %vm917_vm7, %v10734_v52, -inf  ;;  %v10752_v58 = vadd.f32 %v8478_v28, %v10687_v9 }
 0x3db   : > { %v1212_v57 = vsel %vm917_vm7, %v10739_v53, -inf  ;;  %v10755_v59 = vadd.f32 %v1188_v11, %v10699_v16 }
 0x3dc   : > { %v1221_v60 = vsel %vm917_vm7, %v10752_v58, -inf }
 0x3dd   : > { %v1215_v61 = vsel %vm917_vm7, %v10755_v59, -inf }
 0x3de   : > { %1219 = vmax.xlane.f32.xlu0 %v1218_v44 }
 0x3e2   : > { %1213 = vmax.xlane.f32.xlu0 %v1212_v57 }
 0x3ea   : > { %1294 = vrot.lane.b32.xlu1 %v10597_v26, %s10179_s29 }
 0x3ee   : > { %1296 = vrot.lane.b32.xlu1 %v10609_v34, %s10179_s29 }
 0x3f8   : > { %1292 = vrot.lane.b32.xlu0 %v10599_v30, %s10179_s29 }
 0x412   : > { %1222 = vmax.xlane.f32.xlu1 %v1221_v60 }
 0x416   : > { %1216 = vmax.xlane.f32.xlu1 %v1215_v61 }
 0x427   : > { %1298 = vrot.lane.b32.xlu1 %v10607_v33, %s10179_s29 }
 0x44f   : > { %v926_v62 = vpop.xlane.xlu0 %925 }
 0x450   : > { %v944_v3 = vsub.f32 %v10668_v2, %v926_v62 }
 0x452   : > { %v954_v4 = vmul.f32 1.442695, %v944_v3  ;;  %v923_v21 = vpop.xlane.xlu1 %922 }
 0x453   : > { %v920_v47 = vpop.xlane.xlu0 %919  ;;  %v943_v45 = vsub.f32 %v10676_v6, %v923_v21 }
 0x454   : > { %9445 = vpow2.f32 %v954_v4  ;;  %v942_v7 = vsub.f32 %v10671_v5, %v920_v47 }
 0x455   : > { %v952_v22 = vmul.f32 1.442695, %v943_v45 }
 0x456   : > { %v950_v25 = vmul.f32 1.442695, %v942_v7 }
 0x457   : > { %v929_v20 = vpop.xlane.xlu0 %928 }
 0x458   : > { %9447 = vpow2.f32 %v950_v25  ;;  %v945_v49 = vsub.f32 %v10682_v8, %v929_v20 }
 0x459   : > { %v941_v19 = vpop.xlane.xlu1 %940 }
 0x45a   : > { %v956_v55 = vmul.f32 1.442695, %v945_v49  ;;  %v949_v5 = vsub.f32 %v10694_v54, %v941_v19 }
 0x45b   : > { %v938_v32 = vpop.xlane.xlu0 %937 }
 0x45c   : > { %9449 = vpow2.f32 %v956_v55  ;;  %v948_v2 = vsub.f32 %v10691_v14, %v938_v32  ;;  %v964_v24 = vmul.f32 1.442695, %v949_v5 }
 0x45d   : > { %v935_v0 = vpop.xlane.xlu1 %934  ;;  %9451 = vpow2.f32 %v952_v22 }
 0x45e   : > { %v10768_v38 = vpop.eup %9445  ;;  %v962_v39 = vmul.f32 1.442695, %v948_v2  ;;  %v947_v42 = vsub.f32 %v10702_v27, %v935_v0 }
 0x45f   : > { %v932_v6 = vpop.xlane.xlu0 %931  ;;  %v972_v41 = vsel %vm917_vm7, %v10768_v38, 0.0 }
 0x460   : > { %v946_v8 = vsub.f32 %v10707_v31, %v932_v6  ;;  %973 = vadd.xlane.f32.xlu0 %v972_v41  ;;  %9453 = vpow2.f32 %v962_v39  ;;  %v960_v31 = vmul.f32 1.442695, %v947_v42 }
 0x462   : > { %v10775_v46 = vpop.eup %9447  ;;  %v958_v14 = vmul.f32 1.442695, %v946_v8  ;;  %v1211_v36 = vpop.xlane.xlu1 %1210 }
 0x463   : > { %v1227_v48 = vsub.f32 %v10719_v43, %v1211_v36  ;;  %v1208_v50 = vpop.xlane.xlu0 %1207  ;;  %v966_v54 = vsel %vm917_vm7, %v10775_v46, 0.0 }
 0x464   : > { %9455 = vpow2.f32 %v958_v14  ;;  %v1226_v51 = vsub.f32 %v10714_v40, %v1208_v50  ;;  %967 = vadd.xlane.f32.xlu0 %v966_v54 }
 0x465   : > { %9457 = vpow2.f32 %v964_v24  ;;  %v1238_v27 = vmul.f32 1.442695, %v1227_v48 }
 0x466   : > { %v10781_v28 = vpop.eup %9449  ;;  %v1236_v29 = vmul.f32 1.442695, %v1226_v51  ;;  %v1205_v11 = vpop.xlane.xlu1 %1204 }
 0x467   : > { %v1225_v44 = vsub.f32 %v10722_v1, %v1205_v11  ;;  %v1202_v57 = vpop.xlane.xlu0 %1201  ;;  %v975_v43 = vsel %vm917_vm7, %v10781_v28, 0.0  ;;  %v10786_v60 = vpop.eup %9451 }
 0x468   : > { %9459 = vpow2.f32 %v1236_v29  ;;  %v1224_v61 = vsub.f32 %v10727_v10, %v1202_v57  ;;  %976 = vadd.xlane.f32.xlu1 %v975_v43  ;;  %v969_v4 = vsel %vm917_vm7, %v10786_v60, 0.0 }
 0x469   : > { %9461 = vpow2.f32 %v960_v31  ;;  %v1234_v40 = vmul.f32 1.442695, %v1225_v44 }
 0x46a   : > { %9463 = vpow2.f32 %v1238_v27  ;;  %v1232_v62 = vmul.f32 1.442695, %v1224_v61  ;;  %v10791_v21 = vpop.eup %9453  ;;  %v10840_v48 = vpop.permute.xlu1 %1294 }
 0x46b   : > { %v1220_v3 = vpop.xlane.xlu0 %1219  ;;  %9465 = vpow2.f32 %v1234_v40  ;;  %v984_v45 = vsel %vm917_vm7, %v10791_v21, 0.0 }
 0x46c   : > { %v1230_v1 = vsub.f32 %v10734_v52, %v1220_v3  ;;  %970 = vadd.xlane.f32.xlu1 %v969_v4  ;;  %9467 = vpow2.f32 %v1232_v62 }
 0x46e   : > { %v10794_v47 = vpop.eup %9455  ;;  %v1244_v7 = vmul.f32 1.442695, %v1230_v1  ;;  %v10842_v50 = vpop.permute.xlu1 %1296 }
 0x46f   : > { %v1214_v10 = vpop.xlane.xlu0 %1213  ;;  %v978_v25 = vsel %vm917_vm7, %v10794_v47, 0.0  ;;  %v10800_v20 = vpop.eup %9457 }
 0x470   : > { %v1228_v49 = vsub.f32 %v10739_v53, %v1214_v10  ;;  %985 = vadd.xlane.f32.xlu1 %v984_v45  ;;  %979 = vadd.xlane.f32.xlu0 %v978_v25  ;;  %9469 = vpow2.f32 %v1244_v7  ;;  %v987_v32 = vsel %vm917_vm7, %v10800_v20, 0.0 }
 0x472   : > { %v10803_v52 = vpop.eup %9459  ;;  %v1240_v19 = vmul.f32 1.442695, %v1228_v49 }
 0x473   : > { %v10805_v22 = vpop.eup %9461  ;;  %v10807_v55 = vpop.permute.xlu0 %1292  ;;  %v1254_v2 = vsel %vm917_vm7, %v10803_v52, 0.0 }
 0x474   : > { %v10813_v0 = vpop.eup %9463  ;;  %988 = vadd.xlane.f32.xlu1 %v987_v32  ;;  %1255 = vadd.xlane.f32.xlu0 %v1254_v2  ;;  %9471 = vpow2.f32 %v1240_v19  ;;  %v981_v5 = vsel %vm917_vm7, %v10805_v22, 0.0 }
 0x475   : > { %8479 = vmatprep.subr.bf16.mxu0 %v10807_v55  ;;  %v10816_v53 = vpop.eup %9465  ;;  %v1257_v39 = vsel %vm917_vm7, %v10813_v0, 0.0 }
 0x476   : > { %v10822_v6 = vpop.eup %9467  ;;  %v1251_v41 = vsel %vm917_vm7, %v10816_v53, 0.0 }
 0x477   : > { %v1248_v8 = vsel %vm917_vm7, %v10822_v6, 0.0 }
 0x478   : > { %982 = vadd.xlane.f32.xlu1 %v981_v5  ;;  %1258 = vadd.xlane.f32.xlu0 %v1257_v39 }
 0x47a   : > { %v10828_v42 = vpop.eup %9469 }
 0x47b   : > { %v1266_v24 = vsel %vm917_vm7, %v10828_v42, 0.0 }
 0x47c   : > { %1252 = vadd.xlane.f32.xlu0 %v1251_v41  ;;  %1249 = vadd.xlane.f32.xlu1 %v1248_v8 }
 0x47e   : > { %v10832_v14 = vpop.eup %9471 }
 0x47f   : > { %v1260_v36 = vsel %vm917_vm7, %v10832_v14, 0.0 }
 0x480   : > { %1267 = vadd.xlane.f32.xlu0 %v1266_v24 }
 0x484   : > { %1261 = vadd.xlane.f32.xlu0 %v1260_v36 }
 0x48d   : > { %1399 = vrot.lane.b32.xlu1 %v10579_v12, %s10182_s12 }
 0x491   : > { %1401 = vrot.lane.b32.xlu1 %v10591_v18, %s10182_s12 }
 0x49f   : > { %v1223_v54 = vpop.xlane.xlu1 %1222 }
 0x4a0   : > { %v1231_v51 = vsub.f32 %v10752_v58, %v1223_v54 }
 0x4a2   : > { %v1246_v31 = vmul.f32 1.442695, %v1231_v51 }
 0x4a3   : > { %v1217_v27 = vpop.xlane.xlu1 %1216 }
 0x4a4   : > { %9473 = vpow2.f32 %v1246_v31  ;;  %v1229_v29 = vsub.f32 %v10755_v59, %v1217_v27 }
 0x4a6   : > { %v1242_v11 = vmul.f32 1.442695, %v1229_v29 }
 0x4a7   : > { %v1299_v59 = vpop.permute.xlu1 %1298 }
 0x4a8   : > { %9475 = vpow2.f32 %v1242_v11 }
 0x4ae   : > { %v10846_v44 = vpop.eup %9473 }
 0x4af   : > { %v1269_v57 = vsel %vm917_vm7, %v10846_v44, 0.0 }
 0x4b0   : > { %1270 = vadd.xlane.f32.xlu0 %v1269_v57 }
 0x4b2   : > { %v10850_v43 = vpop.eup %9475 }
 0x4b3   : > { %v1263_v61 = vsel %vm917_vm7, %v10850_v43, 0.0 }
 0x4b5   : > { %1264 = vadd.xlane.f32.xlu1 %v1263_v61 }
 0x4c6   : > { %1397 = vrot.lane.b32.xlu0 %v10581_v13, %s10182_s12  ;;  %1403 = vrot.lane.b32.xlu1 %v10589_v15, %s10182_s12 }
 0x4ca   : > { %1389 = vrot.lane.b32.xlu0 %v10581_v13, %s10183_s14  ;;  %1391 = vrot.lane.b32.xlu1 %v10579_v12, %s10183_s14 }
 0x4ce   : > { %1393 = vrot.lane.b32.xlu0 %v10591_v18, %s10183_s14  ;;  %1395 = vrot.lane.b32.xlu1 %v10589_v15, %s10183_s14 }
 0x4ed   : > { %v974_v58 = vpop.xlane.xlu0 %973 }
 0x4f1   : > { %v968_v40 = vpop.xlane.xlu0 %967 }
 0x4f5   : > { %v977_v62 = vpop.xlane.xlu1 %976 }
 0x4f6   : > { %9477 = vrcp.f32 %v977_v62 }
 0x4f7   : > { %9479 = vrcp.f32 %v968_v40 }
 0x4f8   : > { %9481 = vrcp.f32 %v974_v58 }
 0x4f9   : > { %v971_v3 = vpop.xlane.xlu1 %970 }
 0x4fa   : > { %9483 = vrcp.f32 %v971_v3 }
 0x4fd   : > { %v986_v4 = vpop.xlane.xlu1 %985  ;;  %v980_v1 = vpop.xlane.xlu0 %979 }
 0x500   : > { %v9478_v7 = vpop.eup %9477 }
 0x501   : > { %v989_v10 = vpop.xlane.xlu1 %988  ;;  %v1256_v45 = vpop.xlane.xlu0 %1255  ;;  %v1001_v32 = vmul.f32 %v9478_v7, %v10781_v28 }
 0x502   : > { %v9480_v25 = vpop.eup %9479  ;;  %9485 = vrcp.f32 %v989_v10 }
 0x503   : > { %v9482_v49 = vpop.eup %9481  ;;  %9487 = vrcp.f32 %v980_v1  ;;  %v998_v39 = vmul.f32 %v9480_v25, %v10775_v46 }
 0x504   : > { %v9484_v19 = vpop.eup %9483  ;;  %9489 = vrcp.f32 %v986_v4  ;;  %v1000_v8 = vmul.f32 %v9482_v49, %v10768_v38 }
 0x505   : > { %v983_v2 = vpop.xlane.xlu1 %982  ;;  %v1259_v5 = vpop.xlane.xlu0 %1258  ;;  %v999_v41 = vmul.f32 %v9484_v19, %v10786_v60 }
 0x506   : > { %9491 = vrcp.f32 %v983_v2  ;;  %v1007_v36 = vpack.c.bf16 %v1001_v32, %v1000_v8 }
 0x507   : > { %v1006_v24 = vpack.c.bf16 %v999_v41, %v998_v39  ;;  %9493 = vrcp.f32 %v1259_v5 }
 0x509   : > { %v1250_v54 = vpop.xlane.xlu1 %1249  ;;  %8455 = vmatprep.mubr.msk.bf16.mxu0 %vm917_vm7, %v1006_v24  ;;  %v1253_v51 = vpop.xlane.xlu0 %1252 }
 0x50a   : > { %9495 = vrcp.f32 %v1250_v54  ;;  %8456 = vmatmul.mubr.msk.bf16.vlgmr.msra.gmra.mrb[8].mxu0 %vm917_vm7, %v1007_v36 }
 0x50b   : > { %9497 = vrcp.f32 %v1253_v51  ;;  %8480 = vmatpush3.bf16.msra.mxu0 %v10807_v55 }
 0x50c   : > { %8481 = vmatprep.subr.bf16.mxu0 %v10840_v48  ;;  %v9486_v46 = vpop.eup %9485  ;;  %9499 = vrcp.f32 %v1256_v45 }
 0x50d   : > { %v9488_v28 = vpop.eup %9487  ;;  %v1005_v31 = vmul.f32 %v9486_v46, %v10800_v20  ;;  %v1268_v3 = vpop.xlane.xlu0 %1267 }
 0x50e   : > { %v9490_v38 = vpop.eup %9489  ;;  %v1002_v27 = vmul.f32 %v9488_v28, %v10794_v47  ;;  %v1400_v4 = vpop.permute.xlu1 %1399 }
 0x50f   : > { %8482 = vmatpush3.bf16.msra.mxu0 %v10840_v48  ;;  %v1004_v11 = vmul.f32 %v9490_v38, %v10791_v21  ;;  %v1421_v10 = vsel %vm827_vm1, %v1400_v4, 0 }
 0x510   : > { %v9492_v60 = vpop.eup %9491  ;;  %8483 = vmatprep.subr.bf16.mxu0 %v10842_v50 }
 0x511   : > { %v1003_v29 = vmul.f32 %v9492_v60, %v10805_v22  ;;  %v9494_v55 = vpop.eup %9493  ;;  %v1009_v58 = vpack.c.bf16 %v1005_v31, %v1004_v11  ;;  %v1262_v1 = vpop.xlane.xlu0 %1261 }
 0x512   : > { %v1283_v21 = vmul.f32 %v9494_v55, %v10813_v0  ;;  %v1402_v7 = vpop.permute.xlu1 %1401  ;;  %9501 = vrcp.f32 %v1262_v1 }
 0x513   : > { %8484 = vmatpush3.bf16.msra.mxu0 %v10842_v50  ;;  %v1008_v57 = vpack.c.bf16 %v1003_v29, %v1002_v27  ;;  %v1424_v41 = vsel %vm827_vm1, %v1402_v7, 0 }
 0x514   : > { %v9496_v61 = vpop.eup %9495  ;;  %8485 = vmatprep.subr.bf16.mxu0 %v1299_v59 }
 0x515   : > { %v9498_v40 = vpop.eup %9497  ;;  %8459 = vmatprep.mubr.msk.bf16.mxu0 %vm917_vm7, %v1008_v57  ;;  %v1280_v48 = vmul.f32 %v9496_v61, %v10822_v6 }
 0x516   : > { %8460 = vmatmul.mubr.msk.bf16.gmra.mrb[12].mxu0 %vm917_vm7, %v1009_v58  ;;  %v1281_v47 = vmul.f32 %v9498_v40, %v10816_v53  ;;  %v9500_v20 = vpop.eup %9499 }
 0x517   : > { %8486 = vmatpush3.bf16.msra.mxu0 %v1299_v59  ;;  %v1282_v50 = vmul.f32 %v9500_v20, %v10803_v52 }
 0x518   : > { %v1288_v22 = vpack.c.bf16 %v1281_v47, %v1280_v48 }
 0x519   : > { %v1289_v62 = vpack.c.bf16 %v1283_v21, %v1282_v50 }
 0x51a   : > { %8487 = vmatprep.mubr.msk.bf16.mxu0 %vm917_vm7, %v1288_v22 }
 0x51c   : > { %v9502_v52 = vpop.eup %9501 }
 0x51d   : > { %v1284_v19 = vmul.f32 %v9502_v52, %v10832_v14 }
 0x51e   : > { %8488 = vmatmul.mubr.msk.bf16.vlgmr.msra.gmra.mrb[16].mxu0 %vm917_vm7, %v1289_v62 }
 0x53d   : > { %v1271_v6 = vpop.xlane.xlu0 %1270 }
 0x53e   : > { %9503 = vrcp.f32 %v1271_v6 }
 0x53f   : > { %9505 = vrcp.f32 %v1268_v3 }
 0x541   : > { %v1398_v53 = vpop.permute.xlu0 %1397 }
 0x542   : > { %9263 = vmatprep.subr.msk.bf16.mxu0 %vm827_vm1, %v1398_v53  ;;  %v1265_v0 = vpop.xlane.xlu1 %1264  ;;  %v1418_v59 = vsel %vm827_vm1, %v1398_v53, 0 }
 0x543   : > { %9507 = vrcp.f32 %v1265_v0  ;;  %8496 = vmatpush3.bf16.xpose.msra.mxu0 %v1418_v59 }
 0x544   : > { %9264 = vmatprep.subr.msk.bf16.mxu0 %vm827_vm1, %v1400_v4 }
 0x545   : > { %v1390_v36 = vpop.permute.xlu0 %1389 }
 0x546   : > { %v1404_v24 = vpop.permute.xlu1 %1403 }
 0x547   : > { %v1427_v14 = vsel %vm827_vm1, %v1404_v24, 0 }
 0x548   : > { %v9504_v45 = vpop.eup %9503 }
 0x549   : > { %v9506_v25 = vpop.eup %9505  ;;  %v1287_v2 = vmul.f32 %v9504_v45, %v10846_v44 }
 0x54a   : > { %v1286_v39 = vmul.f32 %v9506_v25, %v10828_v42  ;;  %v1392_v44 = vpop.permute.xlu1 %1391 }
 0x54b   : > { %8498 = vmatpush3.bf16.xpose.msra.mxu0 %v1421_v10 }
 0x54c   : > { %9265 = vmatprep.subr.msk.bf16.mxu0 %vm827_vm1, %v1402_v7  ;;  %v1291_v8 = vpack.c.bf16 %v1287_v2, %v1286_v39 }
 0x54d   : > { %v9508_v49 = vpop.eup %9507 }
 0x54e   : > { %v1285_v32 = vmul.f32 %v9508_v49, %v10850_v43  ;;  %v1394_v43 = vpop.permute.xlu0 %1393  ;;  %v1396_v42 = vpop.permute.xlu1 %1395 }
 0x550   : > { %v1290_v5 = vpack.c.bf16 %v1285_v32, %v1284_v19 }
 0x552   : > { %8491 = vmatprep.mubr.msk.bf16.mxu0 %vm917_vm7, %v1290_v5 }
 0x553   : > { %8500 = vmatpush3.bf16.xpose.msra.mxu0 %v1424_v41 }
 0x554   : > { %8492 = vmatmul.mubr.msk.bf16.gmra.mrb[20].mxu0 %vm917_vm7, %v1291_v8  ;;  %9266 = vmatprep.subr.msk.bf16.mxu0 %vm827_vm1, %v1404_v24 }
 0x555   : > { %8503 = vmatprep.mubr.msk.bf16.mxu0 %vm827_vm1, %v1390_v36 }
 0x55b   : > { %8502 = vmatpush3.bf16.xpose.msra.mxu0 %v1427_v14 }
 0x562   : > { %8504 = vmatmul.mubr.msk.bf16.vlgmr.msra.gmra.mrb[24].mxu0 %vm827_vm1, %v1392_v44 }
 0x563   : > { %8507 = vmatprep.mubr.msk.bf16.mxu0 %vm827_vm1, %v1394_v43 }
 0x56a   : > { %8508 = vmatmul.mubr.msk.bf16.gmra.mrb[28].mxu0 %vm827_vm1, %v1396_v42 }
 0x5dd   : > { %v10907_v54 = vpop.f32.mrb[8].mxu0 }
 0x5de   : > { %v10909_v51 = vpop.f32.mrb[9].mxu0 }
 0x5df   : > { %v10911_v46 = vpop.f32.mrb[10].mxu0 }
 0x5e0   : > { %v10915_v38 = vpop.f32.mrb[11].mxu0 }
 0x5e9   : > { %v10919_v31 = vpop.f32.mrb[12].mxu0 }
 0x5ea   : > { %v10921_v27 = vpop.f32.mrb[13].mxu0 }
 0x5eb   : > { %v10923_v29 = vpop.f32.mrb[14].mxu0 }
 0x5ec   : > { %v10927_v55 = vpop.f32.mrb[15].mxu0 }
 0x5f1   : > { %v10931_v61 = vpop.f32.mrb[16].mxu0 }
 0x5f2   : > { %v10933_v58 = vpop.f32.mrb[17].mxu0 }
 0x5f3   : > { %v10935_v40 = vpop.f32.mrb[18].mxu0 }
 0x5f4   : > { %v10939_v47 = vpop.f32.mrb[19].mxu0 }
 0x627   : > { %v10943_v21 = vpop.f32.mrb[20].mxu0 }
 0x628   : > { %v10945_v22 = vpop.f32.mrb[21].mxu0 }
 0x629   : > { %v10947_v50 = vpop.f32.mrb[22].mxu0 }
 0x62a   : > { %v10951_v3 = vpop.f32.mrb[23].mxu0 }
 0x635   : > { %v8505_v1 = vpop.f32.mrb[24].mxu0 }
 0x636   : > { %v1472_v6 = vadd.f32 %v8505_v1, %v10662_v35  ;;  %v1463_v7 = vpop.f32.mrb[25].mxu0 }
 0x637   : > { %v8506_v53 = vpop.f32.mrb[26].mxu0  ;;  %v1464_v0 = vadd.f32 %v1463_v7, %v10665_v63 }
 0x638   : > { %v1466_v59 = vpop.f32.mrb[27].mxu0  ;;  %v1500_v52 = vsel %vm917_vm7, %v1472_v6, -inf  ;;  %v1475_v25 = vadd.f32 %v8506_v53, %v10662_v35 }
 0x639   : > { %v1467_v10 = vadd.f32 %v1466_v59, %v10665_v63  ;;  %1501 = vmax.xlane.f32.xlu0 %v1500_v52  ;;  %v1494_v49 = vsel %vm917_vm7, %v1464_v0, -inf }
 0x63a   : > { %v1503_v41 = vsel %vm917_vm7, %v1475_v25, -inf }
 0x63b   : > { %v1497_v45 = vsel %vm917_vm7, %v1467_v10, -inf }
 0x63c   : > { %1498 = vmax.xlane.f32.xlu1 %v1497_v45 }
 0x63d   : > { %1495 = vmax.xlane.f32.xlu0 %v1494_v49  ;;  %v8509_v19 = vpop.f32.mrb[28].mxu0 }
 0x63e   : > { %v1479_v32 = vpop.f32.mrb[29].mxu0  ;;  %v1488_v5 = vadd.f32 %v8509_v19, %v10687_v9 }
 0x63f   : > { %v8510_v2 = vpop.f32.mrb[30].mxu0  ;;  %v1480_v8 = vadd.f32 %v1479_v32, %v10699_v16 }
 0x640   : > { %v1482_v39 = vpop.f32.mrb[31].mxu0  ;;  %v1512_v24 = vsel %vm917_vm7, %v1488_v5, -inf  ;;  %v1491_v14 = vadd.f32 %v8510_v2, %v10687_v9 }
 0x641   : > { %1504 = vmax.xlane.f32.xlu0 %v1503_v41  ;;  %v1506_v36 = vsel %vm917_vm7, %v1480_v8, -inf  ;;  %v10975_v44 = vadd.f32 %v1482_v39, %v10699_v16 }
 0x642   : > { %v1515_v43 = vsel %vm917_vm7, %v1491_v14, -inf }
 0x643   : > { %v1509_v42 = vsel %vm917_vm7, %v10975_v44, -inf }
 0x645   : > { %1513 = vmax.xlane.f32.xlu0 %v1512_v24 }
 0x649   : > { %1507 = vmax.xlane.f32.xlu0 %v1506_v36 }
 0x64d   : > { %1588 = vrot.lane.b32.xlu1 %v10579_v12, %s10184_s15 }
 0x651   : > { %1590 = vrot.lane.b32.xlu1 %v10591_v18, %s10184_s15 }
 0x65f   : > { %1586 = vrot.lane.b32.xlu0 %v10581_v13, %s10184_s15 }
 0x675   : > { %1516 = vmax.xlane.f32.xlu1 %v1515_v43 }
 0x679   : > { %1510 = vmax.xlane.f32.xlu1 %v1509_v42 }
 0x68a   : > { %1592 = vrot.lane.b32.xlu1 %v10589_v15, %s10184_s15 }
 0x6c6   : > { %v1502_v1 = vpop.xlane.xlu0 %1501 }
 0x6c7   : > { %v1520_v7 = vsub.f32 %v1472_v6, %v1502_v1 }
 0x6c9   : > { %v1530_v53 = vmul.f32 1.442695, %v1520_v7  ;;  %v1499_v59 = vpop.xlane.xlu1 %1498 }
 0x6ca   : > { %v1496_v52 = vpop.xlane.xlu0 %1495  ;;  %v1519_v49 = vsub.f32 %v1467_v10, %v1499_v59 }
 0x6cb   : > { %9509 = vpow2.f32 %v1530_v53  ;;  %v1518_v45 = vsub.f32 %v1464_v0, %v1496_v52 }
 0x6cc   : > { %v1528_v39 = vmul.f32 1.442695, %v1519_v49 }
 0x6cd   : > { %v1526_v19 = vmul.f32 1.442695, %v1518_v45 }
 0x6ce   : > { %v1505_v32 = vpop.xlane.xlu0 %1504 }
 0x6cf   : > { %9511 = vpow2.f32 %v1526_v19  ;;  %v1521_v2 = vsub.f32 %v1475_v25, %v1505_v32  ;;  %v1589_v25 = vpop.permute.xlu1 %1588 }
 0x6d1   : > { %v1532_v41 = vmul.f32 1.442695, %v1521_v2 }
 0x6d2   : > { %v1514_v24 = vpop.xlane.xlu0 %1513 }
 0x6d3   : > { %9513 = vpow2.f32 %v1532_v41  ;;  %v1524_v36 = vsub.f32 %v1488_v5, %v1514_v24 }
 0x6d4   : > { %9515 = vpow2.f32 %v1528_v39 }
 0x6d5   : > { %v10982_v43 = vpop.eup %9509  ;;  %v1538_v42 = vmul.f32 1.442695, %v1524_v36 }
 0x6d6   : > { %v1508_v6 = vpop.xlane.xlu0 %1507  ;;  %v1548_v1 = vsel %vm917_vm7, %v10982_v43, 0.0 }
 0x6d7   : > { %9517 = vpow2.f32 %v1538_v42  ;;  %v1522_v0 = vsub.f32 %v1480_v8, %v1508_v6  ;;  %1549 = vadd.xlane.f32.xlu0 %v1548_v1  ;;  %v1591_v8 = vpop.permute.xlu1 %1590 }
 0x6d9   : > { %v10986_v10 = vpop.eup %9511  ;;  %v1534_v7 = vmul.f32 1.442695, %v1522_v0 }
 0x6da   : > { %v1587_v53 = vpop.permute.xlu0 %1586  ;;  %v1542_v59 = vsel %vm917_vm7, %v10986_v10, 0.0 }
 0x6db   : > { %9519 = vpow2.f32 %v1534_v7  ;;  %1543 = vadd.xlane.f32.xlu0 %v1542_v59  ;;  %8511 = vmatprep.subr.bf16.mxu1 %v1587_v53 }
 0x6dc   : > { %8512 = vmatpush3.bf16.msra.mxu1 %v1587_v53 }
 0x6dd   : > { %v9514_v5 = vpop.eup %9513  ;;  %8513 = vmatprep.subr.bf16.mxu1 %v1589_v25 }
 0x6de   : > { %v1551_v52 = vsel %vm917_vm7, %v9514_v5, 0.0  ;;  %v9516_v45 = vpop.eup %9515 }
 0x6df   : > { %1552 = vadd.xlane.f32.xlu1 %v1551_v52  ;;  %v1545_v19 = vsel %vm917_vm7, %v9516_v45, 0.0 }
 0x6e0   : > { %8514 = vmatpush3.bf16.msra.mxu1 %v1589_v25 }
 0x6e1   : > { %v10991_v49 = vpop.eup %9517  ;;  %8515 = vmatprep.subr.bf16.mxu1 %v1591_v8 }
 0x6e2   : > { %v1560_v32 = vsel %vm917_vm7, %v10991_v49, 0.0 }
 0x6e3   : > { %1546 = vadd.xlane.f32.xlu1 %v1545_v19  ;;  %1561 = vadd.xlane.f32.xlu0 %v1560_v32 }
 0x6e4   : > { %8516 = vmatpush3.bf16.msra.mxu1 %v1591_v8 }
 0x6e5   : > { %v10996_v2 = vpop.eup %9519 }
 0x6e6   : > { %v1554_v39 = vsel %vm917_vm7, %v10996_v2, 0.0 }
 0x6e7   : > { %1555 = vadd.xlane.f32.xlu0 %v1554_v39 }
 0x6f4   : > { %1685 = vrot.lane.b32.xlu1 %v10597_v26, %s10182_s12 }
 0x6f8   : > { %1687 = vrot.lane.b32.xlu1 %v10609_v34, %s10182_s12 }
 0x702   : > { %v1517_v41 = vpop.xlane.xlu1 %1516 }
 0x703   : > { %v1525_v24 = vsub.f32 %v1491_v14, %v1517_v41 }
 0x705   : > { %v1540_v36 = vmul.f32 1.442695, %v1525_v24 }
 0x706   : > { %v1511_v42 = vpop.xlane.xlu1 %1510 }
 0x707   : > { %9521 = vpow2.f32 %v1540_v36  ;;  %v1523_v6 = vsub.f32 %v10975_v44, %v1511_v42 }
 0x709   : > { %v1536_v1 = vmul.f32 1.442695, %v1523_v6 }
 0x70a   : > { %v1593_v0 = vpop.permute.xlu1 %1592 }
 0x70b   : > { %8517 = vmatprep.subr.bf16.mxu1 %v1593_v0  ;;  %9523 = vpow2.f32 %v1536_v1 }
 0x70c   : > { %8518 = vmatpush3.bf16.msra.mxu1 %v1593_v0 }
 0x711   : > { %v9522_v7 = vpop.eup %9521 }
 0x712   : > { %v1563_v25 = vsel %vm917_vm7, %v9522_v7, 0.0 }
 0x713   : > { %1564 = vadd.xlane.f32.xlu0 %v1563_v25 }
 0x715   : > { %v9524_v53 = vpop.eup %9523 }
 0x716   : > { %v1557_v59 = vsel %vm917_vm7, %v9524_v53, 0.0 }
 0x71c   : > { %1558 = vadd.xlane.f32.xlu1 %v1557_v59 }
 0x729   : > { %1683 = vrot.lane.b32.xlu0 %v10599_v30, %s10182_s12 }
 0x72d   : > { %1689 = vrot.lane.b32.xlu1 %v10607_v33, %s10182_s12  ;;  %1675 = vrot.lane.b32.xlu0 %v10599_v30, %s10183_s14 }
 0x731   : > { %1677 = vrot.lane.b32.xlu1 %v10597_v26, %s10183_s14  ;;  %1679 = vrot.lane.b32.xlu0 %v10609_v34, %s10183_s14 }
 0x735   : > { %1681 = vrot.lane.b32.xlu1 %v10607_v33, %s10183_s14 }
 0x764   : > { %v1550_v14 = vpop.xlane.xlu0 %1549 }
 0x768   : > { %v1544_v44 = vpop.xlane.xlu0 %1543 }
 0x76c   : > { %v1553_v52 = vpop.xlane.xlu1 %1552 }
 0x76d   : > { %9525 = vrcp.f32 %v1553_v52 }
 0x76e   : > { %9527 = vrcp.f32 %v1544_v44 }
 0x76f   : > { %9529 = vrcp.f32 %v1550_v14 }
 0x770   : > { %v1547_v8 = vpop.xlane.xlu1 %1546  ;;  %v1562_v25 = vpop.xlane.xlu0 %1561 }
 0x771   : > { %9531 = vrcp.f32 %v1547_v8 }
 0x774   : > { %v1556_v59 = vpop.xlane.xlu0 %1555  ;;  %v1686_v14 = vpop.permute.xlu1 %1685 }
 0x777   : > { %v9526_v19 = vpop.eup %9525 }
 0x778   : > { %v9528_v32 = vpop.eup %9527  ;;  %v1577_v24 = vmul.f32 %v9526_v19, %v9514_v5  ;;  %v1688_v8 = vpop.permute.xlu1 %1687 }
 0x779   : > { %v9530_v39 = vpop.eup %9529  ;;  %v1574_v36 = vmul.f32 %v9528_v32, %v10986_v10  ;;  %v1707_v10 = vsel %vm827_vm1, %v1686_v14, 0 }
 0x77a   : > { %v1576_v6 = vmul.f32 %v9530_v39, %v10982_v43 }
 0x77b   : > { %v9532_v41 = vpop.eup %9531 }
 0x77c   : > { %v1575_v42 = vmul.f32 %v9532_v41, %v9516_v45  ;;  %v1583_v0 = vpack.c.bf16 %v1577_v24, %v1576_v6  ;;  %v1710_v24 = vsel %vm827_vm1, %v1688_v8, 0 }
 0x77e   : > { %v1582_v1 = vpack.c.bf16 %v1575_v42, %v1574_v36 }
 0x780   : > { %8519 = vmatprep.mubr.msk.bf16.mxu1 %vm917_vm7, %v1582_v1 }
 0x781   : > { %8520 = vmatmul.mubr.msk.bf16.vlgmr.msra.gmra.mrb[24].mxu1 %vm917_vm7, %v1583_v0 }
 0x7a0   : > { %v1565_v44 = vpop.xlane.xlu0 %1564 }
 0x7a1   : > { %9533 = vrcp.f32 %v1565_v44 }
 0x7a2   : > { %9535 = vrcp.f32 %v1556_v59 }
 0x7a3   : > { %9537 = vrcp.f32 %v1562_v25 }
 0x7a4   : > { %v1684_v52 = vpop.permute.xlu0 %1683 }
 0x7a5   : > { %9267 = vmatprep.subr.msk.bf16.mxu1 %vm827_vm1, %v1684_v52  ;;  %v1704_v5 = vsel %vm827_vm1, %v1684_v52, 0 }
 0x7a6   : > { %8528 = vmatpush3.bf16.xpose.msra.mxu1 %v1704_v5 }
 0x7a7   : > { %9268 = vmatprep.subr.msk.bf16.mxu1 %vm827_vm1, %v1686_v14 }
 0x7a8   : > { %v1676_v59 = vpop.permute.xlu0 %1675 }
 0x7a9   : > { %v1559_v43 = vpop.xlane.xlu1 %1558 }
 0x7aa   : > { %9539 = vrcp.f32 %v1559_v43 }
 0x7ab   : > { %v9534_v45 = vpop.eup %9533 }
 0x7ac   : > { %v9536_v19 = vpop.eup %9535  ;;  %v1581_v41 = vmul.f32 %v9534_v45, %v9522_v7 }
 0x7ad   : > { %v9538_v32 = vpop.eup %9537  ;;  %v1578_v36 = vmul.f32 %v9536_v19, %v10996_v2  ;;  %v1690_v6 = vpop.permute.xlu1 %1689 }
 0x7ae   : > { %8530 = vmatpush3.bf16.xpose.msra.mxu1 %v1707_v10  ;;  %v1580_v1 = vmul.f32 %v9538_v32, %v10991_v49  ;;  %v1713_v7 = vsel %vm827_vm1, %v1690_v6, 0 }
 0x7af   : > { %9269 = vmatprep.subr.msk.bf16.mxu1 %vm827_vm1, %v1688_v8 }
 0x7b0   : > { %v1585_v25 = vpack.c.bf16 %v1581_v41, %v1580_v1 }
 0x7b1   : > { %v1678_v2 = vpop.permute.xlu1 %1677 }
 0x7b4   : > { %v9540_v39 = vpop.eup %9539 }
 0x7b5   : > { %v1579_v42 = vmul.f32 %v9540_v39, %v9524_v53  ;;  %v1680_v53 = vpop.permute.xlu0 %1679  ;;  %v1682_v49 = vpop.permute.xlu1 %1681 }
 0x7b6   : > { %8532 = vmatpush3.bf16.xpose.msra.mxu1 %v1710_v24 }
 0x7b7   : > { %9270 = vmatprep.subr.msk.bf16.mxu1 %vm827_vm1, %v1690_v6  ;;  %v1584_v0 = vpack.c.bf16 %v1579_v42, %v1578_v36 }
 0x7b9   : > { %8523 = vmatprep.mubr.msk.bf16.mxu1 %vm917_vm7, %v1584_v0 }
 0x7ba   : > { %8524 = vmatmul.mubr.msk.bf16.gmra.mrb[28].mxu1 %vm917_vm7, %v1585_v25 }
 0x7bb   : > { %8535 = vmatprep.mubr.msk.bf16.mxu1 %vm827_vm1, %v1676_v59 }
 0x7be   : > { %8534 = vmatpush3.bf16.xpose.msra.mxu1 %v1713_v7 }
 0x7c5   : > { %8536 = vmatmul.mubr.msk.bf16.vlgmr.msra.gmra.mrb[32].mxu1 %vm827_vm1, %v1678_v2 }
 0x7c6   : > { %8539 = vmatprep.mubr.msk.bf16.mxu1 %vm827_vm1, %v1680_v53 }
 0x7cd   : > { %8540 = vmatmul.mubr.msk.bf16.gmra.mrb[36].mxu1 %vm827_vm1, %v1682_v49 }
 0x854   : > { %v11039_v14 = vpop.f32.mrb[24].mxu1 }
 0x855   : > { %v11041_v44 = vpop.f32.mrb[25].mxu1 }
 0x856   : > { %v11043_v52 = vpop.f32.mrb[26].mxu1 }
 0x857   : > { %v11047_v5 = vpop.f32.mrb[27].mxu1 }
 0x858   : > { %v1961_v43 = vpack.c.bf16 %v11047_v5, %v11041_v44 }
 0x88d   : > { %v11051_v10 = vpop.f32.mrb[28].mxu1 }
 0x88e   : > { %v11053_v45 = vpop.f32.mrb[29].mxu1 }
 0x88f   : > { %v11055_v19 = vpop.f32.mrb[30].mxu1 }
 0x890   : > { %v11059_v39 = vpop.f32.mrb[31].mxu1 }
 0x898   : > { %v8537_v24 = vpop.f32.mrb[32].mxu1 }
 0x899   : > { %v1749_v36 = vpop.f32.mrb[33].mxu1  ;;  %v1758_v0 = vadd.f32 %v8537_v24, %v10662_v35 }
 0x89a   : > { %v1750_v42 = vadd.f32 %v1749_v36, %v10665_v63  ;;  %v8538_v6 = vpop.f32.mrb[34].mxu1 }
 0x89b   : > { %v1752_v1 = vpop.f32.mrb[35].mxu1  ;;  %v1761_v2 = vadd.f32 %v8538_v6, %v10662_v35  ;;  %v1786_v49 = vsel %vm917_vm7, %v1758_v0, -inf }
 0x89c   : > { %v1753_v25 = vadd.f32 %v1752_v1, %v10665_v63  ;;  %v1780_v59 = vsel %vm917_vm7, %v1750_v42, -inf }
 0x89d   : > { %1781 = vmax.xlane.f32.xlu0 %v1780_v59  ;;  %v1789_v1 = vsel %vm917_vm7, %v1761_v2, -inf }
 0x89e   : > { %v1783_v7 = vsel %vm917_vm7, %v1753_v25, -inf }
 0x89f   : > { %1784 = vmax.xlane.f32.xlu1 %v1783_v7 }
 0x8a0   : > { %v8541_v53 = vpop.f32.mrb[36].mxu1 }
 0x8a1   : > { %1787 = vmax.xlane.f32.xlu0 %v1786_v49  ;;  %v1765_v37 = vpop.f32.mrb[37].mxu1  ;;  %v1774_v7 = vadd.f32 %v8541_v53, %v10687_v9 }
 0x8a2   : > { %v8542_v36 = vpop.f32.mrb[38].mxu1  ;;  %v1766_v62 = vadd.f32 %v1765_v37, %v10699_v16 }
 0x8a3   : > { %v1768_v23 = vpop.f32.mrb[39].mxu1  ;;  %v11076_v59 = vadd.f32 %v8542_v36, %v10687_v9 }
 0x8a4   : > { %v11072_v24 = vadd.f32 %v1768_v23, %v10699_v16  ;;  %v1792_v49 = vsel %vm917_vm7, %v1766_v62, -inf  ;;  %v1798_v23 = vsel %vm917_vm7, %v1774_v7, -inf }
 0x8a5   : > { %1790 = vmax.xlane.f32.xlu0 %v1789_v1  ;;  %v1801_v37 = vsel %vm917_vm7, %v11076_v59, -inf }
 0x8a6   : > { %v1795_v6 = vsel %vm917_vm7, %v11072_v24, -inf }
 0x8a7   : > { %1796 = vmax.xlane.f32.xlu1 %v1795_v6 }
 0x8a9   : > { %1793 = vmax.xlane.f32.xlu0 %v1792_v49 }
 0x8ab   : > { %1802 = vmax.xlane.f32.xlu1 %v1801_v37 }
 0x8ad   : > { %1799 = vmax.xlane.f32.xlu0 %v1798_v23 }
 0x92a   : > { %v1782_v1 = vpop.xlane.xlu0 %1781 }
 0x92b   : > { %v1804_v4 = vsub.f32 %v1750_v42, %v1782_v1 }
 0x92c   : > { %v1785_v36 = vpop.xlane.xlu1 %1784 }
 0x92d   : > { %v1812_v11 = vmul.f32 1.442695, %v1804_v4  ;;  %v1805_v57 = vsub.f32 %v1753_v25, %v1785_v36 }
 0x92e   : > { %v1788_v48 = vpop.xlane.xlu0 %1787 }
 0x92f   : > { %v1806_v20 = vsub.f32 %v1758_v0, %v1788_v48  ;;  %v1814_v49 = vmul.f32 1.442695, %v1805_v57 }
 0x931   : > { %v1816_v6 = vmul.f32 1.442695, %v1806_v20 }
 0x932   : > { %v1791_v28 = vpop.xlane.xlu0 %1790 }
 0x933   : > { %9541 = vpow2.f32 %v1816_v6  ;;  %v1807_v53 = vsub.f32 %v1761_v2, %v1791_v28  ;;  %v10053_v2 = vld [vmem:[%s13374_s3 + $0xc] sm:$0xf]  ;;  %v10054_v6 = vld [vmem:[%s13374_s3] sm:$0xf] }
 0x934   : > { %9543 = vpow2.f32 %v1812_v11  ;;  %v1797_v25 = vpop.xlane.xlu1 %1796 }
 0x935   : > { %v1818_v60 = vmul.f32 1.442695, %v1807_v53  ;;  %v7835_v53 = vcombine.low %v10054_v6, %v10054_v6 }
 0x936   : > { %v1794_v32 = vpop.xlane.xlu0 %1793 }
 0x937   : > { %9545 = vpow2.f32 %v1818_v60  ;;  %v1808_v37 = vsub.f32 %v1766_v62, %v1794_v32 }
 0x938   : > { %9547 = vpow2.f32 %v1814_v49  ;;  %v1803_v36 = vpop.xlane.xlu1 %1802 }
 0x939   : > { %v1820_v42 = vmul.f32 1.442695, %v1808_v37  ;;  %v1811_v49 = vsub.f32 %v11076_v59, %v1803_v36  ;;  %v1809_v37 = vsub.f32 %v11072_v24, %v1797_v25 }
 0x93a   : > { %v1800_v41 = vpop.xlane.xlu0 %1799 }
 0x93b   : > { %v1810_v23 = vsub.f32 %v1774_v7, %v1800_v41  ;;  %v7826_v7 = vcombine.low %v10053_v2, %v10053_v2 }
 0x93d   : > { %v11085_v8 = vpop.eup %9541  ;;  %v1824_v1 = vmul.f32 1.442695, %v1810_v23  ;;  %v1826_v23 = vmul.f32 1.442695, %v1811_v49 }
 0x93e   : > { %v1834_v48 = vsel %vm917_vm7, %v11085_v8, 0.0  ;;  %v11089_v20 = vpop.eup %9543 }
 0x93f   : > { %9549 = vpow2.f32 %v1824_v1  ;;  %1835 = vadd.xlane.f32.xlu0 %v1834_v48  ;;  %v1828_v60 = vsel %vm917_vm7, %v11089_v20, 0.0 }
 0x940   : > { %9551 = vpow2.f32 %v1820_v42  ;;  %v1822_v42 = vmul.f32 1.442695, %v1809_v37 }
 0x941   : > { %v11091_v28 = vpop.eup %9545  ;;  %9553 = vpow2.f32 %v1826_v23 }
 0x942   : > { %v1837_v11 = vsel %vm917_vm7, %v11091_v28, 0.0  ;;  %v11097_v57 = vpop.eup %9547  ;;  %9555 = vpow2.f32 %v1822_v42 }
 0x943   : > { %1829 = vadd.xlane.f32.xlu0 %v1828_v60  ;;  %1838 = vadd.xlane.f32.xlu1 %v1837_v11  ;;  %v1831_v62 = vsel %vm917_vm7, %v11097_v57, 0.0 }
 0x947   : > { %1832 = vadd.xlane.f32.xlu1 %v1831_v62 }
 0x949   : > { %v11101_v4 = vpop.eup %9549 }
 0x94a   : > { %v1846_v32 = vsel %vm917_vm7, %v11101_v4, 0.0  ;;  %v11105_v41 = vpop.eup %9551 }
 0x94b   : > { %1847 = vadd.xlane.f32.xlu0 %v1846_v32  ;;  %v1840_v0 = vsel %vm917_vm7, %v11105_v41, 0.0  ;;  %v11131_v59 = vpop.eup %9553 }
 0x94c   : > { %v1849_v24 = vsel %vm917_vm7, %v11131_v59, 0.0  ;;  %v11137_v1 = vpop.eup %9555 }
 0x94d   : > { %v1843_v48 = vsel %vm917_vm7, %v11137_v1, 0.0 }
 0x94f   : > { %1841 = vadd.xlane.f32.xlu0 %v1840_v0 }
 0x958   : > { %1874 = vrot.lane.b32.xlu1 %v10597_v26, %s10184_s15 }
 0x95c   : > { %1876 = vrot.lane.b32.xlu1 %v10609_v34, %s10184_s15 }
 0x965   : > { %1872 = vrot.lane.b32.xlu0 %v10599_v30, %s10184_s15 }
 0x969   : > { %1970 = vrot.lane.b32.xlu0 %v7826_v7, %s10185_s10 }
 0x96d   : > { %2098 = vrot.lane.b32.xlu0 %v7835_v53, %s10185_s10 }
 0x971   : > { %2236 = vrot.lane.b32.xlu0 %v10591_v18, %s10186_s11 }
 0x975   : > { %2238 = vrot.lane.b32.xlu0 %v10589_v15, %s10186_s11 }
 0x979   : > { %2224 = vrot.lane.b32.xlu0 %v10581_v13, %s13390_s13 }
 0x97d   : > { %2522 = vrot.lane.b32.xlu0 %v10609_v34, %s10186_s11 }
 0x980   : > { %1850 = vadd.xlane.f32.xlu1 %v1849_v24 }
 0x981   : > { %2230 = vrot.lane.b32.xlu0 %v10589_v15, %s13390_s13 }
 0x984   : > { %1844 = vadd.xlane.f32.xlu1 %v1843_v48 }
 0x985   : > { %2510 = vrot.lane.b32.xlu0 %v10599_v30, %s13390_s13 }
 0x989   : > { %2514 = vrot.lane.b32.xlu0 %v10609_v34, %s13390_s13 }
 0x995   : > { %1878 = vrot.lane.b32.xlu1 %v10607_v33, %s10184_s15 }
 0x999   : > { %2232 = vrot.lane.b32.xlu1 %v10581_v13, %s10186_s11 }
 0x99d   : > { %2234 = vrot.lane.b32.xlu1 %v10579_v12, %s10186_s11 }
 0x9a1   : > { %2518 = vrot.lane.b32.xlu1 %v10599_v30, %s10186_s11 }
 0x9a5   : > { %2520 = vrot.lane.b32.xlu1 %v10597_v26, %s10186_s11 }
 0x9a9   : > { %2226 = vrot.lane.b32.xlu1 %v10579_v12, %s13390_s13 }
 0x9ad   : > { %2228 = vrot.lane.b32.xlu1 %v10591_v18, %s13390_s13 }
 0x9b1   : > { %2524 = vrot.lane.b32.xlu1 %v10607_v33, %s10186_s11 }
 0x9b5   : > { %2512 = vrot.lane.b32.xlu1 %v10597_v26, %s13390_s13 }
 0x9b9   : > { %2516 = vrot.lane.b32.xlu1 %v10607_v33, %s13390_s13  ;;  %s13462_s13 = smov 40  }
 0x9cc   : > { %v1836_v60 = vpop.xlane.xlu0 %1835 }
 0x9d0   : > { %v1839_v11 = vpop.xlane.xlu1 %1838  ;;  %v1830_v62 = vpop.xlane.xlu0 %1829 }
 0x9d1   : > { %9557 = vrcp.f32 %v1830_v62 }
 0x9d4   : > { %v1833_v32 = vpop.xlane.xlu1 %1832 }
 0x9d5   : > { %9559 = vrcp.f32 %v1833_v32 }
 0x9d6   : > { %9561 = vrcp.f32 %v1839_v11 }
 0x9d7   : > { %9563 = vrcp.f32 %v1836_v60 }
 0x9d8   : > { %v1848_v0 = vpop.xlane.xlu0 %1847  ;;  %v1875_v36 = vpop.permute.xlu1 %1874 }
 0x9db   : > { %v9558_v2 = vpop.eup %9557 }
 0x9dc   : > { %v1842_v25 = vpop.xlane.xlu0 %1841  ;;  %v1860_v53 = vmul.f32 %v9558_v2, %v11089_v20  ;;  %v1877_v42 = vpop.permute.xlu1 %1876 }
 0x9df   : > { %v9560_v7 = vpop.eup %9559 }
 0x9e0   : > { %v1873_v6 = vpop.permute.xlu0 %1872  ;;  %v1861_v49 = vmul.f32 %v9560_v7, %v11097_v57  ;;  %v9562_v57 = vpop.eup %9561 }
 0x9e1   : > { %8543 = vmatprep.subr.bf16.mxu0 %v1873_v6  ;;  %v9564_v7 = vpop.eup %9563 }
 0x9e2   : > { %8544 = vmatpush3.bf16.msra.mxu0 %v1873_v6  ;;  %v1868_v37 = vpack.c.bf16 %v1861_v49, %v1860_v53  ;;  %v1862_v53 = vmul.f32 %v9564_v7, %v11085_v8 }
 0x9e3   : > { %8545 = vmatprep.subr.bf16.mxu0 %v1875_v36 }
 0x9e4   : > { %8551 = vmatprep.mubr.msk.bf16.mxu0 %vm917_vm7, %v1868_v37  ;;  %v1971_v23 = vpop.permute.xlu0 %1970 }
 0x9e5   : > { %v1998_v60 = vsel %vm1996_vm10, %v1971_v23, 0 }
 0x9e6   : > { %8546 = vmatpush3.bf16.msra.mxu0 %v1875_v36  ;;  %v1863_v36 = vmul.f32 %v9562_v57, %v11091_v28 }
 0x9e7   : > { %8547 = vmatprep.subr.bf16.mxu0 %v1877_v42 }
 0x9e8   : > { %v2099_v24 = vpop.permute.xlu0 %2098  ;;  %v1869_v49 = vpack.c.bf16 %v1863_v36, %v1862_v53 }
 0x9ea   : > { %8548 = vmatpush3.bf16.msra.mxu0 %v1877_v42 }
 0x9ec   : > { %v2237_v48 = vpop.permute.xlu0 %2236 }
 0x9ed   : > { %v2259_v44 = vsel %vm827_vm1, %v2237_v48, 0 }
 0x9f0   : > { %v2239_v62 = vpop.permute.xlu0 %2238 }
 0x9f4   : > { %v2225_v32 = vpop.permute.xlu0 %2224 }
 0x9f5   : > { %8603 = vmatprep.mubr.msk.bf16.mxu1 %vm827_vm1, %v2225_v32 }
 0xa0d   : > { %v1851_v20 = vpop.xlane.xlu1 %1850 }
 0xa0e   : > { %9565 = vrcp.f32 %v1851_v20 }
 0xa0f   : > { %9567 = vrcp.f32 %v1842_v25 }
 0xa10   : > { %9569 = vrcp.f32 %v1848_v0 }
 0xa11   : > { %v1845_v2 = vpop.xlane.xlu1 %1844 }
 0xa12   : > { %9571 = vrcp.f32 %v1845_v2 }
 0xa15   : > { %v1879_v6 = vpop.permute.xlu1 %1878 }
 0xa16   : > { %8549 = vmatprep.subr.bf16.mxu0 %v1879_v6 }
 0xa17   : > { %8550 = vmatpush3.bf16.msra.mxu0 %v1879_v6 }
 0xa18   : > { %9271 = vmatprep.subr.msk.bf16.mxu0 %vm1996_vm10, %v1971_v23  ;;  %v9566_v11 = vpop.eup %9565 }
 0xa19   : > { %v2233_v25 = vpop.permute.xlu1 %2232  ;;  %v9568_v37 = vpop.eup %9567  ;;  %v1867_v42 = vmul.f32 %v9566_v11, %v11131_v59 }
 0xa1a   : > { %8552 = vmatmul.mubr.msk.bf16.vlgmr.msra.gmra.mrb[32].mxu0 %vm917_vm7, %v1869_v49  ;;  %9273 = vmatprep.subr.msk.bf16.mxu1 %vm827_vm1, %v2233_v25  ;;  %v2253_v28 = vsel %vm827_vm1, %v2233_v25, 0  ;;  %v9570_v0 = vpop.eup %9569  ;;  %v1864_v23 = vmul.f32 %v9568_v37, %v11105_v41  ;;  %v2125_v41 = vsel %vm1996_vm10, %v2099_v24, 0 }
 0xa1b   : > { %8596 = vmatpush3.bf16.xpose.msra.mxu1 %v2253_v28  ;;  %8560 = vmatpush3.bf16.msra.mxu0 %v1998_v60  ;;  %v1866_v57 = vmul.f32 %v9570_v0, %v11101_v4  ;;  %v13415_v4 = vpack.c.bf16 %v11043_v52, %v11039_v14  ;;  %v2262_v14 = vsel %vm827_vm1, %v2239_v62, 0  ;;  %v13418_v0 = vpack.c.bf16 %v10915_v38, %v10909_v51 }
 0xa1c   : > { %v9572_v8 = vpop.eup %9571  ;;  %9272 = vmatprep.subr.msk.bf16.mxu0 %vm1996_vm10, %v2099_v24  ;;  %v13421_v51 = vpack.c.bf16 %v10923_v29, %v10919_v31 }
 0xa1d   : > { %v2235_v32 = vpop.permute.xlu1 %2234  ;;  %v1865_v20 = vmul.f32 %v9572_v8, %v11137_v1  ;;  %v1871_v7 = vpack.c.bf16 %v1867_v42, %v1866_v57  ;;  %v13416_v1 = vpack.c.bf16 %v11059_v39, %v11053_v45  ;;  %v2523_v39 = vpop.permute.xlu0 %2522  ;;  %v13419_v8 = vpack.c.bf16 %v10911_v46, %v10907_v54 }
 0xa1e   : > { %9274 = vmatprep.subr.msk.bf16.mxu1 %vm827_vm1, %v2235_v32  ;;  %v2256_v36 = vsel %vm827_vm1, %v2235_v32, 0  ;;  %v13420_v32 = vpack.c.bf16 %v10927_v55, %v10921_v27  ;;  %v13422_v54 = vpack.c.bf16 %v10939_v47, %v10933_v58  ;;  %v13423_v58 = vpack.c.bf16 %v10935_v40, %v10931_v61 }
 0xa1f   : > { %v1870_v2 = vpack.c.bf16 %v1865_v20, %v1864_v23 }
 0xa21   : > { %8555 = vmatprep.mubr.msk.bf16.mxu0 %vm917_vm7, %v1870_v2  ;;  %v2519_v59 = vpop.permute.xlu1 %2518  ;;  %v2231_v24 = vpop.permute.xlu0 %2230  ;;  %v2545_v2 = vsel %vm827_vm1, %v2523_v39, 0 }
 0xa22   : > { %8556 = vmatmul.mubr.msk.bf16.gmra.mrb[36].mxu0 %vm917_vm7, %v1871_v7  ;;  %v2539_v42 = vsel %vm827_vm1, %v2519_v59, 0 }
 0xa23   : > { %8561 = vmatprep.mubr.msk.bf16.mxu0 %vm827_vm1, %v1961_v43  ;;  %8598 = vmatpush3.bf16.xpose.msra.mxu1 %v2256_v36  ;;  %v13417_v43 = vpack.c.bf16 %v11055_v19, %v11051_v10 }
 0xa24   : > { %9275 = vmatprep.subr.msk.bf16.mxu1 %vm827_vm1, %v2237_v48 }
 0xa25   : > { %v2521_v5 = vpop.permute.xlu1 %2520 }
 0xa26   : > { %v2542_v38 = vsel %vm827_vm1, %v2521_v5, 0 }
 0xa29   : > { %v2227_v52 = vpop.permute.xlu1 %2226 }
 0xa2a   : > { %8562 = vmatmul.mubr.msk.bf16.vlgmr.msra.gmra.mrb[40].mxu0 %vm827_vm1, %v13415_v4 }
 0xa2b   : > { %8578 = vmatpush3.bf16.msra.mxu0 %v2125_v41  ;;  %8565 = vmatprep.mubr.msk.bf16.mxu0 %vm827_vm1, %v13416_v1  ;;  %v13424_v41 = vpack.c.bf16 %v10951_v3, %v10945_v22  ;;  %v13425_v3 = vpack.c.bf16 %v10947_v50, %v10943_v21 }
 0xa2c   : > { %8600 = vmatpush3.bf16.xpose.msra.mxu1 %v2259_v44  ;;  %9277 = vmatprep.subr.msk.bf16.mxu0 %vm827_vm1, %v2519_v59 }
 0xa2d   : > { %9276 = vmatprep.subr.msk.bf16.mxu1 %vm827_vm1, %v2239_v62  ;;  %v2229_v45 = vpop.permute.xlu1 %2228 }
 0xa31   : > { %v2525_v7 = vpop.permute.xlu1 %2524 }
 0xa32   : > { %8566 = vmatmul.mubr.msk.bf16.gmra.mrb[44].mxu0 %vm827_vm1, %v13417_v43 }
 0xa34   : > { %8602 = vmatpush3.bf16.xpose.msra.mxu1 %v2262_v14  ;;  %v2548_v14 = vsel %vm827_vm1, %v2525_v7, 0 }
 0xa3b   : > { %8604 = vmatmul.mubr.msk.bf16.vlgmr.msra.gmra.mrb[40].mxu1 %vm827_vm1, %v2227_v52 }
 0xa3c   : > { %8607 = vmatprep.mubr.msk.bf16.mxu1 %vm827_vm1, %v2229_v45  ;;  %v2511_v45 = vpop.permute.xlu0 %2510 }
 0xa43   : > { %8608 = vmatmul.mubr.msk.bf16.gmra.mrb[44].mxu1 %vm827_vm1, %v2231_v24 }
 0xaed   : > { %v8553_v48 = vpop.f32.mrb[32].mxu0 }
 0xaee   : > { %v1930_v6 = vpop.f32.mrb[33].mxu0 }
 0xaef   : > { %v8554_v53 = vpop.f32.mrb[34].mxu0 }
 0xaf0   : > { %v1966_v49 = vpack.c.bf16 %v8554_v53, %v8553_v48  ;;  %v1933_v10 = vpop.f32.mrb[35].mxu0  ;;  %v2513_v48 = vpop.permute.xlu1 %2512 }
 0xaf1   : > { %v1965_v19 = vpack.c.bf16 %v1933_v10, %v1930_v6  ;;  %v2515_v6 = vpop.permute.xlu0 %2514 }
 0xaf3   : > { %8569 = vmatprep.mubr.msk.bf16.mxu0 %vm827_vm1, %v1965_v19 }
 0xaf4   : > { %8570 = vmatmul.mubr.msk.bf16.gmra.mrb[48].mxu0 %vm827_vm1, %v1966_v49  ;;  %v2517_v53 = vpop.permute.xlu1 %2516 }
 0xaf5   : > { %v8557_v62 = vpop.f32.mrb[36].mxu0 }
 0xaf6   : > { %v1946_v60 = vpop.f32.mrb[37].mxu0 }
 0xaf7   : > { %v8558_v11 = vpop.f32.mrb[38].mxu0 }
 0xaf8   : > { %v1968_v25 = vpack.c.bf16 %v8558_v11, %v8557_v62  ;;  %v1949_v37 = vpop.f32.mrb[39].mxu0 }
 0xaf9   : > { %v1967_v28 = vpack.c.bf16 %v1949_v37, %v1946_v60 }
 0xafb   : > { %8573 = vmatprep.mubr.msk.bf16.mxu0 %vm827_vm1, %v1967_v28 }
 0xafc   : > { %8574 = vmatmul.mubr.msk.bf16.gmra.mrb[52].mxu0 %vm827_vm1, %v1968_v25 }
 0xafd   : > { %8579 = vmatprep.mubr.msk.bf16.mxu0 %vm827_vm1, %v13418_v0 }
 0xb04   : > { %8580 = vmatmul.mubr.msk.bf16.vlgmr.msra.gmra.mrb[40].mxu0 %vm827_vm1, %v13419_v8 }
 0xb05   : > { %8628 = vmatpush3.bf16.xpose.msra.mxu0 %v2539_v42  ;;  %8583 = vmatprep.mubr.msk.bf16.mxu0 %vm827_vm1, %v13420_v32 }
 0xb06   : > { %9278 = vmatprep.subr.msk.bf16.mxu0 %vm827_vm1, %v2521_v5 }
 0xb0c   : > { %8584 = vmatmul.mubr.msk.bf16.gmra.mrb[44].mxu0 %vm827_vm1, %v13421_v51 }
 0xb0d   : > { %8630 = vmatpush3.bf16.xpose.msra.mxu0 %v2542_v38  ;;  %8587 = vmatprep.mubr.msk.bf16.mxu0 %vm827_vm1, %v13422_v54 }
 0xb0e   : > { %v8605_v46 = vpop.f32.mrb[40].mxu1  ;;  %9279 = vmatprep.subr.msk.bf16.mxu0 %vm827_vm1, %v2523_v39 }
 0xb0f   : > { %v2298_v27 = vpop.f32.mrb[41].mxu1  ;;  %v2307_v31 = vadd.f32 %v8605_v46, %v10662_v35 }
 0xb10   : > { %v2299_v55 = vadd.f32 %v2298_v27, %v10665_v63  ;;  %v8606_v23 = vpop.f32.mrb[42].mxu1 }
 0xb11   : > { %v2301_v20 = vpop.f32.mrb[43].mxu1  ;;  %v2310_v36 = vadd.f32 %v8606_v23, %v10662_v35  ;;  %v2335_v61 = vsel %vm917_vm7, %v2307_v31, -inf }
 0xb12   : > { %v2302_v29 = vadd.f32 %v2301_v20, %v10665_v63  ;;  %v2329_v57 = vsel %vm917_vm7, %v2299_v55, -inf }
 0xb13   : > { %2330 = vmax.xlane.f32.xlu0 %v2329_v57  ;;  %v2338_v43 = vsel %vm917_vm7, %v2310_v36, -inf }
 0xb14   : > { %8588 = vmatmul.mubr.msk.bf16.gmra.mrb[48].mxu0 %vm827_vm1, %v13423_v58  ;;  %v2332_v47 = vsel %vm917_vm7, %v2302_v29, -inf }
 0xb15   : > { %2333 = vmax.xlane.f32.xlu1 %v2332_v47  ;;  %8632 = vmatpush3.bf16.xpose.msra.mxu0 %v2545_v2 }
 0xb16   : > { %8591 = vmatprep.mubr.msk.bf16.mxu0 %vm827_vm1, %v13424_v41  ;;  %v8609_v59 = vpop.f32.mrb[44].mxu1  ;;  %9280 = vmatprep.subr.msk.bf16.mxu0 %vm827_vm1, %v2525_v7 }
 0xb17   : > { %2336 = vmax.xlane.f32.xlu0 %v2335_v61  ;;  %v2314_v40 = vpop.f32.mrb[45].mxu1  ;;  %v11270_v39 = vadd.f32 %v8609_v59, %v10687_v9 }
 0xb18   : > { %v8610_v4 = vpop.f32.mrb[46].mxu1  ;;  %v2315_v44 = vadd.f32 %v2314_v40, %v10699_v16 }
 0xb19   : > { %v2317_v1 = vpop.f32.mrb[47].mxu1  ;;  %v11261_v22 = vadd.f32 %v8610_v4, %v10687_v9  ;;  %v2347_v50 = vsel %vm917_vm7, %v11270_v39, -inf }
 0xb1a   : > { %v2318_v5 = vadd.f32 %v2317_v1, %v10699_v16  ;;  %v2341_v24 = vsel %vm917_vm7, %v2315_v44, -inf }
 0xb1b   : > { %2339 = vmax.xlane.f32.xlu0 %v2338_v43  ;;  %v2350_v21 = vsel %vm917_vm7, %v11261_v22, -inf }
 0xb1c   : > { %8592 = vmatmul.mubr.msk.bf16.gmra.mrb[52].mxu0 %vm827_vm1, %v13425_v3  ;;  %v2344_v52 = vsel %vm917_vm7, %v2318_v5, -inf }
 0xb1d   : > { %8634 = vmatpush3.bf16.xpose.msra.mxu0 %v2548_v14  ;;  %2345 = vmax.xlane.f32.xlu1 %v2344_v52 }
 0xb1e   : > { %8635 = vmatprep.mubr.msk.bf16.mxu0 %vm827_vm1, %v2511_v45 }
 0xb1f   : > { %2342 = vmax.xlane.f32.xlu0 %v2341_v24 }
 0xb21   : > { %2351 = vmax.xlane.f32.xlu1 %v2350_v21 }
 0xb23   : > { %2348 = vmax.xlane.f32.xlu0 %v2347_v50 }
 0xb24   : > { %8636 = vmatmul.mubr.msk.bf16.vlgmr.msra.gmra.mrb[56].mxu0 %vm827_vm1, %v2513_v48 }
 0xb25   : > { %8639 = vmatprep.mubr.msk.bf16.mxu0 %vm827_vm1, %v2515_v6 }
 0xb2c   : > { %8640 = vmatmul.mubr.msk.bf16.gmra.mrb[60].mxu0 %vm827_vm1, %v2517_v53 }
 0xba0   : > { %v2331_v49 = vpop.xlane.xlu0 %2330 }
 0xba1   : > { %v2353_v10 = vsub.f32 %v2299_v55, %v2331_v49 }
 0xba2   : > { %v2334_v19 = vpop.xlane.xlu1 %2333 }
 0xba3   : > { %v2361_v11 = vmul.f32 1.442695, %v2353_v10  ;;  %v2354_v25 = vsub.f32 %v2302_v29, %v2334_v19 }
 0xba4   : > { %v2337_v62 = vpop.xlane.xlu0 %2336 }
 0xba5   : > { %v2355_v60 = vsub.f32 %v2307_v31, %v2337_v62  ;;  %v2363_v42 = vmul.f32 1.442695, %v2354_v25 }
 0xba7   : > { %v2365_v37 = vmul.f32 1.442695, %v2355_v60 }
 0xba8   : > { %v2340_v28 = vpop.xlane.xlu0 %2339 }
 0xba9   : > { %9573 = vpow2.f32 %v2365_v37  ;;  %v2356_v0 = vsub.f32 %v2310_v36, %v2340_v28 }
 0xbaa   : > { %v2346_v8 = vpop.xlane.xlu1 %2345  ;;  %9575 = vpow2.f32 %v2361_v11 }
 0xbab   : > { %v2367_v32 = vmul.f32 1.442695, %v2356_v0  ;;  %v2358_v51 = vsub.f32 %v2318_v5, %v2346_v8 }
 0xbac   : > { %v2343_v38 = vpop.xlane.xlu0 %2342 }
 0xbad   : > { %9577 = vpow2.f32 %v2367_v32  ;;  %v2357_v54 = vsub.f32 %v2315_v44, %v2343_v38  ;;  %v2371_v46 = vmul.f32 1.442695, %v2358_v51 }
 0xbae   : > { %9579 = vpow2.f32 %v2363_v42  ;;  %v2352_v59 = vpop.xlane.xlu1 %2351 }
 0xbaf   : > { %v2369_v27 = vmul.f32 1.442695, %v2357_v54  ;;  %v2360_v61 = vsub.f32 %v11261_v22, %v2352_v59 }
 0xbb0   : > { %v2349_v40 = vpop.xlane.xlu0 %2348 }
 0xbb1   : > { %9581 = vpow2.f32 %v2369_v27  ;;  %v2375_v4 = vmul.f32 1.442695, %v2360_v61  ;;  %v2359_v1 = vsub.f32 %v11270_v39, %v2349_v40 }
 0xbb2   : > { %9583 = vpow2.f32 %v2371_v46 }
 0xbb3   : > { %v11281_v55 = vpop.eup %9573  ;;  %9585 = vpow2.f32 %v2375_v4  ;;  %v2373_v3 = vmul.f32 1.442695, %v2359_v1 }
 0xbb4   : > { %v2383_v23 = vsel %vm917_vm7, %v11281_v55, 0.0  ;;  %v11285_v20 = vpop.eup %9575 }
 0xbb5   : > { %2384 = vadd.xlane.f32.xlu0 %v2383_v23  ;;  %v2377_v29 = vsel %vm917_vm7, %v11285_v20, 0.0  ;;  %9587 = vpow2.f32 %v2373_v3 }
 0xbb7   : > { %v11287_v31 = vpop.eup %9577 }
 0xbb8   : > { %v2386_v57 = vsel %vm917_vm7, %v11287_v31, 0.0  ;;  %v11293_v58 = vpop.eup %9579 }
 0xbb9   : > { %2378 = vadd.xlane.f32.xlu0 %v2377_v29  ;;  %2387 = vadd.xlane.f32.xlu1 %v2386_v57  ;;  %v2380_v2 = vsel %vm917_vm7, %v11293_v58, 0.0 }
 0xbbb   : > { %v11295_v47 = vpop.eup %9581 }
 0xbbc   : > { %v2389_v7 = vsel %vm917_vm7, %v11295_v47, 0.0  ;;  %v11301_v36 = vpop.eup %9583 }
 0xbbd   : > { %2381 = vadd.xlane.f32.xlu1 %v2380_v2  ;;  %2390 = vadd.xlane.f32.xlu0 %v2389_v7  ;;  %v2392_v41 = vsel %vm917_vm7, %v11301_v36, 0.0  ;;  %v11328_v10 = vpop.eup %9585 }
 0xbbe   : > { %v2398_v25 = vsel %vm917_vm7, %v11328_v10, 0.0 }
 0xbbf   : > { %v11335_v28 = vpop.eup %9587 }
 0xbc0   : > { %v2395_v0 = vsel %vm917_vm7, %v11335_v28, 0.0 }
 0xbc1   : > { %2393 = vadd.xlane.f32.xlu1 %v2392_v41 }
 0xbf7   : > { %v8637_v44 = vpop.f32.mrb[56].mxu0 }
 0xbf8   : > { %v11308_v5 = vadd.f32 %v8637_v44, %v10662_v35  ;;  %v2584_v43 = vpop.f32.mrb[57].mxu0 }
 0xbf9   : > { %v8638_v14 = vpop.f32.mrb[58].mxu0  ;;  %v11311_v52 = vadd.f32 %v2584_v43, %v10665_v63 }
 0xbfa   : > { %v11314_v45 = vadd.f32 %v8638_v14, %v10662_v35  ;;  %v2587_v24 = vpop.f32.mrb[59].mxu0  ;;  %v2621_v22 = vsel %vm917_vm7, %v11308_v5, -inf }
 0xbfb   : > { %2622 = vmax.xlane.f32.xlu0 %v2621_v22  ;;  %v11319_v39 = vadd.f32 %v2587_v24, %v10665_v63  ;;  %v2615_v50 = vsel %vm917_vm7, %v11311_v52, -inf }
 0xbfc   : > { %v2624_v21 = vsel %vm917_vm7, %v11314_v45, -inf }
 0xbfd   : > { %2625 = vmax.xlane.f32.xlu1 %v2624_v21  ;;  %v2618_v49 = vsel %vm917_vm7, %v11319_v39, -inf }
 0xbff   : > { %v8641_v48 = vpop.f32.mrb[60].mxu0  ;;  %2616 = vmax.xlane.f32.xlu0 %v2615_v50 }
 0xc00   : > { %v2609_v6 = vadd.f32 %v8641_v48, %v10687_v9  ;;  %v2600_v53 = vpop.f32.mrb[61].mxu0 }
 0xc01   : > { %v8642_v19 = vpop.f32.mrb[62].mxu0  ;;  %2619 = vmax.xlane.f32.xlu1 %v2618_v49  ;;  %v2601_v62 = vadd.f32 %v2600_v53, %v10699_v16 }
 0xc02   : > { %v2603_v60 = vpop.f32.mrb[63].mxu0  ;;  %v2633_v11 = vsel %vm917_vm7, %v2609_v6, -inf  ;;  %v11348_v8 = vadd.f32 %v8642_v19, %v10687_v9 }
 0xc03   : > { %2634 = vmax.xlane.f32.xlu0 %v2633_v11  ;;  %v2627_v37 = vsel %vm917_vm7, %v2601_v62, -inf  ;;  %v11351_v42 = vadd.f32 %v2603_v60, %v10699_v16 }
 0xc04   : > { %v2636_v32 = vsel %vm917_vm7, %v11348_v8, -inf }
 0xc05   : > { %2399 = vadd.xlane.f32.xlu1 %v2398_v25  ;;  %v2630_v51 = vsel %vm917_vm7, %v11351_v42, -inf }
 0xc07   : > { %2628 = vmax.xlane.f32.xlu0 %v2627_v37 }
 0xc0b   : > { %2396 = vadd.xlane.f32.xlu0 %v2395_v0 }
 0xc16   : > { %2423 = vrot.lane.b32.xlu1 %v10579_v12, %s13388_s17 }
 0xc21   : > { %2421 = vrot.lane.b32.xlu0 %v10581_v13, %s13388_s17 }
 0xc25   : > { %2425 = vrot.lane.b32.xlu0 %v10591_v18, %s13388_s17 }
 0xc29   : > { %2427 = vrot.lane.b32.xlu0 %v10589_v15, %s13388_s17 }
 0xc3a   : > { %2637 = vmax.xlane.f32.xlu1 %v2636_v32 }
 0xc3e   : > { %2631 = vmax.xlane.f32.xlu1 %v2630_v51 }
 0xc42   : > { %v2385_v38 = vpop.xlane.xlu0 %2384 }
 0xc46   : > { %v2388_v54 = vpop.xlane.xlu1 %2387  ;;  %v2379_v46 = vpop.xlane.xlu0 %2378 }
 0xc47   : > { %9589 = vrcp.f32 %v2379_v46 }
 0xc4a   : > { %v2382_v27 = vpop.xlane.xlu1 %2381  ;;  %v2391_v41 = vpop.xlane.xlu0 %2390 }
 0xc4b   : > { %9591 = vrcp.f32 %v2382_v27 }
 0xc4e   : > { %v2394_v59 = vpop.xlane.xlu1 %2393 }
 0xc4f   : > { %2707 = vrot.lane.b32.xlu1 %v10599_v30, %s13388_s17 }
 0xc51   : > { %v9590_v23 = vpop.eup %9589 }
 0xc52   : > { %v2409_v57 = vmul.f32 %v9590_v23, %v11285_v20 }
 0xc53   : > { %2709 = vrot.lane.b32.xlu1 %v10597_v26, %s13388_s17 }
 0xc55   : > { %v9592_v29 = vpop.eup %9591 }
 0xc56   : > { %v2410_v2 = vmul.f32 %v9592_v29, %v11293_v58 }
 0xc58   : > { %v2417_v7 = vpack.c.bf16 %v2410_v2, %v2409_v57 }
 0xc5a   : > { %8619 = vmatprep.mubr.msk.bf16.mxu1 %vm917_vm7, %v2417_v7 }
 0xc88   : > { %v2623_v61 = vpop.xlane.xlu0 %2622 }
 0xc89   : > { %v2641_v40 = vsub.f32 %v11308_v5, %v2623_v61 }
 0xc8a   : > { %v2626_v4 = vpop.xlane.xlu1 %2625 }
 0xc8b   : > { %v2651_v1 = vmul.f32 1.442695, %v2641_v40  ;;  %v2642_v44 = vsub.f32 %v11314_v45, %v2626_v4 }
 0xc8c   : > { %v2617_v43 = vpop.xlane.xlu0 %2616 }
 0xc8d   : > { %9593 = vpow2.f32 %v2651_v1  ;;  %v2639_v3 = vsub.f32 %v11311_v52, %v2617_v43  ;;  %v2653_v20 = vmul.f32 1.442695, %v2642_v44 }
 0xc8e   : > { %v2620_v14 = vpop.xlane.xlu1 %2619 }
 0xc8f   : > { %v2647_v24 = vmul.f32 1.442695, %v2639_v3  ;;  %v2640_v58 = vsub.f32 %v11319_v39, %v2620_v14 }
 0xc90   : > { %v2635_v22 = vpop.xlane.xlu0 %2634 }
 0xc91   : > { %9595 = vpow2.f32 %v2647_v24  ;;  %v2645_v21 = vsub.f32 %v2609_v6, %v2635_v22  ;;  %v2649_v50 = vmul.f32 1.442695, %v2640_v58 }
 0xc92   : > { %9597 = vpow2.f32 %v2653_v20  ;;  %v2400_v19 = vpop.xlane.xlu1 %2399 }
 0xc93   : > { %v2659_v48 = vmul.f32 1.442695, %v2645_v21 }
 0xc94   : > { %v2629_v5 = vpop.xlane.xlu0 %2628 }
 0xc95   : > { %9599 = vpow2.f32 %v2659_v48  ;;  %v2643_v53 = vsub.f32 %v2601_v62, %v2629_v5 }
 0xc96   : > { %9601 = vpow2.f32 %v2649_v50  ;;  %v2424_v25 = vpop.permute.xlu1 %2423 }
 0xc97   : > { %v11368_v49 = vpop.eup %9593  ;;  %v2655_v45 = vmul.f32 1.442695, %v2643_v53 }
 0xc98   : > { %v2397_v52 = vpop.xlane.xlu0 %2396  ;;  %v2669_v60 = vsel %vm917_vm7, %v11368_v49, 0.0 }
 0xc99   : > { %9603 = vpow2.f32 %v2655_v45  ;;  %2670 = vadd.xlane.f32.xlu1 %v2669_v60 }
 0xc9a   : > { %9605 = vrcp.f32 %v2388_v54 }
 0xc9b   : > { %v11372_v39 = vpop.eup %9595  ;;  %9607 = vrcp.f32 %v2394_v59 }
 0xc9c   : > { %9609 = vrcp.f32 %v2385_v38  ;;  %v2422_v6 = vpop.permute.xlu0 %2421  ;;  %v2663_v62 = vsel %vm917_vm7, %v11372_v39, 0.0  ;;  %v11376_v11 = vpop.eup %9597 }
 0xc9d   : > { %9611 = vrcp.f32 %v2391_v41  ;;  %2664 = vadd.xlane.f32.xlu1 %v2663_v62  ;;  %8611 = vmatprep.subr.bf16.mxu1 %v2422_v6  ;;  %v2672_v32 = vsel %vm917_vm7, %v11376_v11, 0.0 }
 0xc9e   : > { %8612 = vmatpush3.bf16.msra.mxu1 %v2422_v6  ;;  %9613 = vrcp.f32 %v2397_v52 }
 0xc9f   : > { %v11378_v37 = vpop.eup %9599  ;;  %8613 = vmatprep.subr.bf16.mxu1 %v2424_v25  ;;  %9615 = vrcp.f32 %v2400_v19 }
 0xca0   : > { %v2426_v0 = vpop.permute.xlu0 %2425  ;;  %v2681_v51 = vsel %vm917_vm7, %v11378_v37, 0.0  ;;  %v11384_v38 = vpop.eup %9601 }
 0xca1   : > { %2673 = vadd.xlane.f32.xlu1 %v2672_v32  ;;  %2682 = vadd.xlane.f32.xlu0 %v2681_v51  ;;  %v2666_v27 = vsel %vm917_vm7, %v11384_v38, 0.0 }
 0xca2   : > { %8614 = vmatpush3.bf16.msra.mxu1 %v2424_v25 }
 0xca3   : > { %v11386_v54 = vpop.eup %9603  ;;  %8615 = vmatprep.subr.bf16.mxu1 %v2426_v0 }
 0xca4   : > { %v9606_v46 = vpop.eup %9605  ;;  %v2675_v23 = vsel %vm917_vm7, %v11386_v54, 0.0  ;;  %v2428_v2 = vpop.permute.xlu0 %2427 }
 0xca5   : > { %v9608_v29 = vpop.eup %9607  ;;  %2667 = vadd.xlane.f32.xlu1 %v2666_v27  ;;  %2676 = vadd.xlane.f32.xlu0 %v2675_v23  ;;  %v2412_v41 = vmul.f32 %v9606_v46, %v11287_v31 }
 0xca6   : > { %v9610_v57 = vpop.eup %9609  ;;  %8616 = vmatpush3.bf16.msra.mxu1 %v2426_v0  ;;  %v2414_v59 = vmul.f32 %v9608_v29, %v11301_v36 }
 0xca7   : > { %v9612_v7 = vpop.eup %9611  ;;  %8617 = vmatprep.subr.bf16.mxu1 %v2428_v2  ;;  %v2411_v61 = vmul.f32 %v9610_v57, %v11281_v55 }
 0xca8   : > { %v2413_v40 = vmul.f32 %v9612_v7, %v11295_v47  ;;  %v9614_v1 = vpop.eup %9613 }
 0xca9   : > { %v2418_v4 = vpack.c.bf16 %v2412_v41, %v2411_v61  ;;  %v9616_v43 = vpop.eup %9615  ;;  %v2415_v3 = vmul.f32 %v9614_v1, %v11335_v28 }
 0xcaa   : > { %8618 = vmatpush3.bf16.msra.mxu1 %v2428_v2  ;;  %v2419_v44 = vpack.c.bf16 %v2414_v59, %v2413_v40  ;;  %v2416_v31 = vmul.f32 %v9616_v43, %v11328_v10 }
 0xcac   : > { %v2420_v14 = vpack.c.bf16 %v2416_v31, %v2415_v3 }
 0xcad   : > { %8620 = vmatmul.mubr.msk.bf16.vlgmr.msra.gmra.mrb[48].mxu1 %vm917_vm7, %v2418_v4 }
 0xcae   : > { %8623 = vmatprep.mubr.msk.bf16.mxu1 %vm917_vm7, %v2419_v44 }
 0xcb5   : > { %8624 = vmatmul.mubr.msk.bf16.gmra.mrb[52].mxu1 %vm917_vm7, %v2420_v14 }
 0xcc7   : > { %v2638_v36 = vpop.xlane.xlu1 %2637 }
 0xcc8   : > { %v2646_v55 = vsub.f32 %v11348_v8, %v2638_v36 }
 0xcca   : > { %v2661_v20 = vmul.f32 1.442695, %v2646_v55 }
 0xccb   : > { %v2632_v47 = vpop.xlane.xlu1 %2631 }
 0xccc   : > { %9617 = vpow2.f32 %v2661_v20  ;;  %v2644_v24 = vsub.f32 %v11351_v42, %v2632_v47  ;;  %v10055_v42 = vld [vmem:[%s13374_s3 + $0x18] sm:$0xf] }
 0xccd   : > { %v7860_v48 = vcombine.low %v10055_v42, %v10055_v42 }
 0xcce   : > { %v2657_v58 = vmul.f32 1.442695, %v2644_v24 }
 0xccf   : > { %v2708_v22 = vpop.permute.xlu1 %2707 }
 0xcd0   : > { %9619 = vpow2.f32 %v2657_v58  ;;  %8643 = vmatprep.subr.bf16.mxu1 %v2708_v22 }
 0xcd1   : > { %8644 = vmatpush3.bf16.msra.mxu1 %v2708_v22 }
 0xcd3   : > { %v2710_v21 = vpop.permute.xlu1 %2709 }
 0xcd4   : > { %8645 = vmatprep.subr.bf16.mxu1 %v2710_v21 }
 0xcd5   : > { %8646 = vmatpush3.bf16.msra.mxu1 %v2710_v21 }
 0xcd6   : > { %v11403_v10 = vpop.eup %9617 }
 0xcd7   : > { %v2684_v28 = vsel %vm917_vm7, %v11403_v10, 0.0 }
 0xcd8   : > { %2685 = vadd.xlane.f32.xlu0 %v2684_v28 }
 0xcda   : > { %v11407_v8 = vpop.eup %9619 }
 0xcdb   : > { %v2678_v50 = vsel %vm917_vm7, %v11407_v8, 0.0 }
 0xcdc   : > { %2679 = vadd.xlane.f32.xlu1 %v2678_v50 }
 0xced   : > { %2713 = vrot.lane.b32.xlu1 %v10607_v33, %s13388_s17 }
 0xcee   : > { %2711 = vrot.lane.b32.xlu0 %v10609_v34, %s13388_s17 }
 0xcf1   : > { %2957 = vrot.lane.b32.xlu1 %v10579_v12, %s13386_s7 }
 0xcf2   : > { %2955 = vrot.lane.b32.xlu0 %v10581_v13, %s13386_s7 }
 0xcf5   : > { %2805 = vrot.lane.b32.xlu1 %v7860_v48, %s10185_s10 }
 0xcf6   : > { %2959 = vrot.lane.b32.xlu0 %v10591_v18, %s13386_s7 }
 0xcf9   : > { %2947 = vrot.lane.b32.xlu1 %v10581_v13, %s13384_s9 }
 0xcfa   : > { %2961 = vrot.lane.b32.xlu0 %v10589_v15, %s13386_s7 }
 0xcfd   : > { %3241 = vrot.lane.b32.xlu1 %v10599_v30, %s13386_s7 }
 0xcfe   : > { %2949 = vrot.lane.b32.xlu0 %v10579_v12, %s13384_s9 }
 0xd01   : > { %2951 = vrot.lane.b32.xlu1 %v10591_v18, %s13384_s9 }
 0xd02   : > { %3243 = vrot.lane.b32.xlu0 %v10597_v26, %s13386_s7 }
 0xd05   : > { %3245 = vrot.lane.b32.xlu1 %v10609_v34, %s13386_s7 }
 0xd06   : > { %2953 = vrot.lane.b32.xlu0 %v10589_v15, %s13384_s9 }
 0xd09   : > { %3233 = vrot.lane.b32.xlu1 %v10599_v30, %s13384_s9 }
 0xd0a   : > { %3247 = vrot.lane.b32.xlu0 %v10607_v33, %s13386_s7 }
 0xd0d   : > { %3237 = vrot.lane.b32.xlu1 %v10609_v34, %s13384_s9 }
 0xd0e   : > { %3235 = vrot.lane.b32.xlu0 %v10597_v26, %s13384_s9 }
 0xd11   : > { %3144 = vrot.lane.b32.xlu1 %v10581_v13, %s13382_s16 }
 0xd12   : > { %3239 = vrot.lane.b32.xlu0 %v10607_v33, %s13384_s9 }
 0xd26   : > { %v2671_v5 = vpop.xlane.xlu1 %2670 }
 0xd2a   : > { %v2665_v53 = vpop.xlane.xlu1 %2664 }
 0xd2b   : > { %9621 = vrcp.f32 %v2665_v53 }
 0xd2e   : > { %v2674_v45 = vpop.xlane.xlu1 %2673  ;;  %v2683_v0 = vpop.xlane.xlu0 %2682 }
 0xd32   : > { %v2668_v19 = vpop.xlane.xlu1 %2667  ;;  %v2677_v13 = vpop.xlane.xlu0 %2676 }
 0xd33   : > { %9623 = vrcp.f32 %v2668_v19 }
 0xd34   : > { %9625 = vrcp.f32 %v2674_v45 }
 0xd35   : > { %v9622_v52 = vpop.eup %9621  ;;  %9627 = vrcp.f32 %v2671_v5 }
 0xd36   : > { %v2695_v6 = vmul.f32 %v9622_v52, %v11372_v39 }
 0xd3d   : > { %v9624_v60 = vpop.eup %9623 }
 0xd3e   : > { %v2696_v62 = vmul.f32 %v9624_v60, %v11384_v38  ;;  %v9626_v51 = vpop.eup %9625 }
 0xd3f   : > { %v9628_v23 = vpop.eup %9627  ;;  %v2698_v39 = vmul.f32 %v9626_v51, %v11376_v11 }
 0xd40   : > { %v2703_v25 = vpack.c.bf16 %v2696_v62, %v2695_v6  ;;  %v2697_v29 = vmul.f32 %v9628_v23, %v11368_v49 }
 0xd42   : > { %8651 = vmatprep.mubr.msk.bf16.mxu1 %vm917_vm7, %v2703_v25  ;;  %v2704_v2 = vpack.c.bf16 %v2698_v39, %v2697_v29 }
 0xd65   : > { %v2686_v32 = vpop.xlane.xlu0 %2685 }
 0xd66   : > { %9629 = vrcp.f32 %v2686_v32 }
 0xd67   : > { %9631 = vrcp.f32 %v2677_v13 }
 0xd68   : > { %9633 = vrcp.f32 %v2683_v0 }
 0xd69   : > { %v2680_v46 = vpop.xlane.xlu1 %2679  ;;  %v2712_v27 = vpop.permute.xlu0 %2711 }
 0xd6a   : > { %9635 = vrcp.f32 %v2680_v46  ;;  %8647 = vmatprep.subr.bf16.mxu1 %v2712_v27 }
 0xd6b   : > { %8648 = vmatpush3.bf16.msra.mxu1 %v2712_v27 }
 0xd6d   : > { %v2714_v38 = vpop.permute.xlu1 %2713  ;;  %v2956_v57 = vpop.permute.xlu0 %2955 }
 0xd6e   : > { %8649 = vmatprep.subr.bf16.mxu1 %v2714_v38  ;;  %v2976_v31 = vsel %vm827_vm1, %v2956_v57, 0 }
 0xd6f   : > { %8650 = vmatpush3.bf16.msra.mxu1 %v2714_v38 }
 0xd70   : > { %9282 = vmatprep.subr.msk.bf16.mxu1 %vm827_vm1, %v2956_v57  ;;  %v9630_v7 = vpop.eup %9629 }
 0xd71   : > { %v2958_v41 = vpop.permute.xlu1 %2957  ;;  %v9632_v59 = vpop.eup %9631  ;;  %v2702_v4 = vmul.f32 %v9630_v7, %v11403_v10 }
 0xd72   : > { %8652 = vmatmul.mubr.msk.bf16.vlgmr.msra.gmra.mrb[56].mxu1 %vm917_vm7, %v2704_v2  ;;  %v9634_v61 = vpop.eup %9633  ;;  %v2699_v11 = vmul.f32 %v9632_v59, %v11386_v54  ;;  %v2960_v44 = vpop.permute.xlu0 %2959  ;;  %v2979_v20 = vsel %vm827_vm1, %v2958_v41, 0 }
 0xd73   : > { %v2701_v43 = vmul.f32 %v9634_v61, %v11378_v37  ;;  %v2982_v48 = vsel %vm827_vm1, %v2960_v44, 0 }
 0xd74   : > { %v9636_v40 = vpop.eup %9635 }
 0xd75   : > { %v2806_v1 = vpop.permute.xlu1 %2805  ;;  %v2700_v49 = vmul.f32 %v9636_v40, %v11407_v8  ;;  %v2706_v36 = vpack.c.bf16 %v2702_v4, %v2701_v43 }
 0xd76   : > { %9281 = vmatprep.subr.msk.bf16.mxu0 %vm1996_vm10, %v2806_v1  ;;  %v2832_v3 = vsel %vm1996_vm10, %v2806_v1, 0  ;;  %v2962_v37 = vpop.permute.xlu0 %2961 }
 0xd77   : > { %v2705_v14 = vpack.c.bf16 %v2700_v49, %v2699_v11  ;;  %8660 = vmatpush3.bf16.msra.mxu0 %v2832_v3  ;;  %v2985_v13 = vsel %vm827_vm1, %v2962_v37, 0 }
 0xd78   : > { %8678 = vmatpush3.bf16.xpose.msra.mxu1 %v2976_v31 }
 0xd79   : > { %v2948_v55 = vpop.permute.xlu1 %2947  ;;  %8655 = vmatprep.mubr.msk.bf16.mxu1 %vm917_vm7, %v2705_v14  ;;  %9283 = vmatprep.subr.msk.bf16.mxu1 %vm827_vm1, %v2958_v41 }
 0xd7a   : > { %8656 = vmatmul.mubr.msk.bf16.gmra.mrb[60].mxu1 %vm917_vm7, %v2706_v36  ;;  %v2950_v22 = vpop.permute.xlu0 %2949 }
 0xd7b   : > { %8685 = vmatprep.mubr.msk.bf16.mxu1 %vm827_vm1, %v2948_v55 }
 0xd7d   : > { %v3242_v54 = vpop.permute.xlu1 %3241 }
 0xd7e   : > { %9286 = vmatprep.subr.msk.bf16.mxu0 %vm827_vm1, %v3242_v54  ;;  %v3262_v42 = vsel %vm827_vm1, %v3242_v54, 0  ;;  %v3244_v5 = vpop.permute.xlu0 %3243 }
 0xd7f   : > { %v3265_v0 = vsel %vm827_vm1, %v3244_v5, 0 }
 0xd80   : > { %v8621_v47 = vpop.f32.mrb[48].mxu1  ;;  %8680 = vmatpush3.bf16.xpose.msra.mxu1 %v2979_v20 }
 0xd81   : > { %v2952_v24 = vpop.permute.xlu1 %2951  ;;  %v2479_v58 = vpop.f32.mrb[49].mxu1  ;;  %9284 = vmatprep.subr.msk.bf16.mxu1 %vm827_vm1, %v2960_v44 }
 0xd82   : > { %v8622_v21 = vpop.f32.mrb[50].mxu1  ;;  %v2954_v51 = vpop.permute.xlu0 %2953 }
 0xd83   : > { %v2797_v10 = vpack.c.bf16 %v8622_v21, %v8621_v47  ;;  %v2482_v28 = vpop.f32.mrb[51].mxu1 }
 0xd84   : > { %v2796_v8 = vpack.c.bf16 %v2482_v28, %v2479_v58 }
 0xd85   : > { %v3246_v50 = vpop.permute.xlu1 %3245 }
 0xd86   : > { %8661 = vmatprep.mubr.msk.bf16.mxu0 %vm827_vm1, %v2796_v8  ;;  %v3268_v46 = vsel %vm827_vm1, %v3246_v50, 0  ;;  %v3248_v27 = vpop.permute.xlu0 %3247 }
 0xd87   : > { %8662 = vmatmul.mubr.msk.bf16.vlgmr.msra.gmra.mrb[40].mxu0 %vm827_vm1, %v2797_v10  ;;  %v3271_v23 = vsel %vm827_vm1, %v3248_v27, 0 }
 0xd88   : > { %8710 = vmatpush3.bf16.xpose.msra.mxu0 %v3262_v42  ;;  %v8625_v53 = vpop.f32.mrb[52].mxu1  ;;  %8682 = vmatpush3.bf16.xpose.msra.mxu1 %v2982_v48 }
 0xd89   : > { %9287 = vmatprep.subr.msk.bf16.mxu0 %vm827_vm1, %v3244_v5  ;;  %v3234_v45 = vpop.permute.xlu1 %3233  ;;  %v2495_v19 = vpop.f32.mrb[53].mxu1  ;;  %9285 = vmatprep.subr.msk.bf16.mxu1 %vm827_vm1, %v2962_v37 }
 0xd8a   : > { %v8626_v52 = vpop.f32.mrb[54].mxu1  ;;  %v3236_v11 = vpop.permute.xlu0 %3235 }
 0xd8b   : > { %v2799_v60 = vpack.c.bf16 %v8626_v52, %v8625_v53  ;;  %v2498_v6 = vpop.f32.mrb[55].mxu1 }
 0xd8c   : > { %v2798_v62 = vpack.c.bf16 %v2498_v6, %v2495_v19 }
 0xd8d   : > { %v3238_v25 = vpop.permute.xlu1 %3237 }
 0xd8e   : > { %8665 = vmatprep.mubr.msk.bf16.mxu0 %vm827_vm1, %v2798_v62  ;;  %v3240_v49 = vpop.permute.xlu0 %3239 }
 0xd8f   : > { %8666 = vmatmul.mubr.msk.bf16.gmra.mrb[44].mxu0 %vm827_vm1, %v2799_v60 }
 0xd90   : > { %8712 = vmatpush3.bf16.xpose.msra.mxu0 %v3265_v0  ;;  %8684 = vmatpush3.bf16.xpose.msra.mxu1 %v2985_v13 }
 0xd91   : > { %9288 = vmatprep.subr.msk.bf16.mxu0 %vm827_vm1, %v3246_v50  ;;  %v3145_v32 = vpop.permute.xlu1 %3144 }
 0xd92   : > { %8693 = vmatprep.subr.bf16.mxu1 %v3145_v32 }
 0xd97   : > { %8686 = vmatmul.mubr.msk.bf16.vlgmr.msra.gmra.mrb[64].mxu1 %vm827_vm1, %v2950_v22 }
 0xd98   : > { %8714 = vmatpush3.bf16.xpose.msra.mxu0 %v3268_v46  ;;  %8689 = vmatprep.mubr.msk.bf16.mxu1 %vm827_vm1, %v2952_v24 }
 0xd99   : > { %8694 = vmatpush3.bf16.msra.mxu1 %v3145_v32  ;;  %9289 = vmatprep.subr.msk.bf16.mxu0 %vm827_vm1, %v3248_v27 }
 0xd9f   : > { %8690 = vmatmul.mubr.msk.bf16.gmra.mrb[68].mxu1 %vm827_vm1, %v2954_v51 }
 0xda0   : > { %8716 = vmatpush3.bf16.xpose.msra.mxu0 %v3271_v23 }
 0xe45   : > { %v8653_v39 = vpop.f32.mrb[56].mxu1 }
 0xe46   : > { %v2765_v38 = vpop.f32.mrb[57].mxu1 }
 0xe47   : > { %v8654_v29 = vpop.f32.mrb[58].mxu1 }
 0xe48   : > { %v2801_v57 = vpack.c.bf16 %v8654_v29, %v8653_v39  ;;  %v2768_v2 = vpop.f32.mrb[59].mxu1 }
 0xe49   : > { %v2800_v7 = vpack.c.bf16 %v2768_v2, %v2765_v38 }
 0xe4b   : > { %8669 = vmatprep.mubr.msk.bf16.mxu0 %vm827_vm1, %v2800_v7 }
 0xe4c   : > { %8670 = vmatmul.mubr.msk.bf16.gmra.mrb[48].mxu0 %vm827_vm1, %v2801_v57 }
 0xe4d   : > { %v8657_v41 = vpop.f32.mrb[60].mxu1 }
 0xe4e   : > { %v2781_v59 = vpop.f32.mrb[61].mxu1 }
 0xe4f   : > { %v8658_v61 = vpop.f32.mrb[62].mxu1 }
 0xe50   : > { %v2803_v40 = vpack.c.bf16 %v8658_v61, %v8657_v41  ;;  %v2784_v4 = vpop.f32.mrb[63].mxu1 }
 0xe51   : > { %v2802_v1 = vpack.c.bf16 %v2784_v4, %v2781_v59 }
 0xe53   : > { %8673 = vmatprep.mubr.msk.bf16.mxu0 %vm827_vm1, %v2802_v1 }
 0xe54   : > { %8674 = vmatmul.mubr.msk.bf16.gmra.mrb[52].mxu0 %vm827_vm1, %v2803_v40 }
 0xe55   : > { %8717 = vmatprep.mubr.msk.bf16.mxu0 %vm827_vm1, %v3234_v45 }
 0xe5c   : > { %8718 = vmatmul.mubr.msk.bf16.vlgmr.msra.gmra.mrb[64].mxu0 %vm827_vm1, %v3236_v11 }
 0xe5d   : > { %8721 = vmatprep.mubr.msk.bf16.mxu0 %vm827_vm1, %v3238_v25 }
 0xe64   : > { %8722 = vmatmul.mubr.msk.bf16.gmra.mrb[68].mxu0 %vm827_vm1, %v3240_v49 }
 0xe6a   : > { %v8687_v44 = vpop.f32.mrb[64].mxu1 }
 0xe6b   : > { %v3030_v43 = vadd.f32 %v8687_v44, %v10662_v35  ;;  %v3021_v3 = vpop.f32.mrb[65].mxu1 }
 0xe6c   : > { %v3022_v31 = vadd.f32 %v3021_v3, %v10665_v63  ;;  %v8688_v14 = vpop.f32.mrb[66].mxu1 }
 0xe6d   : > { %v3033_v36 = vadd.f32 %v8688_v14, %v10662_v35  ;;  %v3024_v55 = vpop.f32.mrb[67].mxu1  ;;  %v3058_v37 = vsel %vm917_vm7, %v3030_v43, -inf }
 0xe6e   : > { %3059 = vmax.xlane.f32.xlu0 %v3058_v37  ;;  %v3052_v54 = vsel %vm917_vm7, %v3022_v31, -inf  ;;  %v3025_v20 = vadd.f32 %v3024_v55, %v10665_v63 }
 0xe6f   : > { %3053 = vmax.xlane.f32.xlu1 %v3052_v54  ;;  %v3061_v47 = vsel %vm917_vm7, %v3033_v36, -inf }
 0xe70   : > { %v3055_v50 = vsel %vm917_vm7, %v3025_v20, -inf }
 0xe72   : > { %3062 = vmax.xlane.f32.xlu0 %v3061_v47  ;;  %v8691_v24 = vpop.f32.mrb[68].mxu1 }
 0xe73   : > { %v3046_v58 = vadd.f32 %v8691_v24, %v10687_v9  ;;  %v3037_v22 = vpop.f32.mrb[69].mxu1 }
 0xe74   : > { %v8692_v21 = vpop.f32.mrb[70].mxu1  ;;  %v3038_v10 = vadd.f32 %v3037_v22, %v10699_v16 }
 0xe75   : > { %v11509_v28 = vadd.f32 %v8692_v21, %v10687_v9  ;;  %v3040_v8 = vpop.f32.mrb[71].mxu1  ;;  %v3070_v42 = vsel %vm917_vm7, %v3046_v58, -inf }
 0xe76   : > { %3056 = vmax.xlane.f32.xlu0 %v3055_v50  ;;  %3071 = vmax.xlane.f32.xlu1 %v3070_v42  ;;  %v3041_v48 = vadd.f32 %v3040_v8, %v10699_v16  ;;  %v3064_v53 = vsel %vm917_vm7, %v3038_v10, -inf }
 0xe77   : > { %v3073_v5 = vsel %vm917_vm7, %v11509_v28, -inf }
 0xe78   : > { %v3067_v45 = vsel %vm917_vm7, %v3041_v48, -inf }
 0xe7a   : > { %3074 = vmax.xlane.f32.xlu0 %v3073_v5  ;;  %3065 = vmax.xlane.f32.xlu1 %v3064_v53 }
 0xe7e   : > { %3068 = vmax.xlane.f32.xlu0 %v3067_v45 }
 0xefb   : > { %v3060_v19 = vpop.xlane.xlu0 %3059 }
 0xefc   : > { %v3078_v52 = vsub.f32 %v3030_v43, %v3060_v19  ;;  %v3054_v60 = vpop.xlane.xlu1 %3053 }
 0xefd   : > { %v3076_v6 = vsub.f32 %v3022_v31, %v3054_v60 }
 0xefe   : > { %v3088_v62 = vmul.f32 1.442695, %v3078_v52 }
 0xeff   : > { %v3084_v25 = vmul.f32 1.442695, %v3076_v6  ;;  %v3063_v0 = vpop.xlane.xlu0 %3062 }
 0xf00   : > { %9637 = vpow2.f32 %v3088_v62  ;;  %v3079_v13 = vsub.f32 %v3033_v36, %v3063_v0 }
 0xf01   : > { %9639 = vpow2.f32 %v3084_v25 }
 0xf02   : > { %v3090_v32 = vmul.f32 1.442695, %v3079_v13 }
 0xf03   : > { %v3072_v51 = vpop.xlane.xlu1 %3071  ;;  %v3057_v46 = vpop.xlane.xlu0 %3056 }
 0xf04   : > { %9641 = vpow2.f32 %v3090_v32  ;;  %v3082_v27 = vsub.f32 %v3046_v58, %v3072_v51  ;;  %v3077_v23 = vsub.f32 %v3025_v20, %v3057_v46 }
 0xf06   : > { %v3086_v39 = vmul.f32 1.442695, %v3077_v23  ;;  %v3096_v38 = vmul.f32 1.442695, %v3082_v27 }
 0xf07   : > { %v3066_v29 = vpop.xlane.xlu1 %3065  ;;  %v3075_v57 = vpop.xlane.xlu0 %3074 }
 0xf08   : > { %v3080_v2 = vsub.f32 %v3038_v10, %v3066_v29  ;;  %9643 = vpow2.f32 %v3086_v39  ;;  %v3083_v20 = vsub.f32 %v11509_v28, %v3075_v57 }
 0xf09   : > { %9645 = vpow2.f32 %v3096_v38 }
 0xf0a   : > { %v11518_v7 = vpop.eup %9637  ;;  %v3092_v41 = vmul.f32 1.442695, %v3080_v2  ;;  %v3098_v47 = vmul.f32 1.442695, %v3083_v20 }
 0xf0b   : > { %v3069_v59 = vpop.xlane.xlu0 %3068  ;;  %v3106_v61 = vsel %vm917_vm7, %v11518_v7, 0.0  ;;  %v11522_v40 = vpop.eup %9639 }
 0xf0c   : > { %v3081_v4 = vsub.f32 %v3041_v48, %v3069_v59  ;;  %3107 = vadd.xlane.f32.xlu1 %v3106_v61  ;;  %9647 = vpow2.f32 %v3092_v41  ;;  %v3100_v49 = vsel %vm917_vm7, %v11522_v40, 0.0 }
 0xf0e   : > { %v11524_v1 = vpop.eup %9641  ;;  %v3094_v11 = vmul.f32 1.442695, %v3081_v4 }
 0xf0f   : > { %v3109_v44 = vsel %vm917_vm7, %v11524_v1, 0.0 }
 0xf10   : > { %3101 = vadd.xlane.f32.xlu1 %v3100_v49  ;;  %3110 = vadd.xlane.f32.xlu0 %v3109_v44  ;;  %9649 = vpow2.f32 %v3094_v11 }
 0xf11   : > { %9651 = vpow2.f32 %v3098_v47 }
 0xf12   : > { %v11530_v43 = vpop.eup %9643 }
 0xf13   : > { %v3103_v3 = vsel %vm917_vm7, %v11530_v43, 0.0  ;;  %v11534_v31 = vpop.eup %9645 }
 0xf14   : > { %3104 = vadd.xlane.f32.xlu0 %v3103_v3  ;;  %v3118_v14 = vsel %vm917_vm7, %v11534_v31, 0.0 }
 0xf16   : > { %v11538_v36 = vpop.eup %9647 }
 0xf17   : > { %v3112_v55 = vsel %vm917_vm7, %v11538_v36, 0.0 }
 0xf18   : > { %3119 = vadd.xlane.f32.xlu0 %v3118_v14 }
 0xf1a   : > { %v11542_v37 = vpop.eup %9649 }
 0xf1b   : > { %v3115_v54 = vsel %vm917_vm7, %v11542_v37, 0.0  ;;  %v11555_v52 = vpop.eup %9651 }
 0xf1c   : > { %3113 = vadd.xlane.f32.xlu0 %v3112_v55 }
 0xf20   : > { %3116 = vadd.xlane.f32.xlu0 %v3115_v54 }
 0xf2f   : > { %v8719_v24 = vpop.f32.mrb[64].mxu0 }
 0xf30   : > { %v3316_v58 = vadd.f32 %v8719_v24, %v10662_v35  ;;  %v3307_v22 = vpop.f32.mrb[65].mxu0 }
 0xf31   : > { %v8720_v21 = vpop.f32.mrb[66].mxu0  ;;  %v3308_v10 = vadd.f32 %v3307_v22, %v10665_v63 }
 0xf32   : > { %v3319_v8 = vadd.f32 %v8720_v21, %v10662_v35  ;;  %v3310_v50 = vpop.f32.mrb[67].mxu0  ;;  %v3344_v42 = vsel %vm917_vm7, %v3316_v58, -inf }
 0xf33   : > { %3345 = vmax.xlane.f32.xlu1 %v3344_v42  ;;  %v3311_v48 = vadd.f32 %v3310_v50, %v10665_v63  ;;  %v3338_v28 = vsel %vm917_vm7, %v3308_v10, -inf  ;;  %v3121_v63 = vsel %vm917_vm7, %v11555_v52, 0.0 }
 0xf34   : > { %v3347_v5 = vsel %vm917_vm7, %v3319_v8, -inf }
 0xf35   : > { %3348 = vmax.xlane.f32.xlu0 %v3347_v5  ;;  %v3341_v19 = vsel %vm917_vm7, %v3311_v48, -inf }
 0xf37   : > { %v8723_v53 = vpop.f32.mrb[68].mxu0  ;;  %3339 = vmax.xlane.f32.xlu1 %v3338_v28 }
 0xf38   : > { %v3323_v45 = vpop.f32.mrb[69].mxu0  ;;  %v11574_v13 = vadd.f32 %v8723_v53, %v10687_v9 }
 0xf39   : > { %v8724_v60 = vpop.f32.mrb[70].mxu0  ;;  %3342 = vmax.xlane.f32.xlu0 %v3341_v19  ;;  %v11577_v32 = vadd.f32 %v3323_v45, %v10699_v16 }
 0xf3a   : > { %v3326_v35 = vpop.f32.mrb[71].mxu0  ;;  %v11558_v6 = vadd.f32 %v8724_v60, %v10687_v9  ;;  %v3356_v51 = vsel %vm917_vm7, %v11574_v13, -inf }
 0xf3b   : > { %v11563_v62 = vadd.f32 %v3326_v35, %v10699_v16  ;;  %v3350_v46 = vsel %vm917_vm7, %v11577_v32, -inf }
 0xf3c   : > { %v3359_v25 = vsel %vm917_vm7, %v11558_v6, -inf }
 0xf3d   : > { %3122 = vadd.xlane.f32.xlu0 %v3121_v63  ;;  %v3353_v0 = vsel %vm917_vm7, %v11563_v62, -inf }
 0xf41   : > { %3360 = vmax.xlane.f32.xlu0 %v3359_v25 }
 0xf45   : > { %3354 = vmax.xlane.f32.xlu0 %v3353_v0 }
 0xf48   : > { %3146 = vrot.lane.b32.xlu1 %v10579_v12, %s13382_s16 }
 0xf5b   : > { %3148 = vrot.lane.b32.xlu0 %v10591_v18, %s13382_s16 }
 0xf6c   : > { %3357 = vmax.xlane.f32.xlu1 %v3356_v51 }
 0xf70   : > { %3351 = vmax.xlane.f32.xlu1 %v3350_v46 }
 0xf81   : > { %3150 = vrot.lane.b32.xlu1 %v10589_v15, %s13382_s16 }
 0xf85   : > { %3430 = vrot.lane.b32.xlu1 %v10599_v30, %s13382_s16 }
 0xf89   : > { %3432 = vrot.lane.b32.xlu1 %v10597_v26, %s13382_s16 }
 0xf99   : > { %v3108_v12 = vpop.xlane.xlu1 %3107 }
 0xf9d   : > { %v3111_v18 = vpop.xlane.xlu0 %3110  ;;  %v3102_v9 = vpop.xlane.xlu1 %3101 }
 0xf9e   : > { %9653 = vrcp.f32 %v3102_v9 }
 0xfa1   : > { %v3105_v16 = vpop.xlane.xlu0 %3104 }
 0xfa2   : > { %9655 = vrcp.f32 %v3105_v16 }
 0xfa5   : > { %v3120_v15 = vpop.xlane.xlu0 %3119 }
 0xfa8   : > { %v9654_v27 = vpop.eup %9653 }
 0xfa9   : > { %v3132_v39 = vmul.f32 %v9654_v27, %v11522_v40  ;;  %v3114_v30 = vpop.xlane.xlu0 %3113 }
 0xfac   : > { %v9656_v23 = vpop.eup %9655 }
 0xfad   : > { %v3133_v38 = vmul.f32 %v9656_v23, %v11530_v43  ;;  %v3117_v57 = vpop.xlane.xlu0 %3116 }
 0xfaf   : > { %v3140_v29 = vpack.c.bf16 %v3133_v38, %v3132_v39 }
 0xfb1   : > { %8701 = vmatprep.mubr.msk.bf16.mxu1 %vm917_vm7, %v3140_v29 }
 0xfc0   : > { %v3346_v2 = vpop.xlane.xlu1 %3345 }
 0xfc1   : > { %v3364_v26 = vsub.f32 %v3316_v58, %v3346_v2 }
 0xfc2   : > { %v3349_v41 = vpop.xlane.xlu0 %3348 }
 0xfc3   : > { %v3374_v59 = vmul.f32 1.442695, %v3364_v26  ;;  %v3365_v61 = vsub.f32 %v3319_v8, %v3349_v41 }
 0xfc4   : > { %v3340_v4 = vpop.xlane.xlu1 %3339 }
 0xfc5   : > { %9657 = vpow2.f32 %v3374_v59  ;;  %v3362_v11 = vsub.f32 %v3308_v10, %v3340_v4  ;;  %v3376_v49 = vmul.f32 1.442695, %v3365_v61 }
 0xfc6   : > { %v3343_v44 = vpop.xlane.xlu0 %3342 }
 0xfc7   : > { %v3370_v3 = vmul.f32 1.442695, %v3362_v11  ;;  %v3363_v40 = vsub.f32 %v3311_v48, %v3343_v44  ;;  %v10056_v48 = vld [vmem:[%s13374_s3 + $0x24] sm:$0xf] }
 0xfc8   : > { %v3147_v14 = vpop.permute.xlu1 %3146  ;;  %v7885_v5 = vcombine.low %v10056_v48, %v10056_v48 }
 0xfc9   : > { %9659 = vpow2.f32 %v3370_v3  ;;  %v3372_v43 = vmul.f32 1.442695, %v3363_v40  ;;  %8695 = vmatprep.subr.bf16.mxu1 %v3147_v14 }
 0xfca   : > { %9661 = vpow2.f32 %v3376_v49  ;;  %8696 = vmatpush3.bf16.msra.mxu1 %v3147_v14  ;;  %v3123_v55 = vpop.xlane.xlu0 %3122 }
 0xfcb   : > { %9663 = vpow2.f32 %v3372_v43 }
 0xfcc   : > { %9665 = vrcp.f32 %v3111_v18 }
 0xfcd   : > { %9667 = vrcp.f32 %v3117_v57 }
 0xfce   : > { %v3361_v54 = vpop.xlane.xlu0 %3360  ;;  %9669 = vrcp.f32 %v3108_v12 }
 0xfcf   : > { %v11592_v20 = vpop.eup %9657  ;;  %9671 = vrcp.f32 %v3114_v30  ;;  %v3369_v45 = vsub.f32 %v11558_v6, %v3361_v54 }
 0xfd0   : > { %v3392_v47 = vsel %vm917_vm7, %v11592_v20, 0.0  ;;  %9673 = vrcp.f32 %v3123_v55 }
 0xfd1   : > { %3393 = vadd.xlane.f32.xlu1 %v3392_v47  ;;  %9675 = vrcp.f32 %v3120_v15  ;;  %v3384_v46 = vmul.f32 1.442695, %v3369_v45 }
 0xfd2   : > { %v3355_v24 = vpop.xlane.xlu0 %3354 }
 0xfd3   : > { %v11596_v58 = vpop.eup %9659  ;;  %v3367_v12 = vsub.f32 %v11563_v62, %v3355_v24 }
 0xfd4   : > { %v11598_v22 = vpop.eup %9661  ;;  %v3386_v21 = vsel %vm917_vm7, %v11596_v58, 0.0 }
 0xfd5   : > { %v11602_v10 = vpop.eup %9663  ;;  %3387 = vadd.xlane.f32.xlu1 %v3386_v21  ;;  %v3395_v42 = vsel %vm917_vm7, %v11598_v22, 0.0 }
 0xfd6   : > { %v3149_v8 = vpop.permute.xlu0 %3148  ;;  %v3389_v50 = vsel %vm917_vm7, %v11602_v10, 0.0  ;;  %v9666_v60 = vpop.eup %9665 }
 0xfd7   : > { %3390 = vadd.xlane.f32.xlu0 %v3389_v50  ;;  %8697 = vmatprep.subr.bf16.mxu1 %v3149_v8  ;;  %v9668_v63 = vpop.eup %9667  ;;  %v3135_v51 = vmul.f32 %v9666_v60, %v11524_v1 }
 0xfd8   : > { %8698 = vmatpush3.bf16.msra.mxu1 %v3149_v8  ;;  %v9670_v25 = vpop.eup %9669  ;;  %v3137_v9 = vmul.f32 %v9668_v63, %v11542_v37 }
 0xfd9   : > { %3396 = vadd.xlane.f32.xlu1 %v3395_v42  ;;  %v9672_v0 = vpop.eup %9671  ;;  %v3134_v6 = vmul.f32 %v9670_v25, %v11518_v7 }
 0xfda   : > { %v3136_v16 = vmul.f32 %v9672_v0, %v11538_v36  ;;  %v9674_v23 = vpop.eup %9673 }
 0xfdb   : > { %v3141_v27 = vpack.c.bf16 %v3135_v51, %v3134_v6  ;;  %v9676_v62 = vpop.eup %9675  ;;  %v3139_v7 = vmul.f32 %v9674_v23, %v11555_v52 }
 0xfdc   : > { %v3142_v1 = vpack.c.bf16 %v3137_v9, %v3136_v16  ;;  %v3138_v29 = vmul.f32 %v9676_v62, %v11534_v31 }
 0xfde   : > { %v3143_v30 = vpack.c.bf16 %v3139_v7, %v3138_v29 }
 0xfea   : > { %3436 = vrot.lane.b32.xlu1 %v10607_v33, %s13382_s16 }
 0xfee   : > { %3528 = vrot.lane.b32.xlu1 %v7885_v5, %s10185_s10 }
 0xff9   : > { %v3358_v28 = vpop.xlane.xlu1 %3357 }
 0xffa   : > { %v3368_v53 = vsub.f32 %v11574_v13, %v3358_v28 }
 0xffc   : > { %v3382_v19 = vmul.f32 1.442695, %v3368_v53 }
 0xffd   : > { %v3352_v35 = vpop.xlane.xlu1 %3351 }
 0xffe   : > { %9677 = vpow2.f32 %v3382_v19  ;;  %v3366_v33 = vsub.f32 %v11577_v32, %v3352_v35  ;;  %v3380_v32 = vmul.f32 1.442695, %v3367_v12 }
0x1000   : > { %v3378_v18 = vmul.f32 1.442695, %v3366_v33 }
0x1001   : > { %v3151_v13 = vpop.permute.xlu1 %3150 }
0x1002   : > { %9679 = vpow2.f32 %v3378_v18  ;;  %8699 = vmatprep.subr.bf16.mxu1 %v3151_v13 }
0x1003   : > { %8700 = vmatpush3.bf16.msra.mxu1 %v3151_v13  ;;  %9681 = vpow2.f32 %v3384_v46 }
0x1004   : > { %9683 = vpow2.f32 %v3380_v32 }
0x1005   : > { %v3431_v39 = vpop.permute.xlu1 %3430 }
0x1006   : > { %8702 = vmatmul.mubr.msk.bf16.vlgmr.msra.gmra.mrb[72].mxu1 %vm917_vm7, %v3141_v27  ;;  %8725 = vmatprep.subr.bf16.mxu1 %v3431_v39 }
0x1007   : > { %8705 = vmatprep.mubr.msk.bf16.mxu1 %vm917_vm7, %v3142_v1  ;;  %8726 = vmatpush3.bf16.msra.mxu1 %v3431_v39 }
0x1008   : > { %v11624_v37 = vpop.eup %9677 }
0x1009   : > { %v3433_v38 = vpop.permute.xlu1 %3432  ;;  %v3404_v36 = vsel %vm917_vm7, %v11624_v37, 0.0 }
0x100a   : > { %3405 = vadd.xlane.f32.xlu0 %v3404_v36  ;;  %8727 = vmatprep.subr.bf16.mxu1 %v3433_v38 }
0x100b   : > { %8728 = vmatpush3.bf16.msra.mxu1 %v3433_v38 }
0x100c   : > { %v9680_v15 = vpop.eup %9679 }
0x100d   : > { %v3398_v57 = vsel %vm917_vm7, %v9680_v15, 0.0  ;;  %v9682_v2 = vpop.eup %9681 }
0x100e   : > { %3399 = vadd.xlane.f32.xlu0 %v3398_v57  ;;  %8706 = vmatmul.mubr.msk.bf16.gmra.mrb[76].mxu1 %vm917_vm7, %v3143_v30  ;;  %v3407_v26 = vsel %vm917_vm7, %v9682_v2, 0.0  ;;  %v9684_v52 = vpop.eup %9683  ;;  %v11658_v57 = vld [vmem:[%s13372_s1 + $0x2] ss:$0 sm:$0xff] }
0x100f   : > { %v3401_v41 = vsel %vm917_vm7, %v9684_v52, 0.0 }
0x1012   : > { %3408 = vadd.xlane.f32.xlu0 %v3407_v26  ;;  %v10057_v26 = vld [vmem:[%s10335_s28 + $0x10] sm:$0xff] }
0x1016   : > { %3402 = vadd.xlane.f32.xlu0 %v3401_v41  ;;  %v10058_v41 = vld [vmem:[%s10335_s28] sm:$0xff] }
0x102c   : > { %3434 = vrot.lane.b32.xlu0 %v10609_v34, %s13382_s16  ;;  %s13445_s16 = smov 112  }
0x105e   : > { %v3394_v31 = vpop.xlane.xlu1 %3393 }
0x1062   : > { %v3388_v59 = vpop.xlane.xlu1 %3387 }
0x1063   : > { %9685 = vrcp.f32 %v3388_v59 }
0x1064   : > { %v3391_v61 = vpop.xlane.xlu0 %3390 }
0x1065   : > { %9687 = vrcp.f32 %v3391_v61 }
0x1066   : > { %v3397_v4 = vpop.xlane.xlu1 %3396 }
0x1067   : > { %9689 = vrcp.f32 %v3397_v4 }
0x1068   : > { %9691 = vrcp.f32 %v3394_v31 }
0x106a   : > { %v3437_v11 = vpop.permute.xlu1 %3436 }
0x106d   : > { %v9686_v49 = vpop.eup %9685 }
0x106e   : > { %v3529_v44 = vpop.permute.xlu1 %3528  ;;  %v3418_v14 = vmul.f32 %v9686_v49, %v11596_v58 }
0x106f   : > { %v9688_v3 = vpop.eup %9687  ;;  %9290 = vmatprep.subr.msk.bf16.mxu0 %vm1996_vm10, %v3529_v44  ;;  %v3555_v40 = vsel %vm1996_vm10, %v3529_v44, 0  ;;  %v10060_v44 = vld [vmem:[%s10335_s28 + $0x18] sm:$0xff] }
0x1070   : > { %v3419_v43 = vmul.f32 %v9688_v3, %v11602_v10  ;;  %8742 = vmatpush3.bf16.msra.mxu0 %v3555_v40 }
0x1071   : > { %v9690_v21 = vpop.eup %9689 }
0x1072   : > { %v3426_v34 = vpack.c.bf16 %v3419_v43, %v3418_v14  ;;  %v9692_v58 = vpop.eup %9691  ;;  %v3421_v10 = vmul.f32 %v9690_v21, %v11598_v22 }
0x1073   : > { %v3420_v42 = vmul.f32 %v9692_v58, %v11592_v20 }
0x1074   : > { %8733 = vmatprep.mubr.msk.bf16.mxu1 %vm917_vm7, %v3426_v34 }
0x1075   : > { %v3427_v5 = vpack.c.bf16 %v3421_v10, %v3420_v42 }
0x1097   : > { %v3406_v55 = vpop.xlane.xlu0 %3405 }
0x109b   : > { %v3400_v54 = vpop.xlane.xlu0 %3399 }
0x109c   : > { %9693 = vrcp.f32 %v3400_v54 }
0x109f   : > { %v3409_v47 = vpop.xlane.xlu0 %3408 }
0x10a3   : > { %v3403_v24 = vpop.xlane.xlu0 %3402 }
0x10a4   : > { %9695 = vrcp.f32 %v3403_v24  ;;  %v10061_v24 = vld [vmem:[%s10335_s28 + $0x30] sm:$0xff] }
0x10a5   : > { %9697 = vrcp.f32 %v3409_v47 }
0x10a6   : > { %9699 = vrcp.f32 %v3406_v55  ;;  %v9694_v50 = vpop.eup %9693 }
0x10a7   : > { %v3435_v8 = vpop.permute.xlu0 %3434  ;;  %v3422_v53 = vmul.f32 %v9694_v50, %v9680_v15 }
0x10a8   : > { %8729 = vmatprep.subr.bf16.mxu1 %v3435_v8 }
0x10a9   : > { %8730 = vmatpush3.bf16.msra.mxu1 %v3435_v8  ;;  %v10062_v8 = vld [vmem:[%s10335_s28 + $0x20] sm:$0xff] }
0x10aa   : > { %8731 = vmatprep.subr.bf16.mxu1 %v3437_v11 }
0x10ad   : > { %8732 = vmatpush3.bf16.msra.mxu1 %v3437_v11  ;;  %v10059_v11 = vld [vmem:[%s10335_s28 + $0x8] sm:$0xff] }
0x10ae   : > { %v9696_v48 = vpop.eup %9695 }
0x10af   : > { %v9698_v28 = vpop.eup %9697  ;;  %v3423_v45 = vmul.f32 %v9696_v48, %v9684_v52 }
0x10b0   : > { %8734 = vmatmul.mubr.msk.bf16.vlgmr.msra.gmra.mrb[80].mxu1 %vm917_vm7, %v3427_v5  ;;  %v9700_v19 = vpop.eup %9699  ;;  %v3425_v35 = vmul.f32 %v9698_v28, %v9682_v2  ;;  %v10063_v5 = vld [vmem:[%s10335_s28 + $0x28] sm:$0xff] }
0x10b1   : > { %v3428_v60 = vpack.c.bf16 %v3423_v45, %v3422_v53  ;;  %v3424_v63 = vmul.f32 %v9700_v19, %v11624_v37  ;;  %v10064_v19 = vld [vmem:[%s10335_s28 + $0x38] sm:$0xff] }
0x10b3   : > { %8737 = vmatprep.mubr.msk.bf16.mxu1 %vm917_vm7, %v3428_v60  ;;  %v3429_v22 = vpack.c.bf16 %v3425_v35, %v3424_v63 }
0x10b8   : > { %8738 = vmatmul.mubr.msk.bf16.gmra.mrb[84].mxu1 %vm917_vm7, %v3429_v22 }
0x10d9   : > { %v8703_v33 = vpop.f32.mrb[72].mxu1 }
0x10da   : > { %v3202_v20 = vpop.f32.mrb[73].mxu1 }
0x10db   : > { %v8704_v25 = vpop.f32.mrb[74].mxu1 }
0x10dc   : > { %v3520_v0 = vpack.c.bf16 %v8704_v25, %v8703_v33  ;;  %v3205_v51 = vpop.f32.mrb[75].mxu1 }
0x10dd   : > { %v3519_v46 = vpack.c.bf16 %v3205_v51, %v3202_v20 }
0x10df   : > { %8743 = vmatprep.mubr.msk.bf16.mxu0 %vm827_vm1, %v3519_v46 }
0x10e0   : > { %8744 = vmatmul.mubr.msk.bf16.vlgmr.msra.gmra.mrb[40].mxu0 %vm827_vm1, %v3520_v0 }
0x10e1   : > { %v8707_v12 = vpop.f32.mrb[76].mxu1 }
0x10e2   : > { %v3218_v18 = vpop.f32.mrb[77].mxu1 }
0x10e3   : > { %v8708_v13 = vpop.f32.mrb[78].mxu1 }
0x10e4   : > { %v3522_v9 = vpack.c.bf16 %v8708_v13, %v8707_v12  ;;  %v3221_v6 = vpop.f32.mrb[79].mxu1  ;;  %v10065_v12 = vld [vmem:[%s10335_s28 + $0x50] sm:$0xff]  ;;  %v10066_v13 = vld [vmem:[%s10335_s28 + $0x40] sm:$0xff] }
0x10e5   : > { %v3521_v16 = vpack.c.bf16 %v3221_v6, %v3218_v18 }
0x10e7   : > { %8747 = vmatprep.mubr.msk.bf16.mxu0 %vm827_vm1, %v3521_v16 }
0x10e8   : > { %8748 = vmatmul.mubr.msk.bf16.gmra.mrb[44].mxu0 %vm827_vm1, %v3522_v9 }
0x1183   : > { %v8735_v27 = vpop.f32.mrb[80].mxu1 }
0x1184   : > { %v3488_v32 = vpop.f32.mrb[81].mxu1 }
0x1185   : > { %v8736_v23 = vpop.f32.mrb[82].mxu1 }
0x1186   : > { %v3524_v39 = vpack.c.bf16 %v8736_v23, %v8735_v27  ;;  %v3491_v1 = vpop.f32.mrb[83].mxu1  ;;  %v10067_v23 = vld [vmem:[%s10335_s28 + $0x58] sm:$0xff] }
0x1187   : > { %v3523_v62 = vpack.c.bf16 %v3491_v1, %v3488_v32  ;;  %v10068_v1 = vld [vmem:[%s10335_s28 + $0x48] sm:$0xff] }
0x1189   : > { %8751 = vmatprep.mubr.msk.bf16.mxu0 %vm827_vm1, %v3523_v62 }
0x118a   : > { %8752 = vmatmul.mubr.msk.bf16.gmra.mrb[48].mxu0 %vm827_vm1, %v3524_v39 }
0x118b   : > { %v8739_v37 = vpop.f32.mrb[84].mxu1 }
0x118c   : > { %v3504_v7 = vpop.f32.mrb[85].mxu1 }
0x118d   : > { %v8740_v38 = vpop.f32.mrb[86].mxu1 }
0x118e   : > { %v3526_v36 = vpack.c.bf16 %v8740_v38, %v8739_v37  ;;  %v3507_v29 = vpop.f32.mrb[87].mxu1 }
0x118f   : > { %v3525_v15 = vpack.c.bf16 %v3507_v29, %v3504_v7 }
0x1191   : > { %8755 = vmatprep.mubr.msk.bf16.mxu0 %vm827_vm1, %v3525_v15 }
0x1192   : > { %8756 = vmatmul.mubr.msk.bf16.gmra.mrb[52].mxu0 %vm827_vm1, %v3526_v36 }
0x11b3   : > { %v8745_v30 = vpop.f32.mrb[40].mxu0 }
0x11b4   : > { %v3591_v2 = vpop.f32.mrb[41].mxu0  ;;  %v3672_v52 = vadd.f32 %v10057_v26, %v8745_v30 }
0x11b5   : > { %v3670_v31 = vadd.f32 %v10058_v41, %v3591_v2  ;;  %v8746_v59 = vpop.f32.mrb[42].mxu0  ;;  %v10069_v41 = vld [vmem:[%s10335_s28 + $0x70] sm:$0xff] }
0x11b6   : > { %v3594_v61 = vpop.f32.mrb[43].mxu0  ;;  %v3673_v3 = vadd.f32 %v10060_v44, %v8746_v59  ;;  %v11668_v40 = vadd.f32 %v11658_v57, %v3672_v52  ;;  %v10070_v59 = vld [vmem:[%s10335_s28 + $0x60] sm:$0xff] }
0x11b7   : > { %v11663_v4 = vadd.f32 %v11658_v57, %v3670_v31  ;;  %v3671_v49 = vadd.f32 %v10059_v11, %v3594_v61 }
0x11b8   : > { %13427 = vst [vmem:[#allocation9_spill] sm:$0xff] %v11668_v40  ;;  %v11678_v54 = vadd.f32 %v11658_v57, %v3673_v3  ;;  %v3712_v50 = vsel %vm416_vm0, %v11668_v40, 0.0 }
0x11b9   : > { %13426 = vst [vmem:[#allocation8_spill] sm:$0xff] %v11663_v4  ;;  %v11671_v14 = vadd.f32 %v11658_v57, %v3671_v49  ;;  %v3706_v43 = vsel %vm416_vm0, %v11663_v4, 0.0 }
0x11ba   : > { %3707 = vadd.xlane.f32.xlu1 %v3706_v43  ;;  %13429 = vst [vmem:[#allocation11_spill] sm:$0xff] %v11678_v54  ;;  %v3715_v53 = vsel %vm416_vm0, %v11678_v54, 0.0 }
0x11bb   : > { %13428 = vst [vmem:[#allocation10_spill] sm:$0xff] %v11671_v14  ;;  %v8749_v34 = vpop.f32.mrb[44].mxu0  ;;  %v3709_v55 = vsel %vm416_vm0, %v11671_v14, 0.0 }
0x11bc   : > { %3710 = vadd.xlane.f32.xlu0 %v3709_v55  ;;  %v3607_v47 = vpop.f32.mrb[45].mxu0  ;;  %v3676_v21 = vadd.f32 %v10061_v24, %v8749_v34  ;;  %v10071_v34 = vld [vmem:[%s10335_s28 + $0x78] sm:$0xff] }
0x11bd   : > { %v3674_v58 = vadd.f32 %v10062_v8, %v3607_v47  ;;  %v8750_v10 = vpop.f32.mrb[46].mxu0  ;;  %v10072_v47 = vld [vmem:[%s10335_s28 + $0x68] sm:$0xff] }
0x11be   : > { %3713 = vadd.xlane.f32.xlu1 %v3712_v50  ;;  %v3610_v42 = vpop.f32.mrb[47].mxu0  ;;  %v11691_v45 = vadd.f32 %v11658_v57, %v3676_v21  ;;  %v3677_v60 = vadd.f32 %v10064_v19, %v8750_v10 }
0x11bf   : > { %v11685_v48 = vadd.f32 %v11658_v57, %v3674_v58  ;;  %v3675_v28 = vadd.f32 %v10063_v5, %v3610_v42 }
0x11c0   : > { %13431 = vst [vmem:[#allocation13_spill] sm:$0xff] %v11691_v45  ;;  %v11700_v22 = vadd.f32 %v11658_v57, %v3677_v60  ;;  %v3724_v33 = vsel %vm416_vm0, %v11691_v45, 0.0 }
0x11c1   : > { %13430 = vst [vmem:[#allocation12_spill] sm:$0xff] %v11685_v48  ;;  %v11695_v35 = vadd.f32 %v11658_v57, %v3675_v28  ;;  %v3718_v63 = vsel %vm416_vm0, %v11685_v48, 0.0 }
0x11c2   : > { %3716 = vadd.xlane.f32.xlu1 %v3715_v53  ;;  %3719 = vadd.xlane.f32.xlu0 %v3718_v63  ;;  %13433 = vst [vmem:[#allocation15_spill] sm:$0xff] %v11700_v22  ;;  %v3727_v25 = vsel %vm416_vm0, %v11700_v22, 0.0 }
0x11c3   : > { %13432 = vst [vmem:[#allocation14_spill] sm:$0xff] %v11695_v35  ;;  %v3721_v20 = vsel %vm416_vm0, %v11695_v35, 0.0 }
0x11c6   : > { %3725 = vadd.xlane.f32.xlu0 %v3724_v33  ;;  %3722 = vadd.xlane.f32.xlu1 %v3721_v20 }
0x11ca   : > { %3728 = vadd.xlane.f32.xlu1 %v3727_v25 }
0x1247   : > { %v3708_v0 = vpop.xlane.xlu1 %3707 }
0x1248   : > { %v3754_v2 = vmul.f32 0.03125, %v3708_v0 }
0x1249   : > { %v3711_v36 = vpop.xlane.xlu0 %3710 }
0x124a   : > { %v3755_v44 = vmul.f32 0.03125, %v3711_v36  ;;  %v11740_v8 = vsub.f32 %v11663_v4, %v3754_v2 }
0x124b   : > { %v3714_v16 = vpop.xlane.xlu1 %3713 }
0x124c   : > { %v3756_v10 = vmul.f32 0.03125, %v3714_v16  ;;  %v11751_v53 = vsub.f32 %v11671_v14, %v3755_v44  ;;  %v3786_v0 = vmul.f32 %v11740_v8, %v11740_v8  ;;  %v276_v44 = vld [vmem:[%s13374_s3 + $0x10] sm:$0xf] }
0x124e   : > { %v11759_v33 = vsub.f32 %v11668_v40, %v3756_v10  ;;  %v3802_v16 = vsel %vm416_vm0, %v3786_v0, 0.0 }
0x124f   : > { %v3717_v26 = vpop.xlane.xlu1 %3716  ;;  %v3720_v58 = vpop.xlane.xlu0 %3719 }
0x1250   : > { %v3757_v19 = vmul.f32 0.03125, %v3717_v26  ;;  %v3758_v20 = vmul.f32 0.03125, %v3720_v58 }
0x1253   : > { %v3723_v28 = vpop.xlane.xlu1 %3722 }
0x125d   : > { %v8753_v51 = vpop.f32.mrb[48].mxu0 }
0x125e   : > { %v3623_v46 = vpop.f32.mrb[49].mxu0  ;;  %v3680_v18 = vadd.f32 %v10065_v12, %v8753_v51  ;;  %v3726_v51 = vpop.xlane.xlu0 %3725 }
0x125f   : > { %v3678_v9 = vadd.f32 %v10066_v13, %v3623_v46  ;;  %v8754_v6 = vpop.f32.mrb[50].mxu0  ;;  %v11766_v46 = vsub.f32 %v11678_v54, %v3757_v19  ;;  %v3729_v13 = vpop.xlane.xlu1 %3728 }
0x1260   : > { %v3626_v27 = vpop.f32.mrb[51].mxu0  ;;  %v3681_v39 = vadd.f32 %v10067_v23, %v8754_v6  ;;  %v11716_v37 = vadd.f32 %v11658_v57, %v3680_v18  ;;  %v3787_v18 = vmul.f32 %v11751_v53, %v11751_v53  ;;  %v3760_v6 = vmul.f32 0.03125, %v3726_v51 }
0x1261   : > { %v11711_v32 = vadd.f32 %v11658_v57, %v3678_v9  ;;  %v3679_v62 = vadd.f32 %v10068_v1, %v3626_v27  ;;  %v11773_v9 = vsub.f32 %v11685_v48, %v3758_v20  ;;  %v3788_v27 = vmul.f32 %v11759_v33, %v11759_v33 }
0x1262   : > { %13435 = vst [vmem:[#allocation17_spill] sm:$0xff] %v11716_v37  ;;  %v11724_v29 = vadd.f32 %v11658_v57, %v3681_v39  ;;  %v3736_v49 = vsel %vm416_vm0, %v11716_v37, 0.0  ;;  %v3761_v39 = vmul.f32 0.03125, %v3729_v13  ;;  %v3805_v1 = vsel %vm416_vm0, %v3787_v18, 0.0 }
0x1263   : > { %13434 = vst [vmem:[#allocation16_spill] sm:$0xff] %v11711_v32  ;;  %v11719_v7 = vadd.f32 %v11658_v57, %v3679_v62  ;;  %v3730_v38 = vsel %vm416_vm0, %v11711_v32, 0.0  ;;  %v3789_v62 = vmul.f32 %v11766_v46, %v11766_v46  ;;  %v3808_v36 = vsel %vm416_vm0, %v3788_v27, 0.0 }
0x1264   : > { %3731 = vadd.xlane.f32.xlu0 %v3730_v38  ;;  %13437 = vst [vmem:[#allocation19_spill] sm:$0xff] %v11724_v29  ;;  %v3739_v21 = vsel %vm416_vm0, %v11724_v29, 0.0  ;;  %v11785_v38 = vsub.f32 %v11691_v45, %v3760_v6 }
0x1265   : > { %13436 = vst [vmem:[#allocation18_spill] sm:$0xff] %v11719_v7  ;;  %v8757_v15 = vpop.f32.mrb[52].mxu0  ;;  %v3733_v30 = vsel %vm416_vm0, %v11719_v7, 0.0  ;;  %v3811_v2 = vsel %vm416_vm0, %v3789_v62, 0.0 }
0x1266   : > { %3734 = vadd.xlane.f32.xlu1 %v3733_v30  ;;  %v3639_v52 = vpop.f32.mrb[53].mxu0  ;;  %v3684_v31 = vadd.f32 %v10069_v41, %v8757_v15  ;;  %v3790_v15 = vmul.f32 %v11773_v9, %v11773_v9  ;;  %v11791_v30 = vsub.f32 %v11700_v22, %v3761_v39  ;;  %v3792_v41 = vmul.f32 %v11785_v38, %v11785_v38 }
0x1267   : > { %v3682_v61 = vadd.f32 %v10070_v59, %v3639_v52  ;;  %v8758_v11 = vpop.f32.mrb[54].mxu0 }
0x1268   : > { %3737 = vadd.xlane.f32.xlu0 %v3736_v49  ;;  %v3642_v3 = vpop.f32.mrb[55].mxu0  ;;  %v3685_v55 = vadd.f32 %v10071_v34, %v8758_v11  ;;  %v11743_v50 = vadd.f32 %v11658_v57, %v3684_v31  ;;  %v3814_v52 = vsel %vm416_vm0, %v3790_v15, 0.0  ;;  %v3793_v59 = vmul.f32 %v11791_v30, %v11791_v30  ;;  %v275_v49 = vld [vmem:[%s13374_s3 + $0x4] sm:$0xf]  ;;  %v277_v34 = vld [vmem:[%s13374_s3 + $0x1c] sm:$0xf] }
0x1269   : > { %v11733_v43 = vadd.f32 %v11658_v57, %v3682_v61  ;;  %v3683_v24 = vadd.f32 %v10072_v47, %v3642_v3  ;;  %v3820_v61 = vsel %vm416_vm0, %v3792_v41, 0.0  ;;  %v7897_v3 = vcombine.low %v275_v49, %v276_v44 }
0x126a   : > { %3740 = vadd.xlane.f32.xlu1 %v3739_v21  ;;  %13439 = vst [vmem:[#allocation21_spill] sm:$0xff] %v11743_v50  ;;  %v11754_v60 = vadd.f32 %v11658_v57, %v3685_v55  ;;  %v3748_v25 = vsel %vm416_vm0, %v11743_v50, 0.0  ;;  %v3823_v11 = vsel %vm416_vm0, %v3793_v59, 0.0  ;;  %v278_v55 = vld [vmem:[%s13374_s3 + $0x28] sm:$0xf] }
0x126b   : > { %13438 = vst [vmem:[#allocation20_spill] sm:$0xff] %v11733_v43  ;;  %v11746_v42 = vadd.f32 %v11658_v57, %v3683_v24  ;;  %v3742_v5 = vsel %vm416_vm0, %v11733_v43, 0.0  ;;  %v3759_v57 = vmul.f32 0.03125, %v3723_v28  ;;  %8759 = vmatprep.subr.bf16.mxu1 %v7897_v3  ;;  %v7898_v47 = vcombine.low %v277_v34, %v278_v55 }
0x126c   : > { %3743 = vadd.xlane.f32.xlu0 %v3742_v5  ;;  %13441 = vst [vmem:[#allocation23_spill] sm:$0xff] %v11754_v60  ;;  %v3751_v12 = vsel %vm416_vm0, %v11754_v60, 0.0  ;;  %8760 = vmatpush3.bf16.msra.mxu1 %v7897_v3 }
0x126d   : > { %13440 = vst [vmem:[#allocation22_spill] sm:$0xff] %v11746_v42  ;;  %v3745_v63 = vsel %vm416_vm0, %v11746_v42, 0.0  ;;  %v11779_v23 = vsub.f32 %v11695_v35, %v3759_v57  ;;  %8761 = vmatprep.subr.bf16.mxu1 %v7898_v47 }
0x126e   : > { %3746 = vadd.xlane.f32.xlu1 %v3745_v63 }
0x126f   : > { %v3791_v26 = vmul.f32 %v11779_v23, %v11779_v23 }
0x1270   : > { %3749 = vadd.xlane.f32.xlu0 %v3748_v25  ;;  %8762 = vmatpush3.bf16.msra.mxu1 %v7898_v47 }
0x1271   : > { %v3817_v31 = vsel %vm416_vm0, %v3791_v26, 0.0 }
0x1272   : > { %3752 = vadd.xlane.f32.xlu1 %v3751_v12 }
0x1274   : > { %3803 = vadd.xlane.f32.xlu0 %v3802_v16 }
0x1276   : > { %3806 = vadd.xlane.f32.xlu1 %v3805_v1 }
0x1278   : > { %3809 = vadd.xlane.f32.xlu0 %v3808_v36 }
0x127a   : > { %3812 = vadd.xlane.f32.xlu1 %v3811_v2 }
0x127c   : > { %3815 = vadd.xlane.f32.xlu0 %v3814_v52 }
0x127e   : > { %3818 = vadd.xlane.f32.xlu1 %v3817_v31 }
0x1280   : > { %3821 = vadd.xlane.f32.xlu0 %v3820_v61 }
0x1282   : > { %3824 = vadd.xlane.f32.xlu1 %v3823_v11 }
0x12f1   : > { %v3732_v24 = vpop.xlane.xlu0 %3731 }
0x12f2   : > { %v3762_v21 = vmul.f32 0.03125, %v3732_v24 }
0x12f3   : > { %v3735_v58 = vpop.xlane.xlu1 %3734 }
0x12f4   : > { %v11817_v10 = vsub.f32 %v11711_v32, %v3762_v21  ;;  %v3763_v5 = vmul.f32 0.03125, %v3735_v58 }
0x12f5   : > { %v3738_v28 = vpop.xlane.xlu0 %3737 }
0x12f6   : > { %v11820_v19 = vsub.f32 %v11719_v7, %v3763_v5  ;;  %v3764_v63 = vmul.f32 0.03125, %v3738_v28  ;;  %v3794_v20 = vmul.f32 %v11817_v10, %v11817_v10 }
0x12f7   : > { %v3741_v25 = vpop.xlane.xlu1 %3740 }
0x12f8   : > { %v11825_v0 = vsub.f32 %v11716_v37, %v3764_v63  ;;  %v3765_v51 = vmul.f32 0.03125, %v3741_v25  ;;  %v3826_v57 = vsel %vm416_vm0, %v3794_v20, 0.0  ;;  %v3795_v12 = vmul.f32 %v11820_v19, %v11820_v19 }
0x12f9   : > { %3827 = vadd.xlane.f32.xlu0 %v3826_v57  ;;  %v3744_v18 = vpop.xlane.xlu0 %3743 }
0x12fa   : > { %v11831_v13 = vsub.f32 %v11724_v29, %v3765_v51  ;;  %v3766_v6 = vmul.f32 0.03125, %v3744_v18  ;;  %v3829_v16 = vsel %vm416_vm0, %v3795_v12, 0.0  ;;  %v3796_v27 = vmul.f32 %v11825_v0, %v11825_v0 }
0x12fb   : > { %v3747_v39 = vpop.xlane.xlu1 %3746  ;;  %3830 = vadd.xlane.f32.xlu1 %v3829_v16 }
0x12fc   : > { %v11837_v1 = vsub.f32 %v11733_v43, %v3766_v6  ;;  %v3767_v62 = vmul.f32 0.03125, %v3747_v39  ;;  %v3832_v36 = vsel %vm416_vm0, %v3796_v27, 0.0  ;;  %v3797_v15 = vmul.f32 %v11831_v13, %v11831_v13 }
0x12fd   : > { %3833 = vadd.xlane.f32.xlu0 %v3832_v36  ;;  %v3750_v2 = vpop.xlane.xlu0 %3749 }
0x12fe   : > { %v11843_v26 = vsub.f32 %v11746_v42, %v3767_v62  ;;  %v3768_v52 = vmul.f32 0.03125, %v3750_v2  ;;  %v3835_v41 = vsel %vm416_vm0, %v3797_v15, 0.0  ;;  %v3798_v31 = vmul.f32 %v11837_v1, %v11837_v1 }
0x12ff   : > { %v3753_v59 = vpop.xlane.xlu1 %3752  ;;  %3836 = vadd.xlane.f32.xlu1 %v3835_v41 }
0x1300   : > { %v11849_v61 = vsub.f32 %v11743_v50, %v3768_v52  ;;  %v3769_v11 = vmul.f32 0.03125, %v3753_v59  ;;  %v3838_v49 = vsel %vm416_vm0, %v3798_v31, 0.0  ;;  %v3799_v44 = vmul.f32 %v11843_v26, %v11843_v26 }
0x1301   : > { %3839 = vadd.xlane.f32.xlu0 %v3838_v49  ;;  %v3804_v3 = vpop.xlane.xlu0 %3803 }
0x1302   : > { %v11855_v34 = vsub.f32 %v11754_v60, %v3769_v11  ;;  %v3850_v55 = vmul.f32 0.03125, %v3804_v3  ;;  %v3841_v47 = vsel %vm416_vm0, %v3799_v44, 0.0  ;;  %v3800_v24 = vmul.f32 %v11849_v61, %v11849_v61  ;;  %v11867_v11 = vld [vmem:[%s13372_s1 + $0x3] ss:$0 sm:$0xff] }
0x1303   : > { %3842 = vadd.xlane.f32.xlu1 %v3841_v47  ;;  %v3807_v21 = vpop.xlane.xlu1 %3806 }
0x1304   : > { %v3866_v58 = vadd.f32 1e-06, %v3850_v55  ;;  %v3851_v5 = vmul.f32 0.03125, %v3807_v21  ;;  %v3844_v28 = vsel %vm416_vm0, %v3800_v24, 0.0  ;;  %v3801_v63 = vmul.f32 %v11855_v34, %v11855_v34 }
0x1305   : > { %3845 = vadd.xlane.f32.xlu0 %v3844_v28  ;;  %v3810_v20 = vpop.xlane.xlu0 %3809 }
0x1306   : > { %9701 = vrsqrt.f32 %v3866_v58  ;;  %v3867_v25 = vadd.f32 1e-06, %v3851_v5  ;;  %v3852_v51 = vmul.f32 0.03125, %v3810_v20  ;;  %v3847_v57 = vsel %vm416_vm0, %v3801_v63, 0.0  ;;  %v11875_v5 = vld [vmem:[%s13372_s1 + $0x4] ss:$0 sm:$0xff] }
0x1307   : > { %3848 = vadd.xlane.f32.xlu1 %v3847_v57  ;;  %v3813_v12 = vpop.xlane.xlu1 %3812 }
0x1308   : > { %9703 = vrsqrt.f32 %v3867_v25  ;;  %v3868_v18 = vadd.f32 1e-06, %v3852_v51  ;;  %v3853_v6 = vmul.f32 0.03125, %v3813_v12 }
0x1309   : > { %v3816_v16 = vpop.xlane.xlu0 %3815 }
0x130a   : > { %9705 = vrsqrt.f32 %v3868_v18  ;;  %v3869_v27 = vadd.f32 1e-06, %v3853_v6  ;;  %v3854_v39 = vmul.f32 0.03125, %v3816_v16 }
0x130b   : > { %v3819_v62 = vpop.xlane.xlu1 %3818 }
0x130c   : > { %9707 = vrsqrt.f32 %v3869_v27  ;;  %v3870_v36 = vadd.f32 1e-06, %v3854_v39  ;;  %v3855_v15 = vmul.f32 0.03125, %v3819_v62 }
0x130d   : > { %v3822_v2 = vpop.xlane.xlu0 %3821 }
0x130e   : > { %9709 = vrsqrt.f32 %v3870_v36  ;;  %v3871_v52 = vadd.f32 1e-06, %v3855_v15  ;;  %v3856_v41 = vmul.f32 0.03125, %v3822_v2 }
0x130f   : > { %v3825_v31 = vpop.xlane.xlu1 %3824 }
0x1310   : > { %v9702_v59 = vpop.eup %9701  ;;  %9711 = vrsqrt.f32 %v3871_v52  ;;  %v3872_v49 = vadd.f32 1e-06, %v3856_v41  ;;  %v3857_v44 = vmul.f32 0.03125, %v3825_v31 }
0x1311   : > { %v3898_v3 = vmul.f32 %v9702_v59, %v11740_v8 }
0x1312   : > { %v9704_v55 = vpop.eup %9703  ;;  %9713 = vrsqrt.f32 %v3872_v49  ;;  %v3873_v47 = vadd.f32 1e-06, %v3857_v44 }
0x1313   : > { %v3899_v24 = vmul.f32 %v9704_v55, %v11751_v53  ;;  %v3918_v21 = vmul.f32 %v11867_v11, %v3898_v3 }
0x1314   : > { %v9706_v58 = vpop.eup %9705  ;;  %9715 = vrsqrt.f32 %v3873_v47 }
0x1315   : > { %v3900_v28 = vmul.f32 %v9706_v58, %v11759_v33  ;;  %v3919_v63 = vmul.f32 %v11867_v11, %v3899_v24  ;;  %v3938_v53 = vadd.f32 %v11875_v5, %v3918_v21 }
0x1316   : > { %v9708_v20 = vpop.eup %9707 }
0x1317   : > { %v3920_v8 = vmul.f32 %v11867_v11, %v3900_v28  ;;  %v3901_v25 = vmul.f32 %v9708_v20, %v11766_v46  ;;  %v3939_v51 = vadd.f32 %v11875_v5, %v3919_v63 }
0x1318   : > { %v9710_v57 = vpop.eup %9709 }
0x1319   : > { %v3921_v12 = vmul.f32 %v11867_v11, %v3901_v25  ;;  %v3954_v18 = vpack.c.bf16 %v3939_v51, %v3938_v53  ;;  %v3902_v6 = vmul.f32 %v9710_v57, %v11773_v9  ;;  %v3940_v33 = vadd.f32 %v11875_v5, %v3920_v8 }
0x131a   : > { %v9712_v16 = vpop.eup %9711 }
0x131b   : > { %v3941_v27 = vadd.f32 %v11875_v5, %v3921_v12  ;;  %8763 = vmatprep.mubr.msk.bf16.mxu1 %vm416_vm0, %v3954_v18  ;;  %v3903_v39 = vmul.f32 %v9712_v16, %v11779_v23  ;;  %v3922_v46 = vmul.f32 %v11867_v11, %v3902_v6 }
0x131c   : > { %v9714_v62 = vpop.eup %9713 }
0x131d   : > { %v3955_v36 = vpack.c.bf16 %v3941_v27, %v3940_v33  ;;  %v3923_v15 = vmul.f32 %v11867_v11, %v3903_v39  ;;  %v3904_v2 = vmul.f32 %v9714_v62, %v11785_v38  ;;  %v3942_v9 = vadd.f32 %v11875_v5, %v3922_v46 }
0x131e   : > { %v9716_v52 = vpop.eup %9715 }
0x131f   : > { %8764 = vmatmul.mubr.msk.bf16.vlgmr.msra.gmra.mrb[88].mxu1 %vm416_vm0, %v3955_v36  ;;  %v3943_v41 = vadd.f32 %v11875_v5, %v3923_v15  ;;  %v3905_v31 = vmul.f32 %v9716_v52, %v11791_v30  ;;  %v3924_v59 = vmul.f32 %v11867_v11, %v3904_v2 }
0x1321   : > { %v3956_v23 = vpack.c.bf16 %v3943_v41, %v3942_v9  ;;  %v3925_v49 = vmul.f32 %v11867_v11, %v3905_v31  ;;  %v3944_v44 = vadd.f32 %v11875_v5, %v3924_v59 }
0x1323   : > { %8767 = vmatprep.mubr.msk.bf16.mxu1 %vm416_vm0, %v3956_v23  ;;  %v3945_v38 = vadd.f32 %v11875_v5, %v3925_v49 }
0x1325   : > { %v3957_v3 = vpack.c.bf16 %v3945_v38, %v3944_v44 }
0x1327   : > { %8768 = vmatmul.mubr.msk.bf16.gmra.mrb[92].mxu1 %vm416_vm0, %v3957_v3 }
0x1386   : > { %v3828_v55 = vpop.xlane.xlu0 %3827 }
0x1387   : > { %v3858_v47 = vmul.f32 0.03125, %v3828_v55 }
0x1388   : > { %v3831_v24 = vpop.xlane.xlu1 %3830 }
0x1389   : > { %v3874_v21 = vadd.f32 1e-06, %v3858_v47  ;;  %v3859_v58 = vmul.f32 0.03125, %v3831_v24 }
0x138a   : > { %v3834_v30 = vpop.xlane.xlu0 %3833 }
0x138b   : > { %9717 = vrsqrt.f32 %v3874_v21  ;;  %v3875_v28 = vadd.f32 1e-06, %v3859_v58  ;;  %v3860_v63 = vmul.f32 0.03125, %v3834_v30 }
0x138c   : > { %v3837_v20 = vpop.xlane.xlu1 %3836 }
0x138d   : > { %9719 = vrsqrt.f32 %v3875_v28  ;;  %v3876_v8 = vadd.f32 1e-06, %v3860_v63  ;;  %v3861_v25 = vmul.f32 0.03125, %v3837_v20 }
0x138e   : > { %v3840_v53 = vpop.xlane.xlu0 %3839 }
0x138f   : > { %9721 = vrsqrt.f32 %v3876_v8  ;;  %v3877_v51 = vadd.f32 1e-06, %v3861_v25  ;;  %v3862_v57 = vmul.f32 0.03125, %v3840_v53 }
0x1390   : > { %v3843_v12 = vpop.xlane.xlu1 %3842 }
0x1391   : > { %9723 = vrsqrt.f32 %v3877_v51  ;;  %v3878_v18 = vadd.f32 1e-06, %v3862_v57  ;;  %v3863_v6 = vmul.f32 0.03125, %v3843_v12 }
0x1392   : > { %v3846_v16 = vpop.xlane.xlu0 %3845 }
0x1393   : > { %9725 = vrsqrt.f32 %v3878_v18  ;;  %v3879_v33 = vadd.f32 1e-06, %v3863_v6  ;;  %v3864_v27 = vmul.f32 0.03125, %v3846_v16 }
0x1394   : > { %v3849_v39 = vpop.xlane.xlu1 %3848 }
0x1395   : > { %v9718_v46 = vpop.eup %9717  ;;  %9727 = vrsqrt.f32 %v3879_v33  ;;  %v3880_v62 = vadd.f32 1e-06, %v3864_v27  ;;  %v3865_v36 = vmul.f32 0.03125, %v3849_v39 }
0x1396   : > { %v3906_v15 = vmul.f32 %v9718_v46, %v11817_v10 }
0x1397   : > { %v9720_v2 = vpop.eup %9719  ;;  %9729 = vrsqrt.f32 %v3880_v62  ;;  %v3881_v52 = vadd.f32 1e-06, %v3865_v36 }
0x1398   : > { %v3907_v9 = vmul.f32 %v9720_v2, %v11820_v19  ;;  %v3926_v41 = vmul.f32 %v11867_v11, %v3906_v15 }
0x1399   : > { %v9722_v31 = vpop.eup %9721  ;;  %9731 = vrsqrt.f32 %v3881_v52 }
0x139a   : > { %v3927_v59 = vmul.f32 %v11867_v11, %v3907_v9  ;;  %v3908_v23 = vmul.f32 %v9722_v31, %v11825_v0  ;;  %v3946_v44 = vadd.f32 %v11875_v5, %v3926_v41 }
0x139b   : > { %v9724_v49 = vpop.eup %9723 }
0x139c   : > { %v3947_v38 = vadd.f32 %v11875_v5, %v3927_v59  ;;  %v3909_v10 = vmul.f32 %v9724_v49, %v11831_v13  ;;  %v3928_v3 = vmul.f32 %v11867_v11, %v3908_v23 }
0x139d   : > { %v9726_v55 = vpop.eup %9725 }
0x139e   : > { %v3958_v47 = vpack.c.bf16 %v3947_v38, %v3946_v44  ;;  %v3929_v19 = vmul.f32 %v11867_v11, %v3909_v10  ;;  %v3910_v24 = vmul.f32 %v9726_v55, %v11837_v1  ;;  %v3948_v0 = vadd.f32 %v11875_v5, %v3928_v3 }
0x139f   : > { %v9728_v21 = vpop.eup %9727 }
0x13a0   : > { %8771 = vmatprep.mubr.msk.bf16.mxu1 %vm416_vm0, %v3958_v47  ;;  %v3949_v58 = vadd.f32 %v11875_v5, %v3929_v19  ;;  %v3911_v30 = vmul.f32 %v9728_v21, %v11843_v26  ;;  %v3930_v28 = vmul.f32 %v11867_v11, %v3910_v24 }
0x13a1   : > { %v9730_v13 = vpop.eup %9729 }
0x13a2   : > { %v3959_v63 = vpack.c.bf16 %v3949_v58, %v3948_v0  ;;  %v3931_v20 = vmul.f32 %v11867_v11, %v3911_v30  ;;  %v3912_v8 = vmul.f32 %v9730_v13, %v11849_v61  ;;  %v3950_v1 = vadd.f32 %v11875_v5, %v3930_v28 }
0x13a3   : > { %v9732_v25 = vpop.eup %9731 }
0x13a4   : > { %8772 = vmatmul.mubr.msk.bf16.gmra.mrb[96].mxu1 %vm416_vm0, %v3959_v63  ;;  %v3951_v53 = vadd.f32 %v11875_v5, %v3931_v20  ;;  %v3913_v51 = vmul.f32 %v9732_v25, %v11855_v34  ;;  %v3932_v57 = vmul.f32 %v11867_v11, %v3912_v8 }
0x13a6   : > { %v3960_v26 = vpack.c.bf16 %v3951_v53, %v3950_v1  ;;  %v3933_v12 = vmul.f32 %v11867_v11, %v3913_v51  ;;  %v3952_v18 = vadd.f32 %v11875_v5, %v3932_v57 }
0x13a8   : > { %8775 = vmatprep.mubr.msk.bf16.mxu1 %vm416_vm0, %v3960_v26  ;;  %v3953_v61 = vadd.f32 %v11875_v5, %v3933_v12  ;;  %v13442_v12 = vlaneseq }
0x13aa   : > { %v3961_v6 = vpack.c.bf16 %v3953_v61, %v3952_v18  ;;  %v284_v18 = vshrl.u32 %v13442_v12, 7 }
0x13ac   : > { %8776 = vmatmul.mubr.msk.bf16.gmra.mrb[100].mxu1 %vm416_vm0, %v3961_v6  ;;  %v286_v61 = vadd.s32 16, %v284_v18  ;;  %v382_v6 = vmul.u32 16, %v10657_v17 }
0x13f2   : > { %v8765_v16 = vpop.f32.mrb[88].mxu1 }
0x13f3   : > { %v4032_v33 = vpop.f32.mrb[89].mxu1 }
0x13f4   : > { %v8766_v27 = vpop.f32.mrb[90].mxu1 }
0x13f5   : > { %v11930_v39 = vpack.c.bf16 %v8766_v27, %v8765_v16  ;;  %v4035_v34 = vpop.f32.mrb[91].mxu1  ;;  %v7768_v16 = vadd.s32 4294967280, %v286_v61  ;;  %v287_v27 = vadd.s32 24, %v284_v18 }
0x13f6   : > { %v11932_v46 = vpack.c.bf16 %v4035_v34, %v4032_v33  ;;  %v383_v33 = vsub.s32 %v10652_v56, %v382_v6  ;;  %v285_v34 = vadd.s32 8, %v284_v18 }
0x13f7   : > { %4109 = vrot.lane.b32.xlu1 %v11930_v39, %s10178_s26 }
0x13f8   : > { %4107 = vrot.lane.b32.xlu0 %v11932_v46, %s10178_s26  ;;  %8787 = vmatprep.mubr.msk.bf16.mxu0 %vm827_vm1, %v11932_v46  ;;  %vm402_vm11 = vcmp.eq.s32.totalorder %v7768_v16, %v383_v33  ;;  %vm400_vm12 = vcmp.eq.s32.totalorder %v284_v18, %v383_v33  ;;  %vm401_vm13 = vcmp.eq.s32.totalorder %v285_v34, %v383_v33 }
0x13fa   : > { %v8769_v11 = vpop.f32.mrb[92].mxu1 }
0x13fb   : > { %v4048_v5 = vpop.f32.mrb[93].mxu1 }
0x13fc   : > { %v8770_v62 = vpop.f32.mrb[94].mxu1 }
0x13fd   : > { %v11940_v36 = vpack.c.bf16 %v8770_v62, %v8769_v11  ;;  %v4051_v15 = vpop.f32.mrb[95].mxu1  ;;  %v7769_v11 = vadd.s32 4294967280, %v287_v27  ;;  %v291_v62 = vadd.s32 56, %v284_v18 }
0x13fe   : > { %v11942_v2 = vpack.c.bf16 %v4051_v15, %v4048_v5  ;;  %v290_v5 = vadd.s32 48, %v284_v18  ;;  %v13443_v15 = vmov -1e+30  }
0x13ff   : > { %vm403_vm14 = vcmp.eq.s32.totalorder %v7769_v11, %v383_v33  ;;  %v12008_v17 = vsel %vm401_vm13, 0.0, %v13443_v15 }
0x1400   : > { %4111 = vrot.lane.b32.xlu1 %v11942_v2, %s10178_s26 }
0x1404   : > { %4113 = vrot.lane.b32.xlu1 %v11940_v36, %s10178_s26 }
0x1469   : > { %v4110_v41 = vpop.permute.xlu1 %4109 }
0x146a   : > { %v4108_v52 = vpop.permute.xlu0 %4107  ;;  %v4131_v31 = vsel %vm827_vm1, %v4110_v41, 0 }
0x146b   : > { %9291 = vmatprep.subr.msk.bf16.mxu0 %vm827_vm1, %v4108_v52  ;;  %v4128_v9 = vsel %vm827_vm1, %v4108_v52, 0  ;;  %v12002_v52 = vsel %vm402_vm11, 0.0, %v13443_v15 }
0x146c   : > { %8780 = vmatpush3.bf16.xpose.msra.mxu0 %v4128_v9  ;;  %v289_v9 = vadd.s32 40, %v284_v18 }
0x146d   : > { %9292 = vmatprep.subr.msk.bf16.mxu0 %vm827_vm1, %v4110_v41 }
0x1472   : > { %v4112_v59 = vpop.permute.xlu1 %4111 }
0x1473   : > { %v4134_v55 = vsel %vm827_vm1, %v4112_v59, 0 }
0x1474   : > { %8782 = vmatpush3.bf16.xpose.msra.mxu0 %v4131_v31  ;;  %v12005_v31 = vsel %vm400_vm12, 0.0, %v13443_v15 }
0x1475   : > { %9293 = vmatprep.subr.msk.bf16.mxu0 %vm827_vm1, %v4112_v59 }
0x1476   : > { %v4114_v47 = vpop.permute.xlu1 %4113 }
0x1477   : > { %v8773_v23 = vpop.f32.mrb[96].mxu1  ;;  %v4137_v28 = vsel %vm827_vm1, %v4114_v47, 0 }
0x1478   : > { %v4064_v49 = vpop.f32.mrb[97].mxu1 }
0x1479   : > { %v8774_v44 = vpop.f32.mrb[98].mxu1 }
0x147a   : > { %v11953_v38 = vpack.c.bf16 %v8774_v44, %v8773_v23  ;;  %v4067_v10 = vpop.f32.mrb[99].mxu1  ;;  %v7772_v23 = vadd.s32 4294967248, %v290_v5  ;;  %v7773_v44 = vadd.s32 4294967248, %v291_v62 }
0x147b   : > { %v11955_v3 = vpack.c.bf16 %v4067_v10, %v4064_v49  ;;  %v288_v49 = vadd.s32 32, %v284_v18 }
0x147c   : > { %4391 = vrot.lane.b32.xlu1 %v11953_v38, %s10178_s26  ;;  %8784 = vmatpush3.bf16.xpose.msra.mxu0 %v4134_v55  ;;  %vm406_vm15 = vcmp.eq.s32.totalorder %v7772_v23, %v383_v33  ;;  %vm407_vm2 = vcmp.eq.s32.totalorder %v7773_v44, %v383_v33 }
0x147d   : > { %4389 = vrot.lane.b32.xlu0 %v11955_v3, %s10178_s26  ;;  %9294 = vmatprep.subr.msk.bf16.mxu0 %vm827_vm1, %v4114_v47 }
0x147f   : > { %v8777_v19 = vpop.f32.mrb[100].mxu1 }
0x1480   : > { %v4080_v24 = vpop.f32.mrb[101].mxu1 }
0x1481   : > { %v8778_v21 = vpop.f32.mrb[102].mxu1 }
0x1482   : > { %v11963_v0 = vpack.c.bf16 %v8778_v21, %v8777_v19  ;;  %v4083_v58 = vpop.f32.mrb[103].mxu1  ;;  %v12014_v21 = vsel %vm403_vm14, 0.0, %v13443_v15 }
0x1483   : > { %v11965_v30 = vpack.c.bf16 %v4083_v58, %v4080_v24  ;;  %v7771_v24 = vadd.s32 4294967264, %v289_v9 }
0x1484   : > { %4395 = vrot.lane.b32.xlu1 %v11963_v0, %s10178_s26  ;;  %8786 = vmatpush3.bf16.xpose.msra.mxu0 %v4137_v28  ;;  %v7770_v28 = vadd.s32 4294967264, %v288_v49 }
0x1485   : > { %4393 = vrot.lane.b32.xlu0 %v11965_v30, %s10178_s26  ;;  %vm405_vm3 = vcmp.eq.s32.totalorder %v7771_v24, %v383_v33  ;;  %s8036_s26 = sshll.u32 %s10246_s22, 11  ;;  %s7673_s22 = scalar_lea.sflag [#allocation4], %s10329_s23 }
0x1486   : > { %vm404_vm4 = vcmp.eq.s32.totalorder %v7770_v28, %v383_v33 }
0x1487   : > { %v12033_v6 = vsel %vm404_vm4, 0.0, %v13443_v15 }
0x1488   : > { %4298 = vrot.lane.b32.xlu1 %v11930_v39, %s10179_s29 }
0x1489   : > { %4296 = vrot.lane.b32.xlu0 %v11932_v46, %s10179_s29 }
0x148b   : > { %8788 = vmatmul.mubr.msk.bf16.vlgmr.msra.gmra.mrb[72].mxu0 %vm827_vm1, %v11930_v39 }
0x148c   : > { %8791 = vmatprep.mubr.msk.bf16.mxu0 %vm827_vm1, %v11942_v2 }
0x1493   : > { %8792 = vmatmul.mubr.msk.bf16.gmra.mrb[76].mxu0 %vm827_vm1, %v11940_v36 }
0x1494   : > { %8819 = vmatprep.mubr.msk.bf16.mxu0 %vm827_vm1, %v11955_v3 }
0x14ee   : > { %v4392_v20 = vpop.permute.xlu1 %4391 }
0x14ef   : > { %v4390_v13 = vpop.permute.xlu0 %4389  ;;  %v4413_v1 = vsel %vm827_vm1, %v4392_v20, 0 }
0x14f0   : > { %9295 = vmatprep.subr.msk.bf16.mxu0 %vm827_vm1, %v4390_v13  ;;  %v4410_v63 = vsel %vm827_vm1, %v4390_v13, 0 }
0x14f1   : > { %8812 = vmatpush3.bf16.xpose.msra.mxu0 %v4410_v63 }
0x14f2   : > { %9296 = vmatprep.subr.msk.bf16.mxu0 %vm827_vm1, %v4392_v20 }
0x14f6   : > { %v4396_v8 = vpop.permute.xlu1 %4395 }
0x14f7   : > { %v4394_v25 = vpop.permute.xlu0 %4393  ;;  %v4419_v26 = vsel %vm827_vm1, %v4396_v8, 0 }
0x14f8   : > { %v4416_v57 = vsel %vm827_vm1, %v4394_v25, 0 }
0x14f9   : > { %8814 = vmatpush3.bf16.xpose.msra.mxu0 %v4413_v1  ;;  %v12024_v1 = vsel %vm407_vm2, 0.0, %v13443_v15 }
0x14fa   : > { %9297 = vmatprep.subr.msk.bf16.mxu0 %vm827_vm1, %v4394_v25  ;;  %v4299_v51 = vpop.permute.xlu1 %4298 }
0x14fb   : > { %v4297_v53 = vpop.permute.xlu0 %4296 }
0x14fc   : > { %8795 = vmatprep.subr.bf16.mxu1 %v4297_v53 }
0x14fd   : > { %8796 = vmatpush3.bf16.msra.mxu1 %v4297_v53 }
0x14fe   : > { %8797 = vmatprep.subr.bf16.mxu1 %v4299_v51 }
0x1501   : > { %8798 = vmatpush3.bf16.msra.mxu1 %v4299_v51  ;;  %8816 = vmatpush3.bf16.xpose.msra.mxu0 %v4416_v57  ;;  %v12027_v57 = vsel %vm405_vm3, 0.0, %v13443_v15 }
0x1502   : > { %9298 = vmatprep.subr.msk.bf16.mxu0 %vm827_vm1, %v4396_v8  ;;  %v12021_v8 = vsel %vm406_vm15, 0.0, %v13443_v15 }
0x1503   : > { %13444 = vst [vmem:[#allocation24_spill] sm:$0xff] %v12021_v8 }
0x1509   : > { %8818 = vmatpush3.bf16.xpose.msra.mxu0 %v4419_v26 }
0x1510   : > { %8820 = vmatmul.mubr.msk.bf16.vlgmr.msra.gmra.mrb[80].mxu0 %vm827_vm1, %v11953_v38 }
0x1511   : > { %8823 = vmatprep.mubr.msk.bf16.mxu0 %vm827_vm1, %v11965_v30 }
0x1518   : > { %8824 = vmatmul.mubr.msk.bf16.gmra.mrb[84].mxu0 %vm827_vm1, %v11963_v0 }
0x155e   : > { %v8789_v41 = vpop.f32.mrb[72].mxu0 }
0x155f   : > { %v4182_v56 = vadd.f32 %v8789_v41, %v12002_v52  ;;  %v4173_v59 = vpop.f32.mrb[73].mxu0 }
0x1560   : > { %v8790_v10 = vpop.f32.mrb[74].mxu0  ;;  %v4174_v55 = vadd.f32 %v4173_v59, %v12005_v31 }
0x1561   : > { %v4176_v47 = vpop.f32.mrb[75].mxu0  ;;  %v4210_v19 = vsel %vm917_vm7, %v4182_v56, -inf  ;;  %v4185_v63 = vadd.f32 %v8790_v10, %v12014_v21 }
0x1562   : > { %v4177_v58 = vadd.f32 %v4176_v47, %v12008_v17  ;;  %4211 = vmax.xlane.f32.xlu0 %v4210_v19  ;;  %v4204_v20 = vsel %vm917_vm7, %v4174_v55, -inf }
0x1563   : > { %v4213_v61 = vsel %vm917_vm7, %v4185_v63, -inf }
0x1564   : > { %v4207_v13 = vsel %vm917_vm7, %v4177_v58, -inf }
0x1565   : > { %4208 = vmax.xlane.f32.xlu1 %v4207_v13 }
0x1566   : > { %v8793_v25 = vpop.f32.mrb[76].mxu0  ;;  %4205 = vmax.xlane.f32.xlu0 %v4204_v20 }
0x1567   : > { %v4189_v53 = vpop.f32.mrb[77].mxu0  ;;  %v4198_v26 = vadd.f32 %v8793_v25, %v12021_v8 }
0x1568   : > { %v8794_v51 = vpop.f32.mrb[78].mxu0  ;;  %v4190_v27 = vadd.f32 %v4189_v53, %v12033_v6 }
0x1569   : > { %v4201_v12 = vadd.f32 %v8794_v51, %v12024_v1  ;;  %v4192_v18 = vpop.f32.mrb[79].mxu0  ;;  %v4222_v34 = vsel %vm917_vm7, %v4198_v26, -inf }
0x156a   : > { %4214 = vmax.xlane.f32.xlu0 %v4213_v61  ;;  %v4193_v16 = vadd.f32 %v4192_v18, %v12027_v57  ;;  %v4216_v5 = vsel %vm917_vm7, %v4190_v27, -inf }
0x156b   : > { %v4225_v33 = vsel %vm917_vm7, %v4201_v12, -inf }
0x156c   : > { %4226 = vmax.xlane.f32.xlu1 %v4225_v33  ;;  %v4219_v11 = vsel %vm917_vm7, %v4193_v16, -inf }
0x156e   : > { %4223 = vmax.xlane.f32.xlu0 %v4222_v34 }
0x1570   : > { %4220 = vmax.xlane.f32.xlu1 %v4219_v11 }
0x1572   : > { %4217 = vmax.xlane.f32.xlu0 %v4216_v5 }
0x15e3   : > { %v8821_v62 = vpop.f32.mrb[80].mxu0 }
0x15e4   : > { %v4455_v15 = vpop.f32.mrb[81].mxu0 }
0x15e5   : > { %v12041_v9 = vpop.f32.mrb[82].mxu0 }
0x15e6   : > { %v12043_v41 = vpop.f32.mrb[83].mxu0 }
0x15eb   : > { %v12045_v59 = vpop.f32.mrb[84].mxu0 }
0x15ec   : > { %v12047_v23 = vpop.f32.mrb[85].mxu0 }
0x15ed   : > { %v12049_v49 = vpop.f32.mrb[86].mxu0 }
0x15ee   : > { %v12051_v44 = vpop.f32.mrb[87].mxu0 }
0x15ef   : > { %v4212_v10 = vpop.xlane.xlu0 %4211 }
0x15f0   : > { %v4230_v47 = vsub.f32 %v4182_v56, %v4212_v10 }
0x15f2   : > { %v4240_v19 = vmul.f32 1.442695, %v4230_v47  ;;  %v4209_v24 = vpop.xlane.xlu1 %4208 }
0x15f3   : > { %v4206_v28 = vpop.xlane.xlu0 %4205  ;;  %v4229_v20 = vsub.f32 %v4177_v58, %v4209_v24 }
0x15f4   : > { %9733 = vpow2.f32 %v4240_v19  ;;  %v4228_v13 = vsub.f32 %v4174_v55, %v4206_v28 }
0x15f5   : > { %v4238_v61 = vmul.f32 1.442695, %v4229_v20 }
0x15f6   : > { %v4236_v25 = vmul.f32 1.442695, %v4228_v13 }
0x15f7   : > { %v4215_v53 = vpop.xlane.xlu0 %4214 }
0x15f8   : > { %9735 = vpow2.f32 %v4236_v25  ;;  %v4231_v51 = vsub.f32 %v4185_v63, %v4215_v53  ;;  %v4464_v53 = vadd.f32 %v8821_v62, %v12002_v52 }
0x15f9   : > { %v4227_v18 = vpop.xlane.xlu1 %4226 }
0x15fa   : > { %v4242_v33 = vmul.f32 1.442695, %v4231_v51  ;;  %v4235_v56 = vsub.f32 %v4201_v12, %v4227_v18 }
0x15fb   : > { %v4224_v34 = vpop.xlane.xlu0 %4223 }
0x15fc   : > { %9737 = vpow2.f32 %v4242_v33  ;;  %v4234_v11 = vsub.f32 %v4198_v26, %v4224_v34  ;;  %v4250_v63 = vmul.f32 1.442695, %v4235_v56  ;;  %v12081_v33 = vadd.f32 %v4455_v15, %v12005_v31 }
0x15fd   : > { %9739 = vpow2.f32 %v4238_v61  ;;  %v4221_v47 = vpop.xlane.xlu1 %4220  ;;  %v12098_v15 = vadd.f32 %v12041_v9, %v12014_v21 }
0x15fe   : > { %v12053_v5 = vpop.eup %9733  ;;  %v4248_v10 = vmul.f32 1.442695, %v4234_v11  ;;  %v4233_v24 = vsub.f32 %v4193_v16, %v4221_v47  ;;  %v4492_v11 = vsel %vm917_vm7, %v4464_v53, -inf  ;;  %v12102_v47 = vadd.f32 %v12045_v59, %v12021_v8 }
0x15ff   : > { %v4218_v42 = vpop.xlane.xlu0 %4217  ;;  %v4258_v55 = vsel %vm917_vm7, %v12053_v5, 0.0 }
0x1600   : > { %v4232_v58 = vsub.f32 %v4190_v27, %v4218_v42  ;;  %4259 = vadd.xlane.f32.xlu0 %v4258_v55  ;;  %9741 = vpow2.f32 %v4248_v10  ;;  %v4246_v13 = vmul.f32 1.442695, %v4233_v24  ;;  %v4486_v10 = vsel %vm917_vm7, %v12081_v33, -inf }
0x1601   : > { %v12106_v55 = vadd.f32 %v12043_v41, %v12008_v17  ;;  %v4504_v24 = vsel %vm917_vm7, %v12102_v47, -inf  ;;  %v12128_v41 = vadd.f32 %v12049_v49, %v12024_v1 }
0x1602   : > { %v12057_v19 = vpop.eup %9735  ;;  %v4244_v28 = vmul.f32 1.442695, %v4232_v58  ;;  %v12110_v58 = vadd.f32 %v12047_v23, %v12033_v6  ;;  %v12132_v23 = vadd.f32 %v12051_v44, %v12027_v57 }
0x1603   : > { %v4252_v26 = vsel %vm917_vm7, %v12057_v19, 0.0  ;;  %v4489_v9 = vsel %vm917_vm7, %v12106_v55, -inf }
0x1604   : > { %9743 = vpow2.f32 %v4244_v28  ;;  %4253 = vadd.xlane.f32.xlu0 %v4252_v26  ;;  %v4498_v59 = vsel %vm917_vm7, %v12110_v58, -inf  ;;  %v4507_v28 = vsel %vm917_vm7, %v12128_v41, -inf  ;;  %v4501_v26 = vsel %vm917_vm7, %v12132_v23, -inf }
0x1605   : > { %9745 = vpow2.f32 %v4250_v63  ;;  %v4495_v63 = vsel %vm917_vm7, %v12098_v15, -inf }
0x1606   : > { %v12061_v12 = vpop.eup %9737  ;;  %9747 = vpow2.f32 %v4246_v13 }
0x1607   : > { %v4261_v20 = vsel %vm917_vm7, %v12061_v12, 0.0  ;;  %v12065_v42 = vpop.eup %9739 }
0x1608   : > { %4262 = vadd.xlane.f32.xlu1 %v4261_v20  ;;  %v4255_v16 = vsel %vm917_vm7, %v12065_v42, 0.0 }
0x160a   : > { %v12069_v27 = vpop.eup %9741 }
0x160b   : > { %v4270_v51 = vsel %vm917_vm7, %v12069_v27, 0.0 }
0x160c   : > { %4256 = vadd.xlane.f32.xlu1 %v4255_v16 }
0x160e   : > { %v12071_v25 = vpop.eup %9743 }
0x160f   : > { %v4264_v18 = vsel %vm917_vm7, %v12071_v25, 0.0  ;;  %v12078_v61 = vpop.eup %9745 }
0x1610   : > { %4271 = vadd.xlane.f32.xlu1 %v4270_v51  ;;  %4265 = vadd.xlane.f32.xlu0 %v4264_v18  ;;  %v4273_v34 = vsel %vm917_vm7, %v12078_v61, 0.0  ;;  %v12086_v56 = vpop.eup %9747 }
0x1611   : > { %v4267_v62 = vsel %vm917_vm7, %v12086_v56, 0.0 }
0x1614   : > { %4274 = vadd.xlane.f32.xlu1 %v4273_v34  ;;  %4493 = vmax.xlane.f32.xlu0 %v4492_v11 }
0x1618   : > { %4268 = vadd.xlane.f32.xlu1 %v4267_v62  ;;  %4487 = vmax.xlane.f32.xlu0 %v4486_v10 }
0x1629   : > { %4302 = vrot.lane.b32.xlu1 %v11940_v36, %s10179_s29 }
0x162e   : > { %4300 = vrot.lane.b32.xlu0 %v11942_v2, %s10179_s29 }
0x164d   : > { %4496 = vmax.xlane.f32.xlu1 %v4495_v63  ;;  %4505 = vmax.xlane.f32.xlu0 %v4504_v24 }
0x1651   : > { %4490 = vmax.xlane.f32.xlu1 %v4489_v9  ;;  %4499 = vmax.xlane.f32.xlu0 %v4498_v59 }
0x1662   : > { %4580 = vrot.lane.b32.xlu1 %v11953_v38, %s10179_s29 }
0x1666   : > { %4582 = vrot.lane.b32.xlu1 %v11965_v30, %s10179_s29 }
0x1667   : > { %4578 = vrot.lane.b32.xlu0 %v11955_v3, %s10179_s29 }
0x168a   : > { %4508 = vmax.xlane.f32.xlu1 %v4507_v28 }
0x168d   : > { %v4260_v13 = vpop.xlane.xlu0 %4259 }
0x168e   : > { %4502 = vmax.xlane.f32.xlu1 %v4501_v26 }
0x1691   : > { %v4254_v20 = vpop.xlane.xlu0 %4253 }
0x1692   : > { %9749 = vrcp.f32 %v4254_v20 }
0x1695   : > { %v4263_v16 = vpop.xlane.xlu1 %4262 }
0x1699   : > { %v4257_v51 = vpop.xlane.xlu1 %4256 }
0x169a   : > { %9751 = vrcp.f32 %v4257_v51 }
0x169b   : > { %9753 = vrcp.f32 %v4263_v16 }
0x169c   : > { %9755 = vrcp.f32 %v4260_v13  ;;  %v9750_v11 = vpop.eup %9749 }
0x169d   : > { %v4272_v49 = vpop.xlane.xlu1 %4271  ;;  %v4266_v18 = vpop.xlane.xlu0 %4265  ;;  %v4284_v59 = vmul.f32 %v9750_v11, %v12057_v19 }
0x169e   : > { %9757 = vrcp.f32 %v4266_v18 }
0x169f   : > { %4584 = vrot.lane.b32.xlu1 %v11963_v0, %s10179_s29 }
0x16a1   : > { %v4275_v44 = vpop.xlane.xlu1 %4274  ;;  %v4494_v34 = vpop.xlane.xlu0 %4493 }
0x16a2   : > { %v4512_v62 = vsub.f32 %v4464_v53, %v4494_v34  ;;  %9759 = vrcp.f32 %v4275_v44 }
0x16a4   : > { %v9752_v10 = vpop.eup %9751  ;;  %v4522_v63 = vmul.f32 1.442695, %v4512_v62 }
0x16a5   : > { %v4269_v24 = vpop.xlane.xlu1 %4268  ;;  %v4488_v9 = vpop.xlane.xlu0 %4487  ;;  %v4285_v28 = vmul.f32 %v9752_v10, %v12065_v42 }
0x16a6   : > { %9761 = vpow2.f32 %v4522_v63  ;;  %v9754_v20 = vpop.eup %9753  ;;  %v4510_v18 = vsub.f32 %v12081_v33, %v4488_v9 }
0x16a7   : > { %9763 = vrcp.f32 %v4269_v24  ;;  %v4292_v26 = vpack.c.bf16 %v4285_v28, %v4284_v59  ;;  %v9756_v53 = vpop.eup %9755  ;;  %v4287_v51 = vmul.f32 %v9754_v20, %v12061_v12 }
0x16a8   : > { %9765 = vrcp.f32 %v4272_v49  ;;  %v9758_v19 = vpop.eup %9757  ;;  %v4286_v42 = vmul.f32 %v9756_v53, %v12053_v5  ;;  %v4518_v62 = vmul.f32 1.442695, %v4510_v18 }
0x16a9   : > { %8803 = vmatprep.mubr.msk.bf16.mxu1 %vm917_vm7, %v4292_v26  ;;  %v4301_v13 = vpop.permute.xlu0 %4300  ;;  %v4303_v16 = vpop.permute.xlu1 %4302  ;;  %v4288_v12 = vmul.f32 %v9758_v19, %v12071_v25 }
0x16aa   : > { %8799 = vmatprep.subr.bf16.mxu1 %v4301_v13  ;;  %v4293_v49 = vpack.c.bf16 %v4287_v51, %v4286_v42  ;;  %9767 = vpow2.f32 %v4518_v62 }
0x16ab   : > { %8800 = vmatpush3.bf16.msra.mxu1 %v4301_v13 }
0x16ac   : > { %8801 = vmatprep.subr.bf16.mxu1 %v4303_v16  ;;  %v9760_v44 = vpop.eup %9759 }
0x16ad   : > { %v4291_v5 = vmul.f32 %v9760_v44, %v12078_v61 }
0x16af   : > { %8802 = vmatpush3.bf16.msra.mxu1 %v4303_v16 }
0x16b0   : > { %v12146_v34 = vpop.eup %9761 }
0x16b1   : > { %v9764_v11 = vpop.eup %9763  ;;  %v4540_v10 = vsel %vm917_vm7, %v12146_v34, 0.0 }
0x16b2   : > { %4541 = vadd.xlane.f32.xlu0 %v4540_v10  ;;  %8804 = vmatmul.mubr.msk.bf16.vlgmr.msra.gmra.mrb[104].mxu1 %vm917_vm7, %v4293_v49  ;;  %v4289_v33 = vmul.f32 %v9764_v11, %v12086_v56  ;;  %v9766_v63 = vpop.eup %9765 }
0x16b3   : > { %v4290_v9 = vmul.f32 %v9766_v63, %v12069_v27 }
0x16b4   : > { %v4294_v24 = vpack.c.bf16 %v4289_v33, %v4288_v12  ;;  %v12157_v28 = vpop.eup %9767 }
0x16b5   : > { %v4295_v59 = vpack.c.bf16 %v4291_v5, %v4290_v9  ;;  %v4534_v26 = vsel %vm917_vm7, %v12157_v28, 0.0 }
0x16b6   : > { %8807 = vmatprep.mubr.msk.bf16.mxu1 %vm917_vm7, %v4294_v24 }
0x16ba   : > { %8808 = vmatmul.mubr.msk.bf16.gmra.mrb[108].mxu1 %vm917_vm7, %v4295_v59 }
0x16c3   : > { %4535 = vadd.xlane.f32.xlu1 %v4534_v26 }
0x16d4   : > { %4685 = vrot.lane.b32.xlu1 %v11930_v39, %s10182_s12 }
0x16d8   : > { %4687 = vrot.lane.b32.xlu1 %v11942_v2, %s10182_s12 }
0x16da   : > { %v4497_v25 = vpop.xlane.xlu1 %4496  ;;  %v4506_v61 = vpop.xlane.xlu0 %4505 }
0x16db   : > { %v4513_v56 = vsub.f32 %v12098_v15, %v4497_v25  ;;  %v4516_v20 = vsub.f32 %v12102_v47, %v4506_v61 }
0x16dd   : > { %v4524_v27 = vmul.f32 1.442695, %v4513_v56  ;;  %v4530_v51 = vmul.f32 1.442695, %v4516_v20 }
0x16de   : > { %v4491_v13 = vpop.xlane.xlu1 %4490  ;;  %v4500_v53 = vpop.xlane.xlu0 %4499 }
0x16df   : > { %9769 = vpow2.f32 %v4524_v27  ;;  %v4511_v16 = vsub.f32 %v12106_v55, %v4491_v13  ;;  %v4514_v19 = vsub.f32 %v12110_v58, %v4500_v53 }
0x16e1   : > { %v4520_v18 = vmul.f32 1.442695, %v4511_v16  ;;  %v4526_v49 = vmul.f32 1.442695, %v4514_v19 }
0x16e2   : > { %v4581_v42 = vpop.permute.xlu1 %4580  ;;  %v4579_v44 = vpop.permute.xlu0 %4578 }
0x16e3   : > { %9771 = vpow2.f32 %v4520_v18  ;;  %8827 = vmatprep.subr.bf16.mxu1 %v4579_v44 }
0x16e4   : > { %8828 = vmatpush3.bf16.msra.mxu1 %v4579_v44  ;;  %9773 = vpow2.f32 %v4530_v51 }
0x16e5   : > { %8829 = vmatprep.subr.bf16.mxu1 %v4581_v42  ;;  %9775 = vpow2.f32 %v4526_v49 }
0x16e6   : > { %v4583_v15 = vpop.permute.xlu1 %4582 }
0x16e8   : > { %8830 = vmatpush3.bf16.msra.mxu1 %v4581_v42 }
0x16e9   : > { %v9770_v47 = vpop.eup %9769  ;;  %8831 = vmatprep.subr.bf16.mxu1 %v4583_v15 }
0x16ea   : > { %v4543_v11 = vsel %vm917_vm7, %v9770_v47, 0.0 }
0x16eb   : > { %4544 = vadd.xlane.f32.xlu0 %v4543_v11 }
0x16ec   : > { %8832 = vmatpush3.bf16.msra.mxu1 %v4583_v15 }
0x16ed   : > { %v9772_v55 = vpop.eup %9771 }
0x16ee   : > { %v4537_v58 = vsel %vm917_vm7, %v9772_v55, 0.0  ;;  %v12171_v62 = vpop.eup %9773 }
0x16ef   : > { %4538 = vadd.xlane.f32.xlu0 %v4537_v58  ;;  %v4552_v10 = vsel %vm917_vm7, %v12171_v62, 0.0  ;;  %v12175_v12 = vpop.eup %9775 }
0x16f0   : > { %v4546_v33 = vsel %vm917_vm7, %v12175_v12, 0.0 }
0x16f3   : > { %4553 = vadd.xlane.f32.xlu0 %v4552_v10 }
0x16f7   : > { %4547 = vadd.xlane.f32.xlu0 %v4546_v33 }
0x1717   : > { %v4509_v63 = vpop.xlane.xlu1 %4508 }
0x1718   : > { %v4517_v24 = vsub.f32 %v12128_v41, %v4509_v63 }
0x171a   : > { %v4532_v5 = vmul.f32 1.442695, %v4517_v24 }
0x171b   : > { %v4503_v9 = vpop.xlane.xlu1 %4502 }
0x171c   : > { %9777 = vpow2.f32 %v4532_v5  ;;  %v4515_v59 = vsub.f32 %v12132_v23, %v4503_v9 }
0x171e   : > { %v4528_v26 = vmul.f32 1.442695, %v4515_v59 }
0x171f   : > { %v4585_v25 = vpop.permute.xlu1 %4584 }
0x1720   : > { %9779 = vpow2.f32 %v4528_v26  ;;  %8833 = vmatprep.subr.bf16.mxu1 %v4585_v25 }
0x1721   : > { %8834 = vmatpush3.bf16.msra.mxu1 %v4585_v25 }
0x1726   : > { %v12181_v61 = vpop.eup %9777 }
0x1727   : > { %v4555_v56 = vsel %vm917_vm7, %v12181_v61, 0.0 }
0x1728   : > { %4556 = vadd.xlane.f32.xlu0 %v4555_v56 }
0x172a   : > { %v12185_v27 = vpop.eup %9779 }
0x172b   : > { %v4549_v41 = vsel %vm917_vm7, %v12185_v27, 0.0 }
0x172c   : > { %4550 = vadd.xlane.f32.xlu1 %v4549_v41 }
0x173d   : > { %4689 = vrot.lane.b32.xlu1 %v11940_v36, %s10182_s12 }
0x173e   : > { %4683 = vrot.lane.b32.xlu0 %v11932_v46, %s10182_s12 }
0x173f   : > { %v4542_v23 = vpop.xlane.xlu0 %4541 }
0x1741   : > { %4677 = vrot.lane.b32.xlu1 %v11930_v39, %s10183_s14 }
0x1742   : > { %4675 = vrot.lane.b32.xlu0 %v11932_v46, %s10183_s14 }
0x1745   : > { %4681 = vrot.lane.b32.xlu1 %v11940_v36, %s10183_s14 }
0x1746   : > { %4679 = vrot.lane.b32.xlu0 %v11942_v2, %s10183_s14 }
0x1750   : > { %v4536_v20 = vpop.xlane.xlu1 %4535 }
0x1754   : > { %v4686_v56 = vpop.permute.xlu1 %4685 }
0x1778   : > { %v4545_v13 = vpop.xlane.xlu0 %4544 }
0x1779   : > { %9781 = vrcp.f32 %v4545_v13 }
0x177a   : > { %9783 = vrcp.f32 %v4536_v20 }
0x177b   : > { %9785 = vrcp.f32 %v4542_v23  ;;  %v4688_v23 = vpop.permute.xlu1 %4687 }
0x177c   : > { %v4539_v53 = vpop.xlane.xlu0 %4538 }
0x177d   : > { %9787 = vrcp.f32 %v4539_v53 }
0x1780   : > { %v4554_v25 = vpop.xlane.xlu0 %4553 }
0x1783   : > { %v9782_v16 = vpop.eup %9781 }
0x1784   : > { %v9784_v51 = vpop.eup %9783  ;;  %v4569_v49 = vmul.f32 %v9782_v16, %v9770_v47  ;;  %v4548_v41 = vpop.xlane.xlu0 %4547 }
0x1785   : > { %v12201_v18 = vpop.f32.mrb[104].mxu1  ;;  %v9786_v19 = vpop.eup %9785  ;;  %v4566_v10 = vmul.f32 %v9784_v51, %v12157_v28 }
0x1786   : > { %v12203_v42 = vpop.f32.mrb[105].mxu1  ;;  %v4568_v63 = vmul.f32 %v9786_v19, %v12146_v34 }
0x1787   : > { %v9788_v44 = vpop.eup %9787  ;;  %v12205_v15 = vpop.f32.mrb[106].mxu1 }
0x1788   : > { %v12209_v58 = vpop.f32.mrb[107].mxu1  ;;  %v4567_v33 = vmul.f32 %v9788_v44, %v9772_v55  ;;  %v4575_v9 = vpack.c.bf16 %v4569_v49, %v4568_v63  ;;  %v4707_v44 = vsel %vm827_vm1, %v4686_v56, 0 }
0x178a   : > { %v4574_v5 = vpack.c.bf16 %v4567_v33, %v4566_v10 }
0x178c   : > { %8835 = vmatprep.mubr.msk.bf16.mxu1 %vm917_vm7, %v4574_v5 }
0x178d   : > { %v12216_v47 = vpop.f32.mrb[108].mxu1  ;;  %8836 = vmatmul.mubr.msk.bf16.vlgmr.msra.gmra.mrb[112].mxu1 %vm917_vm7, %v4575_v9 }
0x178e   : > { %v12219_v59 = vpop.f32.mrb[109].mxu1 }
0x178f   : > { %v12221_v26 = vpop.f32.mrb[110].mxu1 }
0x1790   : > { %v12225_v55 = vpop.f32.mrb[111].mxu1 }
0x17b5   : > { %v4557_v20 = vpop.xlane.xlu0 %4556 }
0x17b6   : > { %9789 = vrcp.f32 %v4557_v20 }
0x17b7   : > { %9791 = vrcp.f32 %v4548_v41 }
0x17b8   : > { %9793 = vrcp.f32 %v4554_v25 }
0x17b9   : > { %v4551_v13 = vpop.xlane.xlu1 %4550  ;;  %v4684_v53 = vpop.permute.xlu0 %4683 }
0x17ba   : > { %9795 = vrcp.f32 %v4551_v13  ;;  %9299 = vmatprep.subr.msk.bf16.mxu1 %vm827_vm1, %v4684_v53  ;;  %v4704_v16 = vsel %vm827_vm1, %v4684_v53, 0 }
0x17bb   : > { %8844 = vmatpush3.bf16.xpose.msra.mxu1 %v4704_v16 }
0x17bc   : > { %9300 = vmatprep.subr.msk.bf16.mxu1 %vm827_vm1, %v4686_v56  ;;  %v4710_v56 = vsel %vm827_vm1, %v4688_v23, 0 }
0x17bd   : > { %v4676_v20 = vpop.permute.xlu0 %4675  ;;  %v4690_v13 = vpop.permute.xlu1 %4689 }
0x17c0   : > { %v9790_v51 = vpop.eup %9789 }
0x17c1   : > { %v9792_v19 = vpop.eup %9791  ;;  %v4573_v33 = vmul.f32 %v9790_v51, %v12181_v61  ;;  %v4678_v61 = vpop.permute.xlu1 %4677 }
0x17c2   : > { %v9794_v49 = vpop.eup %9793  ;;  %v4570_v63 = vmul.f32 %v9792_v19, %v12175_v12  ;;  %v4713_v12 = vsel %vm827_vm1, %v4690_v13, 0 }
0x17c3   : > { %8846 = vmatpush3.bf16.xpose.msra.mxu1 %v4707_v44  ;;  %v4572_v9 = vmul.f32 %v9794_v49, %v12171_v62  ;;  %v4680_v62 = vpop.permute.xlu0 %4679 }
0x17c4   : > { %v9796_v10 = vpop.eup %9795  ;;  %9301 = vmatprep.subr.msk.bf16.mxu1 %vm827_vm1, %v4688_v23 }
0x17c5   : > { %v4571_v5 = vmul.f32 %v9796_v10, %v12185_v27  ;;  %v4577_v41 = vpack.c.bf16 %v4573_v33, %v4572_v9  ;;  %v4682_v27 = vpop.permute.xlu1 %4681 }
0x17c7   : > { %v4576_v25 = vpack.c.bf16 %v4571_v5, %v4570_v63 }
0x17c9   : > { %8839 = vmatprep.mubr.msk.bf16.mxu1 %vm917_vm7, %v4576_v25 }
0x17ca   : > { %8840 = vmatmul.mubr.msk.bf16.gmra.mrb[116].mxu1 %vm917_vm7, %v4577_v41 }
0x17cb   : > { %8848 = vmatpush3.bf16.xpose.msra.mxu1 %v4710_v56  ;;  %8851 = vmatprep.mubr.msk.bf16.mxu1 %vm827_vm1, %v4676_v20 }
0x17cc   : > { %9302 = vmatprep.subr.msk.bf16.mxu1 %vm827_vm1, %v4690_v13 }
0x17d3   : > { %8850 = vmatpush3.bf16.xpose.msra.mxu1 %v4713_v12 }
0x17da   : > { %8852 = vmatmul.mubr.msk.bf16.vlgmr.msra.gmra.mrb[120].mxu1 %vm827_vm1, %v4678_v61 }
0x17db   : > { %8855 = vmatprep.mubr.msk.bf16.mxu1 %vm827_vm1, %v4680_v62 }
0x17e2   : > { %8856 = vmatmul.mubr.msk.bf16.gmra.mrb[124].mxu1 %vm827_vm1, %v4682_v27 }
0x1860   : > { %v12247_v53 = vpop.f32.mrb[112].mxu1 }
0x1861   : > { %v12249_v23 = vpop.f32.mrb[113].mxu1 }
0x1862   : > { %v12251_v16 = vpop.f32.mrb[114].mxu1 }
0x1863   : > { %v12255_v19 = vpop.f32.mrb[115].mxu1 }
0x189d   : > { %v12259_v49 = vpop.f32.mrb[116].mxu1 }
0x189e   : > { %v12261_v10 = vpop.f32.mrb[117].mxu1 }
0x189f   : > { %v12263_v33 = vpop.f32.mrb[118].mxu1 }
0x18a0   : > { %v12267_v5 = vpop.f32.mrb[119].mxu1 }
0x18ad   : > { %v8853_v25 = vpop.f32.mrb[120].mxu1 }
0x18ae   : > { %v4758_v41 = vadd.f32 %v8853_v25, %v12002_v52  ;;  %v4749_v20 = vpop.f32.mrb[121].mxu1 }
0x18af   : > { %v8854_v56 = vpop.f32.mrb[122].mxu1  ;;  %v4750_v13 = vadd.f32 %v4749_v20, %v12005_v31 }
0x18b0   : > { %v4752_v12 = vpop.f32.mrb[123].mxu1  ;;  %v4786_v61 = vsel %vm917_vm7, %v4758_v41, -inf  ;;  %v4761_v63 = vadd.f32 %v8854_v56, %v12014_v21 }
0x18b1   : > { %v4753_v62 = vadd.f32 %v4752_v12, %v12008_v17  ;;  %4787 = vmax.xlane.f32.xlu0 %v4786_v61  ;;  %v4780_v9 = vsel %vm917_vm7, %v4750_v13, -inf }
0x18b2   : > { %v4789_v34 = vsel %vm917_vm7, %v4761_v63, -inf }
0x18b3   : > { %v4783_v27 = vsel %vm917_vm7, %v4753_v62, -inf }
0x18b4   : > { %4784 = vmax.xlane.f32.xlu1 %v4783_v27 }
0x18b5   : > { %4781 = vmax.xlane.f32.xlu0 %v4780_v9  ;;  %v8857_v51 = vpop.f32.mrb[124].mxu1 }
0x18b6   : > { %v4765_v25 = vpop.f32.mrb[125].mxu1  ;;  %v4774_v28 = vadd.f32 %v8857_v51, %v12021_v8 }
0x18b7   : > { %v8858_v44 = vpop.f32.mrb[126].mxu1  ;;  %v4766_v12 = vadd.f32 %v4765_v25, %v12033_v6 }
0x18b8   : > { %v4768_v20 = vpop.f32.mrb[127].mxu1  ;;  %v4798_v61 = vsel %vm917_vm7, %v4774_v28, -inf  ;;  %v4777_v51 = vadd.f32 %v8858_v44, %v12024_v1 }
0x18b9   : > { %4790 = vmax.xlane.f32.xlu0 %v4789_v34  ;;  %v4792_v56 = vsel %vm917_vm7, %v4766_v12, -inf  ;;  %v12291_v34 = vadd.f32 %v4768_v20, %v12027_v57 }
0x18ba   : > { %v4801_v9 = vsel %vm917_vm7, %v4777_v51, -inf }
0x18bb   : > { %v4795_v27 = vsel %vm917_vm7, %v12291_v34, -inf }
0x18bd   : > { %4799 = vmax.xlane.f32.xlu0 %v4798_v61 }
0x18c1   : > { %4793 = vmax.xlane.f32.xlu0 %v4792_v56 }
0x18c5   : > { %4874 = vrot.lane.b32.xlu1 %v11930_v39, %s10184_s15 }
0x18c9   : > { %4876 = vrot.lane.b32.xlu1 %v11942_v2, %s10184_s15 }
0x18d7   : > { %4872 = vrot.lane.b32.xlu0 %v11932_v46, %s10184_s15 }
0x18ed   : > { %4802 = vmax.xlane.f32.xlu1 %v4801_v9 }
0x18f1   : > { %4796 = vmax.xlane.f32.xlu1 %v4795_v27 }
0x1902   : > { %4878 = vrot.lane.b32.xlu1 %v11940_v36, %s10184_s15 }
0x193e   : > { %v4788_v25 = vpop.xlane.xlu0 %4787 }
0x193f   : > { %v4806_v61 = vsub.f32 %v4758_v41, %v4788_v25 }
0x1941   : > { %v4816_v56 = vmul.f32 1.442695, %v4806_v61  ;;  %v4785_v11 = vpop.xlane.xlu1 %4784 }
0x1942   : > { %v4782_v24 = vpop.xlane.xlu0 %4781  ;;  %v4805_v60 = vsub.f32 %v4753_v62, %v4785_v11 }
0x1943   : > { %9797 = vpow2.f32 %v4816_v56  ;;  %v4804_v44 = vsub.f32 %v4750_v13, %v4782_v24 }
0x1944   : > { %v4814_v9 = vmul.f32 1.442695, %v4805_v60 }
0x1945   : > { %v4812_v20 = vmul.f32 1.442695, %v4804_v44 }
0x1946   : > { %v4791_v43 = vpop.xlane.xlu0 %4790 }
0x1947   : > { %9799 = vpow2.f32 %v4812_v20  ;;  %v4807_v50 = vsub.f32 %v4761_v63, %v4791_v43  ;;  %v4875_v43 = vpop.permute.xlu1 %4874 }
0x1949   : > { %v4818_v7 = vmul.f32 1.442695, %v4807_v50 }
0x194a   : > { %v4800_v29 = vpop.xlane.xlu0 %4799 }
0x194b   : > { %9801 = vpow2.f32 %v4818_v7  ;;  %v4810_v27 = vsub.f32 %v4774_v28, %v4800_v29 }
0x194c   : > { %9803 = vpow2.f32 %v4814_v9 }
0x194d   : > { %v12298_v32 = vpop.eup %9797  ;;  %v4824_v37 = vmul.f32 1.442695, %v4810_v27 }
0x194e   : > { %v4794_v41 = vpop.xlane.xlu0 %4793  ;;  %v4834_v25 = vsel %vm917_vm7, %v12298_v32, 0.0 }
0x194f   : > { %9805 = vpow2.f32 %v4824_v37  ;;  %v4808_v24 = vsub.f32 %v4766_v12, %v4794_v41  ;;  %4835 = vadd.xlane.f32.xlu0 %v4834_v25  ;;  %v4877_v37 = vpop.permute.xlu1 %4876 }
0x1951   : > { %v12302_v11 = vpop.eup %9799  ;;  %v4820_v13 = vmul.f32 1.442695, %v4808_v24 }
0x1952   : > { %v4873_v60 = vpop.permute.xlu0 %4872  ;;  %v4828_v7 = vsel %vm917_vm7, %v12302_v11, 0.0 }
0x1953   : > { %9807 = vpow2.f32 %v4820_v13  ;;  %4829 = vadd.xlane.f32.xlu0 %v4828_v7  ;;  %8859 = vmatprep.subr.bf16.mxu0 %v4873_v60 }
0x1954   : > { %8860 = vmatpush3.bf16.msra.mxu0 %v4873_v60 }
0x1955   : > { %v9802_v29 = vpop.eup %9801  ;;  %8861 = vmatprep.subr.bf16.mxu0 %v4875_v43 }
0x1956   : > { %v4837_v50 = vsel %vm917_vm7, %v9802_v29, 0.0  ;;  %v9804_v28 = vpop.eup %9803 }
0x1957   : > { %4838 = vadd.xlane.f32.xlu1 %v4837_v50  ;;  %v4831_v62 = vsel %vm917_vm7, %v9804_v28, 0.0 }
0x1958   : > { %8862 = vmatpush3.bf16.msra.mxu0 %v4875_v43 }
0x1959   : > { %v12307_v63 = vpop.eup %9805  ;;  %8863 = vmatprep.subr.bf16.mxu0 %v4877_v37 }
0x195a   : > { %v4846_v12 = vsel %vm917_vm7, %v12307_v63, 0.0 }
0x195b   : > { %4832 = vadd.xlane.f32.xlu1 %v4831_v62  ;;  %4847 = vadd.xlane.f32.xlu0 %v4846_v12 }
0x195c   : > { %8864 = vmatpush3.bf16.msra.mxu0 %v4877_v37 }
0x195d   : > { %v12312_v61 = vpop.eup %9807 }
0x195e   : > { %v4840_v56 = vsel %vm917_vm7, %v12312_v61, 0.0 }
0x195f   : > { %4841 = vadd.xlane.f32.xlu0 %v4840_v56 }
0x196c   : > { %4971 = vrot.lane.b32.xlu1 %v11953_v38, %s10182_s12 }
0x1970   : > { %4973 = vrot.lane.b32.xlu1 %v11965_v30, %s10182_s12 }
0x197a   : > { %v4803_v44 = vpop.xlane.xlu1 %4802 }
0x197b   : > { %v4811_v20 = vsub.f32 %v4777_v51, %v4803_v44 }
0x197d   : > { %v4826_v9 = vmul.f32 1.442695, %v4811_v20 }
0x197e   : > { %v4797_v27 = vpop.xlane.xlu1 %4796 }
0x197f   : > { %9809 = vpow2.f32 %v4826_v9  ;;  %v4809_v41 = vsub.f32 %v12291_v34, %v4797_v27 }
0x1981   : > { %v4822_v25 = vmul.f32 1.442695, %v4809_v41 }
0x1982   : > { %v4879_v24 = vpop.permute.xlu1 %4878 }
0x1983   : > { %8865 = vmatprep.subr.bf16.mxu0 %v4879_v24  ;;  %9811 = vpow2.f32 %v4822_v25 }
0x1984   : > { %8866 = vmatpush3.bf16.msra.mxu0 %v4879_v24 }
0x1989   : > { %v9810_v13 = vpop.eup %9809 }
0x198a   : > { %v4849_v43 = vsel %vm917_vm7, %v9810_v13, 0.0 }
0x198b   : > { %4850 = vadd.xlane.f32.xlu0 %v4849_v43 }
0x198d   : > { %v9812_v60 = vpop.eup %9811 }
0x198e   : > { %v4843_v7 = vsel %vm917_vm7, %v9812_v60, 0.0 }
0x1994   : > { %4844 = vadd.xlane.f32.xlu1 %v4843_v7 }
0x19a1   : > { %4969 = vrot.lane.b32.xlu0 %v11955_v3, %s10182_s12 }
0x19a5   : > { %4975 = vrot.lane.b32.xlu1 %v11963_v0, %s10182_s12  ;;  %4961 = vrot.lane.b32.xlu0 %v11955_v3, %s10183_s14 }
0x19a9   : > { %4963 = vrot.lane.b32.xlu1 %v11953_v38, %s10183_s14  ;;  %4965 = vrot.lane.b32.xlu0 %v11965_v30, %s10183_s14 }
0x19ad   : > { %4967 = vrot.lane.b32.xlu1 %v11963_v0, %s10183_s14 }
0x19dc   : > { %v4836_v51 = vpop.xlane.xlu0 %4835 }
0x19e0   : > { %v4830_v34 = vpop.xlane.xlu0 %4829 }
0x19e4   : > { %v4839_v50 = vpop.xlane.xlu1 %4838 }
0x19e5   : > { %9813 = vrcp.f32 %v4839_v50 }
0x19e6   : > { %9815 = vrcp.f32 %v4830_v34 }
0x19e7   : > { %9817 = vrcp.f32 %v4836_v51 }
0x19e8   : > { %v4833_v37 = vpop.xlane.xlu1 %4832  ;;  %v4848_v43 = vpop.xlane.xlu0 %4847 }
0x19e9   : > { %9819 = vrcp.f32 %v4833_v37 }
0x19ec   : > { %v4842_v7 = vpop.xlane.xlu0 %4841  ;;  %v4972_v51 = vpop.permute.xlu1 %4971 }
0x19ef   : > { %v9814_v62 = vpop.eup %9813 }
0x19f0   : > { %v9816_v12 = vpop.eup %9815  ;;  %v4863_v20 = vmul.f32 %v9814_v62, %v9802_v29  ;;  %v4974_v37 = vpop.permute.xlu1 %4973 }
0x19f1   : > { %v9818_v56 = vpop.eup %9817  ;;  %v4860_v9 = vmul.f32 %v9816_v12, %v12302_v11  ;;  %v4993_v11 = vsel %vm827_vm1, %v4972_v51, 0 }
0x19f2   : > { %v4862_v41 = vmul.f32 %v9818_v56, %v12298_v32 }
0x19f3   : > { %v9820_v44 = vpop.eup %9819 }
0x19f4   : > { %v4861_v27 = vmul.f32 %v9820_v44, %v9804_v28  ;;  %v4869_v24 = vpack.c.bf16 %v4863_v20, %v4862_v41  ;;  %v4996_v20 = vsel %vm827_vm1, %v4974_v37, 0 }
0x19f6   : > { %v4868_v25 = vpack.c.bf16 %v4861_v27, %v4860_v9 }
0x19f8   : > { %8867 = vmatprep.mubr.msk.bf16.mxu0 %vm917_vm7, %v4868_v25 }
0x19f9   : > { %8868 = vmatmul.mubr.msk.bf16.vlgmr.msra.gmra.mrb[88].mxu0 %vm917_vm7, %v4869_v24 }
0x1a18   : > { %v4851_v34 = vpop.xlane.xlu0 %4850 }
0x1a19   : > { %9821 = vrcp.f32 %v4851_v34 }
0x1a1a   : > { %9823 = vrcp.f32 %v4842_v7 }
0x1a1b   : > { %9825 = vrcp.f32 %v4848_v43 }
0x1a1c   : > { %v4970_v50 = vpop.permute.xlu0 %4969 }
0x1a1d   : > { %9303 = vmatprep.subr.msk.bf16.mxu0 %vm827_vm1, %v4970_v50  ;;  %v4990_v29 = vsel %vm827_vm1, %v4970_v50, 0 }
0x1a1e   : > { %8876 = vmatpush3.bf16.xpose.msra.mxu0 %v4990_v29 }
0x1a1f   : > { %9304 = vmatprep.subr.msk.bf16.mxu0 %vm827_vm1, %v4972_v51 }
0x1a20   : > { %v4962_v7 = vpop.permute.xlu0 %4961 }
0x1a21   : > { %v4845_v32 = vpop.xlane.xlu1 %4844 }
0x1a22   : > { %9827 = vrcp.f32 %v4845_v32 }
0x1a23   : > { %v9822_v28 = vpop.eup %9821 }
0x1a24   : > { %v9824_v62 = vpop.eup %9823  ;;  %v4867_v44 = vmul.f32 %v9822_v28, %v9810_v13 }
0x1a25   : > { %v9826_v12 = vpop.eup %9825  ;;  %v4864_v9 = vmul.f32 %v9824_v62, %v12312_v61  ;;  %v4976_v41 = vpop.permute.xlu1 %4975 }
0x1a26   : > { %8878 = vmatpush3.bf16.xpose.msra.mxu0 %v4993_v11  ;;  %v4866_v25 = vmul.f32 %v9826_v12, %v12307_v63  ;;  %v4999_v13 = vsel %vm827_vm1, %v4976_v41, 0 }
0x1a27   : > { %9305 = vmatprep.subr.msk.bf16.mxu0 %vm827_vm1, %v4974_v37 }
0x1a28   : > { %v4871_v43 = vpack.c.bf16 %v4867_v44, %v4866_v25 }
0x1a29   : > { %v4964_v61 = vpop.permute.xlu1 %4963 }
0x1a2c   : > { %v9828_v56 = vpop.eup %9827 }
0x1a2d   : > { %v4865_v27 = vmul.f32 %v9828_v56, %v9812_v60  ;;  %v4966_v60 = vpop.permute.xlu0 %4965  ;;  %v4968_v63 = vpop.permute.xlu1 %4967 }
0x1a2e   : > { %8880 = vmatpush3.bf16.xpose.msra.mxu0 %v4996_v20 }
0x1a2f   : > { %9306 = vmatprep.subr.msk.bf16.mxu0 %vm827_vm1, %v4976_v41  ;;  %v4870_v24 = vpack.c.bf16 %v4865_v27, %v4864_v9 }
0x1a31   : > { %8871 = vmatprep.mubr.msk.bf16.mxu0 %vm917_vm7, %v4870_v24 }
0x1a32   : > { %8872 = vmatmul.mubr.msk.bf16.gmra.mrb[92].mxu0 %vm917_vm7, %v4871_v43 }
0x1a33   : > { %8883 = vmatprep.mubr.msk.bf16.mxu0 %vm827_vm1, %v4962_v7 }
0x1a36   : > { %8882 = vmatpush3.bf16.xpose.msra.mxu0 %v4999_v13 }
0x1a3d   : > { %8884 = vmatmul.mubr.msk.bf16.vlgmr.msra.gmra.mrb[96].mxu0 %vm827_vm1, %v4964_v61 }
0x1a3e   : > { %8887 = vmatprep.mubr.msk.bf16.mxu0 %vm827_vm1, %v4966_v60 }
0x1a45   : > { %8888 = vmatmul.mubr.msk.bf16.gmra.mrb[100].mxu0 %vm827_vm1, %v4968_v63 }
0x1acc   : > { %v12355_v51 = vpop.f32.mrb[88].mxu0 }
0x1acd   : > { %v12357_v34 = vpop.f32.mrb[89].mxu0 }
0x1ace   : > { %v12359_v50 = vpop.f32.mrb[90].mxu0 }
0x1acf   : > { %v12363_v29 = vpop.f32.mrb[91].mxu0 }
0x1b05   : > { %v12367_v11 = vpop.f32.mrb[92].mxu0 }
0x1b06   : > { %v12369_v28 = vpop.f32.mrb[93].mxu0 }
0x1b07   : > { %v12371_v62 = vpop.f32.mrb[94].mxu0 }
0x1b08   : > { %v12375_v56 = vpop.f32.mrb[95].mxu0 }
0x1b10   : > { %v8885_v20 = vpop.f32.mrb[96].mxu0 }
0x1b11   : > { %v5035_v9 = vpop.f32.mrb[97].mxu0  ;;  %v5044_v24 = vadd.f32 %v8885_v20, %v12002_v52 }
0x1b12   : > { %v5036_v27 = vadd.f32 %v5035_v9, %v12005_v31  ;;  %v8886_v41 = vpop.f32.mrb[98].mxu0 }
0x1b13   : > { %v5038_v25 = vpop.f32.mrb[99].mxu0  ;;  %v5047_v61 = vadd.f32 %v8886_v41, %v12014_v21  ;;  %v5072_v63 = vsel %vm917_vm7, %v5044_v24, -inf }
0x1b14   : > { %v5039_v43 = vadd.f32 %v5038_v25, %v12008_v17  ;;  %v5066_v7 = vsel %vm917_vm7, %v5036_v27, -inf }
0x1b15   : > { %5067 = vmax.xlane.f32.xlu0 %v5066_v7  ;;  %v5075_v25 = vsel %vm917_vm7, %v5047_v61, -inf }
0x1b16   : > { %v5069_v13 = vsel %vm917_vm7, %v5039_v43, -inf }
0x1b17   : > { %5070 = vmax.xlane.f32.xlu1 %v5069_v13 }
0x1b18   : > { %v8889_v60 = vpop.f32.mrb[100].mxu0 }
0x1b19   : > { %5073 = vmax.xlane.f32.xlu0 %v5072_v63  ;;  %v5051_v12 = vpop.f32.mrb[101].mxu0  ;;  %v5060_v13 = vadd.f32 %v8889_v60, %v12021_v8 }
0x1b1a   : > { %v8890_v9 = vpop.f32.mrb[102].mxu0  ;;  %v5052_v37 = vadd.f32 %v5051_v12, %v12033_v6 }
0x1b1b   : > { %v5054_v44 = vpop.f32.mrb[103].mxu0  ;;  %v12392_v7 = vadd.f32 %v8890_v9, %v12024_v1 }
0x1b1c   : > { %v12388_v20 = vadd.f32 %v5054_v44, %v12027_v57  ;;  %v5078_v63 = vsel %vm917_vm7, %v5052_v37, -inf  ;;  %v5084_v44 = vsel %vm917_vm7, %v5060_v13, -inf }
0x1b1d   : > { %5076 = vmax.xlane.f32.xlu0 %v5075_v25  ;;  %v5087_v12 = vsel %vm917_vm7, %v12392_v7, -inf }
0x1b1e   : > { %v5081_v41 = vsel %vm917_vm7, %v12388_v20, -inf }
0x1b1f   : > { %5082 = vmax.xlane.f32.xlu1 %v5081_v41 }
0x1b21   : > { %5079 = vmax.xlane.f32.xlu0 %v5078_v63 }
0x1b23   : > { %5088 = vmax.xlane.f32.xlu1 %v5087_v12 }
0x1b25   : > { %5085 = vmax.xlane.f32.xlu0 %v5084_v44 }
0x1ba2   : > { %v5068_v25 = vpop.xlane.xlu0 %5067 }
0x1ba3   : > { %v5090_v32 = vsub.f32 %v5036_v27, %v5068_v25 }
0x1ba4   : > { %v5071_v9 = vpop.xlane.xlu1 %5070 }
0x1ba5   : > { %v5098_v22 = vmul.f32 1.442695, %v5090_v32  ;;  %v5091_v48 = vsub.f32 %v5039_v43, %v5071_v9 }
0x1ba6   : > { %v5074_v45 = vpop.xlane.xlu0 %5073 }
0x1ba7   : > { %v5092_v35 = vsub.f32 %v5044_v24, %v5074_v45  ;;  %v5100_v63 = vmul.f32 1.442695, %v5091_v48 }
0x1ba9   : > { %v5102_v41 = vmul.f32 1.442695, %v5092_v35 }
0x1baa   : > { %v5077_v54 = vpop.xlane.xlu0 %5076 }
0x1bab   : > { %9829 = vpow2.f32 %v5102_v41  ;;  %v5093_v60 = vsub.f32 %v5047_v61, %v5077_v54  ;;  %v10073_v61 = vld [vmem:[%s13374_s3 + $0x10] sm:$0xf]  ;;  %v10074_v41 = vld [vmem:[%s13374_s3 + $0x4] sm:$0xf] }
0x1bac   : > { %9831 = vpow2.f32 %v5098_v22  ;;  %v5083_v43 = vpop.xlane.xlu1 %5082 }
0x1bad   : > { %v5104_v14 = vmul.f32 1.442695, %v5093_v60  ;;  %v7948_v60 = vcombine.low %v10074_v41, %v10074_v41 }
0x1bae   : > { %v5080_v4 = vpop.xlane.xlu0 %5079 }
0x1baf   : > { %9833 = vpow2.f32 %v5104_v14  ;;  %v5094_v12 = vsub.f32 %v5052_v37, %v5080_v4 }
0x1bb0   : > { %9835 = vpow2.f32 %v5100_v63  ;;  %v5089_v9 = vpop.xlane.xlu1 %5088 }
0x1bb1   : > { %v5106_v27 = vmul.f32 1.442695, %v5094_v12  ;;  %v5097_v63 = vsub.f32 %v12392_v7, %v5089_v9  ;;  %v5095_v12 = vsub.f32 %v12388_v20, %v5083_v43 }
0x1bb2   : > { %v5086_v40 = vpop.xlane.xlu0 %5085 }
0x1bb3   : > { %v5096_v44 = vsub.f32 %v5060_v13, %v5086_v40  ;;  %v7939_v13 = vcombine.low %v10073_v61, %v10073_v61 }
0x1bb5   : > { %v12401_v8 = vpop.eup %9829  ;;  %v5110_v25 = vmul.f32 1.442695, %v5096_v44  ;;  %v5112_v44 = vmul.f32 1.442695, %v5097_v63 }
0x1bb6   : > { %v5120_v45 = vsel %vm917_vm7, %v12401_v8, 0.0  ;;  %v12405_v35 = vpop.eup %9831 }
0x1bb7   : > { %9837 = vpow2.f32 %v5110_v25  ;;  %5121 = vadd.xlane.f32.xlu0 %v5120_v45  ;;  %v5114_v14 = vsel %vm917_vm7, %v12405_v35, 0.0 }
0x1bb8   : > { %9839 = vpow2.f32 %v5106_v27  ;;  %v5108_v27 = vmul.f32 1.442695, %v5095_v12 }
0x1bb9   : > { %v12407_v54 = vpop.eup %9833  ;;  %9841 = vpow2.f32 %v5112_v44 }
0x1bba   : > { %v5123_v4 = vsel %vm917_vm7, %v12407_v54, 0.0  ;;  %v12413_v40 = vpop.eup %9835  ;;  %9843 = vpow2.f32 %v5108_v27 }
0x1bbb   : > { %5115 = vadd.xlane.f32.xlu0 %v5114_v14  ;;  %5124 = vadd.xlane.f32.xlu1 %v5123_v4  ;;  %v5117_v48 = vsel %vm917_vm7, %v12413_v40, 0.0 }
0x1bbf   : > { %5118 = vadd.xlane.f32.xlu1 %v5117_v48 }
0x1bc1   : > { %v12417_v22 = vpop.eup %9837 }
0x1bc2   : > { %v5132_v37 = vsel %vm917_vm7, %v12417_v22, 0.0  ;;  %v12421_v32 = vpop.eup %9839 }
0x1bc3   : > { %5133 = vadd.xlane.f32.xlu0 %v5132_v37  ;;  %v5126_v24 = vsel %vm917_vm7, %v12421_v32, 0.0  ;;  %v12447_v25 = vpop.eup %9841 }
0x1bc4   : > { %v5135_v20 = vsel %vm917_vm7, %v12447_v25, 0.0  ;;  %v12453_v7 = vpop.eup %9843 }
0x1bc5   : > { %v5129_v45 = vsel %vm917_vm7, %v12453_v7, 0.0 }
0x1bc7   : > { %5127 = vadd.xlane.f32.xlu0 %v5126_v24 }
0x1bd0   : > { %5160 = vrot.lane.b32.xlu1 %v11953_v38, %s10184_s15 }
0x1bd4   : > { %5162 = vrot.lane.b32.xlu1 %v11965_v30, %s10184_s15 }
0x1bdd   : > { %5158 = vrot.lane.b32.xlu0 %v11955_v3, %s10184_s15 }
0x1be1   : > { %5256 = vrot.lane.b32.xlu0 %v7939_v13, %s10185_s10 }
0x1be5   : > { %5383 = vrot.lane.b32.xlu0 %v7948_v60, %s10185_s10 }
0x1be9   : > { %5521 = vrot.lane.b32.xlu0 %v11942_v2, %s10186_s11 }
0x1bed   : > { %5523 = vrot.lane.b32.xlu0 %v11940_v36, %s10186_s11 }
0x1bf1   : > { %5509 = vrot.lane.b32.xlu0 %v11932_v46, %s13445_s16 }
0x1bf5   : > { %5807 = vrot.lane.b32.xlu0 %v11965_v30, %s10186_s11 }
0x1bf8   : > { %5136 = vadd.xlane.f32.xlu1 %v5135_v20 }
0x1bf9   : > { %5515 = vrot.lane.b32.xlu0 %v11940_v36, %s13445_s16 }
0x1bfc   : > { %5130 = vadd.xlane.f32.xlu1 %v5129_v45 }
0x1bfd   : > { %5795 = vrot.lane.b32.xlu0 %v11955_v3, %s13445_s16 }
0x1c01   : > { %5799 = vrot.lane.b32.xlu0 %v11965_v30, %s13445_s16 }
0x1c0d   : > { %5164 = vrot.lane.b32.xlu1 %v11963_v0, %s10184_s15  ;;  %s13459_s15 = smov 48  }
0x1c11   : > { %5517 = vrot.lane.b32.xlu1 %v11932_v46, %s10186_s11 }
0x1c15   : > { %5519 = vrot.lane.b32.xlu1 %v11930_v39, %s10186_s11 }
0x1c19   : > { %5803 = vrot.lane.b32.xlu1 %v11955_v3, %s10186_s11 }
0x1c1d   : > { %5805 = vrot.lane.b32.xlu1 %v11953_v38, %s10186_s11 }
0x1c21   : > { %5511 = vrot.lane.b32.xlu1 %v11930_v39, %s13445_s16 }
0x1c25   : > { %5513 = vrot.lane.b32.xlu1 %v11942_v2, %s13445_s16 }
0x1c29   : > { %5809 = vrot.lane.b32.xlu1 %v11963_v0, %s10186_s11  ;;  %s10192_s11 = smov [#allocation5]  }
0x1c2a   : > { %s10111_s28 = sshll.u32 %s10192_s11, 4  ;;  %s10112_s28 = int_to_ptr.vmem [resolvable:$false] %s10111_s28 }
0x1c2d   : > { %5797 = vrot.lane.b32.xlu1 %v11953_v38, %s13445_s16 }
0x1c31   : > { %5801 = vrot.lane.b32.xlu1 %v11963_v0, %s13445_s16  ;;  %s13318_s16 = scalar_lea.hbm %s13376_s5, %s8036_s26 }
0x1c44   : > { %v5122_v14 = vpop.xlane.xlu0 %5121 }
0x1c48   : > { %v5125_v4 = vpop.xlane.xlu1 %5124  ;;  %v5116_v48 = vpop.xlane.xlu0 %5115 }
0x1c49   : > { %9845 = vrcp.f32 %v5116_v48 }
0x1c4c   : > { %v5119_v37 = vpop.xlane.xlu1 %5118 }
0x1c4d   : > { %9847 = vrcp.f32 %v5119_v37 }
0x1c4e   : > { %9849 = vrcp.f32 %v5125_v4 }
0x1c4f   : > { %9851 = vrcp.f32 %v5122_v14 }
0x1c50   : > { %v5134_v24 = vpop.xlane.xlu0 %5133  ;;  %v5161_v9 = vpop.permute.xlu1 %5160 }
0x1c53   : > { %v9846_v61 = vpop.eup %9845 }
0x1c54   : > { %v5128_v43 = vpop.xlane.xlu0 %5127  ;;  %v5146_v60 = vmul.f32 %v9846_v61, %v12405_v35  ;;  %v5163_v27 = vpop.permute.xlu1 %5162 }
0x1c57   : > { %v9848_v13 = vpop.eup %9847 }
0x1c58   : > { %v5159_v41 = vpop.permute.xlu0 %5158  ;;  %v5147_v63 = vmul.f32 %v9848_v13, %v12413_v40  ;;  %v9850_v40 = vpop.eup %9849 }
0x1c59   : > { %8891 = vmatprep.subr.bf16.mxu1 %v5159_v41  ;;  %v9852_v13 = vpop.eup %9851 }
0x1c5a   : > { %8892 = vmatpush3.bf16.msra.mxu1 %v5159_v41  ;;  %v5154_v12 = vpack.c.bf16 %v5147_v63, %v5146_v60  ;;  %v5148_v60 = vmul.f32 %v9852_v13, %v12401_v8 }
0x1c5b   : > { %8893 = vmatprep.subr.bf16.mxu1 %v5161_v9 }
0x1c5c   : > { %8899 = vmatprep.mubr.msk.bf16.mxu1 %vm917_vm7, %v5154_v12  ;;  %v5257_v44 = vpop.permute.xlu0 %5256 }
0x1c5d   : > { %v5283_v14 = vsel %vm1996_vm10, %v5257_v44, 0 }
0x1c5e   : > { %8894 = vmatpush3.bf16.msra.mxu1 %v5161_v9  ;;  %v5149_v9 = vmul.f32 %v9850_v40, %v12407_v54 }
0x1c5f   : > { %8895 = vmatprep.subr.bf16.mxu1 %v5163_v27 }
0x1c60   : > { %v5384_v20 = vpop.permute.xlu0 %5383  ;;  %v5155_v63 = vpack.c.bf16 %v5149_v9, %v5148_v60 }
0x1c62   : > { %8896 = vmatpush3.bf16.msra.mxu1 %v5163_v27 }
0x1c64   : > { %v5522_v45 = vpop.permute.xlu0 %5521 }
0x1c68   : > { %v5524_v48 = vpop.permute.xlu0 %5523 }
0x1c6c   : > { %v5510_v37 = vpop.permute.xlu0 %5509 }
0x1c6d   : > { %8951 = vmatprep.mubr.msk.bf16.mxu0 %vm827_vm1, %v5510_v37 }
0x1c85   : > { %v5137_v35 = vpop.xlane.xlu1 %5136 }
0x1c86   : > { %9853 = vrcp.f32 %v5137_v35 }
0x1c87   : > { %9855 = vrcp.f32 %v5128_v43 }
0x1c88   : > { %9857 = vrcp.f32 %v5134_v24 }
0x1c89   : > { %v5131_v61 = vpop.xlane.xlu1 %5130 }
0x1c8a   : > { %9859 = vrcp.f32 %v5131_v61 }
0x1c8d   : > { %v5165_v41 = vpop.permute.xlu1 %5164 }
0x1c8e   : > { %8897 = vmatprep.subr.bf16.mxu1 %v5165_v41 }
0x1c8f   : > { %8898 = vmatpush3.bf16.msra.mxu1 %v5165_v41  ;;  %v13448_v41 = vpack.c.bf16 %v12375_v56, %v12369_v28  ;;  %v5808_v56 = vpop.permute.xlu0 %5807 }
0x1c90   : > { %9307 = vmatprep.subr.msk.bf16.mxu1 %vm1996_vm10, %v5257_v44  ;;  %v9854_v4 = vpop.eup %9853 }
0x1c91   : > { %v5518_v12 = vpop.permute.xlu1 %5517  ;;  %v9856_v43 = vpop.eup %9855  ;;  %v5153_v27 = vmul.f32 %v9854_v4, %v12447_v25  ;;  %v13446_v25 = vpack.c.bf16 %v12363_v29, %v12357_v34  ;;  %v5544_v34 = vsel %vm827_vm1, %v5522_v45, 0 }
0x1c92   : > { %8900 = vmatmul.mubr.msk.bf16.vlgmr.msra.gmra.mrb[128].mxu1 %vm917_vm7, %v5155_v63  ;;  %9309 = vmatprep.subr.msk.bf16.mxu0 %vm827_vm1, %v5518_v12  ;;  %v5538_v24 = vsel %vm827_vm1, %v5518_v12, 0  ;;  %v9858_v54 = vpop.eup %9857  ;;  %v5150_v44 = vmul.f32 %v9856_v43, %v12421_v32  ;;  %v5410_v32 = vsel %vm1996_vm10, %v5384_v20, 0 }
0x1c93   : > { %8944 = vmatpush3.bf16.xpose.msra.mxu0 %v5538_v24  ;;  %8908 = vmatpush3.bf16.msra.mxu1 %v5283_v14  ;;  %v5152_v40 = vmul.f32 %v9858_v54, %v12417_v22  ;;  %v13447_v22 = vpack.c.bf16 %v12359_v50, %v12355_v51  ;;  %v5547_v51 = vsel %vm827_vm1, %v5524_v48, 0 }
0x1c94   : > { %v9860_v8 = vpop.eup %9859  ;;  %9308 = vmatprep.subr.msk.bf16.mxu1 %vm1996_vm10, %v5384_v20  ;;  %v13449_v20 = vpack.c.bf16 %v12371_v62, %v12367_v11 }
0x1c95   : > { %v5520_v37 = vpop.permute.xlu1 %5519  ;;  %v5151_v35 = vmul.f32 %v9860_v8, %v12453_v7  ;;  %v5157_v13 = vpack.c.bf16 %v5153_v27, %v5152_v40  ;;  %v13450_v27 = vpack.c.bf16 %v12209_v58, %v12203_v42  ;;  %v13453_v42 = vpack.c.bf16 %v12221_v26, %v12216_v47 }
0x1c96   : > { %9310 = vmatprep.subr.msk.bf16.mxu0 %vm827_vm1, %v5520_v37  ;;  %v5541_v9 = vsel %vm827_vm1, %v5520_v37, 0  ;;  %v13451_v37 = vpack.c.bf16 %v12205_v15, %v12201_v18  ;;  %v13454_v18 = vpack.c.bf16 %v12255_v19, %v12249_v23  ;;  %v13455_v23 = vpack.c.bf16 %v12251_v16, %v12247_v53 }
0x1c97   : > { %v5156_v61 = vpack.c.bf16 %v5151_v35, %v5150_v44  ;;  %v13452_v35 = vpack.c.bf16 %v12225_v55, %v12219_v59 }
0x1c99   : > { %8903 = vmatprep.mubr.msk.bf16.mxu1 %vm917_vm7, %v5156_v61  ;;  %v5804_v7 = vpop.permute.xlu1 %5803 }
0x1c9a   : > { %8904 = vmatmul.mubr.msk.bf16.gmra.mrb[132].mxu1 %vm917_vm7, %v5157_v13  ;;  %v5824_v44 = vsel %vm827_vm1, %v5804_v7, 0 }
0x1c9b   : > { %8909 = vmatprep.mubr.msk.bf16.mxu1 %vm827_vm1, %v13446_v25  ;;  %8946 = vmatpush3.bf16.xpose.msra.mxu0 %v5541_v9  ;;  %v5830_v9 = vsel %vm827_vm1, %v5808_v56, 0 }
0x1c9c   : > { %9311 = vmatprep.subr.msk.bf16.mxu0 %vm827_vm1, %v5522_v45  ;;  %v5516_v45 = vpop.permute.xlu0 %5515 }
0x1c9d   : > { %v5806_v29 = vpop.permute.xlu1 %5805 }
0x1c9e   : > { %v5827_v58 = vsel %vm827_vm1, %v5806_v29, 0 }
0x1ca1   : > { %v5512_v50 = vpop.permute.xlu1 %5511 }
0x1ca2   : > { %8910 = vmatmul.mubr.msk.bf16.vlgmr.msra.gmra.mrb[136].mxu1 %vm827_vm1, %v13447_v22 }
0x1ca3   : > { %8926 = vmatpush3.bf16.msra.mxu1 %v5410_v32  ;;  %8913 = vmatprep.mubr.msk.bf16.mxu1 %vm827_vm1, %v13448_v41 }
0x1ca4   : > { %8948 = vmatpush3.bf16.xpose.msra.mxu0 %v5544_v34  ;;  %9313 = vmatprep.subr.msk.bf16.mxu1 %vm827_vm1, %v5804_v7  ;;  %v13456_v7 = vpack.c.bf16 %v12267_v5, %v12261_v10  ;;  %v13457_v5 = vpack.c.bf16 %v12263_v33, %v12259_v49 }
0x1ca5   : > { %9312 = vmatprep.subr.msk.bf16.mxu0 %vm827_vm1, %v5524_v48  ;;  %v5514_v28 = vpop.permute.xlu1 %5513 }
0x1ca9   : > { %v5810_v25 = vpop.permute.xlu1 %5809 }
0x1caa   : > { %8914 = vmatmul.mubr.msk.bf16.gmra.mrb[140].mxu1 %vm827_vm1, %v13449_v20 }
0x1cac   : > { %8950 = vmatpush3.bf16.xpose.msra.mxu0 %v5547_v51 }
0x1cb3   : > { %8952 = vmatmul.mubr.msk.bf16.vlgmr.msra.gmra.mrb[104].mxu0 %vm827_vm1, %v5512_v50  ;;  %v5833_v50 = vsel %vm827_vm1, %v5810_v25, 0 }
0x1cb4   : > { %8955 = vmatprep.mubr.msk.bf16.mxu0 %vm827_vm1, %v5514_v28 }
0x1cbb   : > { %8956 = vmatmul.mubr.msk.bf16.gmra.mrb[108].mxu0 %vm827_vm1, %v5516_v45  ;;  %v13458_v45 = vld [vmem:[#allocation24_spill] sm:$0xff] }
0x1d65   : > { %v8901_v60 = vpop.f32.mrb[128].mxu1 }
0x1d66   : > { %v5216_v63 = vpop.f32.mrb[129].mxu1 }
0x1d67   : > { %v8902_v14 = vpop.f32.mrb[130].mxu1 }
0x1d68   : > { %v5252_v4 = vpack.c.bf16 %v8902_v14, %v8901_v60  ;;  %v5219_v11 = vpop.f32.mrb[131].mxu1  ;;  %v5798_v14 = vpop.permute.xlu1 %5797 }
0x1d69   : > { %v5251_v62 = vpack.c.bf16 %v5219_v11, %v5216_v63 }
0x1d6b   : > { %8917 = vmatprep.mubr.msk.bf16.mxu1 %vm827_vm1, %v5251_v62 }
0x1d6c   : > { %8918 = vmatmul.mubr.msk.bf16.gmra.mrb[144].mxu1 %vm827_vm1, %v5252_v4  ;;  %v5802_v11 = vpop.permute.xlu1 %5801 }
0x1d6d   : > { %v8905_v48 = vpop.f32.mrb[132].mxu1 }
0x1d6e   : > { %v5232_v12 = vpop.f32.mrb[133].mxu1 }
0x1d6f   : > { %v8906_v43 = vpop.f32.mrb[134].mxu1 }
0x1d70   : > { %v5254_v24 = vpack.c.bf16 %v8906_v43, %v8905_v48  ;;  %v5235_v54 = vpop.f32.mrb[135].mxu1 }
0x1d71   : > { %v5253_v8 = vpack.c.bf16 %v5235_v54, %v5232_v12 }
0x1d73   : > { %8921 = vmatprep.mubr.msk.bf16.mxu1 %vm827_vm1, %v5253_v8 }
0x1d74   : > { %8922 = vmatmul.mubr.msk.bf16.gmra.mrb[148].mxu1 %vm827_vm1, %v5254_v24 }
0x1d75   : > { %8927 = vmatprep.mubr.msk.bf16.mxu1 %vm827_vm1, %v13450_v27 }
0x1d7c   : > { %8928 = vmatmul.mubr.msk.bf16.vlgmr.msra.gmra.mrb[136].mxu1 %vm827_vm1, %v13451_v37 }
0x1d7d   : > { %8976 = vmatpush3.bf16.xpose.msra.mxu1 %v5824_v44  ;;  %8931 = vmatprep.mubr.msk.bf16.mxu1 %vm827_vm1, %v13452_v35 }
0x1d7e   : > { %9314 = vmatprep.subr.msk.bf16.mxu1 %vm827_vm1, %v5806_v29 }
0x1d84   : > { %8932 = vmatmul.mubr.msk.bf16.gmra.mrb[140].mxu1 %vm827_vm1, %v13453_v42 }
0x1d85   : > { %8978 = vmatpush3.bf16.xpose.msra.mxu1 %v5827_v58  ;;  %8935 = vmatprep.mubr.msk.bf16.mxu1 %vm827_vm1, %v13454_v18 }
0x1d86   : > { %v8953_v15 = vpop.f32.mrb[104].mxu0  ;;  %9315 = vmatprep.subr.msk.bf16.mxu1 %vm827_vm1, %v5808_v56  ;;  %v5796_v56 = vpop.permute.xlu0 %5795 }
0x1d87   : > { %v5583_v59 = vpop.f32.mrb[105].mxu0  ;;  %v5592_v47 = vadd.f32 %v8953_v15, %v12002_v52 }
0x1d88   : > { %v5584_v55 = vadd.f32 %v5583_v59, %v12005_v31  ;;  %v8954_v40 = vpop.f32.mrb[106].mxu0 }
0x1d89   : > { %v5586_v61 = vpop.f32.mrb[107].mxu0  ;;  %v5595_v32 = vadd.f32 %v8954_v40, %v12014_v21  ;;  %v5620_v53 = vsel %vm917_vm7, %v5592_v47, -inf }
0x1d8a   : > { %v5587_v26 = vadd.f32 %v5586_v61, %v12008_v17  ;;  %v5614_v13 = vsel %vm917_vm7, %v5584_v55, -inf  ;;  %v5800_v4 = vpop.permute.xlu0 %5799 }
0x1d8b   : > { %5615 = vmax.xlane.f32.xlu0 %v5614_v13  ;;  %v5623_v51 = vsel %vm917_vm7, %v5595_v32, -inf }
0x1d8c   : > { %8936 = vmatmul.mubr.msk.bf16.gmra.mrb[144].mxu1 %vm827_vm1, %v13455_v23  ;;  %v5617_v19 = vsel %vm917_vm7, %v5587_v26, -inf }
0x1d8d   : > { %5618 = vmax.xlane.f32.xlu1 %v5617_v19  ;;  %8980 = vmatpush3.bf16.xpose.msra.mxu1 %v5830_v9 }
0x1d8e   : > { %8939 = vmatprep.mubr.msk.bf16.mxu1 %vm827_vm1, %v13456_v7  ;;  %v8957_v22 = vpop.f32.mrb[108].mxu0  ;;  %9316 = vmatprep.subr.msk.bf16.mxu1 %vm827_vm1, %v5810_v25 }
0x1d8f   : > { %5621 = vmax.xlane.f32.xlu0 %v5620_v53  ;;  %v5599_v16 = vpop.f32.mrb[109].mxu0  ;;  %v12586_v60 = vadd.f32 %v8957_v22, %v13458_v45 }
0x1d90   : > { %v8958_v41 = vpop.f32.mrb[110].mxu0  ;;  %v5600_v29 = vadd.f32 %v5599_v16, %v12033_v6 }
0x1d91   : > { %v5602_v34 = vpop.f32.mrb[111].mxu0  ;;  %v12577_v10 = vadd.f32 %v8958_v41, %v12024_v1  ;;  %v5632_v33 = vsel %vm917_vm7, %v12586_v60, -inf }
0x1d92   : > { %v5603_v20 = vadd.f32 %v5602_v34, %v12027_v57  ;;  %v5626_v63 = vsel %vm917_vm7, %v5600_v29, -inf }
0x1d93   : > { %5624 = vmax.xlane.f32.xlu0 %v5623_v51  ;;  %v5635_v49 = vsel %vm917_vm7, %v12577_v10, -inf }
0x1d94   : > { %8940 = vmatmul.mubr.msk.bf16.gmra.mrb[148].mxu1 %vm827_vm1, %v13457_v5  ;;  %v5629_v28 = vsel %vm917_vm7, %v5603_v20, -inf }
0x1d95   : > { %8982 = vmatpush3.bf16.xpose.msra.mxu1 %v5833_v50  ;;  %5630 = vmax.xlane.f32.xlu1 %v5629_v28 }
0x1d96   : > { %8983 = vmatprep.mubr.msk.bf16.mxu1 %vm827_vm1, %v5796_v56 }
0x1d97   : > { %5627 = vmax.xlane.f32.xlu0 %v5626_v63 }
0x1d99   : > { %5636 = vmax.xlane.f32.xlu1 %v5635_v49 }
0x1d9b   : > { %5633 = vmax.xlane.f32.xlu0 %v5632_v33 }
0x1d9c   : > { %8984 = vmatmul.mubr.msk.bf16.vlgmr.msra.gmra.mrb[152].mxu1 %vm827_vm1, %v5798_v14 }
0x1d9d   : > { %8987 = vmatprep.mubr.msk.bf16.mxu1 %vm827_vm1, %v5800_v4 }
0x1da4   : > { %8988 = vmatmul.mubr.msk.bf16.gmra.mrb[156].mxu1 %vm827_vm1, %v5802_v11 }
0x1e18   : > { %v5616_v62 = vpop.xlane.xlu0 %5615 }
0x1e19   : > { %v5638_v48 = vsub.f32 %v5584_v55, %v5616_v62 }
0x1e1a   : > { %v5619_v12 = vpop.xlane.xlu1 %5618 }
0x1e1b   : > { %v5646_v54 = vmul.f32 1.442695, %v5638_v48  ;;  %v5639_v8 = vsub.f32 %v5587_v26, %v5619_v12 }
0x1e1c   : > { %v5622_v43 = vpop.xlane.xlu0 %5621 }
0x1e1d   : > { %v5640_v24 = vsub.f32 %v5592_v47, %v5622_v43  ;;  %v5648_v42 = vmul.f32 1.442695, %v5639_v8 }
0x1e1f   : > { %v5650_v27 = vmul.f32 1.442695, %v5640_v24 }
0x1e20   : > { %v5625_v37 = vpop.xlane.xlu0 %5624 }
0x1e21   : > { %9861 = vpow2.f32 %v5650_v27  ;;  %v5641_v44 = vsub.f32 %v5595_v32, %v5625_v37 }
0x1e22   : > { %v5631_v35 = vpop.xlane.xlu1 %5630  ;;  %9863 = vpow2.f32 %v5646_v54 }
0x1e23   : > { %v5652_v58 = vmul.f32 1.442695, %v5641_v44  ;;  %v5643_v18 = vsub.f32 %v5603_v20, %v5631_v35 }
0x1e24   : > { %v5628_v15 = vpop.xlane.xlu0 %5627 }
0x1e25   : > { %9865 = vpow2.f32 %v5652_v58  ;;  %v5642_v59 = vsub.f32 %v5600_v29, %v5628_v15  ;;  %v5656_v40 = vmul.f32 1.442695, %v5643_v18 }
0x1e26   : > { %9867 = vpow2.f32 %v5648_v42  ;;  %v5637_v16 = vpop.xlane.xlu1 %5636 }
0x1e27   : > { %v5654_v55 = vmul.f32 1.442695, %v5642_v59  ;;  %v5645_v41 = vsub.f32 %v12577_v10, %v5637_v16 }
0x1e28   : > { %v5634_v34 = vpop.xlane.xlu0 %5633 }
0x1e29   : > { %9869 = vpow2.f32 %v5654_v55  ;;  %v5660_v29 = vmul.f32 1.442695, %v5645_v41  ;;  %v5644_v20 = vsub.f32 %v12586_v60, %v5634_v34 }
0x1e2a   : > { %9871 = vpow2.f32 %v5656_v40 }
0x1e2b   : > { %v12597_v61 = vpop.eup %9861  ;;  %9873 = vpow2.f32 %v5660_v29  ;;  %v5658_v28 = vmul.f32 1.442695, %v5644_v20 }
0x1e2c   : > { %v5668_v47 = vsel %vm917_vm7, %v12597_v61, 0.0  ;;  %v12601_v26 = vpop.eup %9863 }
0x1e2d   : > { %5669 = vadd.xlane.f32.xlu0 %v5668_v47  ;;  %v5662_v23 = vsel %vm917_vm7, %v12601_v26, 0.0  ;;  %9875 = vpow2.f32 %v5658_v28 }
0x1e2f   : > { %v12603_v13 = vpop.eup %9865 }
0x1e30   : > { %v5671_v19 = vsel %vm917_vm7, %v12603_v13, 0.0  ;;  %v12609_v9 = vpop.eup %9867 }
0x1e31   : > { %5663 = vadd.xlane.f32.xlu0 %v5662_v23  ;;  %5672 = vadd.xlane.f32.xlu1 %v5671_v19  ;;  %v5665_v32 = vsel %vm917_vm7, %v12609_v9, 0.0 }
0x1e33   : > { %v12611_v25 = vpop.eup %9869 }
0x1e34   : > { %v5674_v7 = vsel %vm917_vm7, %v12611_v25, 0.0  ;;  %v12617_v22 = vpop.eup %9871 }
0x1e35   : > { %5666 = vadd.xlane.f32.xlu1 %v5665_v32  ;;  %5675 = vadd.xlane.f32.xlu0 %v5674_v7  ;;  %v5677_v53 = vsel %vm917_vm7, %v12617_v22, 0.0  ;;  %v12641_v43 = vpop.eup %9873 }
0x1e36   : > { %v5683_v37 = vsel %vm917_vm7, %v12641_v43, 0.0 }
0x1e37   : > { %v12648_v35 = vpop.eup %9875 }
0x1e38   : > { %v5680_v42 = vsel %vm917_vm7, %v12648_v35, 0.0 }
0x1e39   : > { %5678 = vadd.xlane.f32.xlu1 %v5677_v53 }
0x1e6f   : > { %v8985_v51 = vpop.f32.mrb[152].mxu1 }
0x1e70   : > { %v5878_v5 = vadd.f32 %v8985_v51, %v12002_v52  ;;  %v5869_v50 = vpop.f32.mrb[153].mxu1 }
0x1e71   : > { %v8986_v56 = vpop.f32.mrb[154].mxu1  ;;  %v12625_v63 = vadd.f32 %v5869_v50, %v12005_v31 }
0x1e72   : > { %v12628_v49 = vadd.f32 %v8986_v56, %v12014_v21  ;;  %v5872_v33 = vpop.f32.mrb[155].mxu1  ;;  %v5906_v10 = vsel %vm917_vm7, %v5878_v5, -inf }
0x1e73   : > { %5907 = vmax.xlane.f32.xlu0 %v5906_v10  ;;  %v12632_v14 = vadd.f32 %v5872_v33, %v12008_v17  ;;  %v5900_v4 = vsel %vm917_vm7, %v12625_v63, -inf }
0x1e74   : > { %v5909_v60 = vsel %vm917_vm7, %v12628_v49, -inf }
0x1e75   : > { %5910 = vmax.xlane.f32.xlu1 %v5909_v60  ;;  %v5903_v12 = vsel %vm917_vm7, %v12632_v14, -inf }
0x1e77   : > { %v8989_v11 = vpop.f32.mrb[156].mxu1  ;;  %5901 = vmax.xlane.f32.xlu0 %v5900_v4 }
0x1e78   : > { %v5894_v62 = vadd.f32 %v8989_v11, %v13458_v45  ;;  %v5885_v48 = vpop.f32.mrb[157].mxu1 }
0x1e79   : > { %v8990_v24 = vpop.f32.mrb[158].mxu1  ;;  %5904 = vmax.xlane.f32.xlu1 %v5903_v12  ;;  %v5886_v54 = vadd.f32 %v5885_v48, %v12033_v6 }
0x1e7a   : > { %v5888_v8 = vpop.f32.mrb[159].mxu1  ;;  %v5918_v27 = vsel %vm917_vm7, %v5894_v62, -inf  ;;  %v12661_v58 = vadd.f32 %v8990_v24, %v12024_v1 }
0x1e7b   : > { %5919 = vmax.xlane.f32.xlu0 %v5918_v27  ;;  %v5912_v44 = vsel %vm917_vm7, %v5886_v54, -inf  ;;  %v12664_v18 = vadd.f32 %v5888_v8, %v12027_v57 }
0x1e7c   : > { %v5921_v15 = vsel %vm917_vm7, %v12661_v58, -inf }
0x1e7d   : > { %5684 = vadd.xlane.f32.xlu1 %v5683_v37  ;;  %v5915_v59 = vsel %vm917_vm7, %v12664_v18, -inf }
0x1e7f   : > { %5913 = vmax.xlane.f32.xlu0 %v5912_v44 }
0x1e83   : > { %5681 = vadd.xlane.f32.xlu0 %v5680_v42 }
0x1e8e   : > { %5708 = vrot.lane.b32.xlu1 %v11930_v39, %s13459_s15 }
0x1e99   : > { %5706 = vrot.lane.b32.xlu0 %v11932_v46, %s13459_s15 }
0x1e9d   : > { %5710 = vrot.lane.b32.xlu0 %v11942_v2, %s13459_s15 }
0x1ea1   : > { %5712 = vrot.lane.b32.xlu0 %v11940_v36, %s13459_s15 }
0x1eb2   : > { %5922 = vmax.xlane.f32.xlu1 %v5921_v15 }
0x1eb6   : > { %5916 = vmax.xlane.f32.xlu1 %v5915_v59 }
0x1eba   : > { %v5670_v40 = vpop.xlane.xlu0 %5669 }
0x1ebe   : > { %v5673_v55 = vpop.xlane.xlu1 %5672  ;;  %v5664_v47 = vpop.xlane.xlu0 %5663 }
0x1ebf   : > { %9877 = vrcp.f32 %v5664_v47 }
0x1ec2   : > { %v5667_v23 = vpop.xlane.xlu1 %5666  ;;  %v5676_v41 = vpop.xlane.xlu0 %5675 }
0x1ec3   : > { %9879 = vrcp.f32 %v5667_v23 }
0x1ec6   : > { %v5679_v34 = vpop.xlane.xlu1 %5678 }
0x1ec7   : > { %5992 = vrot.lane.b32.xlu1 %v11955_v3, %s13459_s15 }
0x1ec9   : > { %v9878_v19 = vpop.eup %9877 }
0x1eca   : > { %v5694_v7 = vmul.f32 %v9878_v19, %v12601_v26 }
0x1ecb   : > { %5994 = vrot.lane.b32.xlu1 %v11953_v38, %s13459_s15 }
0x1ecd   : > { %v9880_v32 = vpop.eup %9879 }
0x1ece   : > { %v5695_v53 = vmul.f32 %v9880_v32, %v12609_v9 }
0x1ed0   : > { %v5702_v16 = vpack.c.bf16 %v5695_v53, %v5694_v7 }
0x1ed2   : > { %8967 = vmatprep.mubr.msk.bf16.mxu0 %vm917_vm7, %v5702_v16 }
0x1f00   : > { %v5908_v29 = vpop.xlane.xlu0 %5907 }
0x1f01   : > { %v5926_v20 = vsub.f32 %v5878_v5, %v5908_v29 }
0x1f02   : > { %v5911_v51 = vpop.xlane.xlu1 %5910 }
0x1f03   : > { %v5936_v50 = vmul.f32 1.442695, %v5926_v20  ;;  %v5927_v28 = vsub.f32 %v12628_v49, %v5911_v51 }
0x1f04   : > { %v5902_v56 = vpop.xlane.xlu0 %5901 }
0x1f05   : > { %9881 = vpow2.f32 %v5936_v50  ;;  %v5924_v33 = vsub.f32 %v12625_v63, %v5902_v56  ;;  %v5938_v60 = vmul.f32 1.442695, %v5927_v28 }
0x1f06   : > { %v5905_v10 = vpop.xlane.xlu1 %5904 }
0x1f07   : > { %v5932_v26 = vmul.f32 1.442695, %v5924_v33  ;;  %v5925_v9 = vsub.f32 %v12632_v14, %v5905_v10 }
0x1f08   : > { %v5920_v4 = vpop.xlane.xlu0 %5919 }
0x1f09   : > { %9883 = vpow2.f32 %v5932_v26  ;;  %v5930_v11 = vsub.f32 %v5894_v62, %v5920_v4  ;;  %v5934_v48 = vmul.f32 1.442695, %v5925_v9 }
0x1f0a   : > { %9885 = vpow2.f32 %v5938_v60  ;;  %v5685_v27 = vpop.xlane.xlu1 %5684 }
0x1f0b   : > { %v5944_v12 = vmul.f32 1.442695, %v5930_v11 }
0x1f0c   : > { %v5914_v5 = vpop.xlane.xlu0 %5913 }
0x1f0d   : > { %9887 = vpow2.f32 %v5944_v12  ;;  %v5928_v24 = vsub.f32 %v5886_v54, %v5914_v5 }
0x1f0e   : > { %9889 = vpow2.f32 %v5934_v48  ;;  %v5709_v42 = vpop.permute.xlu1 %5708 }
0x1f0f   : > { %v12680_v8 = vpop.eup %9881  ;;  %v5940_v49 = vmul.f32 1.442695, %v5928_v24 }
0x1f10   : > { %v5682_v63 = vpop.xlane.xlu0 %5681  ;;  %v5954_v37 = vsel %vm917_vm7, %v12680_v8, 0.0 }
0x1f11   : > { %9891 = vpow2.f32 %v5940_v49  ;;  %5955 = vadd.xlane.f32.xlu1 %v5954_v37 }
0x1f12   : > { %9893 = vrcp.f32 %v5673_v55 }
0x1f13   : > { %v12684_v14 = vpop.eup %9883  ;;  %9895 = vrcp.f32 %v5679_v34 }
0x1f14   : > { %9897 = vrcp.f32 %v5670_v40  ;;  %v5707_v62 = vpop.permute.xlu0 %5706  ;;  %v5948_v54 = vsel %vm917_vm7, %v12684_v14, 0.0  ;;  %v12688_v44 = vpop.eup %9885 }
0x1f15   : > { %9899 = vrcp.f32 %v5676_v41  ;;  %5949 = vadd.xlane.f32.xlu1 %v5948_v54  ;;  %8959 = vmatprep.subr.bf16.mxu0 %v5707_v62  ;;  %v5957_v55 = vsel %vm917_vm7, %v12688_v44, 0.0 }
0x1f16   : > { %8960 = vmatpush3.bf16.msra.mxu0 %v5707_v62  ;;  %9901 = vrcp.f32 %v5682_v63 }
0x1f17   : > { %v12690_v15 = vpop.eup %9887  ;;  %8961 = vmatprep.subr.bf16.mxu0 %v5709_v42  ;;  %9903 = vrcp.f32 %v5685_v27 }
0x1f18   : > { %v5711_v59 = vpop.permute.xlu0 %5710  ;;  %v5966_v40 = vsel %vm917_vm7, %v12690_v15, 0.0  ;;  %v12696_v47 = vpop.eup %9889 }
0x1f19   : > { %5958 = vadd.xlane.f32.xlu1 %v5957_v55  ;;  %5967 = vadd.xlane.f32.xlu0 %v5966_v40  ;;  %v5951_v32 = vsel %vm917_vm7, %v12696_v47, 0.0 }
0x1f1a   : > { %8962 = vmatpush3.bf16.msra.mxu0 %v5709_v42 }
0x1f1b   : > { %v12698_v23 = vpop.eup %9891  ;;  %8963 = vmatprep.subr.bf16.mxu0 %v5711_v59 }
0x1f1c   : > { %v9894_v19 = vpop.eup %9893  ;;  %v5960_v7 = vsel %vm917_vm7, %v12698_v23, 0.0  ;;  %v5713_v41 = vpop.permute.xlu0 %5712 }
0x1f1d   : > { %v9896_v53 = vpop.eup %9895  ;;  %5952 = vadd.xlane.f32.xlu1 %v5951_v32  ;;  %5961 = vadd.xlane.f32.xlu0 %v5960_v7  ;;  %v5697_v29 = vmul.f32 %v9894_v19, %v12603_v13 }
0x1f1e   : > { %v9898_v16 = vpop.eup %9897  ;;  %8964 = vmatpush3.bf16.msra.mxu0 %v5711_v59  ;;  %v5699_v20 = vmul.f32 %v9896_v53, %v12617_v22 }
0x1f1f   : > { %v9900_v34 = vpop.eup %9899  ;;  %8965 = vmatprep.subr.bf16.mxu0 %v5713_v41  ;;  %v5696_v51 = vmul.f32 %v9898_v16, %v12597_v61 }
0x1f20   : > { %v5698_v50 = vmul.f32 %v9900_v34, %v12611_v25  ;;  %v9902_v56 = vpop.eup %9901 }
0x1f21   : > { %v5703_v28 = vpack.c.bf16 %v5697_v29, %v5696_v51  ;;  %v9904_v10 = vpop.eup %9903  ;;  %v5700_v60 = vmul.f32 %v9902_v56, %v12648_v35 }
0x1f22   : > { %8966 = vmatpush3.bf16.msra.mxu0 %v5713_v41  ;;  %v5704_v33 = vpack.c.bf16 %v5699_v20, %v5698_v50  ;;  %v5701_v13 = vmul.f32 %v9904_v10, %v12641_v43 }
0x1f24   : > { %v5705_v26 = vpack.c.bf16 %v5701_v13, %v5700_v60 }
0x1f25   : > { %8968 = vmatmul.mubr.msk.bf16.vlgmr.msra.gmra.mrb[112].mxu0 %vm917_vm7, %v5703_v28 }
0x1f26   : > { %8971 = vmatprep.mubr.msk.bf16.mxu0 %vm917_vm7, %v5704_v33 }
0x1f2d   : > { %8972 = vmatmul.mubr.msk.bf16.gmra.mrb[116].mxu0 %vm917_vm7, %v5705_v26 }
0x1f3f   : > { %v5923_v22 = vpop.xlane.xlu1 %5922 }
0x1f40   : > { %v5931_v61 = vsub.f32 %v12661_v58, %v5923_v22 }
0x1f42   : > { %v5946_v9 = vmul.f32 1.442695, %v5931_v61 }
0x1f43   : > { %v5917_v25 = vpop.xlane.xlu1 %5916 }
0x1f44   : > { %9905 = vpow2.f32 %v5946_v9  ;;  %v5929_v4 = vsub.f32 %v12664_v18, %v5917_v25  ;;  %v10075_v18 = vld [vmem:[%s13374_s3 + $0x1c] sm:$0xf] }
0x1f45   : > { %v7973_v24 = vcombine.low %v10075_v18, %v10075_v18 }
0x1f46   : > { %v5942_v11 = vmul.f32 1.442695, %v5929_v4 }
0x1f47   : > { %v5993_v48 = vpop.permute.xlu1 %5992 }
0x1f48   : > { %9907 = vpow2.f32 %v5942_v11  ;;  %8991 = vmatprep.subr.bf16.mxu0 %v5993_v48 }
0x1f49   : > { %8992 = vmatpush3.bf16.msra.mxu0 %v5993_v48 }
0x1f4b   : > { %v5995_v12 = vpop.permute.xlu1 %5994 }
0x1f4c   : > { %8993 = vmatprep.subr.bf16.mxu0 %v5995_v12 }
0x1f4d   : > { %8994 = vmatpush3.bf16.msra.mxu0 %v5995_v12 }
0x1f4e   : > { %v12715_v43 = vpop.eup %9905 }
0x1f4f   : > { %v5969_v35 = vsel %vm917_vm7, %v12715_v43, 0.0 }
0x1f50   : > { %5970 = vadd.xlane.f32.xlu0 %v5969_v35 }
0x1f52   : > { %v12719_v58 = vpop.eup %9907 }
0x1f53   : > { %v5963_v5 = vsel %vm917_vm7, %v12719_v58, 0.0 }
0x1f54   : > { %5964 = vadd.xlane.f32.xlu1 %v5963_v5 }
0x1f65   : > { %5998 = vrot.lane.b32.xlu1 %v11963_v0, %s13459_s15 }
0x1f66   : > { %5996 = vrot.lane.b32.xlu0 %v11965_v30, %s13459_s15 }
0x1f69   : > { %6090 = vrot.lane.b32.xlu1 %v7973_v24, %s10185_s10 }
0x1f6a   : > { %6240 = vrot.lane.b32.xlu0 %v11932_v46, %s13460_s25 }
0x1f6d   : > { %6244 = vrot.lane.b32.xlu1 %v11942_v2, %s13460_s25 }
0x1f6e   : > { %6242 = vrot.lane.b32.xlu0 %v11930_v39, %s13460_s25 }
0x1f71   : > { %6246 = vrot.lane.b32.xlu1 %v11940_v36, %s13460_s25 }
0x1f72   : > { %6526 = vrot.lane.b32.xlu0 %v11955_v3, %s13460_s25 }
0x1f75   : > { %6232 = vrot.lane.b32.xlu1 %v11932_v46, %s13461_s8 }
0x1f76   : > { %6528 = vrot.lane.b32.xlu0 %v11953_v38, %s13460_s25 }
0x1f79   : > { %6530 = vrot.lane.b32.xlu1 %v11965_v30, %s13460_s25 }
0x1f7a   : > { %6234 = vrot.lane.b32.xlu0 %v11930_v39, %s13461_s8 }
0x1f7d   : > { %6238 = vrot.lane.b32.xlu1 %v11940_v36, %s13461_s8 }
0x1f7e   : > { %6236 = vrot.lane.b32.xlu0 %v11942_v2, %s13461_s8 }
0x1f81   : > { %6518 = vrot.lane.b32.xlu1 %v11955_v3, %s13461_s8 }
0x1f82   : > { %6532 = vrot.lane.b32.xlu0 %v11963_v0, %s13460_s25  ;;  %s10113_s25 = scalar_lea.vmem %s10112_s28, 4096 }
0x1f85   : > { %6522 = vrot.lane.b32.xlu1 %v11965_v30, %s13461_s8 }
0x1f86   : > { %6520 = vrot.lane.b32.xlu0 %v11953_v38, %s13461_s8 }
0x1f89   : > { %6429 = vrot.lane.b32.xlu1 %v11932_v46, %s13462_s13 }
0x1f8a   : > { %6524 = vrot.lane.b32.xlu0 %v11963_v0, %s13461_s8 }
0x1f9e   : > { %v5956_v49 = vpop.xlane.xlu1 %5955 }
0x1fa2   : > { %v5950_v27 = vpop.xlane.xlu1 %5949 }
0x1fa3   : > { %9909 = vrcp.f32 %v5950_v27 }
0x1fa6   : > { %v5959_v63 = vpop.xlane.xlu1 %5958  ;;  %v5968_v40 = vpop.xlane.xlu0 %5967 }
0x1faa   : > { %v5953_v37 = vpop.xlane.xlu1 %5952  ;;  %v5962_v46 = vpop.xlane.xlu0 %5961 }
0x1fab   : > { %9911 = vrcp.f32 %v5953_v37 }
0x1fac   : > { %9913 = vrcp.f32 %v5959_v63 }
0x1fad   : > { %v9910_v62 = vpop.eup %9909  ;;  %9915 = vrcp.f32 %v5956_v49 }
0x1fae   : > { %v5980_v42 = vmul.f32 %v9910_v62, %v12684_v14 }
0x1fb5   : > { %v9912_v54 = vpop.eup %9911 }
0x1fb6   : > { %v5981_v59 = vmul.f32 %v9912_v54, %v12696_v47  ;;  %v9914_v32 = vpop.eup %9913 }
0x1fb7   : > { %v9916_v16 = vpop.eup %9915  ;;  %v5983_v14 = vmul.f32 %v9914_v32, %v12688_v44 }
0x1fb8   : > { %v5988_v55 = vpack.c.bf16 %v5981_v59, %v5980_v42  ;;  %v5982_v34 = vmul.f32 %v9916_v16, %v12680_v8 }
0x1fba   : > { %8999 = vmatprep.mubr.msk.bf16.mxu0 %vm917_vm7, %v5988_v55  ;;  %v5989_v29 = vpack.c.bf16 %v5983_v14, %v5982_v34 }
0x1fdd   : > { %v5971_v19 = vpop.xlane.xlu0 %5970 }
0x1fde   : > { %9917 = vrcp.f32 %v5971_v19 }
0x1fdf   : > { %9919 = vrcp.f32 %v5962_v46 }
0x1fe0   : > { %9921 = vrcp.f32 %v5968_v40 }
0x1fe1   : > { %v5965_v7 = vpop.xlane.xlu1 %5964  ;;  %v5997_v53 = vpop.permute.xlu0 %5996 }
0x1fe2   : > { %9923 = vrcp.f32 %v5965_v7  ;;  %8995 = vmatprep.subr.bf16.mxu0 %v5997_v53 }
0x1fe3   : > { %8996 = vmatpush3.bf16.msra.mxu0 %v5997_v53 }
0x1fe5   : > { %v5999_v47 = vpop.permute.xlu1 %5998  ;;  %v6241_v41 = vpop.permute.xlu0 %6240 }
0x1fe6   : > { %8997 = vmatprep.subr.bf16.mxu0 %v5999_v47  ;;  %v6261_v61 = vsel %vm827_vm1, %v6241_v41, 0 }
0x1fe7   : > { %8998 = vmatpush3.bf16.msra.mxu0 %v5999_v47 }
0x1fe8   : > { %9318 = vmatprep.subr.msk.bf16.mxu0 %vm827_vm1, %v6241_v41  ;;  %v9918_v20 = vpop.eup %9917 }
0x1fe9   : > { %v6091_v51 = vpop.permute.xlu1 %6090  ;;  %v6243_v50 = vpop.permute.xlu0 %6242  ;;  %v5987_v8 = vmul.f32 %v9918_v20, %v12715_v43 }
0x1fea   : > { %v9920_v28 = vpop.eup %9919  ;;  %v6117_v56 = vsel %vm1996_vm10, %v6091_v51, 0  ;;  %9000 = vmatmul.mubr.msk.bf16.vlgmr.msra.gmra.mrb[120].mxu0 %vm917_vm7, %v5989_v29  ;;  %9317 = vmatprep.subr.msk.bf16.mxu1 %vm1996_vm10, %v6091_v51 }
0x1feb   : > { %v9922_v44 = vpop.eup %9921  ;;  %9008 = vmatpush3.bf16.msra.mxu1 %v6117_v56  ;;  %v5984_v13 = vmul.f32 %v9920_v28, %v12698_v23  ;;  %v6264_v23 = vsel %vm827_vm1, %v6243_v50, 0 }
0x1fec   : > { %v9924_v33 = vpop.eup %9923  ;;  %v5986_v22 = vmul.f32 %v9922_v44, %v12690_v15 }
0x1fed   : > { %v6245_v10 = vpop.permute.xlu1 %6244  ;;  %v6527_v60 = vpop.permute.xlu0 %6526  ;;  %v5985_v26 = vmul.f32 %v9924_v33, %v12719_v58 }
0x1fee   : > { %9322 = vmatprep.subr.msk.bf16.mxu1 %vm827_vm1, %v6527_v60  ;;  %v5991_v25 = vpack.c.bf16 %v5987_v8, %v5986_v22  ;;  %v6267_v49 = vsel %vm827_vm1, %v6245_v10, 0  ;;  %v6547_v27 = vsel %vm827_vm1, %v6527_v60, 0 }
0x1fef   : > { %v5990_v9 = vpack.c.bf16 %v5985_v26, %v5984_v13 }
0x1ff0   : > { %9026 = vmatpush3.bf16.xpose.msra.mxu0 %v6261_v61 }
0x1ff1   : > { %v6247_v4 = vpop.permute.xlu1 %6246  ;;  %9003 = vmatprep.mubr.msk.bf16.mxu0 %vm917_vm7, %v5990_v9  ;;  %9319 = vmatprep.subr.msk.bf16.mxu0 %vm827_vm1, %v6243_v50  ;;  %v6529_v24 = vpop.permute.xlu0 %6528 }
0x1ff2   : > { %9004 = vmatmul.mubr.msk.bf16.gmra.mrb[124].mxu0 %vm917_vm7, %v5991_v25  ;;  %v6270_v19 = vsel %vm827_vm1, %v6247_v4, 0  ;;  %v6550_v32 = vsel %vm827_vm1, %v6529_v24, 0 }
0x1ff5   : > { %v6233_v11 = vpop.permute.xlu1 %6232  ;;  %v6235_v55 = vpop.permute.xlu0 %6234 }
0x1ff6   : > { %9033 = vmatprep.mubr.msk.bf16.mxu0 %vm827_vm1, %v6233_v11 }
0x1ff8   : > { %v8969_v48 = vpop.f32.mrb[112].mxu0  ;;  %9028 = vmatpush3.bf16.xpose.msra.mxu0 %v6264_v23 }
0x1ff9   : > { %v6531_v15 = vpop.permute.xlu1 %6530  ;;  %v5764_v12 = vpop.f32.mrb[113].mxu0  ;;  %9320 = vmatprep.subr.msk.bf16.mxu0 %vm827_vm1, %v6245_v10 }
0x1ffa   : > { %v8970_v43 = vpop.f32.mrb[114].mxu0  ;;  %v6237_v53 = vpop.permute.xlu0 %6236  ;;  %v6553_v16 = vsel %vm827_vm1, %v6531_v15, 0 }
0x1ffb   : > { %v6082_v35 = vpack.c.bf16 %v8970_v43, %v8969_v48  ;;  %v5767_v58 = vpop.f32.mrb[115].mxu0 }
0x1ffc   : > { %v6081_v5 = vpack.c.bf16 %v5767_v58, %v5764_v12 }
0x1ffd   : > { %v6239_v18 = vpop.permute.xlu1 %6238 }
0x1ffe   : > { %9009 = vmatprep.mubr.msk.bf16.mxu1 %vm827_vm1, %v6081_v5  ;;  %v6533_v14 = vpop.permute.xlu0 %6532 }
0x1fff   : > { %9010 = vmatmul.mubr.msk.bf16.vlgmr.msra.gmra.mrb[136].mxu1 %vm827_vm1, %v6082_v35  ;;  %v6556_v47 = vsel %vm827_vm1, %v6533_v14, 0 }
0x2000   : > { %9058 = vmatpush3.bf16.xpose.msra.mxu1 %v6547_v27  ;;  %v8973_v63 = vpop.f32.mrb[116].mxu0  ;;  %9030 = vmatpush3.bf16.xpose.msra.mxu0 %v6267_v49 }
0x2001   : > { %9323 = vmatprep.subr.msk.bf16.mxu1 %vm827_vm1, %v6529_v24  ;;  %v6519_v37 = vpop.permute.xlu1 %6518  ;;  %v5780_v62 = vpop.f32.mrb[117].mxu0  ;;  %9321 = vmatprep.subr.msk.bf16.mxu0 %vm827_vm1, %v6247_v4 }
0x2002   : > { %v8974_v54 = vpop.f32.mrb[118].mxu0  ;;  %v6521_v60 = vpop.permute.xlu0 %6520 }
0x2003   : > { %v6084_v42 = vpack.c.bf16 %v8974_v54, %v8973_v63  ;;  %v5783_v59 = vpop.f32.mrb[119].mxu0 }
0x2004   : > { %v6083_v40 = vpack.c.bf16 %v5783_v59, %v5780_v62 }
0x2005   : > { %v6523_v46 = vpop.permute.xlu1 %6522 }
0x2006   : > { %9013 = vmatprep.mubr.msk.bf16.mxu1 %vm827_vm1, %v6083_v40  ;;  %v6525_v13 = vpop.permute.xlu0 %6524 }
0x2007   : > { %9014 = vmatmul.mubr.msk.bf16.gmra.mrb[140].mxu1 %vm827_vm1, %v6084_v42 }
0x2008   : > { %9060 = vmatpush3.bf16.xpose.msra.mxu1 %v6550_v32  ;;  %9032 = vmatpush3.bf16.xpose.msra.mxu0 %v6270_v19 }
0x2009   : > { %9324 = vmatprep.subr.msk.bf16.mxu1 %vm827_vm1, %v6531_v15  ;;  %v6430_v7 = vpop.permute.xlu1 %6429 }
0x200a   : > { %9041 = vmatprep.subr.bf16.mxu0 %v6430_v7 }
0x200f   : > { %9034 = vmatmul.mubr.msk.bf16.vlgmr.msra.gmra.mrb[128].mxu0 %vm827_vm1, %v6235_v55 }
0x2010   : > { %9062 = vmatpush3.bf16.xpose.msra.mxu1 %v6553_v16  ;;  %9037 = vmatprep.mubr.msk.bf16.mxu0 %vm827_vm1, %v6237_v53 }
0x2011   : > { %9042 = vmatpush3.bf16.msra.mxu0 %v6430_v7  ;;  %9325 = vmatprep.subr.msk.bf16.mxu1 %vm827_vm1, %v6533_v14 }
0x2017   : > { %9038 = vmatmul.mubr.msk.bf16.gmra.mrb[132].mxu0 %vm827_vm1, %v6239_v18 }
0x2018   : > { %9064 = vmatpush3.bf16.xpose.msra.mxu1 %v6556_v47 }
0x20bd   : > { %v9001_v41 = vpop.f32.mrb[120].mxu0 }
0x20be   : > { %v6050_v34 = vpop.f32.mrb[121].mxu0 }
0x20bf   : > { %v9002_v29 = vpop.f32.mrb[122].mxu0 }
0x20c0   : > { %v6086_v20 = vpack.c.bf16 %v9002_v29, %v9001_v41  ;;  %v6053_v51 = vpop.f32.mrb[123].mxu0 }
0x20c1   : > { %v6085_v50 = vpack.c.bf16 %v6053_v51, %v6050_v34 }
0x20c3   : > { %9017 = vmatprep.mubr.msk.bf16.mxu1 %vm827_vm1, %v6085_v50 }
0x20c4   : > { %9018 = vmatmul.mubr.msk.bf16.gmra.mrb[144].mxu1 %vm827_vm1, %v6086_v20 }
0x20c5   : > { %v9005_v28 = vpop.f32.mrb[124].mxu0 }
0x20c6   : > { %v6066_v56 = vpop.f32.mrb[125].mxu0 }
0x20c7   : > { %v9006_v44 = vpop.f32.mrb[126].mxu0 }
0x20c8   : > { %v6088_v33 = vpack.c.bf16 %v9006_v44, %v9005_v28  ;;  %v6069_v8 = vpop.f32.mrb[127].mxu0 }
0x20c9   : > { %v6087_v10 = vpack.c.bf16 %v6069_v8, %v6066_v56 }
0x20cb   : > { %9021 = vmatprep.mubr.msk.bf16.mxu1 %vm827_vm1, %v6087_v10 }
0x20cc   : > { %9022 = vmatmul.mubr.msk.bf16.gmra.mrb[148].mxu1 %vm827_vm1, %v6088_v33 }
0x20cd   : > { %9065 = vmatprep.mubr.msk.bf16.mxu1 %vm827_vm1, %v6519_v37 }
0x20d4   : > { %9066 = vmatmul.mubr.msk.bf16.vlgmr.msra.gmra.mrb[160].mxu1 %vm827_vm1, %v6521_v60 }
0x20d5   : > { %9069 = vmatprep.mubr.msk.bf16.mxu1 %vm827_vm1, %v6523_v46 }
0x20dc   : > { %9070 = vmatmul.mubr.msk.bf16.gmra.mrb[164].mxu1 %vm827_vm1, %v6525_v13 }
0x20e2   : > { %v9035_v26 = vpop.f32.mrb[128].mxu0 }
0x20e3   : > { %v6315_v22 = vadd.f32 %v9035_v26, %v12002_v52  ;;  %v6306_v61 = vpop.f32.mrb[129].mxu0 }
0x20e4   : > { %v6307_v9 = vadd.f32 %v6306_v61, %v12005_v31  ;;  %v9036_v25 = vpop.f32.mrb[130].mxu0 }
0x20e5   : > { %v6318_v4 = vadd.f32 %v9036_v25, %v12014_v21  ;;  %v6309_v11 = vpop.f32.mrb[131].mxu0  ;;  %v6343_v23 = vsel %vm917_vm7, %v6315_v22, -inf }
0x20e6   : > { %6344 = vmax.xlane.f32.xlu0 %v6343_v23  ;;  %v6337_v48 = vsel %vm917_vm7, %v6307_v9, -inf  ;;  %v6310_v15 = vadd.f32 %v6309_v11, %v12008_v17 }
0x20e7   : > { %6338 = vmax.xlane.f32.xlu1 %v6337_v48  ;;  %v6346_v12 = vsel %vm917_vm7, %v6318_v4, -inf }
0x20e8   : > { %v6340_v27 = vsel %vm917_vm7, %v6310_v15, -inf }
0x20ea   : > { %6347 = vmax.xlane.f32.xlu0 %v6346_v12  ;;  %v9039_v43 = vpop.f32.mrb[132].mxu0 }
0x20eb   : > { %v6331_v35 = vadd.f32 %v9039_v43, %v13458_v45  ;;  %v6322_v58 = vpop.f32.mrb[133].mxu0 }
0x20ec   : > { %v9040_v5 = vpop.f32.mrb[134].mxu0  ;;  %v6323_v18 = vadd.f32 %v6322_v58, %v12033_v6 }
0x20ed   : > { %v6334_v24 = vadd.f32 %v9040_v5, %v12024_v1  ;;  %v6325_v49 = vpop.f32.mrb[135].mxu0  ;;  %v6355_v63 = vsel %vm917_vm7, %v6331_v35, -inf }
0x20ee   : > { %6341 = vmax.xlane.f32.xlu0 %v6340_v27  ;;  %6356 = vmax.xlane.f32.xlu1 %v6355_v63  ;;  %v6326_v37 = vadd.f32 %v6325_v49, %v12027_v57  ;;  %v6349_v54 = vsel %vm917_vm7, %v6323_v18, -inf }
0x20ef   : > { %v6358_v62 = vsel %vm917_vm7, %v6334_v24, -inf }
0x20f0   : > { %v6352_v42 = vsel %vm917_vm7, %v6326_v37, -inf }
0x20f2   : > { %6359 = vmax.xlane.f32.xlu0 %v6358_v62  ;;  %6350 = vmax.xlane.f32.xlu1 %v6349_v54 }
0x20f6   : > { %6353 = vmax.xlane.f32.xlu0 %v6352_v42 }
0x2173   : > { %v6345_v59 = vpop.xlane.xlu0 %6344 }
0x2174   : > { %v6363_v55 = vsub.f32 %v6315_v22, %v6345_v59  ;;  %v6339_v40 = vpop.xlane.xlu1 %6338 }
0x2175   : > { %v6361_v46 = vsub.f32 %v6307_v9, %v6339_v40 }
0x2176   : > { %v6373_v19 = vmul.f32 1.442695, %v6363_v55 }
0x2177   : > { %v6369_v32 = vmul.f32 1.442695, %v6361_v46  ;;  %v6348_v7 = vpop.xlane.xlu0 %6347 }
0x2178   : > { %9925 = vpow2.f32 %v6373_v19  ;;  %v6364_v53 = vsub.f32 %v6318_v4, %v6348_v7 }
0x2179   : > { %9927 = vpow2.f32 %v6369_v32 }
0x217a   : > { %v6375_v16 = vmul.f32 1.442695, %v6364_v53 }
0x217b   : > { %v6357_v14 = vpop.xlane.xlu1 %6356  ;;  %v6342_v47 = vpop.xlane.xlu0 %6341 }
0x217c   : > { %9929 = vpow2.f32 %v6375_v16  ;;  %v6367_v41 = vsub.f32 %v6331_v35, %v6357_v14  ;;  %v6362_v34 = vsub.f32 %v6310_v15, %v6342_v47 }
0x217e   : > { %v6381_v29 = vmul.f32 1.442695, %v6367_v41  ;;  %v6371_v20 = vmul.f32 1.442695, %v6362_v34 }
0x217f   : > { %v6351_v51 = vpop.xlane.xlu1 %6350  ;;  %v6360_v50 = vpop.xlane.xlu0 %6359 }
0x2180   : > { %9931 = vpow2.f32 %v6381_v29  ;;  %v6365_v28 = vsub.f32 %v6323_v18, %v6351_v51  ;;  %v6368_v56 = vsub.f32 %v6334_v24, %v6360_v50 }
0x2181   : > { %9933 = vpow2.f32 %v6371_v20 }
0x2182   : > { %v12827_v44 = vpop.eup %9925  ;;  %v6377_v33 = vmul.f32 1.442695, %v6365_v28  ;;  %v6383_v8 = vmul.f32 1.442695, %v6368_v56 }
0x2183   : > { %v6354_v10 = vpop.xlane.xlu0 %6353  ;;  %v6391_v60 = vsel %vm917_vm7, %v12827_v44, 0.0  ;;  %v12831_v13 = vpop.eup %9927 }
0x2184   : > { %9935 = vpow2.f32 %v6377_v33  ;;  %v6366_v26 = vsub.f32 %v6326_v37, %v6354_v10  ;;  %6392 = vadd.xlane.f32.xlu1 %v6391_v60  ;;  %v6385_v9 = vsel %vm917_vm7, %v12831_v13, 0.0 }
0x2185   : > { %9937 = vpow2.f32 %v6383_v8 }
0x2186   : > { %v12833_v22 = vpop.eup %9929  ;;  %v6379_v61 = vmul.f32 1.442695, %v6366_v26 }
0x2187   : > { %v6394_v25 = vsel %vm917_vm7, %v12833_v22, 0.0 }
0x2188   : > { %9939 = vpow2.f32 %v6379_v61  ;;  %6386 = vadd.xlane.f32.xlu1 %v6385_v9  ;;  %6395 = vadd.xlane.f32.xlu0 %v6394_v25 }
0x218a   : > { %v12839_v4 = vpop.eup %9931 }
0x218b   : > { %v9934_v11 = vpop.eup %9933  ;;  %v6403_v23 = vsel %vm917_vm7, %v12839_v4, 0.0 }
0x218c   : > { %6404 = vadd.xlane.f32.xlu1 %v6403_v23  ;;  %v6388_v48 = vsel %vm917_vm7, %v9934_v11, 0.0 }
0x218d   : > { %6389 = vadd.xlane.f32.xlu0 %v6388_v48 }
0x218e   : > { %v12844_v15 = vpop.eup %9935 }
0x218f   : > { %v12846_v12 = vpop.eup %9937  ;;  %v6397_v43 = vsel %vm917_vm7, %v12844_v15, 0.0 }
0x2190   : > { %6398 = vadd.xlane.f32.xlu1 %v6397_v43  ;;  %v6406_v35 = vsel %vm917_vm7, %v12846_v12, 0.0 }
0x2191   : > { %6407 = vadd.xlane.f32.xlu0 %v6406_v35 }
0x2192   : > { %v12852_v58 = vpop.eup %9939 }
0x2193   : > { %v6400_v5 = vsel %vm917_vm7, %v12852_v58, 0.0 }
0x2195   : > { %6401 = vadd.xlane.f32.xlu0 %v6400_v5 }
0x21a7   : > { %v9067_v18 = vpop.f32.mrb[160].mxu1 }
0x21a8   : > { %v6601_v24 = vadd.f32 %v9067_v18, %v12002_v52  ;;  %v6592_v49 = vpop.f32.mrb[161].mxu1 }
0x21a9   : > { %v9068_v27 = vpop.f32.mrb[162].mxu1  ;;  %v6593_v63 = vadd.f32 %v6592_v49, %v12005_v31 }
0x21aa   : > { %v6604_v37 = vadd.f32 %v9068_v27, %v12014_v21  ;;  %v6595_v62 = vpop.f32.mrb[163].mxu1  ;;  %v6629_v54 = vsel %vm917_vm7, %v6601_v24, -inf }
0x21ab   : > { %6630 = vmax.xlane.f32.xlu1 %v6629_v54  ;;  %v6596_v42 = vadd.f32 %v6595_v62, %v12008_v17  ;;  %v6623_v55 = vsel %vm917_vm7, %v6593_v63, -inf }
0x21ac   : > { %v6632_v59 = vsel %vm917_vm7, %v6604_v37, -inf }
0x21ad   : > { %6633 = vmax.xlane.f32.xlu0 %v6632_v59  ;;  %v6626_v31 = vsel %vm917_vm7, %v6596_v42, -inf }
0x21af   : > { %v9071_v40 = vpop.f32.mrb[164].mxu1  ;;  %6624 = vmax.xlane.f32.xlu1 %v6623_v55 }
0x21b0   : > { %v6617_v52 = vadd.f32 %v9071_v40, %v13458_v45  ;;  %v6608_v46 = vpop.f32.mrb[165].mxu1 }
0x21b1   : > { %v9072_v19 = vpop.f32.mrb[166].mxu1  ;;  %6627 = vmax.xlane.f32.xlu0 %v6626_v31  ;;  %v6609_v21 = vadd.f32 %v6608_v46, %v12033_v6 }
0x21b2   : > { %v6620_v32 = vadd.f32 %v9072_v19, %v12024_v1  ;;  %v6611_v7 = vpop.f32.mrb[167].mxu1  ;;  %v6641_v17 = vsel %vm917_vm7, %v6617_v52, -inf }
0x21b3   : > { %6642 = vmax.xlane.f32.xlu1 %v6641_v17  ;;  %v12869_v53 = vadd.f32 %v6611_v7, %v12027_v57  ;;  %v6635_v45 = vsel %vm917_vm7, %v6609_v21, -inf }
0x21b4   : > { %v6644_v16 = vsel %vm917_vm7, %v6620_v32, -inf }
0x21b5   : > { %6645 = vmax.xlane.f32.xlu0 %v6644_v16  ;;  %v6638_v14 = vsel %vm917_vm7, %v12869_v53, -inf }
0x21b7   : > { %6636 = vmax.xlane.f32.xlu1 %v6635_v45 }
0x21b9   : > { %6639 = vmax.xlane.f32.xlu0 %v6638_v14 }
0x21c8   : > { %6431 = vrot.lane.b32.xlu1 %v11930_v39, %s13462_s13 }
0x21cc   : > { %6435 = vrot.lane.b32.xlu1 %v11940_v36, %s13462_s13 }
0x21cf   : > { %6433 = vrot.lane.b32.xlu0 %v11942_v2, %s13462_s13 }
0x2211   : > { %v6393_v1 = vpop.xlane.xlu1 %6392 }
0x2215   : > { %v6396_v57 = vpop.xlane.xlu0 %6395  ;;  %v6387_v6 = vpop.xlane.xlu1 %6386 }
0x2216   : > { %9941 = vrcp.f32 %v6387_v6 }
0x2219   : > { %v6405_v39 = vpop.xlane.xlu1 %6404 }
0x221a   : > { %v6390_v47 = vpop.xlane.xlu0 %6389 }
0x221b   : > { %9943 = vrcp.f32 %v6390_v47 }
0x221d   : > { %v6399_v36 = vpop.xlane.xlu1 %6398 }
0x221e   : > { %v6408_v50 = vpop.xlane.xlu0 %6407 }
0x2220   : > { %v9942_v41 = vpop.eup %9941 }
0x2221   : > { %v6417_v29 = vmul.f32 %v9942_v41, %v12831_v13 }
0x2222   : > { %v6402_v28 = vpop.xlane.xlu0 %6401 }
0x2225   : > { %v9944_v34 = vpop.eup %9943 }
0x2226   : > { %v6418_v20 = vmul.f32 %v9944_v34, %v9934_v11 }
0x2228   : > { %v6425_v51 = vpack.c.bf16 %v6418_v20, %v6417_v29 }
0x222a   : > { %9049 = vmatprep.mubr.msk.bf16.mxu0 %vm917_vm7, %v6425_v51 }
0x2238   : > { %v6631_v56 = vpop.xlane.xlu1 %6630 }
0x2239   : > { %v6649_v2 = vsub.f32 %v6601_v24, %v6631_v56 }
0x223a   : > { %v6634_v33 = vpop.xlane.xlu0 %6633 }
0x223b   : > { %v6659_v8 = vmul.f32 1.442695, %v6649_v2  ;;  %v6650_v10 = vsub.f32 %v6604_v37, %v6634_v33 }
0x223c   : > { %v6625_v60 = vpop.xlane.xlu1 %6624 }
0x223d   : > { %9945 = vpow2.f32 %v6659_v8  ;;  %v6647_v26 = vsub.f32 %v6593_v63, %v6625_v60  ;;  %v6661_v9 = vmul.f32 1.442695, %v6650_v10 }
0x223e   : > { %v6628_v61 = vpop.xlane.xlu0 %6627  ;;  %9947 = vrcp.f32 %v6393_v1 }
0x223f   : > { %v6655_v25 = vmul.f32 1.442695, %v6647_v26  ;;  %v6648_v13 = vsub.f32 %v6596_v42, %v6628_v61 }
0x2240   : > { %v6643_v11 = vpop.xlane.xlu1 %6642 }
0x2241   : > { %9949 = vpow2.f32 %v6655_v25  ;;  %v6653_v23 = vsub.f32 %v6617_v52, %v6643_v11  ;;  %v6657_v43 = vmul.f32 1.442695, %v6648_v13 }
0x2242   : > { %9951 = vrcp.f32 %v6396_v57  ;;  %v6646_v48 = vpop.xlane.xlu0 %6645 }
0x2243   : > { %9953 = vpow2.f32 %v6661_v9  ;;  %v6667_v35 = vmul.f32 1.442695, %v6653_v23  ;;  %v6654_v5 = vsub.f32 %v6620_v32, %v6646_v48 }
0x2244   : > { %9955 = vrcp.f32 %v6402_v28  ;;  %v6637_v18 = vpop.xlane.xlu1 %6636 }
0x2245   : > { %9957 = vpow2.f32 %v6667_v35  ;;  %v6651_v24 = vsub.f32 %v6609_v21, %v6637_v18  ;;  %v6669_v49 = vmul.f32 1.442695, %v6654_v5 }
0x2246   : > { %9959 = vrcp.f32 %v6399_v36  ;;  %v6640_v27 = vpop.xlane.xlu0 %6639 }
0x2247   : > { %v12883_v63 = vpop.eup %9945  ;;  %9961 = vpow2.f32 %v6657_v43  ;;  %v6663_v37 = vmul.f32 1.442695, %v6651_v24  ;;  %v6652_v62 = vsub.f32 %v12869_v53, %v6640_v27 }
0x2248   : > { %9963 = vrcp.f32 %v6408_v50  ;;  %v6432_v54 = vpop.permute.xlu1 %6431  ;;  %v6677_v42 = vsel %vm917_vm7, %v12883_v63, 0.0  ;;  %v9948_v55 = vpop.eup %9947 }
0x2249   : > { %9965 = vpow2.f32 %v6663_v37  ;;  %v6665_v59 = vmul.f32 1.442695, %v6652_v62  ;;  %9043 = vmatprep.subr.bf16.mxu0 %v6432_v54  ;;  %6678 = vadd.xlane.f32.xlu0 %v6677_v42  ;;  %v6419_v6 = vmul.f32 %v9948_v55, %v12827_v44 }
0x224a   : > { %9967 = vpow2.f32 %v6669_v49  ;;  %9044 = vmatpush3.bf16.msra.mxu0 %v6432_v54  ;;  %v6434_v40 = vpop.permute.xlu0 %6433 }
0x224b   : > { %v12888_v52 = vpop.eup %9949  ;;  %9969 = vpow2.f32 %v6665_v59  ;;  %9045 = vmatprep.subr.bf16.mxu0 %v6434_v40 }
0x224c   : > { %v9952_v46 = vpop.eup %9951  ;;  %v6671_v31 = vsel %vm917_vm7, %v12888_v52, 0.0  ;;  %9971 = vrcp.f32 %v6405_v39  ;;  %v6436_v32 = vpop.permute.xlu1 %6435 }
0x224d   : > { %v12892_v19 = vpop.eup %9953  ;;  %6672 = vadd.xlane.f32.xlu0 %v6671_v31  ;;  %v6420_v53 = vmul.f32 %v9952_v46, %v12833_v22 }
0x224e   : > { %v9956_v21 = vpop.eup %9955  ;;  %9046 = vmatpush3.bf16.msra.mxu0 %v6434_v40  ;;  %v6680_v45 = vsel %vm917_vm7, %v12892_v19, 0.0 }
0x224f   : > { %v12894_v7 = vpop.eup %9957  ;;  %9047 = vmatprep.subr.bf16.mxu0 %v6436_v32  ;;  %v6422_v1 = vmul.f32 %v9956_v21, %v12852_v58  ;;  %v6426_v34 = vpack.c.bf16 %v6420_v53, %v6419_v6 }
0x2250   : > { %v9960_v17 = vpop.eup %9959  ;;  %v6689_v16 = vsel %vm917_vm7, %v12894_v7, 0.0 }
0x2251   : > { %v9962_v14 = vpop.eup %9961  ;;  %6690 = vadd.xlane.f32.xlu1 %v6689_v16  ;;  %6681 = vadd.xlane.f32.xlu0 %v6680_v45  ;;  %v6421_v41 = vmul.f32 %v9960_v17, %v12844_v15 }
0x2252   : > { %v9964_v57 = vpop.eup %9963  ;;  %9048 = vmatpush3.bf16.msra.mxu0 %v6436_v32  ;;  %v6674_v20 = vsel %vm917_vm7, %v9962_v14, 0.0 }
0x2253   : > { %v12903_v47 = vpop.eup %9965  ;;  %v6427_v58 = vpack.c.bf16 %v6422_v1, %v6421_v41  ;;  %v6424_v50 = vmul.f32 %v9964_v57, %v12846_v12  ;;  %v10076_v12 = vld [vmem:[%s13374_s3 + $0x28] sm:$0xf] }
0x2254   : > { %v12906_v22 = vpop.eup %9967  ;;  %v6683_v29 = vsel %vm917_vm7, %v12903_v47, 0.0  ;;  %v7998_v56 = vcombine.low %v10076_v12, %v10076_v12 }
0x2255   : > { %v9970_v51 = vpop.eup %9969  ;;  %6684 = vadd.xlane.f32.xlu1 %v6683_v29  ;;  %6675 = vadd.xlane.f32.xlu0 %v6674_v20  ;;  %v6692_v15 = vsel %vm917_vm7, %v12906_v22, 0.0 }
0x2256   : > { %9050 = vmatmul.mubr.msk.bf16.vlgmr.msra.gmra.mrb[136].mxu0 %vm917_vm7, %v6426_v34  ;;  %v9972_v44 = vpop.eup %9971  ;;  %v6686_v39 = vsel %vm917_vm7, %v9970_v51, 0.0 }
0x2257   : > { %9053 = vmatprep.mubr.msk.bf16.mxu0 %vm917_vm7, %v6427_v58  ;;  %v6423_v36 = vmul.f32 %v9972_v44, %v12839_v4 }
0x2259   : > { %6693 = vadd.xlane.f32.xlu1 %v6692_v15  ;;  %6687 = vadd.xlane.f32.xlu0 %v6686_v39  ;;  %v6428_v28 = vpack.c.bf16 %v6424_v50, %v6423_v36  ;;  %v12954_v50 = vld [vmem:[%s13372_s1 + $0x5] ss:$0 sm:$0xff] }
0x225e   : > { %9054 = vmatmul.mubr.msk.bf16.gmra.mrb[140].mxu0 %vm917_vm7, %v6428_v28  ;;  %v13463_v28 = vld [vmem:[#allocation9_spill] sm:$0xff] }
0x226a   : > { %6717 = vrot.lane.b32.xlu1 %v11953_v38, %s13462_s13 }
0x226e   : > { %6719 = vrot.lane.b32.xlu1 %v11965_v30, %s13462_s13 }
0x226f   : > { %6715 = vrot.lane.b32.xlu0 %v11955_v3, %s13462_s13 }
0x2272   : > { %6721 = vrot.lane.b32.xlu1 %v11963_v0, %s13462_s13 }
0x2276   : > { %6813 = vrot.lane.b32.xlu1 %v7998_v56, %s10185_s10  ;;  %v13464_v56 = vld [vmem:[#allocation8_spill] sm:$0xff]  ;;  %s13479_s10 = sshll.u32 %s10329_s23, 7 }
0x2277   : > { %s13272_s9 = scalar_lea.vmem [#allocation5], %s13479_s10 }
0x2278   : > { %s7686_s29 = sshll.u32 %s13272_s9, 4  ;;  %s13320_s29 = int_to_ptr.vmem [resolvable:$true] %s7686_s29 }
0x2279   : > { %s10107_s15 = scalar_lea.vmem %s13320_s29, 2048  ;;  %p10114_p8 = scmp.lt.s32.totalorder %s13320_s29, %s10112_s28 }
0x227a   : > { %p10108_p6 = scmp.ne.s32.totalorder %s13320_s29, %s10107_s15  ;;  %p10115_p10 = scmp.lt.s32.totalorder %s10113_s25, %s10107_s15 }
0x227c   : > { %p10109_p12 = pnand %p10108_p6, %p13480_p11  ;;  %p10116_p0 = por %p10115_p10, %p10114_p8 }
0x227e   : > { %p10110_p13 = pneg %p10109_p12 }
0x2280   : > { %p10117_p2 = pnand %p10116_p0, %p10110_p13 }
0x22d6   : > { %v6679_v4 = vpop.xlane.xlu0 %6678 }
0x22da   : > { %v6673_v2 = vpop.xlane.xlu0 %6672 }
0x22db   : > { %9973 = vrcp.f32 %v6673_v2 }
0x22de   : > { %v6691_v33 = vpop.xlane.xlu1 %6690  ;;  %v6682_v38 = vpop.xlane.xlu0 %6681 }
0x22e2   : > { %v6685_v8 = vpop.xlane.xlu1 %6684  ;;  %v6676_v30 = vpop.xlane.xlu0 %6675 }
0x22e3   : > { %9975 = vrcp.f32 %v6676_v30 }
0x22e4   : > { %9977 = vrcp.f32 %v6682_v38 }
0x22e5   : > { %v9974_v0 = vpop.eup %9973 }
0x22e6   : > { %v6694_v10 = vpop.xlane.xlu1 %6693  ;;  %v6688_v3 = vpop.xlane.xlu0 %6687  ;;  %v6703_v25 = vmul.f32 %v9974_v0, %v12888_v52 }
0x22e7   : > { %9979 = vrcp.f32 %v6688_v3  ;;  %v13466_v3 = vld [vmem:[#allocation11_spill] sm:$0xff] }
0x22e8   : > { %9981 = vrcp.f32 %v6679_v4 }
0x22e9   : > { %9983 = vrcp.f32 %v6685_v8  ;;  %v13465_v8 = vld [vmem:[#allocation10_spill] sm:$0xff] }
0x22ea   : > { %v6718_v60 = vpop.permute.xlu1 %6717  ;;  %v6716_v26 = vpop.permute.xlu0 %6715  ;;  %9985 = vrcp.f32 %v6694_v10 }
0x22eb   : > { %9073 = vmatprep.subr.bf16.mxu0 %v6716_v26  ;;  %9987 = vrcp.f32 %v6691_v33 }
0x22ec   : > { %9074 = vmatpush3.bf16.msra.mxu0 %v6716_v26 }
0x22ed   : > { %9075 = vmatprep.subr.bf16.mxu0 %v6718_v60  ;;  %v9976_v61 = vpop.eup %9975 }
0x22ee   : > { %v6720_v9 = vpop.permute.xlu1 %6719  ;;  %v6704_v13 = vmul.f32 %v9976_v61, %v9962_v14  ;;  %v9978_v23 = vpop.eup %9977 }
0x22ef   : > { %v6706_v18 = vmul.f32 %v9978_v23, %v12892_v19 }
0x22f0   : > { %9076 = vmatpush3.bf16.msra.mxu0 %v6718_v60  ;;  %v6711_v11 = vpack.c.bf16 %v6704_v13, %v6703_v25 }
0x22f1   : > { %9077 = vmatprep.subr.bf16.mxu0 %v6720_v9  ;;  %v9980_v43 = vpop.eup %9979 }
0x22f2   : > { %v6722_v48 = vpop.permute.xlu1 %6721  ;;  %9081 = vmatprep.mubr.msk.bf16.mxu0 %vm917_vm7, %v6711_v11  ;;  %v9982_v35 = vpop.eup %9981  ;;  %v6708_v24 = vmul.f32 %v9980_v43, %v9970_v51  ;;  %v13467_v11 = vld [vmem:[#allocation12_spill] sm:$0xff] }
0x22f3   : > { %v9984_v5 = vpop.eup %9983  ;;  %v6705_v27 = vmul.f32 %v9982_v35, %v12883_v63 }
0x22f4   : > { %9078 = vmatpush3.bf16.msra.mxu0 %v6720_v9  ;;  %v6707_v62 = vmul.f32 %v9984_v5, %v12903_v47  ;;  %v9986_v42 = vpop.eup %9985  ;;  %v13468_v5 = vld [vmem:[#allocation15_spill] sm:$0xff] }
0x22f5   : > { %9079 = vmatprep.subr.bf16.mxu0 %v6722_v48  ;;  %v6712_v54 = vpack.c.bf16 %v6706_v18, %v6705_v27  ;;  %v9988_v55 = vpop.eup %9987  ;;  %v6710_v40 = vmul.f32 %v9986_v42, %v12906_v22  ;;  %v13470_v27 = vld [vmem:[#allocation13_spill] sm:$0xff] }
0x22f6   : > { %v6814_v49 = vpop.permute.xlu1 %6813  ;;  %v6713_v59 = vpack.c.bf16 %v6708_v24, %v6707_v62  ;;  %v6709_v63 = vmul.f32 %v9988_v55, %v12894_v7  ;;  %v13469_v24 = vld [vmem:[#allocation14_spill] sm:$0xff] }
0x22f7   : > { %v6840_v37 = vsel %vm1996_vm10, %v6814_v49, 0  ;;  %9326 = vmatprep.subr.msk.bf16.mxu1 %vm1996_vm10, %v6814_v49 }
0x22f8   : > { %9080 = vmatpush3.bf16.msra.mxu0 %v6722_v48  ;;  %9090 = vmatpush3.bf16.msra.mxu1 %v6840_v37  ;;  %v6714_v52 = vpack.c.bf16 %v6710_v40, %v6709_v63 }
0x22fb   : > { %9082 = vmatmul.mubr.msk.bf16.vlgmr.msra.gmra.mrb[144].mxu0 %vm917_vm7, %v6712_v54 }
0x22fc   : > { %9085 = vmatprep.mubr.msk.bf16.mxu0 %vm917_vm7, %v6713_v59 }
0x2303   : > { %9086 = vmatmul.mubr.msk.bf16.gmra.mrb[148].mxu0 %vm917_vm7, %v6714_v52 }
0x2329   : > { %v9051_v46 = vpop.f32.mrb[136].mxu0 }
0x232a   : > { %v6487_v31 = vpop.f32.mrb[137].mxu0 }
0x232b   : > { %v9052_v19 = vpop.f32.mrb[138].mxu0 }
0x232c   : > { %v6805_v21 = vpack.c.bf16 %v9052_v19, %v9051_v46  ;;  %v6490_v32 = vpop.f32.mrb[139].mxu0 }
0x232d   : > { %v6804_v17 = vpack.c.bf16 %v6490_v32, %v6487_v31 }
0x232f   : > { %9091 = vmatprep.mubr.msk.bf16.mxu1 %vm827_vm1, %v6804_v17  ;;  %v13471_v17 = vld [vmem:[#allocation17_spill] sm:$0xff] }
0x2330   : > { %9092 = vmatmul.mubr.msk.bf16.vlgmr.msra.gmra.mrb[136].mxu1 %vm827_vm1, %v6805_v21 }
0x2331   : > { %v9055_v53 = vpop.f32.mrb[140].mxu0 }
0x2332   : > { %v6503_v16 = vpop.f32.mrb[141].mxu0 }
0x2333   : > { %v9056_v45 = vpop.f32.mrb[142].mxu0 }
0x2334   : > { %v6807_v14 = vpack.c.bf16 %v9056_v45, %v9055_v53  ;;  %v6506_v1 = vpop.f32.mrb[143].mxu0 }
0x2335   : > { %v6806_v57 = vpack.c.bf16 %v6506_v1, %v6503_v16  ;;  %v13472_v16 = vld [vmem:[#allocation16_spill] sm:$0xff] }
0x2337   : > { %9095 = vmatprep.mubr.msk.bf16.mxu1 %vm827_vm1, %v6806_v57 }
0x2338   : > { %9096 = vmatmul.mubr.msk.bf16.gmra.mrb[140].mxu1 %vm827_vm1, %v6807_v14 }
0x23ce   : > { %v9083_v7 = vpop.f32.mrb[144].mxu0 }
0x23cf   : > { %v6773_v6 = vpop.f32.mrb[145].mxu0 }
0x23d0   : > { %v9084_v47 = vpop.f32.mrb[146].mxu0 }
0x23d1   : > { %v6809_v41 = vpack.c.bf16 %v9084_v47, %v9083_v7  ;;  %v6776_v22 = vpop.f32.mrb[147].mxu0  ;;  %v13473_v7 = vld [vmem:[#allocation19_spill] sm:$0xff]  ;;  %v13474_v47 = vld [vmem:[#allocation18_spill] sm:$0xff] }
0x23d2   : > { %v6808_v34 = vpack.c.bf16 %v6776_v22, %v6773_v6 }
0x23d4   : > { %9099 = vmatprep.mubr.msk.bf16.mxu1 %vm827_vm1, %v6808_v34 }
0x23d5   : > { %9100 = vmatmul.mubr.msk.bf16.gmra.mrb[144].mxu1 %vm827_vm1, %v6809_v41 }
0x23d6   : > { %v9087_v29 = vpop.f32.mrb[148].mxu0 }
0x23d7   : > { %v6789_v20 = vpop.f32.mrb[149].mxu0 }
0x23d8   : > { %v9088_v51 = vpop.f32.mrb[150].mxu0 }
0x23d9   : > { %v6811_v58 = vpack.c.bf16 %v9088_v51, %v9087_v29  ;;  %v6792_v44 = vpop.f32.mrb[151].mxu0 }
0x23da   : > { %v6810_v15 = vpack.c.bf16 %v6792_v44, %v6789_v20 }
0x23dc   : > { %9103 = vmatprep.mubr.msk.bf16.mxu1 %vm827_vm1, %v6810_v15 }
0x23dd   : > { %9104 = vmatmul.mubr.msk.bf16.gmra.mrb[148].mxu1 %vm827_vm1, %v6811_v58 }
0x2403   : > { %v9093_v39 = vpop.f32.mrb[136].mxu1 }
0x2404   : > { %v6876_v36 = vpop.f32.mrb[137].mxu1  ;;  %v6957_v12 = vadd.f32 %v9093_v39, %v13463_v28  ;;  %v13475_v28 = vld [vmem:[#allocation21_spill] sm:$0xff] }
0x2405   : > { %v6955_v4 = vadd.f32 %v6876_v36, %v13464_v56  ;;  %v9094_v2 = vpop.f32.mrb[138].mxu1  ;;  %v13476_v56 = vld [vmem:[#allocation20_spill] sm:$0xff] }
0x2406   : > { %v6879_v33 = vpop.f32.mrb[139].mxu1  ;;  %v12963_v10 = vadd.f32 %v12954_v50, %v6957_v12  ;;  %v6958_v60 = vadd.f32 %v9094_v2, %v13466_v3 }
0x2407   : > { %v12959_v38 = vadd.f32 %v12954_v50, %v6955_v4  ;;  %v6956_v30 = vadd.f32 %v6879_v33, %v13465_v8 }
0x2408   : > { %v12974_v13 = vadd.f32 %v12954_v50, %v6958_v60  ;;  %v6997_v43 = vsel %vm416_vm0, %v12963_v10, 0.0  ;;  %v13477_v60 = vld [vmem:[#allocation23_spill] sm:$0xff] }
0x2409   : > { %v12967_v26 = vadd.f32 %v12954_v50, %v6956_v30  ;;  %v6991_v0 = vsel %vm416_vm0, %v12959_v38, 0.0 }
0x240a   : > { %6992 = vadd.xlane.f32.xlu0 %v6991_v0  ;;  %v7000_v42 = vsel %vm416_vm0, %v12974_v13, 0.0 }
0x240b   : > { %v9097_v61 = vpop.f32.mrb[140].mxu1  ;;  %v6994_v9 = vsel %vm416_vm0, %v12967_v26, 0.0 }
0x240c   : > { %6995 = vadd.xlane.f32.xlu1 %v6994_v9  ;;  %v6892_v25 = vpop.f32.mrb[141].mxu1  ;;  %v6961_v37 = vadd.f32 %v9097_v61, %v13470_v27  ;;  %v13478_v61 = vld [vmem:[#allocation22_spill] sm:$0xff] }
0x240d   : > { %v6959_v23 = vadd.f32 %v6892_v25, %v13467_v11  ;;  %v9098_v48 = vpop.f32.mrb[142].mxu1 }
0x240e   : > { %6998 = vadd.xlane.f32.xlu0 %v6997_v43  ;;  %v6895_v35 = vpop.f32.mrb[143].mxu1  ;;  %v6962_v18 = vadd.f32 %v9098_v48, %v13468_v5  ;;  %v12996_v40 = vadd.f32 %v12954_v50, %v6961_v37 }
0x240f   : > { %v6960_v49 = vadd.f32 %v6895_v35, %v13469_v24  ;;  %v12983_v62 = vadd.f32 %v12954_v50, %v6959_v23 }
0x2410   : > { %v12991_v59 = vadd.f32 %v12954_v50, %v6962_v18  ;;  %v7009_v46 = vsel %vm416_vm0, %v12996_v40, 0.0 }
0x2411   : > { %v12986_v54 = vadd.f32 %v12954_v50, %v6960_v49  ;;  %v7003_v63 = vsel %vm416_vm0, %v12983_v62, 0.0 }
0x2412   : > { %7001 = vadd.xlane.f32.xlu0 %v7000_v42  ;;  %v7012_v52 = vsel %vm416_vm0, %v12991_v59, 0.0 }
0x2413   : > { %v7006_v55 = vsel %vm416_vm0, %v12986_v54, 0.0 }
0x2414   : > { %7007 = vadd.xlane.f32.xlu1 %v7006_v55 }
0x2416   : > { %7004 = vadd.xlane.f32.xlu0 %v7003_v63 }
0x2418   : > { %7013 = vadd.xlane.f32.xlu1 %v7012_v52 }
0x241a   : > { %7010 = vadd.xlane.f32.xlu0 %v7009_v46 }
0x2497   : > { %v6993_v31 = vpop.xlane.xlu0 %6992 }
0x2498   : > { %v7039_v39 = vmul.f32 0.03125, %v6993_v31 }
0x2499   : > { %v6996_v51 = vpop.xlane.xlu1 %6995 }
0x249a   : > { %v7040_v8 = vmul.f32 0.03125, %v6996_v51  ;;  %v13036_v11 = vsub.f32 %v12959_v38, %v7039_v39 }
0x249b   : > { %v6999_v21 = vpop.xlane.xlu0 %6998 }
0x249c   : > { %v7041_v48 = vmul.f32 0.03125, %v6999_v21  ;;  %v13047_v24 = vsub.f32 %v12967_v26, %v7040_v8  ;;  %v7071_v52 = vmul.f32 %v13036_v11, %v13036_v11 }
0x249e   : > { %v13055_v42 = vsub.f32 %v12963_v10, %v7041_v48  ;;  %v7072_v21 = vmul.f32 %v13047_v24, %v13047_v24 }
0x249f   : > { %v7002_v20 = vpop.xlane.xlu0 %7001 }
0x24a0   : > { %v7042_v49 = vmul.f32 0.03125, %v7002_v20 }
0x24a1   : > { %v7008_v18 = vpop.xlane.xlu1 %7007 }
0x24a2   : > { %v13062_v31 = vsub.f32 %v12974_v13, %v7042_v49 }
0x24a3   : > { %v7005_v23 = vpop.xlane.xlu0 %7004 }
0x24a4   : > { %v7043_v55 = vmul.f32 0.03125, %v7005_v23 }
0x24a7   : > { %v7011_v46 = vpop.xlane.xlu0 %7010 }
0x24a8   : > { %v9101_v19 = vpop.f32.mrb[144].mxu1 }
0x24a9   : > { %v6908_v32 = vpop.f32.mrb[145].mxu1  ;;  %v6965_v53 = vadd.f32 %v9101_v19, %v13471_v17  ;;  %v13069_v17 = vsub.f32 %v12983_v62, %v7043_v55 }
0x24aa   : > { %v6963_v45 = vadd.f32 %v6908_v32, %v13472_v16  ;;  %v9102_v14 = vpop.f32.mrb[146].mxu1  ;;  %v7014_v32 = vpop.xlane.xlu1 %7013  ;;  %v7087_v16 = vsel %vm416_vm0, %v7071_v52, 0.0 }
0x24ab   : > { %v6911_v1 = vpop.f32.mrb[147].mxu1  ;;  %v6966_v6 = vadd.f32 %v9102_v14, %v13473_v7  ;;  %v13012_v22 = vadd.f32 %v12954_v50, %v6965_v53  ;;  %v7045_v53 = vmul.f32 0.03125, %v7011_v46  ;;  %v7090_v7 = vsel %vm416_vm0, %v7072_v21, 0.0 }
0x24ac   : > { %v13007_v57 = vadd.f32 %v12954_v50, %v6963_v45  ;;  %v6964_v41 = vadd.f32 %v6911_v1, %v13474_v47  ;;  %v7073_v45 = vmul.f32 %v13055_v42, %v13055_v42  ;;  %v7046_v1 = vmul.f32 0.03125, %v7014_v32 }
0x24ad   : > { %v13020_v58 = vadd.f32 %v12954_v50, %v6966_v6  ;;  %v7021_v33 = vsel %vm416_vm0, %v13012_v22, 0.0  ;;  %v7074_v6 = vmul.f32 %v13062_v31, %v13062_v31  ;;  %v13081_v47 = vsub.f32 %v12996_v40, %v7045_v53 }
0x24ae   : > { %v13015_v34 = vadd.f32 %v12954_v50, %v6964_v41  ;;  %v7015_v29 = vsel %vm416_vm0, %v13007_v57, 0.0  ;;  %v7093_v41 = vsel %vm416_vm0, %v7073_v45, 0.0  ;;  %v13087_v20 = vsub.f32 %v12991_v59, %v7046_v1 }
0x24af   : > { %7016 = vadd.xlane.f32.xlu0 %v7015_v29  ;;  %v7024_v25 = vsel %vm416_vm0, %v13020_v58, 0.0  ;;  %v7075_v29 = vmul.f32 %v13069_v17, %v13069_v17  ;;  %v7096_v51 = vsel %vm416_vm0, %v7074_v6, 0.0  ;;  %v7077_v39 = vmul.f32 %v13081_v47, %v13081_v47 }
0x24b0   : > { %v9105_v44 = vpop.f32.mrb[148].mxu1  ;;  %v7018_v15 = vsel %vm416_vm0, %v13015_v34, 0.0 }
0x24b1   : > { %7019 = vadd.xlane.f32.xlu1 %v7018_v15  ;;  %v6924_v36 = vpop.f32.mrb[149].mxu1  ;;  %v6969_v12 = vadd.f32 %v9105_v44, %v13475_v28  ;;  %v7099_v15 = vsel %vm416_vm0, %v7075_v29, 0.0  ;;  %v7078_v28 = vmul.f32 %v13087_v20, %v13087_v20 }
0x24b2   : > { %v6967_v4 = vadd.f32 %v6924_v36, %v13476_v56  ;;  %v9106_v2 = vpop.f32.mrb[150].mxu1 }
0x24b3   : > { %7022 = vadd.xlane.f32.xlu0 %v7021_v33  ;;  %v6927_v30 = vpop.f32.mrb[151].mxu1  ;;  %v6970_v0 = vadd.f32 %v9106_v2, %v13477_v60  ;;  %v13039_v43 = vadd.f32 %v12954_v50, %v6969_v12  ;;  %v7105_v12 = vsel %vm416_vm0, %v7077_v39, 0.0  ;;  %v7108_v56 = vsel %vm416_vm0, %v7078_v28, 0.0  ;;  %v9404_v2 = vld [vmem:[%s13374_s3 + $0x20] ss:$12 sps:$4 sm:$0xff]  }
0x24b4   : > { %v13029_v3 = vadd.f32 %v12954_v50, %v6967_v4  ;;  %v6968_v9 = vadd.f32 %v6927_v30, %v13478_v61  ;;  %v9403_v4 = vld [vmem:[%s13374_s3 + $0x8] ss:$12 sps:$4 sm:$0xff]  }
0x24b5   : > { %7025 = vadd.xlane.f32.xlu1 %v7024_v25  ;;  %v13050_v27 = vadd.f32 %v12954_v50, %v6970_v0  ;;  %v7033_v63 = vsel %vm416_vm0, %v13039_v43, 0.0  ;;  %9107 = vmatprep.subr.bf16.mxu0 %v9403_v4 }
0x24b6   : > { %v13042_v35 = vadd.f32 %v12954_v50, %v6968_v9  ;;  %v7027_v5 = vsel %vm416_vm0, %v13029_v3, 0.0  ;;  %v7044_v50 = vmul.f32 0.03125, %v7008_v18  ;;  %9108 = vmatpush3.bf16.msra.mxu0 %v9403_v4 }
0x24b7   : > { %7028 = vadd.xlane.f32.xlu0 %v7027_v5  ;;  %v7036_v19 = vsel %vm416_vm0, %v13050_v27, 0.0  ;;  %9109 = vmatprep.subr.bf16.mxu0 %v9404_v2 }
0x24b8   : > { %v7030_v37 = vsel %vm416_vm0, %v13042_v35, 0.0  ;;  %v13075_v14 = vsub.f32 %v12986_v54, %v7044_v50 }
0x24b9   : > { %7031 = vadd.xlane.f32.xlu1 %v7030_v37 }
0x24ba   : > { %v7076_v44 = vmul.f32 %v13075_v14, %v13075_v14  ;;  %9110 = vmatpush3.bf16.msra.mxu0 %v9404_v2 }
0x24bb   : > { %7034 = vadd.xlane.f32.xlu0 %v7033_v63 }
0x24bc   : > { %v7102_v36 = vsel %vm416_vm0, %v7076_v44, 0.0 }
0x24bd   : > { %7037 = vadd.xlane.f32.xlu1 %v7036_v19 }
0x24bf   : > { %7088 = vadd.xlane.f32.xlu0 %v7087_v16 }
0x24c1   : > { %7091 = vadd.xlane.f32.xlu1 %v7090_v7 }
0x24c3   : > { %7094 = vadd.xlane.f32.xlu0 %v7093_v41 }
0x24c5   : > { %7097 = vadd.xlane.f32.xlu1 %v7096_v51 }
0x24c7   : > { %7100 = vadd.xlane.f32.xlu0 %v7099_v15 }
0x24c9   : > { %7103 = vadd.xlane.f32.xlu1 %v7102_v36 }
0x24cb   : > { %7106 = vadd.xlane.f32.xlu0 %v7105_v12 }
0x24cd   : > { %7109 = vadd.xlane.f32.xlu1 %v7108_v56 }
0x253c   : > { %v7017_v33 = vpop.xlane.xlu0 %7016 }
0x253d   : > { %v7047_v8 = vmul.f32 0.03125, %v7017_v33 }
0x253e   : > { %v7020_v30 = vpop.xlane.xlu1 %7019 }
0x253f   : > { %v13107_v60 = vsub.f32 %v13007_v57, %v7047_v8  ;;  %v7048_v0 = vmul.f32 0.03125, %v7020_v30 }
0x2540   : > { %v7023_v61 = vpop.xlane.xlu0 %7022 }
0x2541   : > { %v13110_v9 = vsub.f32 %v13015_v34, %v7048_v0  ;;  %v7049_v25 = vmul.f32 0.03125, %v7023_v61  ;;  %v7079_v23 = vmul.f32 %v13107_v60, %v13107_v60 }
0x2542   : > { %v7026_v48 = vpop.xlane.xlu1 %7025 }
0x2543   : > { %v13115_v5 = vsub.f32 %v13012_v22, %v7049_v25  ;;  %v7050_v18 = vmul.f32 0.03125, %v7026_v48  ;;  %v7111_v49 = vsel %vm416_vm0, %v7079_v23, 0.0  ;;  %v7080_v37 = vmul.f32 %v13110_v9, %v13110_v9 }
0x2544   : > { %7112 = vadd.xlane.f32.xlu0 %v7111_v49  ;;  %v7029_v55 = vpop.xlane.xlu0 %7028 }
0x2545   : > { %v13121_v63 = vsub.f32 %v13020_v58, %v7050_v18  ;;  %v7051_v52 = vmul.f32 0.03125, %v7029_v55  ;;  %v7114_v46 = vsel %vm416_vm0, %v7080_v37, 0.0  ;;  %v7081_v50 = vmul.f32 %v13115_v5, %v13115_v5 }
0x2546   : > { %v7032_v19 = vpop.xlane.xlu1 %7031  ;;  %7115 = vadd.xlane.f32.xlu1 %v7114_v46 }
0x2547   : > { %v13127_v21 = vsub.f32 %v13029_v3, %v7051_v52  ;;  %v7052_v32 = vmul.f32 0.03125, %v7032_v19  ;;  %v7117_v53 = vsel %vm416_vm0, %v7081_v50, 0.0  ;;  %v7082_v16 = vmul.f32 %v13121_v63, %v13121_v63 }
0x2548   : > { %7118 = vadd.xlane.f32.xlu0 %v7117_v53  ;;  %v7035_v45 = vpop.xlane.xlu0 %7034 }
0x2549   : > { %v13133_v1 = vsub.f32 %v13042_v35, %v7052_v32  ;;  %v7053_v7 = vmul.f32 0.03125, %v7035_v45  ;;  %v7120_v6 = vsel %vm416_vm0, %v7082_v16, 0.0  ;;  %v7083_v41 = vmul.f32 %v13127_v21, %v13127_v21 }
0x254a   : > { %v7038_v29 = vpop.xlane.xlu1 %7037  ;;  %7121 = vadd.xlane.f32.xlu1 %v7120_v6 }
0x254b   : > { %v13139_v51 = vsub.f32 %v13039_v43, %v7053_v7  ;;  %v7054_v44 = vmul.f32 0.03125, %v7038_v29  ;;  %v7123_v15 = vsel %vm416_vm0, %v7083_v41, 0.0  ;;  %v7084_v39 = vmul.f32 %v13133_v1, %v13133_v1  ;;  %v13157_v41 = vld [vmem:[%s13372_s1 + $0x6] ss:$0 sm:$0xff] }
0x254c   : > { %7124 = vadd.xlane.f32.xlu0 %v7123_v15  ;;  %v7089_v36 = vpop.xlane.xlu0 %7088 }
0x254d   : > { %v13145_v28 = vsub.f32 %v13050_v27, %v7054_v44  ;;  %v7135_v12 = vmul.f32 0.03125, %v7089_v36  ;;  %v7126_v56 = vsel %vm416_vm0, %v7084_v39, 0.0  ;;  %v7085_v4 = vmul.f32 %v13139_v51, %v13139_v51 }
0x254e   : > { %v7092_v2 = vpop.xlane.xlu1 %7091  ;;  %7127 = vadd.xlane.f32.xlu1 %v7126_v56 }
0x254f   : > { %v7151_v33 = vadd.f32 1e-06, %v7135_v12  ;;  %v7136_v8 = vmul.f32 0.03125, %v7092_v2  ;;  %v7129_v30 = vsel %vm416_vm0, %v7085_v4, 0.0  ;;  %v7086_v0 = vmul.f32 %v13145_v28, %v13145_v28  ;;  %v13165_v2 = vld [vmem:[%s13372_s1 + $0x7] ss:$0 sm:$0xff] }
0x2550   : > { %7130 = vadd.xlane.f32.xlu0 %v7129_v30  ;;  %v7095_v61 = vpop.xlane.xlu0 %7094 }
0x2551   : > { %9989 = vrsqrt.f32 %v7151_v33  ;;  %v7152_v25 = vadd.f32 1e-06, %v7136_v8  ;;  %v7137_v23 = vmul.f32 0.03125, %v7095_v61  ;;  %v7132_v48 = vsel %vm416_vm0, %v7086_v0, 0.0 }
0x2552   : > { %7133 = vadd.xlane.f32.xlu1 %v7132_v48  ;;  %v7098_v18 = vpop.xlane.xlu1 %7097 }
0x2553   : > { %9991 = vrsqrt.f32 %v7152_v25  ;;  %v7153_v49 = vadd.f32 1e-06, %v7137_v23  ;;  %v7138_v37 = vmul.f32 0.03125, %v7098_v18 }
0x2554   : > { %v7101_v55 = vpop.xlane.xlu0 %7100 }
0x2555   : > { %9993 = vrsqrt.f32 %v7153_v49  ;;  %v7154_v52 = vadd.f32 1e-06, %v7138_v37  ;;  %v7139_v46 = vmul.f32 0.03125, %v7101_v55 }
0x2556   : > { %v7104_v50 = vpop.xlane.xlu1 %7103 }
0x2557   : > { %9995 = vrsqrt.f32 %v7154_v52  ;;  %v7155_v19 = vadd.f32 1e-06, %v7139_v46  ;;  %v7140_v32 = vmul.f32 0.03125, %v7104_v50 }
0x2558   : > { %v7107_v53 = vpop.xlane.xlu0 %7106 }
0x2559   : > { %9997 = vrsqrt.f32 %v7155_v19  ;;  %v7156_v16 = vadd.f32 1e-06, %v7140_v32  ;;  %v7141_v45 = vmul.f32 0.03125, %v7107_v53 }
0x255a   : > { %v7110_v7 = vpop.xlane.xlu1 %7109 }
0x255b   : > { %v9990_v6 = vpop.eup %9989  ;;  %9999 = vrsqrt.f32 %v7156_v16  ;;  %v7157_v29 = vadd.f32 1e-06, %v7141_v45  ;;  %v7142_v44 = vmul.f32 0.03125, %v7110_v7 }
0x255c   : > { %v7183_v15 = vmul.f32 %v9990_v6, %v13036_v11 }
0x255d   : > { %v9992_v39 = vpop.eup %9991  ;;  %10001 = vrsqrt.f32 %v7157_v29  ;;  %v7158_v36 = vadd.f32 1e-06, %v7142_v44  ;;  %v9406_v44 = vld [vmem:[%s13375_s4 + $0x8] sm:$0xff]  }
0x255e   : > { %v7184_v12 = vmul.f32 %v9992_v39, %v13047_v24  ;;  %v7203_v56 = vmul.f32 %v13157_v41, %v7183_v15  ;;  %v9407_v15 = vld [vmem:[%s13375_s4 + $0x10] sm:$0xff]   ;;  %v9408_v39 = vld [vmem:[%s13375_s4 + $0x18] sm:$0xff]  }
0x255f   : > { %v9994_v4 = vpop.eup %9993  ;;  %10003 = vrsqrt.f32 %v7158_v36  ;;  %v9409_v36 = vld [vmem:[%s13375_s4 + $0x20] sm:$0xff]  }
0x2560   : > { %v7185_v33 = vmul.f32 %v9994_v4, %v13055_v42  ;;  %v7204_v8 = vmul.f32 %v13157_v41, %v7184_v12  ;;  %v7223_v24 = vadd.f32 %v13165_v2, %v7203_v56  ;;  %v9410_v12 = vld [vmem:[%s13375_s4 + $0x28] sm:$0xff]   ;;  %v9411_v56 = vld [vmem:[%s13375_s4 + $0x30] sm:$0xff]  }
0x2561   : > { %v9996_v30 = vpop.eup %9995 }
0x2562   : > { %v7205_v11 = vmul.f32 %v13157_v41, %v7185_v33  ;;  %v7186_v0 = vmul.f32 %v9996_v30, %v13062_v31  ;;  %v7224_v61 = vadd.f32 %v13165_v2, %v7204_v8  ;;  %v9412_v30 = vld [vmem:[%s13375_s4 + $0x38] sm:$0xff]  }
0x2563   : > { %v9998_v25 = vpop.eup %9997 }
0x2564   : > { %v7206_v23 = vmul.f32 %v13157_v41, %v7186_v0  ;;  %v7187_v48 = vmul.f32 %v9998_v25, %v13069_v17  ;;  %v7239_v18 = vpack.c.bf16 %v7224_v61, %v7223_v24  ;;  %v7225_v42 = vadd.f32 %v13165_v2, %v7205_v11 }
0x2565   : > { %v10000_v49 = vpop.eup %9999 }
0x2566   : > { %v7226_v37 = vadd.f32 %v13165_v2, %v7206_v23  ;;  %v7188_v55 = vmul.f32 %v10000_v49, %v13075_v14  ;;  %9111 = vmatprep.mubr.msk.bf16.mxu0 %vm416_vm0, %v7239_v18  ;;  %v7207_v31 = vmul.f32 %v13157_v41, %v7187_v48 }
0x2567   : > { %v10002_v52 = vpop.eup %10001 }
0x2568   : > { %v7189_v46 = vmul.f32 %v10002_v52, %v13081_v47  ;;  %v7240_v50 = vpack.c.bf16 %v7226_v37, %v7225_v42  ;;  %v7208_v19 = vmul.f32 %v13157_v41, %v7188_v55  ;;  %v7227_v53 = vadd.f32 %v13165_v2, %v7207_v31 }
0x2569   : > { %v10004_v32 = vpop.eup %10003 }
0x256a   : > { %v7190_v17 = vmul.f32 %v10004_v32, %v13087_v20  ;;  %9112 = vmatmul.mubr.msk.bf16.vlgmr.msra.gmra.mrb[152].mxu0 %vm416_vm0, %v7240_v50  ;;  %v7228_v16 = vadd.f32 %v13165_v2, %v7208_v19  ;;  %v7209_v14 = vmul.f32 %v13157_v41, %v7189_v46  ;;  %v9405_v20 = vld [vmem:[%s13375_s4] sm:$0xff]  }
0x256b   : > { %9127 = vmatprep.subr.bf16.mxu1 %v9405_v20 }
0x256c   : > { %v7241_v45 = vpack.c.bf16 %v7228_v16, %v7227_v53  ;;  %v7210_v7 = vmul.f32 %v13157_v41, %v7190_v17  ;;  %v7229_v47 = vadd.f32 %v13165_v2, %v7209_v14  ;;  %9128 = vmatpush3.bf16.msra.mxu1 %v9405_v20 }
0x256d   : > { %9129 = vmatprep.subr.bf16.mxu1 %v9406_v44 }
0x256e   : > { %9115 = vmatprep.mubr.msk.bf16.mxu0 %vm416_vm0, %v7241_v45  ;;  %v7230_v6 = vadd.f32 %v13165_v2, %v7210_v7 }
0x2570   : > { %v7242_v29 = vpack.c.bf16 %v7230_v6, %v7229_v47  ;;  %9130 = vmatpush3.bf16.msra.mxu1 %v9406_v44 }
0x2571   : > { %9131 = vmatprep.subr.bf16.mxu1 %v9407_v15 }
0x2572   : > { %9116 = vmatmul.mubr.msk.bf16.gmra.mrb[156].mxu0 %vm416_vm0, %v7242_v29 }
0x2574   : > { %9132 = vmatpush3.bf16.msra.mxu1 %v9407_v15 }
0x2575   : > { %9133 = vmatprep.subr.bf16.mxu1 %v9408_v39 }
0x2578   : > { %9134 = vmatpush3.bf16.msra.mxu1 %v9408_v39 }
0x2579   : > { %9135 = vmatprep.subr.bf16.mxu1 %v9409_v36 }
0x257c   : > { %9136 = vmatpush3.bf16.msra.mxu1 %v9409_v36 }
0x257d   : > { %9137 = vmatprep.subr.bf16.mxu1 %v9410_v12 }
0x2580   : > { %9138 = vmatpush3.bf16.msra.mxu1 %v9410_v12 }
0x2581   : > { %9139 = vmatprep.subr.bf16.mxu1 %v9411_v56 }
0x2584   : > { %9140 = vmatpush3.bf16.msra.mxu1 %v9411_v56 }
0x2585   : > { %9141 = vmatprep.subr.bf16.mxu1 %v9412_v30 }
0x2588   : > { %9142 = vmatpush3.bf16.msra.mxu1 %v9412_v30 }
0x25d1   : > { %v7113_v4 = vpop.xlane.xlu0 %7112 }
0x25d2   : > { %v7143_v33 = vmul.f32 0.03125, %v7113_v4 }
0x25d3   : > { %v7116_v8 = vpop.xlane.xlu1 %7115 }
0x25d4   : > { %v7159_v11 = vadd.f32 1e-06, %v7143_v33  ;;  %v7144_v0 = vmul.f32 0.03125, %v7116_v8 }
0x25d5   : > { %v7119_v24 = vpop.xlane.xlu0 %7118 }
0x25d6   : > { %10005 = vrsqrt.f32 %v7159_v11  ;;  %v7160_v61 = vadd.f32 1e-06, %v7144_v0  ;;  %v7145_v25 = vmul.f32 0.03125, %v7119_v24 }
0x25d7   : > { %v7122_v23 = vpop.xlane.xlu1 %7121 }
0x25d8   : > { %10007 = vrsqrt.f32 %v7160_v61  ;;  %v7161_v48 = vadd.f32 1e-06, %v7145_v25  ;;  %v7146_v18 = vmul.f32 0.03125, %v7122_v23 }
0x25d9   : > { %v7125_v49 = vpop.xlane.xlu0 %7124 }
0x25da   : > { %10009 = vrsqrt.f32 %v7161_v48  ;;  %v7162_v42 = vadd.f32 1e-06, %v7146_v18  ;;  %v7147_v37 = vmul.f32 0.03125, %v7125_v49 }
0x25db   : > { %v7128_v55 = vpop.xlane.xlu1 %7127 }
0x25dc   : > { %10011 = vrsqrt.f32 %v7162_v42  ;;  %v7163_v31 = vadd.f32 1e-06, %v7147_v37  ;;  %v7148_v52 = vmul.f32 0.03125, %v7128_v55 }
0x25dd   : > { %v7131_v46 = vpop.xlane.xlu0 %7130 }
0x25de   : > { %10013 = vrsqrt.f32 %v7163_v31  ;;  %v7164_v50 = vadd.f32 1e-06, %v7148_v52  ;;  %v7149_v19 = vmul.f32 0.03125, %v7131_v46 }
0x25df   : > { %v7134_v32 = vpop.xlane.xlu1 %7133 }
0x25e0   : > { %v10006_v17 = vpop.eup %10005  ;;  %10015 = vrsqrt.f32 %v7164_v50  ;;  %v7165_v53 = vadd.f32 1e-06, %v7149_v19  ;;  %v7150_v16 = vmul.f32 0.03125, %v7134_v32 }
0x25e1   : > { %v7191_v14 = vmul.f32 %v10006_v17, %v13107_v60 }
0x25e2   : > { %v10008_v45 = vpop.eup %10007  ;;  %10017 = vrsqrt.f32 %v7165_v53  ;;  %v7166_v7 = vadd.f32 1e-06, %v7150_v16 }
0x25e3   : > { %v7192_v47 = vmul.f32 %v10008_v45, %v13110_v9  ;;  %v7211_v6 = vmul.f32 %v13157_v41, %v7191_v14 }
0x25e4   : > { %v10010_v29 = vpop.eup %10009  ;;  %10019 = vrsqrt.f32 %v7166_v7 }
0x25e5   : > { %v7193_v20 = vmul.f32 %v10010_v29, %v13115_v5  ;;  %v7212_v44 = vmul.f32 %v13157_v41, %v7192_v47  ;;  %v7231_v36 = vadd.f32 %v13165_v2, %v7211_v6 }
0x25e6   : > { %v10012_v15 = vpop.eup %10011 }
0x25e7   : > { %v7194_v39 = vmul.f32 %v10012_v15, %v13121_v63  ;;  %v7232_v60 = vadd.f32 %v13165_v2, %v7212_v44  ;;  %v7213_v12 = vmul.f32 %v13157_v41, %v7193_v20 }
0x25e8   : > { %v10014_v56 = vpop.eup %10013 }
0x25e9   : > { %v7195_v9 = vmul.f32 %v10014_v56, %v13127_v21  ;;  %v7243_v4 = vpack.c.bf16 %v7232_v60, %v7231_v36  ;;  %v7214_v33 = vmul.f32 %v13157_v41, %v7194_v39  ;;  %v7233_v30 = vadd.f32 %v13165_v2, %v7213_v12 }
0x25ea   : > { %v10016_v8 = vpop.eup %10015 }
0x25eb   : > { %v7196_v5 = vmul.f32 %v10016_v8, %v13133_v1  ;;  %9119 = vmatprep.mubr.msk.bf16.mxu0 %vm416_vm0, %v7243_v4  ;;  %v7234_v63 = vadd.f32 %v13165_v2, %v7214_v33  ;;  %v7215_v11 = vmul.f32 %v13157_v41, %v7195_v9 }
0x25ec   : > { %v10018_v0 = vpop.eup %10017 }
0x25ed   : > { %v7197_v24 = vmul.f32 %v10018_v0, %v13139_v51  ;;  %v7244_v61 = vpack.c.bf16 %v7234_v63, %v7233_v30  ;;  %v7216_v21 = vmul.f32 %v13157_v41, %v7196_v5  ;;  %v7235_v1 = vadd.f32 %v13165_v2, %v7215_v11 }
0x25ee   : > { %v10020_v25 = vpop.eup %10019 }
0x25ef   : > { %v7198_v23 = vmul.f32 %v10020_v25, %v13145_v28  ;;  %9120 = vmatmul.mubr.msk.bf16.gmra.mrb[160].mxu0 %vm416_vm0, %v7244_v61  ;;  %v7236_v48 = vadd.f32 %v13165_v2, %v7216_v21  ;;  %v7217_v18 = vmul.f32 %v13157_v41, %v7197_v24  ;;  %v13247_v28 = vld [vmem:[%s13373_s2] ss:$0 sm:$0xff] }
0x25f1   : > { %v7245_v49 = vpack.c.bf16 %v7236_v48, %v7235_v1  ;;  %v7218_v42 = vmul.f32 %v13157_v41, %v7198_v23  ;;  %v7237_v51 = vadd.f32 %v13165_v2, %v7217_v18 }
0x25f3   : > { %9123 = vmatprep.mubr.msk.bf16.mxu0 %vm416_vm0, %v7245_v49  ;;  %v7238_v37 = vadd.f32 %v13165_v2, %v7218_v42 }
0x25f5   : > { %v7246_v55 = vpack.c.bf16 %v7238_v37, %v7237_v51 }
0x25f7   : > { %9124 = vmatmul.mubr.msk.bf16.gmra.mrb[164].mxu0 %vm416_vm0, %v7246_v55 }
0x263d   : > { %v9113_v31 = vpop.f32.mrb[152].mxu0 }
0x263e   : > { %v7333_v52 = vadd.f32 %v9113_v31, %v13247_v28  ;;  %v7324_v46 = vpop.f32.mrb[153].mxu0 }
0x263f   : > { %v7325_v41 = vadd.f32 %v13247_v28, %v7324_v46  ;;  %v9114_v50 = vpop.f32.mrb[154].mxu0 }
0x2640   : > { %v7405_v19 = vmul.f32 0.70710677, %v7333_v52  ;;  %v7336_v32 = vadd.f32 %v9114_v50, %v13247_v28  ;;  %v7327_v17 = vpop.f32.mrb[155].mxu0  ;;  %v7389_v30 = vmul.f32 0.5, %v7333_v52 }
0x2641   : > { %v7403_v2 = vmul.f32 0.70710677, %v7325_v41  ;;  %v7328_v53 = vadd.f32 %v13247_v28, %v7327_v17  ;;  %v7387_v0 = vmul.f32 0.5, %v7325_v41 }
0x2642   : > { %10021 = verf.f32 %v7405_v19  ;;  %v7406_v16 = vmul.f32 0.70710677, %v7336_v32  ;;  %v7390_v63 = vmul.f32 0.5, %v7336_v32 }
0x2643   : > { %10023 = verf.f32 %v7403_v2  ;;  %v7404_v14 = vmul.f32 0.70710677, %v7328_v53  ;;  %v7388_v24 = vmul.f32 0.5, %v7328_v53 }
0x2644   : > { %10025 = verf.f32 %v7406_v16 }
0x2645   : > { %10027 = verf.f32 %v7404_v14  ;;  %v9117_v45 = vpop.f32.mrb[156].mxu0 }
0x2646   : > { %v7349_v7 = vadd.f32 %v9117_v45, %v13247_v28  ;;  %v7340_v47 = vpop.f32.mrb[157].mxu0 }
0x2647   : > { %v7341_v6 = vadd.f32 %v13247_v28, %v7340_v47  ;;  %v9118_v29 = vpop.f32.mrb[158].mxu0 }
0x2648   : > { %v7409_v20 = vmul.f32 0.70710677, %v7349_v7  ;;  %v7352_v44 = vadd.f32 %v9118_v29, %v13247_v28  ;;  %v7343_v15 = vpop.f32.mrb[159].mxu0  ;;  %v7393_v46 = vmul.f32 0.5, %v7349_v7 }
0x2649   : > { %v7407_v39 = vmul.f32 0.70710677, %v7341_v6  ;;  %v7344_v36 = vadd.f32 %v13247_v28, %v7343_v15  ;;  %v7391_v41 = vmul.f32 0.5, %v7341_v6 }
0x264a   : > { %10029 = verf.f32 %v7409_v20  ;;  %v7410_v60 = vmul.f32 0.70710677, %v7352_v44  ;;  %v7394_v52 = vmul.f32 0.5, %v7352_v44 }
0x264b   : > { %10031 = verf.f32 %v7407_v39  ;;  %v7408_v12 = vmul.f32 0.70710677, %v7344_v36  ;;  %v7392_v19 = vmul.f32 0.5, %v7344_v36 }
0x264c   : > { %v10022_v56 = vpop.eup %10021  ;;  %10033 = verf.f32 %v7410_v60 }
0x264d   : > { %v10024_v9 = vpop.eup %10023  ;;  %v7437_v4 = vadd.f32 1.0, %v10022_v56  ;;  %10035 = verf.f32 %v7408_v12 }
0x264e   : > { %v10026_v33 = vpop.eup %10025  ;;  %v7435_v8 = vadd.f32 1.0, %v10024_v9 }
0x264f   : > { %v10028_v5 = vpop.eup %10027  ;;  %v7438_v11 = vadd.f32 1.0, %v10026_v33  ;;  %v7453_v21 = vmul.f32 %v7437_v4, %v7389_v30 }
0x2650   : > { %v7436_v61 = vadd.f32 1.0, %v10028_v5  ;;  %v7451_v23 = vmul.f32 %v7435_v8, %v7387_v0 }
0x2651   : > { %v7454_v25 = vmul.f32 %v7438_v11, %v7390_v63 }
0x2652   : > { %v7452_v1 = vmul.f32 %v7436_v61, %v7388_v24 }
0x2653   : > { %v7468_v48 = vpack.c.bf16 %v7454_v25, %v7453_v21 }
0x2654   : > { %v10030_v18 = vpop.eup %10029  ;;  %v7467_v49 = vpack.c.bf16 %v7452_v1, %v7451_v23 }
0x2655   : > { %v10032_v42 = vpop.eup %10031  ;;  %v7441_v51 = vadd.f32 1.0, %v10030_v18 }
0x2656   : > { %v10034_v37 = vpop.eup %10033  ;;  %v7439_v55 = vadd.f32 1.0, %v10032_v42  ;;  %9143 = vmatprep.mubr.bf16.mxu1 %v7467_v49 }
0x2657   : > { %v10036_v31 = vpop.eup %10035  ;;  %v7442_v50 = vadd.f32 1.0, %v10034_v37  ;;  %9144 = vmatmul.mubr.bf16.vlgmr.msra.gmra.mrb[168].mxu1 %v7468_v48  ;;  %v7457_v17 = vmul.f32 %v7441_v51, %v7393_v46 }
0x2658   : > { %v7440_v32 = vadd.f32 1.0, %v10036_v31  ;;  %v7455_v53 = vmul.f32 %v7439_v55, %v7391_v41 }
0x2659   : > { %v7458_v2 = vmul.f32 %v7442_v50, %v7394_v52 }
0x265a   : > { %v7456_v16 = vmul.f32 %v7440_v32, %v7392_v19 }
0x265b   : > { %v7470_v14 = vpack.c.bf16 %v7458_v2, %v7457_v17 }
0x265c   : > { %v7469_v45 = vpack.c.bf16 %v7456_v16, %v7455_v53 }
0x265e   : > { %9147 = vmatprep.mubr.bf16.mxu1 %v7469_v45 }
0x265f   : > { %9148 = vmatmul.mubr.bf16.gmra.mrb[172].mxu1 %v7470_v14 }
0x26c2   : > { %v9121_v47 = vpop.f32.mrb[160].mxu0 }
0x26c3   : > { %v7365_v29 = vadd.f32 %v9121_v47, %v13247_v28  ;;  %v7356_v20 = vpop.f32.mrb[161].mxu0 }
0x26c4   : > { %v7357_v7 = vadd.f32 %v13247_v28, %v7356_v20  ;;  %v9122_v44 = vpop.f32.mrb[162].mxu0 }
0x26c5   : > { %v7413_v15 = vmul.f32 0.70710677, %v7365_v29  ;;  %v7368_v6 = vadd.f32 %v9122_v44, %v13247_v28  ;;  %v7359_v39 = vpop.f32.mrb[163].mxu0  ;;  %v7397_v42 = vmul.f32 0.5, %v7365_v29 }
0x26c6   : > { %v7411_v36 = vmul.f32 0.70710677, %v7357_v7  ;;  %v7360_v60 = vadd.f32 %v13247_v28, %v7359_v39  ;;  %v7395_v55 = vmul.f32 0.5, %v7357_v7 }
0x26c7   : > { %10037 = verf.f32 %v7413_v15  ;;  %v7414_v12 = vmul.f32 0.70710677, %v7368_v6  ;;  %v7398_v51 = vmul.f32 0.5, %v7368_v6 }
0x26c8   : > { %10039 = verf.f32 %v7411_v36  ;;  %v7412_v56 = vmul.f32 0.70710677, %v7360_v60  ;;  %v7396_v31 = vmul.f32 0.5, %v7360_v60 }
0x26c9   : > { %10041 = verf.f32 %v7414_v12 }
0x26ca   : > { %10043 = verf.f32 %v7412_v56  ;;  %v9125_v9 = vpop.f32.mrb[164].mxu0 }
0x26cb   : > { %v7381_v4 = vadd.f32 %v9125_v9, %v13247_v28  ;;  %v7372_v33 = vpop.f32.mrb[165].mxu0  ;;  %v8021_v9 = vld [vmem:[%s13372_s1 + $0x8] ss:$0 sm:$0xff] }
0x26cc   : > { %v7373_v8 = vadd.f32 %v13247_v28, %v7372_v33  ;;  %v9126_v5 = vpop.f32.mrb[166].mxu0 }
0x26cd   : > { %v7417_v30 = vmul.f32 0.70710677, %v7381_v4  ;;  %v7384_v63 = vadd.f32 %v9126_v5, %v13247_v28  ;;  %v7375_v11 = vpop.f32.mrb[167].mxu0  ;;  %v7401_v47 = vmul.f32 0.5, %v7381_v4 }
0x26ce   : > { %v7415_v0 = vmul.f32 0.70710677, %v7373_v8  ;;  %v7376_v24 = vadd.f32 %v13247_v28, %v7375_v11  ;;  %v7399_v7 = vmul.f32 0.5, %v7373_v8 }
0x26cf   : > { %10045 = verf.f32 %v7417_v30  ;;  %v7418_v61 = vmul.f32 0.70710677, %v7384_v63  ;;  %v7402_v29 = vmul.f32 0.5, %v7384_v63 }
0x26d0   : > { %10047 = verf.f32 %v7415_v0  ;;  %v7416_v21 = vmul.f32 0.70710677, %v7376_v24  ;;  %v7400_v44 = vmul.f32 0.5, %v7376_v24 }
0x26d1   : > { %v10038_v25 = vpop.eup %10037  ;;  %10049 = verf.f32 %v7418_v61 }
0x26d2   : > { %v10040_v23 = vpop.eup %10039  ;;  %v7445_v1 = vadd.f32 1.0, %v10038_v25  ;;  %10051 = verf.f32 %v7416_v21 }
0x26d3   : > { %v10042_v48 = vpop.eup %10041  ;;  %v7443_v18 = vadd.f32 1.0, %v10040_v23 }
0x26d4   : > { %v10044_v49 = vpop.eup %10043  ;;  %v7446_v37 = vadd.f32 1.0, %v10042_v48  ;;  %v7461_v52 = vmul.f32 %v7445_v1, %v7397_v42 }
0x26d5   : > { %v7444_v46 = vadd.f32 1.0, %v10044_v49  ;;  %v7459_v50 = vmul.f32 %v7443_v18, %v7395_v55 }
0x26d6   : > { %v7462_v28 = vmul.f32 %v7446_v37, %v7398_v51 }
0x26d7   : > { %v7460_v41 = vmul.f32 %v7444_v46, %v7396_v31 }
0x26d8   : > { %v7472_v19 = vpack.c.bf16 %v7462_v28, %v7461_v52 }
0x26d9   : > { %v10046_v32 = vpop.eup %10045  ;;  %v7471_v17 = vpack.c.bf16 %v7460_v41, %v7459_v50 }
0x26da   : > { %v10048_v2 = vpop.eup %10047  ;;  %v7449_v53 = vadd.f32 1.0, %v10046_v32 }
0x26db   : > { %v10050_v16 = vpop.eup %10049  ;;  %v7447_v14 = vadd.f32 1.0, %v10048_v2  ;;  %9151 = vmatprep.mubr.bf16.mxu1 %v7471_v17 }
0x26dc   : > { %v10052_v45 = vpop.eup %10051  ;;  %v7450_v20 = vadd.f32 1.0, %v10050_v16  ;;  %9152 = vmatmul.mubr.bf16.gmra.mrb[176].mxu1 %v7472_v19  ;;  %v7465_v6 = vmul.f32 %v7449_v53, %v7401_v47 }
0x26dd   : > { %v7448_v15 = vadd.f32 1.0, %v10052_v45  ;;  %v7463_v36 = vmul.f32 %v7447_v14, %v7399_v7 }
0x26de   : > { %v7466_v39 = vmul.f32 %v7450_v20, %v7402_v29 }
0x26df   : > { %v7464_v60 = vmul.f32 %v7448_v15, %v7400_v44 }
0x26e0   : > { %v7474_v12 = vpack.c.bf16 %v7466_v39, %v7465_v6 }
0x26e1   : > { %v7473_v56 = vpack.c.bf16 %v7464_v60, %v7463_v36 }
0x26e3   : > { %9155 = vmatprep.mubr.bf16.mxu1 %v7473_v56 }
0x26e4   : > { %9156 = vmatmul.mubr.bf16.gmra.mrb[180].mxu1 %v7474_v12 }
0x272a   : > { %v9145_v4 = vpop.f32.mrb[168].mxu1 }
0x272b   : > { %v7586_v33 = vadd.f32 %v9145_v4, %v8021_v9  ;;  %v7577_v5 = vpop.f32.mrb[169].mxu1 }
0x272c   : > { %v7578_v30 = vadd.f32 %v8021_v9, %v7577_v5  ;;  %v9146_v8 = vpop.f32.mrb[170].mxu1 }
0x272d   : > { %v7642_v63 = vadd.f32 %v7586_v33, %v12963_v10  ;;  %v7589_v11 = vadd.f32 %v9146_v8, %v8021_v9  ;;  %v7580_v0 = vpop.f32.mrb[171].mxu1 }
0x272e   : > { %v7640_v24 = vadd.f32 %v7578_v30, %v12959_v38  ;;  %v7581_v61 = vadd.f32 %v8021_v9, %v7580_v0 }
0x272f   : > { %7658 = vst.msk [vmem:[%s13272_s9 + $0x10] sm:$0xff] %vm416_vm0, %v7642_v63  ;;  %v7643_v21 = vadd.f32 %v7589_v11, %v12974_v13 }
0x2730   : > { %7656 = vst.msk [vmem:[%s13272_s9] sm:$0xff] %vm416_vm0, %v7640_v24  ;;  %v7641_v10 = vadd.f32 %v7581_v61, %v12967_v26 }
0x2731   : > { %7659 = vst.msk [vmem:[%s13272_s9 + $0x18] sm:$0xff] %vm416_vm0, %v7643_v21 }
0x2732   : > { %7657 = vst.msk [vmem:[%s13272_s9 + $0x8] sm:$0xff] %vm416_vm0, %v7641_v10  ;;  %v9149_v38 = vpop.f32.mrb[172].mxu1 }
0x2733   : > { %v7602_v25 = vadd.f32 %v9149_v38, %v8021_v9  ;;  %v7593_v23 = vpop.f32.mrb[173].mxu1 }
0x2734   : > { %v7594_v1 = vadd.f32 %v8021_v9, %v7593_v23  ;;  %v9150_v48 = vpop.f32.mrb[174].mxu1 }
0x2735   : > { %v7646_v18 = vadd.f32 %v7602_v25, %v12996_v40  ;;  %v7605_v49 = vadd.f32 %v9150_v48, %v8021_v9  ;;  %v7596_v13 = vpop.f32.mrb[175].mxu1 }
0x2736   : > { %v7644_v42 = vadd.f32 %v7594_v1, %v12983_v62  ;;  %v7597_v51 = vadd.f32 %v8021_v9, %v7596_v13 }
0x2737   : > { %7662 = vst.msk [vmem:[%s13272_s9 + $0x30] sm:$0xff] %vm416_vm0, %v7646_v18  ;;  %v7647_v26 = vadd.f32 %v7605_v49, %v12991_v59 }
0x2738   : > { %7660 = vst.msk [vmem:[%s13272_s9 + $0x20] sm:$0xff] %vm416_vm0, %v7644_v42  ;;  %v7645_v37 = vadd.f32 %v7597_v51, %v12986_v54 }
0x2739   : > { %7663 = vst.msk [vmem:[%s13272_s9 + $0x38] sm:$0xff] %vm416_vm0, %v7647_v26 }
0x273a   : > { %7661 = vst.msk [vmem:[%s13272_s9 + $0x28] sm:$0xff] %vm416_vm0, %v7645_v37 }
0x27af   : > { %v9153_v40 = vpop.f32.mrb[176].mxu1 }
0x27b0   : > { %v7618_v55 = vadd.f32 %v9153_v40, %v8021_v9  ;;  %v7609_v62 = vpop.f32.mrb[177].mxu1 }
0x27b1   : > { %v7610_v31 = vadd.f32 %v8021_v9, %v7609_v62  ;;  %v9154_v46 = vpop.f32.mrb[178].mxu1 }
0x27b2   : > { %v7650_v52 = vadd.f32 %v7618_v55, %v13012_v22  ;;  %v7621_v59 = vadd.f32 %v9154_v46, %v8021_v9  ;;  %v7612_v28 = vpop.f32.mrb[179].mxu1 }
0x27b3   : > { %v7648_v50 = vadd.f32 %v7610_v31, %v13007_v57  ;;  %v7613_v54 = vadd.f32 %v8021_v9, %v7612_v28 }
0x27b4   : > { %7666 = vst.msk [vmem:[%s13272_s9 + $0x50] sm:$0xff] %vm416_vm0, %v7650_v52  ;;  %v7651_v41 = vadd.f32 %v7621_v59, %v13020_v58 }
0x27b5   : > { %7664 = vst.msk [vmem:[%s13272_s9 + $0x40] sm:$0xff] %vm416_vm0, %v7648_v50  ;;  %v7649_v19 = vadd.f32 %v7613_v54, %v13015_v34 }
0x27b6   : > { %7667 = vst.msk [vmem:[%s13272_s9 + $0x58] sm:$0xff] %vm416_vm0, %v7651_v41 }
0x27b7   : > { %7665 = vst.msk [vmem:[%s13272_s9 + $0x48] sm:$0xff] %vm416_vm0, %v7649_v19  ;;  %v9157_v22 = vpop.f32.mrb[180].mxu1 }
0x27b8   : > { %v7634_v32 = vadd.f32 %v9157_v22, %v8021_v9  ;;  %v7625_v17 = vpop.f32.mrb[181].mxu1 }
0x27b9   : > { %v7626_v57 = vadd.f32 %v8021_v9, %v7625_v17  ;;  %v9158_v2 = vpop.f32.mrb[182].mxu1 }
0x27ba   : > { %v7654_v58 = vadd.f32 %v7634_v32, %v13039_v43  ;;  %v7637_v53 = vadd.f32 %v9158_v2, %v8021_v9  ;;  %v7628_v34 = vpop.f32.mrb[183].mxu1 }
0x27bb   : > { %v7652_v16 = vadd.f32 %v7626_v57, %v13029_v3  ;;  %v7629_v14 = vadd.f32 %v8021_v9, %v7628_v34 }
0x27bc   : > { %7670 = vst.msk [vmem:[%s13272_s9 + $0x70] sm:$0xff] %vm416_vm0, %v7654_v58  ;;  %v7655_v45 = vadd.f32 %v7637_v53, %v13050_v27 }
0x27bd   : > { %7668 = vst.msk [vmem:[%s13272_s9 + $0x60] sm:$0xff] %vm416_vm0, %v7652_v16  ;;  %v7653_v43 = vadd.f32 %v7629_v14, %v13042_v35 }
0x27be   : > { %7671 = vst.msk [vmem:[%s13272_s9 + $0x78] sm:$0xff] %vm416_vm0, %v7655_v45 }
0x27bf   : > { %7669 = vst.msk [vmem:[%s13272_s9 + $0x68] sm:$0xff] %vm416_vm0, %v7653_v43 }
0x27c0   : > { %10120 = shalt.err (!%p10117_p2)
}
0x27c1   : > { %s10121_s8 = scalar_lea.hbm %s13318_s16, 2048  ;;  %s10125_s7 = scalar_lea.hbm %s13376_s5, 4096 }
0x27c2   : > { %p10122_p4 = scmp.ne.s32.totalorder %s13318_s16, %s10121_s8  ;;  %p10126_p9 = scmp.lt.u32.totalorder %s13318_s16, %s13376_s5 }
0x27c3   : > { %p10127_p1 = scmp.lt.u32.totalorder %s10125_s7, %s10121_s8  ;;  %p10129_p6 = scmp.lt.u32.totalorder %s10121_s8, %s13318_s16 }
0x27c4   : > { %p10123_p5 = pnand %p10122_p4, %p13480_p11 }
0x27c5   : > { %p10128_p3 = por %p10127_p1, %p10126_p9 }
0x27c6   : > { %p10124_p7 = pneg %p10123_p5 }
0x27c7   : > { %p10130_p12 = por %p10129_p6, %p10128_p3 }
0x27c9   : > { %p10131_p13 = pnand %p10130_p12, %p10124_p7 }
0x27cb   : > { %10134 = shalt.err (!%p10131_p13)
}
0x27cc   : > { %s10193_s26 = smov 128   ;;  %s10194_s12 = smov 8  }
0x27cd   : > { %9329 = dma.vmem_to_hbm [thread:$0]  (%p13480_p11), %s13320_s29, 2048, %s13318_s16, %s7673_s22, %s10193_s26, %s10193_s26, %s10194_s12  }
0x27ce PF: > { %s7701_s14 = sand.u32 1, %s10161_s18   ;;  %p13481_p8 = scmp.ne.s32.totalorder %s13413_s6, 0 }
0x27cf   : > { %p13482_p10 = scmp.ge.s32.totalorder %s10173_s21, 2  ;;  %s7702_s15 = scalar_lea.sflag [#allocation4], %s7701_s14 }
0x27d1   : > { %p9336_p0 = pnand %p13482_p10, %p13481_p8 }
0x27d3   : > { %10156 = dma.done.wait (!%p9336_p0), %s7702_s15, 2048  }
0x27d4   : > { %10158 = vsyncadd (!%p9336_p0), %s7702_s15, 4294965248  ;;  %p18_p2 = scmp.ge.s32.totalorder %s10250_s24, 4   ;;  %s13483_s18 = smov %s10165_s19 }
0x27d5   : > { %s13484_s19 = smov %s10169_s20  ;;  %s13485_s20 = smov %s10262_s27 }
0x27d6   : > { %s13486_s21 = smov %s10250_s24  ;;  %20 = sbr.rel (!%p18_p2) target bundleno = 5 (0x5), region = 85 }
0x27dd   :  { %7707 = vsyncpa [#allocation3], 1 }
0x27de   :  { %7709 = vsyncpa [#allocation3 + $0x1], 1 }
0x27df   :  { %7710 = vsyncpa [#allocation4], 1 }
0x27e0   :  { %7712 = vsyncpa [#allocation4 + $0x1], 1 }

</bundles_post_ra>
